<compile_context>
chip_gen: v7x
topology: tpu7x:2x2x1
jax: 0.10.0
libtpu: 0.0.40
codegen_flags: <defaults>
</compile_context>

<pallas_src>
import functools

import jax
import jax.numpy as jnp
from jax.experimental import pallas as pl
from jax.experimental.pallas import tpu as pltpu


# ----------------------------- in-kernel helpers ----------------------------

def _ln_rows(y, g, b):
    """Row-wise LayerNorm (f32) over the last dim."""
    mu = jnp.mean(y, axis=-1, keepdims=True)
    var = jnp.mean(jnp.square(y - mu), axis=-1, keepdims=True)
    return (y - mu) * jax.lax.rsqrt(var + 1e-5) * g + b


def _mha_core(q, k, v, nhead, causal):
    """q: (Sq, D) f32, k/v: (Sk, D) f32 -> (Sq, D) f32.

    All heads of one batch element are contracted with two batched einsums
    (no per-head slicing / concatenation). Q is pre-scaled (scale folded into
    the Q projection weights at init).
    """
    Sq, D = q.shape
    Sk = k.shape[0]
    Dh = D // nhead
    qh = q.reshape(Sq, nhead, Dh).astype(jnp.bfloat16)
    kh = k.reshape(Sk, nhead, Dh).astype(jnp.bfloat16)
    vh = v.reshape(Sk, nhead, Dh).astype(jnp.bfloat16)
    s = jnp.einsum('qhd,khd->hqk', qh, kh,
                   preferred_element_type=jnp.float32)            # (H, Sq, Sk)
    if causal:
        qi = jax.lax.broadcasted_iota(jnp.int32, s.shape, 1)
        ki = jax.lax.broadcasted_iota(jnp.int32, s.shape, 2)
        s = jnp.where(ki <= qi, s, jnp.float32(-1e30))
    s = s - jnp.max(s, axis=-1, keepdims=True)
    p = jnp.exp(s)
    p = p * pl.reciprocal(jnp.sum(p, axis=-1, keepdims=True), approx=True)
    # TODO(synk): at real LED seq lengths, switch to online-softmax (flash)
    # with a kv-tile grid axis instead of materializing (H, Sq, Sk).
    o = jnp.einsum('hqk,khd->qhd', p.astype(jnp.bfloat16), vh,
                   preferred_element_type=jnp.float32)            # (Sq, H, Dh)
    return o.reshape(Sq, D)


# ------------------------------- Pallas kernels ------------------------------

def _self_attn_block_kernel(*refs, nhead, causal, pre_ln):
    """Fused: [opt. embedding-LN] -> x@Wqkv -> MHA -> out-proj -> +res -> LN.

    Operates on one batch element's (S, D) block (grid axis = batch).
    """
    if pre_ln:
        (x_ref, eg_ref, eb_ref, wqkv_ref, bqkv_ref, wo_ref, bo_ref,
         g_ref, beta_ref, o_ref) = refs
    else:
        (x_ref, wqkv_ref, bqkv_ref, wo_ref, bo_ref,
         g_ref, beta_ref, o_ref) = refs
    S, D = x_ref.shape
    x = x_ref[...]                                                 # (S, D) f32
    if pre_ln:
        x = _ln_rows(x, eg_ref[...], eb_ref[...])                  # layernorm_embedding
    qkv = jnp.dot(x.astype(jnp.bfloat16), wqkv_ref[...],
                  preferred_element_type=jnp.float32) + bqkv_ref[...]  # (S, 3D)
    q = qkv[:, :D]
    k = qkv[:, D:2 * D]
    v = qkv[:, 2 * D:]
    attn = _mha_core(q, k, v, nhead, causal)                       # (S, D) f32
    proj = jnp.dot(attn.astype(jnp.bfloat16), wo_ref[...],
                   preferred_element_type=jnp.float32) + bo_ref[...]
    o_ref[...] = _ln_rows(x + proj, g_ref[...], beta_ref[...])


def _cross_attn_block_kernel(x_ref, enc_ref, wq_ref, bq_ref, wkv_ref, bkv_ref,
                             wo_ref, bo_ref, g_ref, beta_ref, o_ref, *, nhead):
    """Fused: Q from decoder, fused KV from (bf16) encoder, MHA, out-proj,
    +residual, LayerNorm. One batch element per grid step."""
    Sq, D = x_ref.shape
    x = x_ref[...]                                                 # (Sq, D) f32
    q = jnp.dot(x.astype(jnp.bfloat16), wq_ref[...],
                preferred_element_type=jnp.float32) + bq_ref[...]
    kv = jnp.dot(enc_ref[...], wkv_ref[...],                       # enc already bf16
                 preferred_element_type=jnp.float32) + bkv_ref[...]  # (Sk, 2D)
    k = kv[:, :D]
    v = kv[:, D:]
    attn = _mha_core(q, k, v, nhead, causal=False)
    proj = jnp.dot(attn.astype(jnp.bfloat16), wo_ref[...],
                   preferred_element_type=jnp.float32) + bo_ref[...]
    o_ref[...] = _ln_rows(x + proj, g_ref[...], beta_ref[...])


def _ffn_block_kernel(x_ref, w1_ref, b1_ref, w2_ref, b2_ref, g_ref, beta_ref,
                      o_ref):
    """Fused: fc1 -> gelu -> fc2 -> +residual -> LayerNorm."""
    x = x_ref[...]                                                 # (S, D) f32
    h = jnp.dot(x.astype(jnp.bfloat16), w1_ref[...],
                preferred_element_type=jnp.float32) + b1_ref[...]
    # TODO(synk): HF "gelu" is erf-based; tanh-approx gelu is used in-kernel.
    h = jax.nn.gelu(h, approximate=True)
    f = jnp.dot(h.astype(jnp.bfloat16), w2_ref[...],
                preferred_element_type=jnp.float32) + b2_ref[...]
    o_ref[...] = _ln_rows(x + f, g_ref[...], beta_ref[...])


def _lm_head_kernel(x_ref, w_ref, b_ref, o_ref):
    """logits = x @ W(D,V) + bias; W is the pre-transposed bf16 tied weight."""
    o_ref[...] = jnp.dot(x_ref[...].astype(jnp.bfloat16), w_ref[...],
                         preferred_element_type=jnp.float32) + b_ref[...]
    # TODO(synk): at real vocab sizes, tile over (M/tm, V/tv) with tv a
    # multiple of 128 and stream weight blocks (weight >> VMEM otherwise).


# ------------------------------ pallas wrappers ------------------------------

_PAR = pltpu.CompilerParams(dimension_semantics=("parallel",))


def _full(shape):
    """Whole-array block spec (weights/biases), constant across the grid."""
    return pl.BlockSpec(shape, lambda b: (0,) * len(shape))


def _rows(block_rows, ncols):
    """Per-batch row tile of a (B*S, C) activation."""
    return pl.BlockSpec((block_rows, ncols), lambda b: (b, 0))


def self_attn_block(x, p, batch, nhead, causal, pre_ln=None):
    M, D = x.shape
    S = M // batch
    kern = functools.partial(_self_attn_block_kernel, nhead=nhead,
                             causal=causal, pre_ln=pre_ln is not None)
    arrays = [x]
    specs = [_rows(S, D)]
    if pre_ln is not None:
        g_emb, b_emb = pre_ln
        arrays += [g_emb.reshape(1, D), b_emb.reshape(1, D)]
        specs += [_full((1, D)), _full((1, D))]
    arrays += [p["wqkv"], p["bqkv"].reshape(1, 3 * D),
               p["wo"], p["bo"].reshape(1, D),
               p["ln_g"].reshape(1, D), p["ln_b"].reshape(1, D)]
    specs += [_full((D, 3 * D)), _full((1, 3 * D)),
              _full((D, D)), _full((1, D)),
              _full((1, D)), _full((1, D))]
    return pl.pallas_call(
        kern,
        out_shape=jax.ShapeDtypeStruct((M, D), jnp.float32),
        grid=(batch,),
        in_specs=specs,
        out_specs=_rows(S, D),
        compiler_params=_PAR,
    )(*arrays)


def cross_attn_block(x, enc_bf16, p, batch, nhead):
    M, D = x.shape
    Se = enc_bf16.shape[0] // batch
    Sd = M // batch
    kern = functools.partial(_cross_attn_block_kernel, nhead=nhead)
    return pl.pallas_call(
        kern,
        out_shape=jax.ShapeDtypeStruct((M, D), jnp.float32),
        grid=(batch,),
        in_specs=[_rows(Sd, D), _rows(Se, D),
                  _full((D, D)), _full((1, D)),
                  _full((D, 2 * D)), _full((1, 2 * D)),
                  _full((D, D)), _full((1, D)),
                  _full((1, D)), _full((1, D))],
        out_specs=_rows(Sd, D),
        compiler_params=_PAR,
    )(x, enc_bf16,
      p["wq"], p["bq"].reshape(1, D),
      p["wkv"], p["bkv"].reshape(1, 2 * D),
      p["wo"], p["bo"].reshape(1, D),
      p["ln_g"].reshape(1, D), p["ln_b"].reshape(1, D))


def ffn_block(x, lp, batch):
    M, D = x.shape
    S = M // batch
    F = lp["fc1_w"].shape[1]
    return pl.pallas_call(
        _ffn_block_kernel,
        out_shape=jax.ShapeDtypeStruct((M, D), jnp.float32),
        grid=(batch,),
        in_specs=[_rows(S, D),
                  _full((D, F)), _full((1, F)),
                  _full((F, D)), _full((1, D)),
                  _full((1, D)), _full((1, D))],
        out_specs=_rows(S, D),
        compiler_params=_PAR,
    )(x, lp["fc1_w"], lp["fc1_b"].reshape(1, F),
      lp["fc2_w"], lp["fc2_b"].reshape(1, D),
      lp["final_ln_g"].reshape(1, D), lp["final_ln_b"].reshape(1, D))


def lm_head(x, w_t_bf16, bias, batch):
    M, D = x.shape
    V = w_t_bf16.shape[1]
    S = M // batch
    return pl.pallas_call(
        _lm_head_kernel,
        out_shape=jax.ShapeDtypeStruct((M, V), jnp.float32),
        grid=(batch,),
        in_specs=[_rows(S, D), _full((D, V)), _full((1, V))],
        out_specs=_rows(S, V),
        compiler_params=_PAR,
    )(x, w_t_bf16, bias.reshape(1, V))


# -------------------------------- model forward ------------------------------

def led_forward(params, input_ids, decoder_input_ids, nhead):
    B, Se = input_ids.shape
    Sd = decoder_input_ids.shape[1]

    # --- encoder (LEDEncoder): embed + learned pos; layernorm_embedding is
    #     fused into the first self-attention block ---
    h = jnp.take(params["shared"], input_ids.reshape(-1), axis=0)     # (B*Se, D)
    h = h + jnp.tile(params["enc_pos"][:Se], (B, 1))
    for i, lp in enumerate(params["enc_layers"]):
        pre = (params["enc_ln_emb_g"], params["enc_ln_emb_b"]) if i == 0 else None
        h = self_attn_block(h, lp["self_attn"], B, nhead, causal=False, pre_ln=pre)
        h = ffn_block(h, lp, B)
    # encoder output feeds every decoder layer's cross-attention K/V; cast once
    enc_bf16 = h.astype(jnp.bfloat16)                                 # (B*Se, D)

    # --- decoder (LEDDecoder) ---
    d = jnp.take(params["shared"], decoder_input_ids.reshape(-1), axis=0)
    d = d + jnp.tile(params["dec_pos"][:Sd], (B, 1))
    for i, lp in enumerate(params["dec_layers"]):
        pre = (params["dec_ln_emb_g"], params["dec_ln_emb_b"]) if i == 0 else None
        d = self_attn_block(d, lp["self_attn"], B, nhead, causal=True, pre_ln=pre)
        d = cross_attn_block(d, enc_bf16, lp["cross_attn"], B, nhead)
        d = ffn_block(d, lp, B)

    # --- tied lm_head: one-time bf16 (D, V) slab of the shared table (XLA),
    #     so the kernel does a plain MXU dot (no transposed contraction) ---
    w_t = params["shared"].T.astype(jnp.bfloat16)                     # (D, V)
    logits = lm_head(d, w_t, params["final_logits_bias"], B)
    return logits.reshape(B, Sd, -1)                                  # (B, Sd, V)


# ------------------------------- parameter init ------------------------------

def init_params(key, vocab, d_model, ffn, n_enc, n_dec, nhead, max_pos):
    std = 0.02
    dh = d_model // nhead
    scale = dh ** -0.5
    counter = [0]

    def nk():
        counter[0] += 1
        return jax.random.fold_in(key, counter[0])

    def w32(shape):
        return jax.random.normal(nk(), shape, jnp.float32) * std

    def w(shape):
        # matmul weights stored bf16 (MXU operands); accumulation stays f32
        return w32(shape).astype(jnp.bfloat16)

    def self_attn_params(d):
        # fold the 1/sqrt(Dh) attention scale into the Q projection columns
        wqkv = w32((d, 3 * d))
        wqkv = wqkv.at[:, :d].multiply(scale)
        # (bqkv is zero; a nonzero Q bias would be scaled by `scale` too)
        return dict(wqkv=wqkv.astype(jnp.bfloat16),
                    bqkv=jnp.zeros((3 * d,), jnp.float32),
                    wo=w((d, d)), bo=jnp.zeros((d,), jnp.float32),
                    ln_g=jnp.ones((d,), jnp.float32),
                    ln_b=jnp.zeros((d,), jnp.float32))

    def cross_attn_params(d):
        return dict(wq=(w32((d, d)) * scale).astype(jnp.bfloat16),
                    bq=jnp.zeros((d,), jnp.float32),
                    wkv=w((d, 2 * d)), bkv=jnp.zeros((2 * d,), jnp.float32),
                    wo=w((d, d)), bo=jnp.zeros((d,), jnp.float32),
                    ln_g=jnp.ones((d,), jnp.float32),
                    ln_b=jnp.zeros((d,), jnp.float32))

    def enc_layer():
        return dict(self_attn=self_attn_params(d_model),
                    fc1_w=w((d_model, ffn)), fc1_b=jnp.zeros((ffn,), jnp.float32),
                    fc2_w=w((ffn, d_model)), fc2_b=jnp.zeros((d_model,), jnp.float32),
                    final_ln_g=jnp.ones((d_model,), jnp.float32),
                    final_ln_b=jnp.zeros((d_model,), jnp.float32))

    def dec_layer():
        p = enc_layer()
        p["cross_attn"] = cross_attn_params(d_model)
        return p

    return dict(
        shared=jax.random.normal(nk(), (vocab, d_model), jnp.float32) * std,
        enc_pos=jax.random.normal(nk(), (max_pos, d_model), jnp.float32) * std,
        dec_pos=jax.random.normal(nk(), (max_pos, d_model), jnp.float32) * std,
        enc_ln_emb_g=jnp.ones((d_model,), jnp.float32),
        enc_ln_emb_b=jnp.zeros((d_model,), jnp.float32),
        dec_ln_emb_g=jnp.ones((d_model,), jnp.float32),
        dec_ln_emb_b=jnp.zeros((d_model,), jnp.float32),
        enc_layers=[enc_layer() for _ in range(n_enc)],
        dec_layers=[dec_layer() for _ in range(n_dec)],
        final_logits_bias=jnp.zeros((vocab,), jnp.float32),
    )


# ------------------------------------ main -----------------------------------

if __name__ == "__main__":
    # Small synthetic LEDConfig, chosen lane-dense (multiples of 128 on the
    # lane dim): vocab=256, d_model=128, ffn=256, 2 enc / 2 dec layers,
    # 4 heads, max positions 32; dropout ignored (eval semantics).
    VOCAB, D_MODEL, FFN, N_ENC, N_DEC, NHEAD, MAX_POS = 256, 128, 256, 2, 2, 4, 32
    B, S_ENC, S_DEC = 2, 8, 8

    root = jax.random.PRNGKey(0)
    k_par, k_in, k_dec = jax.random.split(root, 3)

    params = init_params(k_par, VOCAB, D_MODEL, FFN, N_ENC, N_DEC, NHEAD, MAX_POS)
    input_ids = jax.random.randint(k_in, (B, S_ENC), 0, VOCAB, dtype=jnp.int32)
    decoder_input_ids = jax.random.randint(k_dec, (B, S_DEC), 0, VOCAB, dtype=jnp.int32)

    fwd = jax.jit(functools.partial(led_forward, nhead=NHEAD))
    logits = fwd(params, input_ids, decoder_input_ids)
    jax.block_until_ready(logits)

    assert logits.shape == (B, S_DEC, VOCAB), logits.shape
    assert bool(jnp.isfinite(logits).all())
    print("KERNEL_OK")
</pallas_src>

<mosaic_0001>
module attributes {stable_mosaic.version = 11 : i64} {
  func.func @_self_attn_block_kernel(%arg0: i32, %arg1: memref<8x128xf32, #tpu.memory_space<vmem>>, %arg2: memref<1x128xf32, #tpu.memory_space<vmem>>, %arg3: memref<1x128xf32, #tpu.memory_space<vmem>>, %arg4: memref<128x384xbf16, #tpu.memory_space<vmem>>, %arg5: memref<1x384xf32, #tpu.memory_space<vmem>>, %arg6: memref<128x128xbf16, #tpu.memory_space<vmem>>, %arg7: memref<1x128xf32, #tpu.memory_space<vmem>>, %arg8: memref<1x128xf32, #tpu.memory_space<vmem>>, %arg9: memref<1x128xf32, #tpu.memory_space<vmem>>, %arg10: memref<8x128xf32, #tpu.memory_space<vmem>>) attributes {dimension_semantics = [#tpu.dimension_semantics<parallel>], iteration_bounds = array<i64: 2>, scalar_prefetch = 0 : i64, scratch_operands = 0 : i64, tpu.core_type = #tpu.core_type<tc>, window_params = [{transform_indices = @transform_0, window_bounds = array<i64: 8, 128>}, {pipeline_mode = #tpu.pipeline_mode<synchronous>, transform_indices = @transform_1, window_bounds = array<i64: 1, 128>}, {pipeline_mode = #tpu.pipeline_mode<synchronous>, transform_indices = @transform_2, window_bounds = array<i64: 1, 128>}, {pipeline_mode = #tpu.pipeline_mode<synchronous>, transform_indices = @transform_3, window_bounds = array<i64: 128, 384>}, {pipeline_mode = #tpu.pipeline_mode<synchronous>, transform_indices = @transform_4, window_bounds = array<i64: 1, 384>}, {pipeline_mode = #tpu.pipeline_mode<synchronous>, transform_indices = @transform_5, window_bounds = array<i64: 128, 128>}, {pipeline_mode = #tpu.pipeline_mode<synchronous>, transform_indices = @transform_6, window_bounds = array<i64: 1, 128>}, {pipeline_mode = #tpu.pipeline_mode<synchronous>, transform_indices = @transform_7, window_bounds = array<i64: 1, 128>}, {pipeline_mode = #tpu.pipeline_mode<synchronous>, transform_indices = @transform_8, window_bounds = array<i64: 1, 128>}, {transform_indices = @transform_9, window_bounds = array<i64: 8, 128>}]} {
    %c0 = arith.constant 0 : index
    %c0_0 = arith.constant 0 : index
    %0 = vector.load %arg1[%c0, %c0_0] : memref<8x128xf32, #tpu.memory_space<vmem>>, vector<8x128xf32>
    %c0_1 = arith.constant 0 : index
    %c0_2 = arith.constant 0 : index
    %1 = vector.load %arg2[%c0_1, %c0_2] : memref<1x128xf32, #tpu.memory_space<vmem>>, vector<1x128xf32>
    %c0_3 = arith.constant 0 : index
    %c0_4 = arith.constant 0 : index
    %2 = vector.load %arg3[%c0_3, %c0_4] : memref<1x128xf32, #tpu.memory_space<vmem>>, vector<1x128xf32>
    %cst = arith.constant dense<0.000000e+00> : vector<8xf32>
    %3 = vector.multi_reduction <add>, %0, %cst [1] : vector<8x128xf32> to vector<8xf32>
    %4 = vector.shape_cast %3 : vector<8xf32> to vector<8x1xf32>
    %cst_5 = arith.constant 1.280000e+02 : f32
    %5 = vector.broadcast %cst_5 : f32 to vector<8x1xf32>
    %6 = arith.divf %4, %5 : vector<8x1xf32>
    %7 = vector.broadcast %6 : vector<8x1xf32> to vector<8x128xf32>
    %8 = arith.subf %0, %7 : vector<8x128xf32>
    %9 = arith.mulf %8, %8 : vector<8x128xf32>
    %cst_6 = arith.constant dense<0.000000e+00> : vector<8xf32>
    %10 = vector.multi_reduction <add>, %9, %cst_6 [1] : vector<8x128xf32> to vector<8xf32>
    %11 = vector.shape_cast %10 : vector<8xf32> to vector<8x1xf32>
    %cst_7 = arith.constant 1.280000e+02 : f32
    %12 = vector.broadcast %cst_7 : f32 to vector<8x1xf32>
    %13 = arith.divf %11, %12 : vector<8x1xf32>
    %14 = vector.broadcast %6 : vector<8x1xf32> to vector<8x128xf32>
    %15 = arith.subf %0, %14 : vector<8x128xf32>
    %cst_8 = arith.constant 9.99999974E-6 : f32
    %16 = vector.broadcast %cst_8 : f32 to vector<8x1xf32>
    %17 = arith.addf %13, %16 : vector<8x1xf32>
    %18 = math.rsqrt %17 : vector<8x1xf32>
    %19 = vector.broadcast %18 : vector<8x1xf32> to vector<8x128xf32>
    %20 = arith.mulf %15, %19 : vector<8x128xf32>
    %21 = vector.broadcast %1 : vector<1x128xf32> to vector<8x128xf32>
    %22 = arith.mulf %20, %21 : vector<8x128xf32>
    %23 = vector.broadcast %2 : vector<1x128xf32> to vector<8x128xf32>
    %24 = arith.addf %22, %23 : vector<8x128xf32>
    %25 = arith.truncf %24 : vector<8x128xf32> to vector<8x128xbf16>
    %c0_9 = arith.constant 0 : index
    %c0_10 = arith.constant 0 : index
    %26 = vector.load %arg4[%c0_9, %c0_10] : memref<128x384xbf16, #tpu.memory_space<vmem>>, vector<128x384xbf16>
    %cst_11 = arith.constant dense<0.000000e+00> : vector<8x384xf32>
    %27 = tpu.matmul %25, %26, %cst_11 {dimension_numbers = #tpu.dot_dimension_numbers<[1], [0], [0], [1], [0, 0, 1, 1], [], []>} : vector<8x128xbf16>, vector<128x384xbf16>, vector<8x384xf32> -> vector<8x384xf32>
    %c0_12 = arith.constant 0 : index
    %c0_13 = arith.constant 0 : index
    %28 = vector.load %arg5[%c0_12, %c0_13] : memref<1x384xf32, #tpu.memory_space<vmem>>, vector<1x384xf32>
    %29 = vector.broadcast %28 : vector<1x384xf32> to vector<8x384xf32>
    %30 = arith.addf %27, %29 : vector<8x384xf32>
    %31 = vector.extract_strided_slice %30 {offsets = [0, 0], sizes = [8, 128], strides = [1, 1]} : vector<8x384xf32> to vector<8x128xf32>
    %32 = vector.extract_strided_slice %30 {offsets = [0, 128], sizes = [8, 128], strides = [1, 1]} : vector<8x384xf32> to vector<8x128xf32>
    %33 = vector.extract_strided_slice %30 {offsets = [0, 256], sizes = [8, 128], strides = [1, 1]} : vector<8x384xf32> to vector<8x128xf32>
    %34 = vector.shape_cast %31 : vector<8x128xf32> to vector<8x4x32xf32>
    %35 = arith.truncf %34 : vector<8x4x32xf32> to vector<8x4x32xbf16>
    %36 = vector.shape_cast %32 : vector<8x128xf32> to vector<8x4x32xf32>
    %37 = arith.truncf %36 : vector<8x4x32xf32> to vector<8x4x32xbf16>
    %38 = vector.shape_cast %33 : vector<8x128xf32> to vector<8x4x32xf32>
    %39 = arith.truncf %38 : vector<8x4x32xf32> to vector<8x4x32xbf16>
    "tpu.trace_start"() <{level = 10 : i32, message = "qhd,khd->hqk"}> : () -> ()
    %cst_14 = arith.constant dense<0.000000e+00> : vector<4x8x8xf32>
    %40 = tpu.matmul %35, %37, %cst_14 {dimension_numbers = #tpu.dot_dimension_numbers<[2], [2], [0], [0], [0, 1, 0, 0, 1, 0], [1], [1]>} : vector<8x4x32xbf16>, vector<8x4x32xbf16>, vector<4x8x8xf32> -> vector<4x8x8xf32>
    "tpu.trace_stop"() : () -> ()
    %41 = tpu.iota {dimensions = array<i32: 1>} : vector<4x8x8xi32>
    %42 = tpu.iota {dimensions = array<i32: 2>} : vector<4x8x8xi32>
    %43 = arith.cmpi sle, %42, %41 : vector<4x8x8xi32>
    %cst_15 = arith.constant -1.000000e+30 : f32
    %44 = vector.broadcast %cst_15 : f32 to vector<4x8x8xf32>
    %45 = arith.select %43, %40, %44 : vector<4x8x8xi1>, vector<4x8x8xf32>
    %cst_16 = arith.constant dense<0xFF800000> : vector<4x8xf32>
    %46 = vector.multi_reduction <maximumf>, %45, %cst_16 [2] : vector<4x8x8xf32> to vector<4x8xf32>
    %47 = vector.shape_cast %46 : vector<4x8xf32> to vector<4x8x1xf32>
    %48 = vector.broadcast %47 : vector<4x8x1xf32> to vector<4x8x8xf32>
    %49 = arith.subf %45, %48 : vector<4x8x8xf32>
    %50 = math.exp %49 : vector<4x8x8xf32>
    %cst_17 = arith.constant dense<0.000000e+00> : vector<4x8xf32>
    %51 = vector.multi_reduction <add>, %50, %cst_17 [2] : vector<4x8x8xf32> to vector<4x8xf32>
    %52 = vector.shape_cast %51 : vector<4x8xf32> to vector<4x8x1xf32>
    %53 = tpu.reciprocal %52 {approx = true} : vector<4x8x1xf32> -> vector<4x8x1xf32>
    %54 = vector.broadcast %53 : vector<4x8x1xf32> to vector<4x8x8xf32>
    %55 = arith.mulf %50, %54 : vector<4x8x8xf32>
    %56 = arith.truncf %55 : vector<4x8x8xf32> to vector<4x8x8xbf16>
    "tpu.trace_start"() <{level = 10 : i32, message = "hqk,khd->qhd"}> : () -> ()
    %cst_18 = arith.constant dense<0.000000e+00> : vector<4x32x8xf32>
    %57 = tpu.matmul %39, %56, %cst_18 {dimension_numbers = #tpu.dot_dimension_numbers<[0], [2], [2], [1], [0, 1, 0, 2, 1, 1], [1], [0]>} : vector<8x4x32xbf16>, vector<4x8x8xbf16>, vector<4x32x8xf32> -> vector<4x32x8xf32>
    %58 = tpu.transpose %57, [2, 0, 1] : vector<4x32x8xf32> -> vector<8x4x32xf32>
    "tpu.trace_stop"() : () -> ()
    %59 = vector.shape_cast %58 : vector<8x4x32xf32> to vector<8x128xf32>
    %60 = arith.truncf %59 : vector<8x128xf32> to vector<8x128xbf16>
    %c0_19 = arith.constant 0 : index
    %c0_20 = arith.constant 0 : index
    %61 = vector.load %arg6[%c0_19, %c0_20] : memref<128x128xbf16, #tpu.memory_space<vmem>>, vector<128x128xbf16>
    %cst_21 = arith.constant dense<0.000000e+00> : vector<8x128xf32>
    %62 = tpu.matmul %60, %61, %cst_21 {dimension_numbers = #tpu.dot_dimension_numbers<[1], [0], [0], [1], [0, 0, 1, 1], [], []>} : vector<8x128xbf16>, vector<128x128xbf16>, vector<8x128xf32> -> vector<8x128xf32>
    %c0_22 = arith.constant 0 : index
    %c0_23 = arith.constant 0 : index
    %63 = vector.load %arg7[%c0_22, %c0_23] : memref<1x128xf32, #tpu.memory_space<vmem>>, vector<1x128xf32>
    %64 = vector.broadcast %63 : vector<1x128xf32> to vector<8x128xf32>
    %65 = arith.addf %62, %64 : vector<8x128xf32>
    %66 = arith.addf %24, %65 : vector<8x128xf32>
    %c0_24 = arith.constant 0 : index
    %c0_25 = arith.constant 0 : index
    %67 = vector.load %arg8[%c0_24, %c0_25] : memref<1x128xf32, #tpu.memory_space<vmem>>, vector<1x128xf32>
    %c0_26 = arith.constant 0 : index
    %c0_27 = arith.constant 0 : index
    %68 = vector.load %arg9[%c0_26, %c0_27] : memref<1x128xf32, #tpu.memory_space<vmem>>, vector<1x128xf32>
    %cst_28 = arith.constant dense<0.000000e+00> : vector<8xf32>
    %69 = vector.multi_reduction <add>, %66, %cst_28 [1] : vector<8x128xf32> to vector<8xf32>
    %70 = vector.shape_cast %69 : vector<8xf32> to vector<8x1xf32>
    %cst_29 = arith.constant 1.280000e+02 : f32
    %71 = vector.broadcast %cst_29 : f32 to vector<8x1xf32>
    %72 = arith.divf %70, %71 : vector<8x1xf32>
    %73 = vector.broadcast %72 : vector<8x1xf32> to vector<8x128xf32>
    %74 = arith.subf %66, %73 : vector<8x128xf32>
    %75 = arith.mulf %74, %74 : vector<8x128xf32>
    %cst_30 = arith.constant dense<0.000000e+00> : vector<8xf32>
    %76 = vector.multi_reduction <add>, %75, %cst_30 [1] : vector<8x128xf32> to vector<8xf32>
    %77 = vector.shape_cast %76 : vector<8xf32> to vector<8x1xf32>
    %cst_31 = arith.constant 1.280000e+02 : f32
    %78 = vector.broadcast %cst_31 : f32 to vector<8x1xf32>
    %79 = arith.divf %77, %78 : vector<8x1xf32>
    %80 = vector.broadcast %72 : vector<8x1xf32> to vector<8x128xf32>
    %81 = arith.subf %66, %80 : vector<8x128xf32>
    %cst_32 = arith.constant 9.99999974E-6 : f32
    %82 = vector.broadcast %cst_32 : f32 to vector<8x1xf32>
    %83 = arith.addf %79, %82 : vector<8x1xf32>
    %84 = math.rsqrt %83 : vector<8x1xf32>
    %85 = vector.broadcast %84 : vector<8x1xf32> to vector<8x128xf32>
    %86 = arith.mulf %81, %85 : vector<8x128xf32>
    %87 = vector.broadcast %67 : vector<1x128xf32> to vector<8x128xf32>
    %88 = arith.mulf %86, %87 : vector<8x128xf32>
    %89 = vector.broadcast %68 : vector<1x128xf32> to vector<8x128xf32>
    %90 = arith.addf %88, %89 : vector<8x128xf32>
    %c0_33 = arith.constant 0 : index
    %c0_34 = arith.constant 0 : index
    %91 = vector.load %arg10[%c0_33, %c0_34] : memref<8x128xf32, #tpu.memory_space<vmem>>, vector<8x128xf32>
    tpu.vector_store %arg10[%c0_33, %c0_34], %90 {strides = array<i32>} : memref<8x128xf32, #tpu.memory_space<vmem>>, vector<8x128xf32>,
    return
  }
  func.func @transform_0(%arg0: i32) -> (i32, i32) {
    %c0_i32 = arith.constant 0 : i32
    %c0_i32_0 = arith.constant 0 : i32
    return %arg0, %c0_i32 : i32, i32
  }
  func.func @transform_1(%arg0: i32) -> (i32, i32) {
    %c0_i32 = arith.constant 0 : i32
    %c0_i32_0 = arith.constant 0 : i32
    %c0_i32_1 = arith.constant 0 : i32
    return %c0_i32, %c0_i32_0 : i32, i32
  }
  func.func @transform_2(%arg0: i32) -> (i32, i32) {
    %c0_i32 = arith.constant 0 : i32
    %c0_i32_0 = arith.constant 0 : i32
    %c0_i32_1 = arith.constant 0 : i32
    return %c0_i32, %c0_i32_0 : i32, i32
  }
  func.func @transform_3(%arg0: i32) -> (i32, i32) {
    %c0_i32 = arith.constant 0 : i32
    %c0_i32_0 = arith.constant 0 : i32
    %c0_i32_1 = arith.constant 0 : i32
    return %c0_i32, %c0_i32_0 : i32, i32
  }
  func.func @transform_4(%arg0: i32) -> (i32, i32) {
    %c0_i32 = arith.constant 0 : i32
    %c0_i32_0 = arith.constant 0 : i32
    %c0_i32_1 = arith.constant 0 : i32
    return %c0_i32, %c0_i32_0 : i32, i32
  }
  func.func @transform_5(%arg0: i32) -> (i32, i32) {
    %c0_i32 = arith.constant 0 : i32
    %c0_i32_0 = arith.constant 0 : i32
    %c0_i32_1 = arith.constant 0 : i32
    return %c0_i32, %c0_i32_0 : i32, i32
  }
  func.func @transform_6(%arg0: i32) -> (i32, i32) {
    %c0_i32 = arith.constant 0 : i32
    %c0_i32_0 = arith.constant 0 : i32
    %c0_i32_1 = arith.constant 0 : i32
    return %c0_i32, %c0_i32_0 : i32, i32
  }
  func.func @transform_7(%arg0: i32) -> (i32, i32) {
    %c0_i32 = arith.constant 0 : i32
    %c0_i32_0 = arith.constant 0 : i32
    %c0_i32_1 = arith.constant 0 : i32
    return %c0_i32, %c0_i32_0 : i32, i32
  }
  func.func @transform_8(%arg0: i32) -> (i32, i32) {
    %c0_i32 = arith.constant 0 : i32
    %c0_i32_0 = arith.constant 0 : i32
    %c0_i32_1 = arith.constant 0 : i32
    return %c0_i32, %c0_i32_0 : i32, i32
  }
  func.func @transform_9(%arg0: i32) -> (i32, i32) {
    %c0_i32 = arith.constant 0 : i32
    %c0_i32_0 = arith.constant 0 : i32
    return %arg0, %c0_i32 : i32, i32
  }
}

module attributes {stable_mosaic.version = 11 : i64} {
  func.func @_ffn_block_kernel(%arg0: i32, %arg1: memref<8x128xf32, #tpu.memory_space<vmem>>, %arg2: memref<128x256xbf16, #tpu.memory_space<vmem>>, %arg3: memref<1x256xf32, #tpu.memory_space<vmem>>, %arg4: memref<256x128xbf16, #tpu.memory_space<vmem>>, %arg5: memref<1x128xf32, #tpu.memory_space<vmem>>, %arg6: memref<1x128xf32, #tpu.memory_space<vmem>>, %arg7: memref<1x128xf32, #tpu.memory_space<vmem>>, %arg8: memref<8x128xf32, #tpu.memory_space<vmem>>) attributes {dimension_semantics = [#tpu.dimension_semantics<parallel>], iteration_bounds = array<i64: 2>, scalar_prefetch = 0 : i64, scratch_operands = 0 : i64, tpu.core_type = #tpu.core_type<tc>, window_params = [{transform_indices = @transform_0, window_bounds = array<i64: 8, 128>}, {pipeline_mode = #tpu.pipeline_mode<synchronous>, transform_indices = @transform_1, window_bounds = array<i64: 128, 256>}, {pipeline_mode = #tpu.pipeline_mode<synchronous>, transform_indices = @transform_2, window_bounds = array<i64: 1, 256>}, {pipeline_mode = #tpu.pipeline_mode<synchronous>, transform_indices = @transform_3, window_bounds = array<i64: 256, 128>}, {pipeline_mode = #tpu.pipeline_mode<synchronous>, transform_indices = @transform_4, window_bounds = array<i64: 1, 128>}, {pipeline_mode = #tpu.pipeline_mode<synchronous>, transform_indices = @transform_5, window_bounds = array<i64: 1, 128>}, {pipeline_mode = #tpu.pipeline_mode<synchronous>, transform_indices = @transform_6, window_bounds = array<i64: 1, 128>}, {transform_indices = @transform_7, window_bounds = array<i64: 8, 128>}]} {
    %c0 = arith.constant 0 : index
    %c0_0 = arith.constant 0 : index
    %0 = vector.load %arg1[%c0, %c0_0] : memref<8x128xf32, #tpu.memory_space<vmem>>, vector<8x128xf32>
    %1 = arith.truncf %0 : vector<8x128xf32> to vector<8x128xbf16>
    %c0_1 = arith.constant 0 : index
    %c0_2 = arith.constant 0 : index
    %2 = vector.load %arg2[%c0_1, %c0_2] : memref<128x256xbf16, #tpu.memory_space<vmem>>, vector<128x256xbf16>
    %cst = arith.constant dense<0.000000e+00> : vector<8x256xf32>
    %3 = tpu.matmul %1, %2, %cst {dimension_numbers = #tpu.dot_dimension_numbers<[1], [0], [0], [1], [0, 0, 1, 1], [], []>} : vector<8x128xbf16>, vector<128x256xbf16>, vector<8x256xf32> -> vector<8x256xf32>
    %c0_3 = arith.constant 0 : index
    %c0_4 = arith.constant 0 : index
    %4 = vector.load %arg3[%c0_3, %c0_4] : memref<1x256xf32, #tpu.memory_space<vmem>>, vector<1x256xf32>
    %5 = vector.broadcast %4 : vector<1x256xf32> to vector<8x256xf32>
    %6 = arith.addf %3, %5 : vector<8x256xf32>
    %7 = arith.mulf %6, %6 : vector<8x256xf32>
    %8 = arith.mulf %6, %7 : vector<8x256xf32>
    %cst_5 = arith.constant 4.471500e-02 : f32
    %9 = vector.broadcast %cst_5 : f32 to vector<8x256xf32>
    %10 = arith.mulf %9, %8 : vector<8x256xf32>
    %11 = arith.addf %6, %10 : vector<8x256xf32>
    %cst_6 = arith.constant 0.797884583 : f32
    %12 = vector.broadcast %cst_6 : f32 to vector<8x256xf32>
    %13 = arith.mulf %12, %11 : vector<8x256xf32>
    %14 = math.tanh %13 : vector<8x256xf32>
    %cst_7 = arith.constant 1.000000e+00 : f32
    %15 = vector.broadcast %cst_7 : f32 to vector<8x256xf32>
    %16 = arith.addf %15, %14 : vector<8x256xf32>
    %cst_8 = arith.constant 5.000000e-01 : f32
    %17 = vector.broadcast %cst_8 : f32 to vector<8x256xf32>
    %18 = arith.mulf %17, %16 : vector<8x256xf32>
    %19 = arith.mulf %6, %18 : vector<8x256xf32>
    %20 = arith.truncf %19 : vector<8x256xf32> to vector<8x256xbf16>
    %c0_9 = arith.constant 0 : index
    %c0_10 = arith.constant 0 : index
    %21 = vector.load %arg4[%c0_9, %c0_10] : memref<256x128xbf16, #tpu.memory_space<vmem>>, vector<256x128xbf16>
    %cst_11 = arith.constant dense<0.000000e+00> : vector<8x128xf32>
    %22 = tpu.matmul %20, %21, %cst_11 {dimension_numbers = #tpu.dot_dimension_numbers<[1], [0], [0], [1], [0, 0, 1, 1], [], []>} : vector<8x256xbf16>, vector<256x128xbf16>, vector<8x128xf32> -> vector<8x128xf32>
    %c0_12 = arith.constant 0 : index
    %c0_13 = arith.constant 0 : index
    %23 = vector.load %arg5[%c0_12, %c0_13] : memref<1x128xf32, #tpu.memory_space<vmem>>, vector<1x128xf32>
    %24 = vector.broadcast %23 : vector<1x128xf32> to vector<8x128xf32>
    %25 = arith.addf %22, %24 : vector<8x128xf32>
    %26 = arith.addf %0, %25 : vector<8x128xf32>
    %c0_14 = arith.constant 0 : index
    %c0_15 = arith.constant 0 : index
    %27 = vector.load %arg6[%c0_14, %c0_15] : memref<1x128xf32, #tpu.memory_space<vmem>>, vector<1x128xf32>
    %c0_16 = arith.constant 0 : index
    %c0_17 = arith.constant 0 : index
    %28 = vector.load %arg7[%c0_16, %c0_17] : memref<1x128xf32, #tpu.memory_space<vmem>>, vector<1x128xf32>
    %cst_18 = arith.constant dense<0.000000e+00> : vector<8xf32>
    %29 = vector.multi_reduction <add>, %26, %cst_18 [1] : vector<8x128xf32> to vector<8xf32>
    %30 = vector.shape_cast %29 : vector<8xf32> to vector<8x1xf32>
    %cst_19 = arith.constant 1.280000e+02 : f32
    %31 = vector.broadcast %cst_19 : f32 to vector<8x1xf32>
    %32 = arith.divf %30, %31 : vector<8x1xf32>
    %33 = vector.broadcast %32 : vector<8x1xf32> to vector<8x128xf32>
    %34 = arith.subf %26, %33 : vector<8x128xf32>
    %35 = arith.mulf %34, %34 : vector<8x128xf32>
    %cst_20 = arith.constant dense<0.000000e+00> : vector<8xf32>
    %36 = vector.multi_reduction <add>, %35, %cst_20 [1] : vector<8x128xf32> to vector<8xf32>
    %37 = vector.shape_cast %36 : vector<8xf32> to vector<8x1xf32>
    %cst_21 = arith.constant 1.280000e+02 : f32
    %38 = vector.broadcast %cst_21 : f32 to vector<8x1xf32>
    %39 = arith.divf %37, %38 : vector<8x1xf32>
    %40 = vector.broadcast %32 : vector<8x1xf32> to vector<8x128xf32>
    %41 = arith.subf %26, %40 : vector<8x128xf32>
    %cst_22 = arith.constant 9.99999974E-6 : f32
    %42 = vector.broadcast %cst_22 : f32 to vector<8x1xf32>
    %43 = arith.addf %39, %42 : vector<8x1xf32>
    %44 = math.rsqrt %43 : vector<8x1xf32>
    %45 = vector.broadcast %44 : vector<8x1xf32> to vector<8x128xf32>
    %46 = arith.mulf %41, %45 : vector<8x128xf32>
    %47 = vector.broadcast %27 : vector<1x128xf32> to vector<8x128xf32>
    %48 = arith.mulf %46, %47 : vector<8x128xf32>
    %49 = vector.broadcast %28 : vector<1x128xf32> to vector<8x128xf32>
    %50 = arith.addf %48, %49 : vector<8x128xf32>
    %c0_23 = arith.constant 0 : index
    %c0_24 = arith.constant 0 : index
    %51 = vector.load %arg8[%c0_23, %c0_24] : memref<8x128xf32, #tpu.memory_space<vmem>>, vector<8x128xf32>
    tpu.vector_store %arg8[%c0_23, %c0_24], %50 {strides = array<i32>} : memref<8x128xf32, #tpu.memory_space<vmem>>, vector<8x128xf32>,
    return
  }
  func.func @transform_0(%arg0: i32) -> (i32, i32) {
    %c0_i32 = arith.constant 0 : i32
    %c0_i32_0 = arith.constant 0 : i32
    return %arg0, %c0_i32 : i32, i32
  }
  func.func @transform_1(%arg0: i32) -> (i32, i32) {
    %c0_i32 = arith.constant 0 : i32
    %c0_i32_0 = arith.constant 0 : i32
    %c0_i32_1 = arith.constant 0 : i32
    return %c0_i32, %c0_i32_0 : i32, i32
  }
  func.func @transform_2(%arg0: i32) -> (i32, i32) {
    %c0_i32 = arith.constant 0 : i32
    %c0_i32_0 = arith.constant 0 : i32
    %c0_i32_1 = arith.constant 0 : i32
    return %c0_i32, %c0_i32_0 : i32, i32
  }
  func.func @transform_3(%arg0: i32) -> (i32, i32) {
    %c0_i32 = arith.constant 0 : i32
    %c0_i32_0 = arith.constant 0 : i32
    %c0_i32_1 = arith.constant 0 : i32
    return %c0_i32, %c0_i32_0 : i32, i32
  }
  func.func @transform_4(%arg0: i32) -> (i32, i32) {
    %c0_i32 = arith.constant 0 : i32
    %c0_i32_0 = arith.constant 0 : i32
    %c0_i32_1 = arith.constant 0 : i32
    return %c0_i32, %c0_i32_0 : i32, i32
  }
  func.func @transform_5(%arg0: i32) -> (i32, i32) {
    %c0_i32 = arith.constant 0 : i32
    %c0_i32_0 = arith.constant 0 : i32
    %c0_i32_1 = arith.constant 0 : i32
    return %c0_i32, %c0_i32_0 : i32, i32
  }
  func.func @transform_6(%arg0: i32) -> (i32, i32) {
    %c0_i32 = arith.constant 0 : i32
    %c0_i32_0 = arith.constant 0 : i32
    %c0_i32_1 = arith.constant 0 : i32
    return %c0_i32, %c0_i32_0 : i32, i32
  }
  func.func @transform_7(%arg0: i32) -> (i32, i32) {
    %c0_i32 = arith.constant 0 : i32
    %c0_i32_0 = arith.constant 0 : i32
    return %arg0, %c0_i32 : i32, i32
  }
}

module attributes {stable_mosaic.version = 11 : i64} {
  func.func @_self_attn_block_kernel(%arg0: i32, %arg1: memref<8x128xf32, #tpu.memory_space<vmem>>, %arg2: memref<128x384xbf16, #tpu.memory_space<vmem>>, %arg3: memref<1x384xf32, #tpu.memory_space<vmem>>, %arg4: memref<128x128xbf16, #tpu.memory_space<vmem>>, %arg5: memref<1x128xf32, #tpu.memory_space<vmem>>, %arg6: memref<1x128xf32, #tpu.memory_space<vmem>>, %arg7: memref<1x128xf32, #tpu.memory_space<vmem>>, %arg8: memref<8x128xf32, #tpu.memory_space<vmem>>) attributes {dimension_semantics = [#tpu.dimension_semantics<parallel>], iteration_bounds = array<i64: 2>, scalar_prefetch = 0 : i64, scratch_operands = 0 : i64, tpu.core_type = #tpu.core_type<tc>, window_params = [{transform_indices = @transform_0, window_bounds = array<i64: 8, 128>}, {pipeline_mode = #tpu.pipeline_mode<synchronous>, transform_indices = @transform_1, window_bounds = array<i64: 128, 384>}, {pipeline_mode = #tpu.pipeline_mode<synchronous>, transform_indices = @transform_2, window_bounds = array<i64: 1, 384>}, {pipeline_mode = #tpu.pipeline_mode<synchronous>, transform_indices = @transform_3, window_bounds = array<i64: 128, 128>}, {pipeline_mode = #tpu.pipeline_mode<synchronous>, transform_indices = @transform_4, window_bounds = array<i64: 1, 128>}, {pipeline_mode = #tpu.pipeline_mode<synchronous>, transform_indices = @transform_5, window_bounds = array<i64: 1, 128>}, {pipeline_mode = #tpu.pipeline_mode<synchronous>, transform_indices = @transform_6, window_bounds = array<i64: 1, 128>}, {transform_indices = @transform_7, window_bounds = array<i64: 8, 128>}]} {
    %c0 = arith.constant 0 : index
    %c0_0 = arith.constant 0 : index
    %0 = vector.load %arg1[%c0, %c0_0] : memref<8x128xf32, #tpu.memory_space<vmem>>, vector<8x128xf32>
    %1 = arith.truncf %0 : vector<8x128xf32> to vector<8x128xbf16>
    %c0_1 = arith.constant 0 : index
    %c0_2 = arith.constant 0 : index
    %2 = vector.load %arg2[%c0_1, %c0_2] : memref<128x384xbf16, #tpu.memory_space<vmem>>, vector<128x384xbf16>
    %cst = arith.constant dense<0.000000e+00> : vector<8x384xf32>
    %3 = tpu.matmul %1, %2, %cst {dimension_numbers = #tpu.dot_dimension_numbers<[1], [0], [0], [1], [0, 0, 1, 1], [], []>} : vector<8x128xbf16>, vector<128x384xbf16>, vector<8x384xf32> -> vector<8x384xf32>
    %c0_3 = arith.constant 0 : index
    %c0_4 = arith.constant 0 : index
    %4 = vector.load %arg3[%c0_3, %c0_4] : memref<1x384xf32, #tpu.memory_space<vmem>>, vector<1x384xf32>
    %5 = vector.broadcast %4 : vector<1x384xf32> to vector<8x384xf32>
    %6 = arith.addf %3, %5 : vector<8x384xf32>
    %7 = vector.extract_strided_slice %6 {offsets = [0, 0], sizes = [8, 128], strides = [1, 1]} : vector<8x384xf32> to vector<8x128xf32>
    %8 = vector.extract_strided_slice %6 {offsets = [0, 128], sizes = [8, 128], strides = [1, 1]} : vector<8x384xf32> to vector<8x128xf32>
    %9 = vector.extract_strided_slice %6 {offsets = [0, 256], sizes = [8, 128], strides = [1, 1]} : vector<8x384xf32> to vector<8x128xf32>
    %10 = vector.shape_cast %7 : vector<8x128xf32> to vector<8x4x32xf32>
    %11 = arith.truncf %10 : vector<8x4x32xf32> to vector<8x4x32xbf16>
    %12 = vector.shape_cast %8 : vector<8x128xf32> to vector<8x4x32xf32>
    %13 = arith.truncf %12 : vector<8x4x32xf32> to vector<8x4x32xbf16>
    %14 = vector.shape_cast %9 : vector<8x128xf32> to vector<8x4x32xf32>
    %15 = arith.truncf %14 : vector<8x4x32xf32> to vector<8x4x32xbf16>
    "tpu.trace_start"() <{level = 10 : i32, message = "qhd,khd->hqk"}> : () -> ()
    %cst_5 = arith.constant dense<0.000000e+00> : vector<4x8x8xf32>
    %16 = tpu.matmul %11, %13, %cst_5 {dimension_numbers = #tpu.dot_dimension_numbers<[2], [2], [0], [0], [0, 1, 0, 0, 1, 0], [1], [1]>} : vector<8x4x32xbf16>, vector<8x4x32xbf16>, vector<4x8x8xf32> -> vector<4x8x8xf32>
    "tpu.trace_stop"() : () -> ()
    %cst_6 = arith.constant dense<0xFF800000> : vector<4x8xf32>
    %17 = vector.multi_reduction <maximumf>, %16, %cst_6 [2] : vector<4x8x8xf32> to vector<4x8xf32>
    %18 = vector.shape_cast %17 : vector<4x8xf32> to vector<4x8x1xf32>
    %19 = vector.broadcast %18 : vector<4x8x1xf32> to vector<4x8x8xf32>
    %20 = arith.subf %16, %19 : vector<4x8x8xf32>
    %21 = math.exp %20 : vector<4x8x8xf32>
    %cst_7 = arith.constant dense<0.000000e+00> : vector<4x8xf32>
    %22 = vector.multi_reduction <add>, %21, %cst_7 [2] : vector<4x8x8xf32> to vector<4x8xf32>
    %23 = vector.shape_cast %22 : vector<4x8xf32> to vector<4x8x1xf32>
    %24 = tpu.reciprocal %23 {approx = true} : vector<4x8x1xf32> -> vector<4x8x1xf32>
    %25 = vector.broadcast %24 : vector<4x8x1xf32> to vector<4x8x8xf32>
    %26 = arith.mulf %21, %25 : vector<4x8x8xf32>
    %27 = arith.truncf %26 : vector<4x8x8xf32> to vector<4x8x8xbf16>
    "tpu.trace_start"() <{level = 10 : i32, message = "hqk,khd->qhd"}> : () -> ()
    %cst_8 = arith.constant dense<0.000000e+00> : vector<4x32x8xf32>
    %28 = tpu.matmul %15, %27, %cst_8 {dimension_numbers = #tpu.dot_dimension_numbers<[0], [2], [2], [1], [0, 1, 0, 2, 1, 1], [1], [0]>} : vector<8x4x32xbf16>, vector<4x8x8xbf16>, vector<4x32x8xf32> -> vector<4x32x8xf32>
    %29 = tpu.transpose %28, [2, 0, 1] : vector<4x32x8xf32> -> vector<8x4x32xf32>
    "tpu.trace_stop"() : () -> ()
    %30 = vector.shape_cast %29 : vector<8x4x32xf32> to vector<8x128xf32>
    %31 = arith.truncf %30 : vector<8x128xf32> to vector<8x128xbf16>
    %c0_9 = arith.constant 0 : index
    %c0_10 = arith.constant 0 : index
    %32 = vector.load %arg4[%c0_9, %c0_10] : memref<128x128xbf16, #tpu.memory_space<vmem>>, vector<128x128xbf16>
    %cst_11 = arith.constant dense<0.000000e+00> : vector<8x128xf32>
    %33 = tpu.matmul %31, %32, %cst_11 {dimension_numbers = #tpu.dot_dimension_numbers<[1], [0], [0], [1], [0, 0, 1, 1], [], []>} : vector<8x128xbf16>, vector<128x128xbf16>, vector<8x128xf32> -> vector<8x128xf32>
    %c0_12 = arith.constant 0 : index
    %c0_13 = arith.constant 0 : index
    %34 = vector.load %arg5[%c0_12, %c0_13] : memref<1x128xf32, #tpu.memory_space<vmem>>, vector<1x128xf32>
    %35 = vector.broadcast %34 : vector<1x128xf32> to vector<8x128xf32>
    %36 = arith.addf %33, %35 : vector<8x128xf32>
    %37 = arith.addf %0, %36 : vector<8x128xf32>
    %c0_14 = arith.constant 0 : index
    %c0_15 = arith.constant 0 : index
    %38 = vector.load %arg6[%c0_14, %c0_15] : memref<1x128xf32, #tpu.memory_space<vmem>>, vector<1x128xf32>
    %c0_16 = arith.constant 0 : index
    %c0_17 = arith.constant 0 : index
    %39 = vector.load %arg7[%c0_16, %c0_17] : memref<1x128xf32, #tpu.memory_space<vmem>>, vector<1x128xf32>
    %cst_18 = arith.constant dense<0.000000e+00> : vector<8xf32>
    %40 = vector.multi_reduction <add>, %37, %cst_18 [1] : vector<8x128xf32> to vector<8xf32>
    %41 = vector.shape_cast %40 : vector<8xf32> to vector<8x1xf32>
    %cst_19 = arith.constant 1.280000e+02 : f32
    %42 = vector.broadcast %cst_19 : f32 to vector<8x1xf32>
    %43 = arith.divf %41, %42 : vector<8x1xf32>
    %44 = vector.broadcast %43 : vector<8x1xf32> to vector<8x128xf32>
    %45 = arith.subf %37, %44 : vector<8x128xf32>
    %46 = arith.mulf %45, %45 : vector<8x128xf32>
    %cst_20 = arith.constant dense<0.000000e+00> : vector<8xf32>
    %47 = vector.multi_reduction <add>, %46, %cst_20 [1] : vector<8x128xf32> to vector<8xf32>
    %48 = vector.shape_cast %47 : vector<8xf32> to vector<8x1xf32>
    %cst_21 = arith.constant 1.280000e+02 : f32
    %49 = vector.broadcast %cst_21 : f32 to vector<8x1xf32>
    %50 = arith.divf %48, %49 : vector<8x1xf32>
    %51 = vector.broadcast %43 : vector<8x1xf32> to vector<8x128xf32>
    %52 = arith.subf %37, %51 : vector<8x128xf32>
    %cst_22 = arith.constant 9.99999974E-6 : f32
    %53 = vector.broadcast %cst_22 : f32 to vector<8x1xf32>
    %54 = arith.addf %50, %53 : vector<8x1xf32>
    %55 = math.rsqrt %54 : vector<8x1xf32>
    %56 = vector.broadcast %55 : vector<8x1xf32> to vector<8x128xf32>
    %57 = arith.mulf %52, %56 : vector<8x128xf32>
    %58 = vector.broadcast %38 : vector<1x128xf32> to vector<8x128xf32>
    %59 = arith.mulf %57, %58 : vector<8x128xf32>
    %60 = vector.broadcast %39 : vector<1x128xf32> to vector<8x128xf32>
    %61 = arith.addf %59, %60 : vector<8x128xf32>
    %c0_23 = arith.constant 0 : index
    %c0_24 = arith.constant 0 : index
    %62 = vector.load %arg8[%c0_23, %c0_24] : memref<8x128xf32, #tpu.memory_space<vmem>>, vector<8x128xf32>
    tpu.vector_store %arg8[%c0_23, %c0_24], %61 {strides = array<i32>} : memref<8x128xf32, #tpu.memory_space<vmem>>, vector<8x128xf32>,
    return
  }
  func.func @transform_0(%arg0: i32) -> (i32, i32) {
    %c0_i32 = arith.constant 0 : i32
    %c0_i32_0 = arith.constant 0 : i32
    return %arg0, %c0_i32 : i32, i32
  }
  func.func @transform_1(%arg0: i32) -> (i32, i32) {
    %c0_i32 = arith.constant 0 : i32
    %c0_i32_0 = arith.constant 0 : i32
    %c0_i32_1 = arith.constant 0 : i32
    return %c0_i32, %c0_i32_0 : i32, i32
  }
  func.func @transform_2(%arg0: i32) -> (i32, i32) {
    %c0_i32 = arith.constant 0 : i32
    %c0_i32_0 = arith.constant 0 : i32
    %c0_i32_1 = arith.constant 0 : i32
    return %c0_i32, %c0_i32_0 : i32, i32
  }
  func.func @transform_3(%arg0: i32) -> (i32, i32) {
    %c0_i32 = arith.constant 0 : i32
    %c0_i32_0 = arith.constant 0 : i32
    %c0_i32_1 = arith.constant 0 : i32
    return %c0_i32, %c0_i32_0 : i32, i32
  }
  func.func @transform_4(%arg0: i32) -> (i32, i32) {
    %c0_i32 = arith.constant 0 : i32
    %c0_i32_0 = arith.constant 0 : i32
    %c0_i32_1 = arith.constant 0 : i32
    return %c0_i32, %c0_i32_0 : i32, i32
  }
  func.func @transform_5(%arg0: i32) -> (i32, i32) {
    %c0_i32 = arith.constant 0 : i32
    %c0_i32_0 = arith.constant 0 : i32
    %c0_i32_1 = arith.constant 0 : i32
    return %c0_i32, %c0_i32_0 : i32, i32
  }
  func.func @transform_6(%arg0: i32) -> (i32, i32) {
    %c0_i32 = arith.constant 0 : i32
    %c0_i32_0 = arith.constant 0 : i32
    %c0_i32_1 = arith.constant 0 : i32
    return %c0_i32, %c0_i32_0 : i32, i32
  }
  func.func @transform_7(%arg0: i32) -> (i32, i32) {
    %c0_i32 = arith.constant 0 : i32
    %c0_i32_0 = arith.constant 0 : i32
    return %arg0, %c0_i32 : i32, i32
  }
}

module attributes {stable_mosaic.version = 11 : i64} {
  func.func @_self_attn_block_kernel(%arg0: i32, %arg1: memref<8x128xf32, #tpu.memory_space<vmem>>, %arg2: memref<1x128xf32, #tpu.memory_space<vmem>>, %arg3: memref<1x128xf32, #tpu.memory_space<vmem>>, %arg4: memref<128x384xbf16, #tpu.memory_space<vmem>>, %arg5: memref<1x384xf32, #tpu.memory_space<vmem>>, %arg6: memref<128x128xbf16, #tpu.memory_space<vmem>>, %arg7: memref<1x128xf32, #tpu.memory_space<vmem>>, %arg8: memref<1x128xf32, #tpu.memory_space<vmem>>, %arg9: memref<1x128xf32, #tpu.memory_space<vmem>>, %arg10: memref<8x128xf32, #tpu.memory_space<vmem>>) attributes {dimension_semantics = [#tpu.dimension_semantics<parallel>], iteration_bounds = array<i64: 2>, scalar_prefetch = 0 : i64, scratch_operands = 0 : i64, tpu.core_type = #tpu.core_type<tc>, window_params = [{transform_indices = @transform_0, window_bounds = array<i64: 8, 128>}, {pipeline_mode = #tpu.pipeline_mode<synchronous>, transform_indices = @transform_1, window_bounds = array<i64: 1, 128>}, {pipeline_mode = #tpu.pipeline_mode<synchronous>, transform_indices = @transform_2, window_bounds = array<i64: 1, 128>}, {pipeline_mode = #tpu.pipeline_mode<synchronous>, transform_indices = @transform_3, window_bounds = array<i64: 128, 384>}, {pipeline_mode = #tpu.pipeline_mode<synchronous>, transform_indices = @transform_4, window_bounds = array<i64: 1, 384>}, {pipeline_mode = #tpu.pipeline_mode<synchronous>, transform_indices = @transform_5, window_bounds = array<i64: 128, 128>}, {pipeline_mode = #tpu.pipeline_mode<synchronous>, transform_indices = @transform_6, window_bounds = array<i64: 1, 128>}, {pipeline_mode = #tpu.pipeline_mode<synchronous>, transform_indices = @transform_7, window_bounds = array<i64: 1, 128>}, {pipeline_mode = #tpu.pipeline_mode<synchronous>, transform_indices = @transform_8, window_bounds = array<i64: 1, 128>}, {transform_indices = @transform_9, window_bounds = array<i64: 8, 128>}]} {
    %c0 = arith.constant 0 : index
    %c0_0 = arith.constant 0 : index
    %0 = vector.load %arg1[%c0, %c0_0] : memref<8x128xf32, #tpu.memory_space<vmem>>, vector<8x128xf32>
    %c0_1 = arith.constant 0 : index
    %c0_2 = arith.constant 0 : index
    %1 = vector.load %arg2[%c0_1, %c0_2] : memref<1x128xf32, #tpu.memory_space<vmem>>, vector<1x128xf32>
    %c0_3 = arith.constant 0 : index
    %c0_4 = arith.constant 0 : index
    %2 = vector.load %arg3[%c0_3, %c0_4] : memref<1x128xf32, #tpu.memory_space<vmem>>, vector<1x128xf32>
    %cst = arith.constant dense<0.000000e+00> : vector<8xf32>
    %3 = vector.multi_reduction <add>, %0, %cst [1] : vector<8x128xf32> to vector<8xf32>
    %4 = vector.shape_cast %3 : vector<8xf32> to vector<8x1xf32>
    %cst_5 = arith.constant 1.280000e+02 : f32
    %5 = vector.broadcast %cst_5 : f32 to vector<8x1xf32>
    %6 = arith.divf %4, %5 : vector<8x1xf32>
    %7 = vector.broadcast %6 : vector<8x1xf32> to vector<8x128xf32>
    %8 = arith.subf %0, %7 : vector<8x128xf32>
    %9 = arith.mulf %8, %8 : vector<8x128xf32>
    %cst_6 = arith.constant dense<0.000000e+00> : vector<8xf32>
    %10 = vector.multi_reduction <add>, %9, %cst_6 [1] : vector<8x128xf32> to vector<8xf32>
    %11 = vector.shape_cast %10 : vector<8xf32> to vector<8x1xf32>
    %cst_7 = arith.constant 1.280000e+02 : f32
    %12 = vector.broadcast %cst_7 : f32 to vector<8x1xf32>
    %13 = arith.divf %11, %12 : vector<8x1xf32>
    %14 = vector.broadcast %6 : vector<8x1xf32> to vector<8x128xf32>
    %15 = arith.subf %0, %14 : vector<8x128xf32>
    %cst_8 = arith.constant 9.99999974E-6 : f32
    %16 = vector.broadcast %cst_8 : f32 to vector<8x1xf32>
    %17 = arith.addf %13, %16 : vector<8x1xf32>
    %18 = math.rsqrt %17 : vector<8x1xf32>
    %19 = vector.broadcast %18 : vector<8x1xf32> to vector<8x128xf32>
    %20 = arith.mulf %15, %19 : vector<8x128xf32>
    %21 = vector.broadcast %1 : vector<1x128xf32> to vector<8x128xf32>
    %22 = arith.mulf %20, %21 : vector<8x128xf32>
    %23 = vector.broadcast %2 : vector<1x128xf32> to vector<8x128xf32>
    %24 = arith.addf %22, %23 : vector<8x128xf32>
    %25 = arith.truncf %24 : vector<8x128xf32> to vector<8x128xbf16>
    %c0_9 = arith.constant 0 : index
    %c0_10 = arith.constant 0 : index
    %26 = vector.load %arg4[%c0_9, %c0_10] : memref<128x384xbf16, #tpu.memory_space<vmem>>, vector<128x384xbf16>
    %cst_11 = arith.constant dense<0.000000e+00> : vector<8x384xf32>
    %27 = tpu.matmul %25, %26, %cst_11 {dimension_numbers = #tpu.dot_dimension_numbers<[1], [0], [0], [1], [0, 0, 1, 1], [], []>} : vector<8x128xbf16>, vector<128x384xbf16>, vector<8x384xf32> -> vector<8x384xf32>
    %c0_12 = arith.constant 0 : index
    %c0_13 = arith.constant 0 : index
    %28 = vector.load %arg5[%c0_12, %c0_13] : memref<1x384xf32, #tpu.memory_space<vmem>>, vector<1x384xf32>
    %29 = vector.broadcast %28 : vector<1x384xf32> to vector<8x384xf32>
    %30 = arith.addf %27, %29 : vector<8x384xf32>
    %31 = vector.extract_strided_slice %30 {offsets = [0, 0], sizes = [8, 128], strides = [1, 1]} : vector<8x384xf32> to vector<8x128xf32>
    %32 = vector.extract_strided_slice %30 {offsets = [0, 128], sizes = [8, 128], strides = [1, 1]} : vector<8x384xf32> to vector<8x128xf32>
    %33 = vector.extract_strided_slice %30 {offsets = [0, 256], sizes = [8, 128], strides = [1, 1]} : vector<8x384xf32> to vector<8x128xf32>
    %34 = vector.shape_cast %31 : vector<8x128xf32> to vector<8x4x32xf32>
    %35 = arith.truncf %34 : vector<8x4x32xf32> to vector<8x4x32xbf16>
    %36 = vector.shape_cast %32 : vector<8x128xf32> to vector<8x4x32xf32>
    %37 = arith.truncf %36 : vector<8x4x32xf32> to vector<8x4x32xbf16>
    %38 = vector.shape_cast %33 : vector<8x128xf32> to vector<8x4x32xf32>
    %39 = arith.truncf %38 : vector<8x4x32xf32> to vector<8x4x32xbf16>
    "tpu.trace_start"() <{level = 10 : i32, message = "qhd,khd->hqk"}> : () -> ()
    %cst_14 = arith.constant dense<0.000000e+00> : vector<4x8x8xf32>
    %40 = tpu.matmul %35, %37, %cst_14 {dimension_numbers = #tpu.dot_dimension_numbers<[2], [2], [0], [0], [0, 1, 0, 0, 1, 0], [1], [1]>} : vector<8x4x32xbf16>, vector<8x4x32xbf16>, vector<4x8x8xf32> -> vector<4x8x8xf32>
    "tpu.trace_stop"() : () -> ()
    %cst_15 = arith.constant dense<0xFF800000> : vector<4x8xf32>
    %41 = vector.multi_reduction <maximumf>, %40, %cst_15 [2] : vector<4x8x8xf32> to vector<4x8xf32>
    %42 = vector.shape_cast %41 : vector<4x8xf32> to vector<4x8x1xf32>
    %43 = vector.broadcast %42 : vector<4x8x1xf32> to vector<4x8x8xf32>
    %44 = arith.subf %40, %43 : vector<4x8x8xf32>
    %45 = math.exp %44 : vector<4x8x8xf32>
    %cst_16 = arith.constant dense<0.000000e+00> : vector<4x8xf32>
    %46 = vector.multi_reduction <add>, %45, %cst_16 [2] : vector<4x8x8xf32> to vector<4x8xf32>
    %47 = vector.shape_cast %46 : vector<4x8xf32> to vector<4x8x1xf32>
    %48 = tpu.reciprocal %47 {approx = true} : vector<4x8x1xf32> -> vector<4x8x1xf32>
    %49 = vector.broadcast %48 : vector<4x8x1xf32> to vector<4x8x8xf32>
    %50 = arith.mulf %45, %49 : vector<4x8x8xf32>
    %51 = arith.truncf %50 : vector<4x8x8xf32> to vector<4x8x8xbf16>
    "tpu.trace_start"() <{level = 10 : i32, message = "hqk,khd->qhd"}> : () -> ()
    %cst_17 = arith.constant dense<0.000000e+00> : vector<4x32x8xf32>
    %52 = tpu.matmul %39, %51, %cst_17 {dimension_numbers = #tpu.dot_dimension_numbers<[0], [2], [2], [1], [0, 1, 0, 2, 1, 1], [1], [0]>} : vector<8x4x32xbf16>, vector<4x8x8xbf16>, vector<4x32x8xf32> -> vector<4x32x8xf32>
    %53 = tpu.transpose %52, [2, 0, 1] : vector<4x32x8xf32> -> vector<8x4x32xf32>
    "tpu.trace_stop"() : () -> ()
    %54 = vector.shape_cast %53 : vector<8x4x32xf32> to vector<8x128xf32>
    %55 = arith.truncf %54 : vector<8x128xf32> to vector<8x128xbf16>
    %c0_18 = arith.constant 0 : index
    %c0_19 = arith.constant 0 : index
    %56 = vector.load %arg6[%c0_18, %c0_19] : memref<128x128xbf16, #tpu.memory_space<vmem>>, vector<128x128xbf16>
    %cst_20 = arith.constant dense<0.000000e+00> : vector<8x128xf32>
    %57 = tpu.matmul %55, %56, %cst_20 {dimension_numbers = #tpu.dot_dimension_numbers<[1], [0], [0], [1], [0, 0, 1, 1], [], []>} : vector<8x128xbf16>, vector<128x128xbf16>, vector<8x128xf32> -> vector<8x128xf32>
    %c0_21 = arith.constant 0 : index
    %c0_22 = arith.constant 0 : index
    %58 = vector.load %arg7[%c0_21, %c0_22] : memref<1x128xf32, #tpu.memory_space<vmem>>, vector<1x128xf32>
    %59 = vector.broadcast %58 : vector<1x128xf32> to vector<8x128xf32>
    %60 = arith.addf %57, %59 : vector<8x128xf32>
    %61 = arith.addf %24, %60 : vector<8x128xf32>
    %c0_23 = arith.constant 0 : index
    %c0_24 = arith.constant 0 : index
    %62 = vector.load %arg8[%c0_23, %c0_24] : memref<1x128xf32, #tpu.memory_space<vmem>>, vector<1x128xf32>
    %c0_25 = arith.constant 0 : index
    %c0_26 = arith.constant 0 : index
    %63 = vector.load %arg9[%c0_25, %c0_26] : memref<1x128xf32, #tpu.memory_space<vmem>>, vector<1x128xf32>
    %cst_27 = arith.constant dense<0.000000e+00> : vector<8xf32>
    %64 = vector.multi_reduction <add>, %61, %cst_27 [1] : vector<8x128xf32> to vector<8xf32>
    %65 = vector.shape_cast %64 : vector<8xf32> to vector<8x1xf32>
    %cst_28 = arith.constant 1.280000e+02 : f32
    %66 = vector.broadcast %cst_28 : f32 to vector<8x1xf32>
    %67 = arith.divf %65, %66 : vector<8x1xf32>
    %68 = vector.broadcast %67 : vector<8x1xf32> to vector<8x128xf32>
    %69 = arith.subf %61, %68 : vector<8x128xf32>
    %70 = arith.mulf %69, %69 : vector<8x128xf32>
    %cst_29 = arith.constant dense<0.000000e+00> : vector<8xf32>
    %71 = vector.multi_reduction <add>, %70, %cst_29 [1] : vector<8x128xf32> to vector<8xf32>
    %72 = vector.shape_cast %71 : vector<8xf32> to vector<8x1xf32>
    %cst_30 = arith.constant 1.280000e+02 : f32
    %73 = vector.broadcast %cst_30 : f32 to vector<8x1xf32>
    %74 = arith.divf %72, %73 : vector<8x1xf32>
    %75 = vector.broadcast %67 : vector<8x1xf32> to vector<8x128xf32>
    %76 = arith.subf %61, %75 : vector<8x128xf32>
    %cst_31 = arith.constant 9.99999974E-6 : f32
    %77 = vector.broadcast %cst_31 : f32 to vector<8x1xf32>
    %78 = arith.addf %74, %77 : vector<8x1xf32>
    %79 = math.rsqrt %78 : vector<8x1xf32>
    %80 = vector.broadcast %79 : vector<8x1xf32> to vector<8x128xf32>
    %81 = arith.mulf %76, %80 : vector<8x128xf32>
    %82 = vector.broadcast %62 : vector<1x128xf32> to vector<8x128xf32>
    %83 = arith.mulf %81, %82 : vector<8x128xf32>
    %84 = vector.broadcast %63 : vector<1x128xf32> to vector<8x128xf32>
    %85 = arith.addf %83, %84 : vector<8x128xf32>
    %c0_32 = arith.constant 0 : index
    %c0_33 = arith.constant 0 : index
    %86 = vector.load %arg10[%c0_32, %c0_33] : memref<8x128xf32, #tpu.memory_space<vmem>>, vector<8x128xf32>
    tpu.vector_store %arg10[%c0_32, %c0_33], %85 {strides = array<i32>} : memref<8x128xf32, #tpu.memory_space<vmem>>, vector<8x128xf32>,
    return
  }
  func.func @transform_0(%arg0: i32) -> (i32, i32) {
    %c0_i32 = arith.constant 0 : i32
    %c0_i32_0 = arith.constant 0 : i32
    return %arg0, %c0_i32 : i32, i32
  }
  func.func @transform_1(%arg0: i32) -> (i32, i32) {
    %c0_i32 = arith.constant 0 : i32
    %c0_i32_0 = arith.constant 0 : i32
    %c0_i32_1 = arith.constant 0 : i32
    return %c0_i32, %c0_i32_0 : i32, i32
  }
  func.func @transform_2(%arg0: i32) -> (i32, i32) {
    %c0_i32 = arith.constant 0 : i32
    %c0_i32_0 = arith.constant 0 : i32
    %c0_i32_1 = arith.constant 0 : i32
    return %c0_i32, %c0_i32_0 : i32, i32
  }
  func.func @transform_3(%arg0: i32) -> (i32, i32) {
    %c0_i32 = arith.constant 0 : i32
    %c0_i32_0 = arith.constant 0 : i32
    %c0_i32_1 = arith.constant 0 : i32
    return %c0_i32, %c0_i32_0 : i32, i32
  }
  func.func @transform_4(%arg0: i32) -> (i32, i32) {
    %c0_i32 = arith.constant 0 : i32
    %c0_i32_0 = arith.constant 0 : i32
    %c0_i32_1 = arith.constant 0 : i32
    return %c0_i32, %c0_i32_0 : i32, i32
  }
  func.func @transform_5(%arg0: i32) -> (i32, i32) {
    %c0_i32 = arith.constant 0 : i32
    %c0_i32_0 = arith.constant 0 : i32
    %c0_i32_1 = arith.constant 0 : i32
    return %c0_i32, %c0_i32_0 : i32, i32
  }
  func.func @transform_6(%arg0: i32) -> (i32, i32) {
    %c0_i32 = arith.constant 0 : i32
    %c0_i32_0 = arith.constant 0 : i32
    %c0_i32_1 = arith.constant 0 : i32
    return %c0_i32, %c0_i32_0 : i32, i32
  }
  func.func @transform_7(%arg0: i32) -> (i32, i32) {
    %c0_i32 = arith.constant 0 : i32
    %c0_i32_0 = arith.constant 0 : i32
    %c0_i32_1 = arith.constant 0 : i32
    return %c0_i32, %c0_i32_0 : i32, i32
  }
  func.func @transform_8(%arg0: i32) -> (i32, i32) {
    %c0_i32 = arith.constant 0 : i32
    %c0_i32_0 = arith.constant 0 : i32
    %c0_i32_1 = arith.constant 0 : i32
    return %c0_i32, %c0_i32_0 : i32, i32
  }
  func.func @transform_9(%arg0: i32) -> (i32, i32) {
    %c0_i32 = arith.constant 0 : i32
    %c0_i32_0 = arith.constant 0 : i32
    return %arg0, %c0_i32 : i32, i32
  }
}

module attributes {stable_mosaic.version = 11 : i64} {
  func.func @_cross_attn_block_kernel(%arg0: i32, %arg1: memref<8x128xf32, #tpu.memory_space<vmem>>, %arg2: memref<8x128xbf16, #tpu.memory_space<vmem>>, %arg3: memref<128x128xbf16, #tpu.memory_space<vmem>>, %arg4: memref<1x128xf32, #tpu.memory_space<vmem>>, %arg5: memref<128x256xbf16, #tpu.memory_space<vmem>>, %arg6: memref<1x256xf32, #tpu.memory_space<vmem>>, %arg7: memref<128x128xbf16, #tpu.memory_space<vmem>>, %arg8: memref<1x128xf32, #tpu.memory_space<vmem>>, %arg9: memref<1x128xf32, #tpu.memory_space<vmem>>, %arg10: memref<1x128xf32, #tpu.memory_space<vmem>>, %arg11: memref<8x128xf32, #tpu.memory_space<vmem>>) attributes {dimension_semantics = [#tpu.dimension_semantics<parallel>], iteration_bounds = array<i64: 2>, scalar_prefetch = 0 : i64, scratch_operands = 0 : i64, tpu.core_type = #tpu.core_type<tc>, window_params = [{transform_indices = @transform_0, window_bounds = array<i64: 8, 128>}, {transform_indices = @transform_1, window_bounds = array<i64: 8, 128>}, {pipeline_mode = #tpu.pipeline_mode<synchronous>, transform_indices = @transform_2, window_bounds = array<i64: 128, 128>}, {pipeline_mode = #tpu.pipeline_mode<synchronous>, transform_indices = @transform_3, window_bounds = array<i64: 1, 128>}, {pipeline_mode = #tpu.pipeline_mode<synchronous>, transform_indices = @transform_4, window_bounds = array<i64: 128, 256>}, {pipeline_mode = #tpu.pipeline_mode<synchronous>, transform_indices = @transform_5, window_bounds = array<i64: 1, 256>}, {pipeline_mode = #tpu.pipeline_mode<synchronous>, transform_indices = @transform_6, window_bounds = array<i64: 128, 128>}, {pipeline_mode = #tpu.pipeline_mode<synchronous>, transform_indices = @transform_7, window_bounds = array<i64: 1, 128>}, {pipeline_mode = #tpu.pipeline_mode<synchronous>, transform_indices = @transform_8, window_bounds = array<i64: 1, 128>}, {pipeline_mode = #tpu.pipeline_mode<synchronous>, transform_indices = @transform_9, window_bounds = array<i64: 1, 128>}, {transform_indices = @transform_10, window_bounds = array<i64: 8, 128>}]} {
    %c0 = arith.constant 0 : index
    %c0_0 = arith.constant 0 : index
    %0 = vector.load %arg1[%c0, %c0_0] : memref<8x128xf32, #tpu.memory_space<vmem>>, vector<8x128xf32>
    %1 = arith.truncf %0 : vector<8x128xf32> to vector<8x128xbf16>
    %c0_1 = arith.constant 0 : index
    %c0_2 = arith.constant 0 : index
    %2 = vector.load %arg3[%c0_1, %c0_2] : memref<128x128xbf16, #tpu.memory_space<vmem>>, vector<128x128xbf16>
    %cst = arith.constant dense<0.000000e+00> : vector<8x128xf32>
    %3 = tpu.matmul %1, %2, %cst {dimension_numbers = #tpu.dot_dimension_numbers<[1], [0], [0], [1], [0, 0, 1, 1], [], []>} : vector<8x128xbf16>, vector<128x128xbf16>, vector<8x128xf32> -> vector<8x128xf32>
    %c0_3 = arith.constant 0 : index
    %c0_4 = arith.constant 0 : index
    %4 = vector.load %arg4[%c0_3, %c0_4] : memref<1x128xf32, #tpu.memory_space<vmem>>, vector<1x128xf32>
    %5 = vector.broadcast %4 : vector<1x128xf32> to vector<8x128xf32>
    %6 = arith.addf %3, %5 : vector<8x128xf32>
    %c0_5 = arith.constant 0 : index
    %c0_6 = arith.constant 0 : index
    %7 = vector.load %arg2[%c0_5, %c0_6] : memref<8x128xbf16, #tpu.memory_space<vmem>>, vector<8x128xbf16>
    %c0_7 = arith.constant 0 : index
    %c0_8 = arith.constant 0 : index
    %8 = vector.load %arg5[%c0_7, %c0_8] : memref<128x256xbf16, #tpu.memory_space<vmem>>, vector<128x256xbf16>
    %cst_9 = arith.constant dense<0.000000e+00> : vector<8x256xf32>
    %9 = tpu.matmul %7, %8, %cst_9 {dimension_numbers = #tpu.dot_dimension_numbers<[1], [0], [0], [1], [0, 0, 1, 1], [], []>} : vector<8x128xbf16>, vector<128x256xbf16>, vector<8x256xf32> -> vector<8x256xf32>
    %c0_10 = arith.constant 0 : index
    %c0_11 = arith.constant 0 : index
    %10 = vector.load %arg6[%c0_10, %c0_11] : memref<1x256xf32, #tpu.memory_space<vmem>>, vector<1x256xf32>
    %11 = vector.broadcast %10 : vector<1x256xf32> to vector<8x256xf32>
    %12 = arith.addf %9, %11 : vector<8x256xf32>
    %13 = vector.extract_strided_slice %12 {offsets = [0, 0], sizes = [8, 128], strides = [1, 1]} : vector<8x256xf32> to vector<8x128xf32>
    %14 = vector.extract_strided_slice %12 {offsets = [0, 128], sizes = [8, 128], strides = [1, 1]} : vector<8x256xf32> to vector<8x128xf32>
    %15 = vector.shape_cast %6 : vector<8x128xf32> to vector<8x4x32xf32>
    %16 = arith.truncf %15 : vector<8x4x32xf32> to vector<8x4x32xbf16>
    %17 = vector.shape_cast %13 : vector<8x128xf32> to vector<8x4x32xf32>
    %18 = arith.truncf %17 : vector<8x4x32xf32> to vector<8x4x32xbf16>
    %19 = vector.shape_cast %14 : vector<8x128xf32> to vector<8x4x32xf32>
    %20 = arith.truncf %19 : vector<8x4x32xf32> to vector<8x4x32xbf16>
    "tpu.trace_start"() <{level = 10 : i32, message = "qhd,khd->hqk"}> : () -> ()
    %cst_12 = arith.constant dense<0.000000e+00> : vector<4x8x8xf32>
    %21 = tpu.matmul %16, %18, %cst_12 {dimension_numbers = #tpu.dot_dimension_numbers<[2], [2], [0], [0], [0, 1, 0, 0, 1, 0], [1], [1]>} : vector<8x4x32xbf16>, vector<8x4x32xbf16>, vector<4x8x8xf32> -> vector<4x8x8xf32>
    "tpu.trace_stop"() : () -> ()
    %cst_13 = arith.constant dense<0xFF800000> : vector<4x8xf32>
    %22 = vector.multi_reduction <maximumf>, %21, %cst_13 [2] : vector<4x8x8xf32> to vector<4x8xf32>
    %23 = vector.shape_cast %22 : vector<4x8xf32> to vector<4x8x1xf32>
    %24 = vector.broadcast %23 : vector<4x8x1xf32> to vector<4x8x8xf32>
    %25 = arith.subf %21, %24 : vector<4x8x8xf32>
    %26 = math.exp %25 : vector<4x8x8xf32>
    %cst_14 = arith.constant dense<0.000000e+00> : vector<4x8xf32>
    %27 = vector.multi_reduction <add>, %26, %cst_14 [2] : vector<4x8x8xf32> to vector<4x8xf32>
    %28 = vector.shape_cast %27 : vector<4x8xf32> to vector<4x8x1xf32>
    %29 = tpu.reciprocal %28 {approx = true} : vector<4x8x1xf32> -> vector<4x8x1xf32>
    %30 = vector.broadcast %29 : vector<4x8x1xf32> to vector<4x8x8xf32>
    %31 = arith.mulf %26, %30 : vector<4x8x8xf32>
    %32 = arith.truncf %31 : vector<4x8x8xf32> to vector<4x8x8xbf16>
    "tpu.trace_start"() <{level = 10 : i32, message = "hqk,khd->qhd"}> : () -> ()
    %cst_15 = arith.constant dense<0.000000e+00> : vector<4x32x8xf32>
    %33 = tpu.matmul %20, %32, %cst_15 {dimension_numbers = #tpu.dot_dimension_numbers<[0], [2], [2], [1], [0, 1, 0, 2, 1, 1], [1], [0]>} : vector<8x4x32xbf16>, vector<4x8x8xbf16>, vector<4x32x8xf32> -> vector<4x32x8xf32>
    %34 = tpu.transpose %33, [2, 0, 1] : vector<4x32x8xf32> -> vector<8x4x32xf32>
    "tpu.trace_stop"() : () -> ()
    %35 = vector.shape_cast %34 : vector<8x4x32xf32> to vector<8x128xf32>
    %36 = arith.truncf %35 : vector<8x128xf32> to vector<8x128xbf16>
    %c0_16 = arith.constant 0 : index
    %c0_17 = arith.constant 0 : index
    %37 = vector.load %arg7[%c0_16, %c0_17] : memref<128x128xbf16, #tpu.memory_space<vmem>>, vector<128x128xbf16>
    %cst_18 = arith.constant dense<0.000000e+00> : vector<8x128xf32>
    %38 = tpu.matmul %36, %37, %cst_18 {dimension_numbers = #tpu.dot_dimension_numbers<[1], [0], [0], [1], [0, 0, 1, 1], [], []>} : vector<8x128xbf16>, vector<128x128xbf16>, vector<8x128xf32> -> vector<8x128xf32>
    %c0_19 = arith.constant 0 : index
    %c0_20 = arith.constant 0 : index
    %39 = vector.load %arg8[%c0_19, %c0_20] : memref<1x128xf32, #tpu.memory_space<vmem>>, vector<1x128xf32>
    %40 = vector.broadcast %39 : vector<1x128xf32> to vector<8x128xf32>
    %41 = arith.addf %38, %40 : vector<8x128xf32>
    %42 = arith.addf %0, %41 : vector<8x128xf32>
    %c0_21 = arith.constant 0 : index
    %c0_22 = arith.constant 0 : index
    %43 = vector.load %arg9[%c0_21, %c0_22] : memref<1x128xf32, #tpu.memory_space<vmem>>, vector<1x128xf32>
    %c0_23 = arith.constant 0 : index
    %c0_24 = arith.constant 0 : index
    %44 = vector.load %arg10[%c0_23, %c0_24] : memref<1x128xf32, #tpu.memory_space<vmem>>, vector<1x128xf32>
    %cst_25 = arith.constant dense<0.000000e+00> : vector<8xf32>
    %45 = vector.multi_reduction <add>, %42, %cst_25 [1] : vector<8x128xf32> to vector<8xf32>
    %46 = vector.shape_cast %45 : vector<8xf32> to vector<8x1xf32>
    %cst_26 = arith.constant 1.280000e+02 : f32
    %47 = vector.broadcast %cst_26 : f32 to vector<8x1xf32>
    %48 = arith.divf %46, %47 : vector<8x1xf32>
    %49 = vector.broadcast %48 : vector<8x1xf32> to vector<8x128xf32>
    %50 = arith.subf %42, %49 : vector<8x128xf32>
    %51 = arith.mulf %50, %50 : vector<8x128xf32>
    %cst_27 = arith.constant dense<0.000000e+00> : vector<8xf32>
    %52 = vector.multi_reduction <add>, %51, %cst_27 [1] : vector<8x128xf32> to vector<8xf32>
    %53 = vector.shape_cast %52 : vector<8xf32> to vector<8x1xf32>
    %cst_28 = arith.constant 1.280000e+02 : f32
    %54 = vector.broadcast %cst_28 : f32 to vector<8x1xf32>
    %55 = arith.divf %53, %54 : vector<8x1xf32>
    %56 = vector.broadcast %48 : vector<8x1xf32> to vector<8x128xf32>
    %57 = arith.subf %42, %56 : vector<8x128xf32>
    %cst_29 = arith.constant 9.99999974E-6 : f32
    %58 = vector.broadcast %cst_29 : f32 to vector<8x1xf32>
    %59 = arith.addf %55, %58 : vector<8x1xf32>
    %60 = math.rsqrt %59 : vector<8x1xf32>
    %61 = vector.broadcast %60 : vector<8x1xf32> to vector<8x128xf32>
    %62 = arith.mulf %57, %61 : vector<8x128xf32>
    %63 = vector.broadcast %43 : vector<1x128xf32> to vector<8x128xf32>
    %64 = arith.mulf %62, %63 : vector<8x128xf32>
    %65 = vector.broadcast %44 : vector<1x128xf32> to vector<8x128xf32>
    %66 = arith.addf %64, %65 : vector<8x128xf32>
    %c0_30 = arith.constant 0 : index
    %c0_31 = arith.constant 0 : index
    %67 = vector.load %arg11[%c0_30, %c0_31] : memref<8x128xf32, #tpu.memory_space<vmem>>, vector<8x128xf32>
    tpu.vector_store %arg11[%c0_30, %c0_31], %66 {strides = array<i32>} : memref<8x128xf32, #tpu.memory_space<vmem>>, vector<8x128xf32>,
    return
  }
  func.func @transform_0(%arg0: i32) -> (i32, i32) {
    %c0_i32 = arith.constant 0 : i32
    %c0_i32_0 = arith.constant 0 : i32
    return %arg0, %c0_i32 : i32, i32
  }
  func.func @transform_1(%arg0: i32) -> (i32, i32) {
    %c0_i32 = arith.constant 0 : i32
    %c0_i32_0 = arith.constant 0 : i32
    return %arg0, %c0_i32 : i32, i32
  }
  func.func @transform_2(%arg0: i32) -> (i32, i32) {
    %c0_i32 = arith.constant 0 : i32
    %c0_i32_0 = arith.constant 0 : i32
    %c0_i32_1 = arith.constant 0 : i32
    return %c0_i32, %c0_i32_0 : i32, i32
  }
  func.func @transform_3(%arg0: i32) -> (i32, i32) {
    %c0_i32 = arith.constant 0 : i32
    %c0_i32_0 = arith.constant 0 : i32
    %c0_i32_1 = arith.constant 0 : i32
    return %c0_i32, %c0_i32_0 : i32, i32
  }
  func.func @transform_4(%arg0: i32) -> (i32, i32) {
    %c0_i32 = arith.constant 0 : i32
    %c0_i32_0 = arith.constant 0 : i32
    %c0_i32_1 = arith.constant 0 : i32
    return %c0_i32, %c0_i32_0 : i32, i32
  }
  func.func @transform_5(%arg0: i32) -> (i32, i32) {
    %c0_i32 = arith.constant 0 : i32
    %c0_i32_0 = arith.constant 0 : i32
    %c0_i32_1 = arith.constant 0 : i32
    return %c0_i32, %c0_i32_0 : i32, i32
  }
  func.func @transform_6(%arg0: i32) -> (i32, i32) {
    %c0_i32 = arith.constant 0 : i32
    %c0_i32_0 = arith.constant 0 : i32
    %c0_i32_1 = arith.constant 0 : i32
    return %c0_i32, %c0_i32_0 : i32, i32
  }
  func.func @transform_7(%arg0: i32) -> (i32, i32) {
    %c0_i32 = arith.constant 0 : i32
    %c0_i32_0 = arith.constant 0 : i32
    %c0_i32_1 = arith.constant 0 : i32
    return %c0_i32, %c0_i32_0 : i32, i32
  }
  func.func @transform_8(%arg0: i32) -> (i32, i32) {
    %c0_i32 = arith.constant 0 : i32
    %c0_i32_0 = arith.constant 0 : i32
    %c0_i32_1 = arith.constant 0 : i32
    return %c0_i32, %c0_i32_0 : i32, i32
  }
  func.func @transform_9(%arg0: i32) -> (i32, i32) {
    %c0_i32 = arith.constant 0 : i32
    %c0_i32_0 = arith.constant 0 : i32
    %c0_i32_1 = arith.constant 0 : i32
    return %c0_i32, %c0_i32_0 : i32, i32
  }
  func.func @transform_10(%arg0: i32) -> (i32, i32) {
    %c0_i32 = arith.constant 0 : i32
    %c0_i32_0 = arith.constant 0 : i32
    return %arg0, %c0_i32 : i32, i32
  }
}

module attributes {stable_mosaic.version = 11 : i64} {
  func.func @_self_attn_block_kernel(%arg0: i32, %arg1: memref<8x128xf32, #tpu.memory_space<vmem>>, %arg2: memref<128x384xbf16, #tpu.memory_space<vmem>>, %arg3: memref<1x384xf32, #tpu.memory_space<vmem>>, %arg4: memref<128x128xbf16, #tpu.memory_space<vmem>>, %arg5: memref<1x128xf32, #tpu.memory_space<vmem>>, %arg6: memref<1x128xf32, #tpu.memory_space<vmem>>, %arg7: memref<1x128xf32, #tpu.memory_space<vmem>>, %arg8: memref<8x128xf32, #tpu.memory_space<vmem>>) attributes {dimension_semantics = [#tpu.dimension_semantics<parallel>], iteration_bounds = array<i64: 2>, scalar_prefetch = 0 : i64, scratch_operands = 0 : i64, tpu.core_type = #tpu.core_type<tc>, window_params = [{transform_indices = @transform_0, window_bounds = array<i64: 8, 128>}, {pipeline_mode = #tpu.pipeline_mode<synchronous>, transform_indices = @transform_1, window_bounds = array<i64: 128, 384>}, {pipeline_mode = #tpu.pipeline_mode<synchronous>, transform_indices = @transform_2, window_bounds = array<i64: 1, 384>}, {pipeline_mode = #tpu.pipeline_mode<synchronous>, transform_indices = @transform_3, window_bounds = array<i64: 128, 128>}, {pipeline_mode = #tpu.pipeline_mode<synchronous>, transform_indices = @transform_4, window_bounds = array<i64: 1, 128>}, {pipeline_mode = #tpu.pipeline_mode<synchronous>, transform_indices = @transform_5, window_bounds = array<i64: 1, 128>}, {pipeline_mode = #tpu.pipeline_mode<synchronous>, transform_indices = @transform_6, window_bounds = array<i64: 1, 128>}, {transform_indices = @transform_7, window_bounds = array<i64: 8, 128>}]} {
    %c0 = arith.constant 0 : index
    %c0_0 = arith.constant 0 : index
    %0 = vector.load %arg1[%c0, %c0_0] : memref<8x128xf32, #tpu.memory_space<vmem>>, vector<8x128xf32>
    %1 = arith.truncf %0 : vector<8x128xf32> to vector<8x128xbf16>
    %c0_1 = arith.constant 0 : index
    %c0_2 = arith.constant 0 : index
    %2 = vector.load %arg2[%c0_1, %c0_2] : memref<128x384xbf16, #tpu.memory_space<vmem>>, vector<128x384xbf16>
    %cst = arith.constant dense<0.000000e+00> : vector<8x384xf32>
    %3 = tpu.matmul %1, %2, %cst {dimension_numbers = #tpu.dot_dimension_numbers<[1], [0], [0], [1], [0, 0, 1, 1], [], []>} : vector<8x128xbf16>, vector<128x384xbf16>, vector<8x384xf32> -> vector<8x384xf32>
    %c0_3 = arith.constant 0 : index
    %c0_4 = arith.constant 0 : index
    %4 = vector.load %arg3[%c0_3, %c0_4] : memref<1x384xf32, #tpu.memory_space<vmem>>, vector<1x384xf32>
    %5 = vector.broadcast %4 : vector<1x384xf32> to vector<8x384xf32>
    %6 = arith.addf %3, %5 : vector<8x384xf32>
    %7 = vector.extract_strided_slice %6 {offsets = [0, 0], sizes = [8, 128], strides = [1, 1]} : vector<8x384xf32> to vector<8x128xf32>
    %8 = vector.extract_strided_slice %6 {offsets = [0, 128], sizes = [8, 128], strides = [1, 1]} : vector<8x384xf32> to vector<8x128xf32>
    %9 = vector.extract_strided_slice %6 {offsets = [0, 256], sizes = [8, 128], strides = [1, 1]} : vector<8x384xf32> to vector<8x128xf32>
    %10 = vector.shape_cast %7 : vector<8x128xf32> to vector<8x4x32xf32>
    %11 = arith.truncf %10 : vector<8x4x32xf32> to vector<8x4x32xbf16>
    %12 = vector.shape_cast %8 : vector<8x128xf32> to vector<8x4x32xf32>
    %13 = arith.truncf %12 : vector<8x4x32xf32> to vector<8x4x32xbf16>
    %14 = vector.shape_cast %9 : vector<8x128xf32> to vector<8x4x32xf32>
    %15 = arith.truncf %14 : vector<8x4x32xf32> to vector<8x4x32xbf16>
    "tpu.trace_start"() <{level = 10 : i32, message = "qhd,khd->hqk"}> : () -> ()
    %cst_5 = arith.constant dense<0.000000e+00> : vector<4x8x8xf32>
    %16 = tpu.matmul %11, %13, %cst_5 {dimension_numbers = #tpu.dot_dimension_numbers<[2], [2], [0], [0], [0, 1, 0, 0, 1, 0], [1], [1]>} : vector<8x4x32xbf16>, vector<8x4x32xbf16>, vector<4x8x8xf32> -> vector<4x8x8xf32>
    "tpu.trace_stop"() : () -> ()
    %17 = tpu.iota {dimensions = array<i32: 1>} : vector<4x8x8xi32>
    %18 = tpu.iota {dimensions = array<i32: 2>} : vector<4x8x8xi32>
    %19 = arith.cmpi sle, %18, %17 : vector<4x8x8xi32>
    %cst_6 = arith.constant -1.000000e+30 : f32
    %20 = vector.broadcast %cst_6 : f32 to vector<4x8x8xf32>
    %21 = arith.select %19, %16, %20 : vector<4x8x8xi1>, vector<4x8x8xf32>
    %cst_7 = arith.constant dense<0xFF800000> : vector<4x8xf32>
    %22 = vector.multi_reduction <maximumf>, %21, %cst_7 [2] : vector<4x8x8xf32> to vector<4x8xf32>
    %23 = vector.shape_cast %22 : vector<4x8xf32> to vector<4x8x1xf32>
    %24 = vector.broadcast %23 : vector<4x8x1xf32> to vector<4x8x8xf32>
    %25 = arith.subf %21, %24 : vector<4x8x8xf32>
    %26 = math.exp %25 : vector<4x8x8xf32>
    %cst_8 = arith.constant dense<0.000000e+00> : vector<4x8xf32>
    %27 = vector.multi_reduction <add>, %26, %cst_8 [2] : vector<4x8x8xf32> to vector<4x8xf32>
    %28 = vector.shape_cast %27 : vector<4x8xf32> to vector<4x8x1xf32>
    %29 = tpu.reciprocal %28 {approx = true} : vector<4x8x1xf32> -> vector<4x8x1xf32>
    %30 = vector.broadcast %29 : vector<4x8x1xf32> to vector<4x8x8xf32>
    %31 = arith.mulf %26, %30 : vector<4x8x8xf32>
    %32 = arith.truncf %31 : vector<4x8x8xf32> to vector<4x8x8xbf16>
    "tpu.trace_start"() <{level = 10 : i32, message = "hqk,khd->qhd"}> : () -> ()
    %cst_9 = arith.constant dense<0.000000e+00> : vector<4x32x8xf32>
    %33 = tpu.matmul %15, %32, %cst_9 {dimension_numbers = #tpu.dot_dimension_numbers<[0], [2], [2], [1], [0, 1, 0, 2, 1, 1], [1], [0]>} : vector<8x4x32xbf16>, vector<4x8x8xbf16>, vector<4x32x8xf32> -> vector<4x32x8xf32>
    %34 = tpu.transpose %33, [2, 0, 1] : vector<4x32x8xf32> -> vector<8x4x32xf32>
    "tpu.trace_stop"() : () -> ()
    %35 = vector.shape_cast %34 : vector<8x4x32xf32> to vector<8x128xf32>
    %36 = arith.truncf %35 : vector<8x128xf32> to vector<8x128xbf16>
    %c0_10 = arith.constant 0 : index
    %c0_11 = arith.constant 0 : index
    %37 = vector.load %arg4[%c0_10, %c0_11] : memref<128x128xbf16, #tpu.memory_space<vmem>>, vector<128x128xbf16>
    %cst_12 = arith.constant dense<0.000000e+00> : vector<8x128xf32>
    %38 = tpu.matmul %36, %37, %cst_12 {dimension_numbers = #tpu.dot_dimension_numbers<[1], [0], [0], [1], [0, 0, 1, 1], [], []>} : vector<8x128xbf16>, vector<128x128xbf16>, vector<8x128xf32> -> vector<8x128xf32>
    %c0_13 = arith.constant 0 : index
    %c0_14 = arith.constant 0 : index
    %39 = vector.load %arg5[%c0_13, %c0_14] : memref<1x128xf32, #tpu.memory_space<vmem>>, vector<1x128xf32>
    %40 = vector.broadcast %39 : vector<1x128xf32> to vector<8x128xf32>
    %41 = arith.addf %38, %40 : vector<8x128xf32>
    %42 = arith.addf %0, %41 : vector<8x128xf32>
    %c0_15 = arith.constant 0 : index
    %c0_16 = arith.constant 0 : index
    %43 = vector.load %arg6[%c0_15, %c0_16] : memref<1x128xf32, #tpu.memory_space<vmem>>, vector<1x128xf32>
    %c0_17 = arith.constant 0 : index
    %c0_18 = arith.constant 0 : index
    %44 = vector.load %arg7[%c0_17, %c0_18] : memref<1x128xf32, #tpu.memory_space<vmem>>, vector<1x128xf32>
    %cst_19 = arith.constant dense<0.000000e+00> : vector<8xf32>
    %45 = vector.multi_reduction <add>, %42, %cst_19 [1] : vector<8x128xf32> to vector<8xf32>
    %46 = vector.shape_cast %45 : vector<8xf32> to vector<8x1xf32>
    %cst_20 = arith.constant 1.280000e+02 : f32
    %47 = vector.broadcast %cst_20 : f32 to vector<8x1xf32>
    %48 = arith.divf %46, %47 : vector<8x1xf32>
    %49 = vector.broadcast %48 : vector<8x1xf32> to vector<8x128xf32>
    %50 = arith.subf %42, %49 : vector<8x128xf32>
    %51 = arith.mulf %50, %50 : vector<8x128xf32>
    %cst_21 = arith.constant dense<0.000000e+00> : vector<8xf32>
    %52 = vector.multi_reduction <add>, %51, %cst_21 [1] : vector<8x128xf32> to vector<8xf32>
    %53 = vector.shape_cast %52 : vector<8xf32> to vector<8x1xf32>
    %cst_22 = arith.constant 1.280000e+02 : f32
    %54 = vector.broadcast %cst_22 : f32 to vector<8x1xf32>
    %55 = arith.divf %53, %54 : vector<8x1xf32>
    %56 = vector.broadcast %48 : vector<8x1xf32> to vector<8x128xf32>
    %57 = arith.subf %42, %56 : vector<8x128xf32>
    %cst_23 = arith.constant 9.99999974E-6 : f32
    %58 = vector.broadcast %cst_23 : f32 to vector<8x1xf32>
    %59 = arith.addf %55, %58 : vector<8x1xf32>
    %60 = math.rsqrt %59 : vector<8x1xf32>
    %61 = vector.broadcast %60 : vector<8x1xf32> to vector<8x128xf32>
    %62 = arith.mulf %57, %61 : vector<8x128xf32>
    %63 = vector.broadcast %43 : vector<1x128xf32> to vector<8x128xf32>
    %64 = arith.mulf %62, %63 : vector<8x128xf32>
    %65 = vector.broadcast %44 : vector<1x128xf32> to vector<8x128xf32>
    %66 = arith.addf %64, %65 : vector<8x128xf32>
    %c0_24 = arith.constant 0 : index
    %c0_25 = arith.constant 0 : index
    %67 = vector.load %arg8[%c0_24, %c0_25] : memref<8x128xf32, #tpu.memory_space<vmem>>, vector<8x128xf32>
    tpu.vector_store %arg8[%c0_24, %c0_25], %66 {strides = array<i32>} : memref<8x128xf32, #tpu.memory_space<vmem>>, vector<8x128xf32>,
    return
  }
  func.func @transform_0(%arg0: i32) -> (i32, i32) {
    %c0_i32 = arith.constant 0 : i32
    %c0_i32_0 = arith.constant 0 : i32
    return %arg0, %c0_i32 : i32, i32
  }
  func.func @transform_1(%arg0: i32) -> (i32, i32) {
    %c0_i32 = arith.constant 0 : i32
    %c0_i32_0 = arith.constant 0 : i32
    %c0_i32_1 = arith.constant 0 : i32
    return %c0_i32, %c0_i32_0 : i32, i32
  }
  func.func @transform_2(%arg0: i32) -> (i32, i32) {
    %c0_i32 = arith.constant 0 : i32
    %c0_i32_0 = arith.constant 0 : i32
    %c0_i32_1 = arith.constant 0 : i32
    return %c0_i32, %c0_i32_0 : i32, i32
  }
  func.func @transform_3(%arg0: i32) -> (i32, i32) {
    %c0_i32 = arith.constant 0 : i32
    %c0_i32_0 = arith.constant 0 : i32
    %c0_i32_1 = arith.constant 0 : i32
    return %c0_i32, %c0_i32_0 : i32, i32
  }
  func.func @transform_4(%arg0: i32) -> (i32, i32) {
    %c0_i32 = arith.constant 0 : i32
    %c0_i32_0 = arith.constant 0 : i32
    %c0_i32_1 = arith.constant 0 : i32
    return %c0_i32, %c0_i32_0 : i32, i32
  }
  func.func @transform_5(%arg0: i32) -> (i32, i32) {
    %c0_i32 = arith.constant 0 : i32
    %c0_i32_0 = arith.constant 0 : i32
    %c0_i32_1 = arith.constant 0 : i32
    return %c0_i32, %c0_i32_0 : i32, i32
  }
  func.func @transform_6(%arg0: i32) -> (i32, i32) {
    %c0_i32 = arith.constant 0 : i32
    %c0_i32_0 = arith.constant 0 : i32
    %c0_i32_1 = arith.constant 0 : i32
    return %c0_i32, %c0_i32_0 : i32, i32
  }
  func.func @transform_7(%arg0: i32) -> (i32, i32) {
    %c0_i32 = arith.constant 0 : i32
    %c0_i32_0 = arith.constant 0 : i32
    return %arg0, %c0_i32 : i32, i32
  }
}

module attributes {stable_mosaic.version = 11 : i64} {
  func.func @_lm_head_kernel(%arg0: i32, %arg1: memref<8x128xf32, #tpu.memory_space<vmem>>, %arg2: memref<128x256xbf16, #tpu.memory_space<vmem>>, %arg3: memref<1x256xf32, #tpu.memory_space<vmem>>, %arg4: memref<8x256xf32, #tpu.memory_space<vmem>>) attributes {dimension_semantics = [#tpu.dimension_semantics<parallel>], iteration_bounds = array<i64: 2>, scalar_prefetch = 0 : i64, scratch_operands = 0 : i64, tpu.core_type = #tpu.core_type<tc>, window_params = [{transform_indices = @transform_0, window_bounds = array<i64: 8, 128>}, {pipeline_mode = #tpu.pipeline_mode<synchronous>, transform_indices = @transform_1, window_bounds = array<i64: 128, 256>}, {pipeline_mode = #tpu.pipeline_mode<synchronous>, transform_indices = @transform_2, window_bounds = array<i64: 1, 256>}, {transform_indices = @transform_3, window_bounds = array<i64: 8, 256>}]} {
    %c0 = arith.constant 0 : index
    %c0_0 = arith.constant 0 : index
    %0 = vector.load %arg1[%c0, %c0_0] : memref<8x128xf32, #tpu.memory_space<vmem>>, vector<8x128xf32>
    %1 = arith.truncf %0 : vector<8x128xf32> to vector<8x128xbf16>
    %c0_1 = arith.constant 0 : index
    %c0_2 = arith.constant 0 : index
    %2 = vector.load %arg2[%c0_1, %c0_2] : memref<128x256xbf16, #tpu.memory_space<vmem>>, vector<128x256xbf16>
    %cst = arith.constant dense<0.000000e+00> : vector<8x256xf32>
    %3 = tpu.matmul %1, %2, %cst {dimension_numbers = #tpu.dot_dimension_numbers<[1], [0], [0], [1], [0, 0, 1, 1], [], []>} : vector<8x128xbf16>, vector<128x256xbf16>, vector<8x256xf32> -> vector<8x256xf32>
    %c0_3 = arith.constant 0 : index
    %c0_4 = arith.constant 0 : index
    %4 = vector.load %arg3[%c0_3, %c0_4] : memref<1x256xf32, #tpu.memory_space<vmem>>, vector<1x256xf32>
    %5 = vector.broadcast %4 : vector<1x256xf32> to vector<8x256xf32>
    %6 = arith.addf %3, %5 : vector<8x256xf32>
    %c0_5 = arith.constant 0 : index
    %c0_6 = arith.constant 0 : index
    %7 = vector.load %arg4[%c0_5, %c0_6] : memref<8x256xf32, #tpu.memory_space<vmem>>, vector<8x256xf32>
    tpu.vector_store %arg4[%c0_5, %c0_6], %6 {strides = array<i32>} : memref<8x256xf32, #tpu.memory_space<vmem>>, vector<8x256xf32>,
    return
  }
  func.func @transform_0(%arg0: i32) -> (i32, i32) {
    %c0_i32 = arith.constant 0 : i32
    %c0_i32_0 = arith.constant 0 : i32
    return %arg0, %c0_i32 : i32, i32
  }
  func.func @transform_1(%arg0: i32) -> (i32, i32) {
    %c0_i32 = arith.constant 0 : i32
    %c0_i32_0 = arith.constant 0 : i32
    %c0_i32_1 = arith.constant 0 : i32
    return %c0_i32, %c0_i32_0 : i32, i32
  }
  func.func @transform_2(%arg0: i32) -> (i32, i32) {
    %c0_i32 = arith.constant 0 : i32
    %c0_i32_0 = arith.constant 0 : i32
    %c0_i32_1 = arith.constant 0 : i32
    return %c0_i32, %c0_i32_0 : i32, i32
  }
  func.func @transform_3(%arg0: i32) -> (i32, i32) {
    %c0_i32 = arith.constant 0 : i32
    %c0_i32_0 = arith.constant 0 : i32
    return %arg0, %c0_i32 : i32, i32
  }
}

</mosaic_0001>

<bundles_post_ra>
// kernel: led_forward.12
= control target key start
LH: loop header
LB: loop body
LE: loop exit
PB: predicated region body
PF: predicated region fallthrough
CT: control target
= control target key end

     0   :  { %s874_s24 = smov 0   ;;  %s1011_s0 = inlined_call_operand.vmem [shape: f32[16,128], index: 0, kind: input, shape index: {}]   ;;  %s1012_s1 = inlined_call_operand.vmem [shape: bf16[128,256], index: 1, kind: input, shape index: {}]   ;;  %s1013_s2 = inlined_call_operand.vmem [shape: f32[1,256], index: 2, kind: input, shape index: {}]   ;;  %s1014_s3 = inlined_call_operand.vmem [shape: bf16[256,128], index: 3, kind: input, shape index: {}]   ;;  %s1015_s4 = inlined_call_operand.vmem [shape: f32[1,128], index: 4, kind: input, shape index: {}]   ;;  %s1016_s5 = inlined_call_operand.vmem [shape: f32[1,128], index: 5, kind: input, shape index: {}]   ;;  %s1017_s6 = inlined_call_operand.vmem [shape: f32[1,128], index: 6, kind: input, shape index: {}]   ;;  %s1018_s7 = inlined_call_operand.vmem [shape: f32[16,128], index: 7, kind: output, shape index: {}]  }
   0x1 LB: > { %s704_s25 = sadd.s32 4294967295, %s831_s24   ;;  %p708_p0 = scmp.ge.s32.totalorder %s831_s24, 1  ;;  %s831_s24 = sphi %s874_s24, %s17_s24  }
   0x2   : > { %p236_p1 = scmp.lt.s32.totalorder %s831_s24, 3 }
   0x4   : > { %p237_p2 = pnand %p708_p0, %p236_p1 }
   0x5   : > { %v779_v0 = vld [vmem:[%s1012_s1 + $0x4] ss:$8 sps:$4 sm:$0xff] (!%p237_p2)   ;;  %v781_v1 = vld [vmem:[%s1012_s1] ss:$8 sps:$4 sm:$0xff] (!%p237_p2)   ;;  %v833_v2 = vmov (!%p237_p2), 0   ;;  %p266_p3 = scmp.lt.s32.totalorder (!%p237_p2), %s704_s25, 1  ;;  %v295_v35 = vlaneseq (!%p237_p2) }
   0x6   : > { %240 = sbr.rel (%p237_p2) target bundleno = 814 (0x32e), region = 48  ;;  %417 = vmatprep.mubr.bf16.mxu0 (!%p237_p2), %v833_v2  ;;  %385 = vmatprep.subr.bf16.mxu0 (!%p237_p2), %v779_v0  ;;  %v782_v3 = vld [vmem:[%s1012_s1 + $0x14] ss:$8 sps:$4 sm:$0xff] (!%p237_p2)   ;;  %v784_v4 = vld [vmem:[%s1012_s1 + $0x10] ss:$8 sps:$4 sm:$0xff] (!%p237_p2)   ;;  %v803_v19 = vld [vmem:[%s1014_s3 + $0x40] sm:$0xff] (!%p237_p2)  }
   0x7   : > { %386 = vmatpush1.bf16.msra.mxu0 (!%p237_p2), %v781_v1  ;;  %v785_v5 = vld [vmem:[%s1012_s1 + $0x24] ss:$8 sps:$4 sm:$0xff] (!%p237_p2)   ;;  %v787_v6 = vld [vmem:[%s1012_s1 + $0x20] ss:$8 sps:$4 sm:$0xff] (!%p237_p2)   ;;  %v788_v7 = vld [vmem:[%s1012_s1 + $0x34] ss:$8 sps:$4 sm:$0xff] (!%p237_p2)   ;;  %748 = vmatprep.subr.bf16.mxu1 (!%p237_p2), %v803_v19 }
   0x8   : > { %387 = vmatprep.subr.bf16.mxu0 (!%p237_p2), %v782_v3  ;;  %v790_v8 = vld [vmem:[%s1012_s1 + $0x30] ss:$8 sps:$4 sm:$0xff] (!%p237_p2)   ;;  %v791_v9 = vld [vmem:[%s1012_s1 + $0x44] ss:$8 sps:$4 sm:$0xff] (!%p237_p2)   ;;  %v793_v10 = vld [vmem:[%s1012_s1 + $0x40] ss:$8 sps:$4 sm:$0xff] (!%p237_p2)  }
   0x9   : > { %v794_v11 = vld [vmem:[%s1012_s1 + $0x54] ss:$8 sps:$4 sm:$0xff] (!%p237_p2)   ;;  %v796_v12 = vld [vmem:[%s1012_s1 + $0x50] ss:$8 sps:$4 sm:$0xff] (!%p237_p2)   ;;  %v797_v13 = vld [vmem:[%s1012_s1 + $0x64] ss:$8 sps:$4 sm:$0xff] (!%p237_p2)  }
   0xa   : > { %v799_v14 = vld [vmem:[%s1012_s1 + $0x60] ss:$8 sps:$4 sm:$0xff] (!%p237_p2)   ;;  %v800_v15 = vld [vmem:[%s1012_s1 + $0x74] ss:$8 sps:$4 sm:$0xff] (!%p237_p2)   ;;  %v802_v16 = vld [vmem:[%s1012_s1 + $0x70] ss:$8 sps:$4 sm:$0xff] (!%p237_p2)  }
   0xb   : > { %388 = vmatpush1.bf16.msra.mxu0 (!%p237_p2), %v784_v4  ;;  %v804_v20 = vld [vmem:[%s1014_s3] sm:$0xff] (!%p237_p2)   ;;  %v805_v21 = vld [vmem:[%s1014_s3 + $0x48] sm:$0xff] (!%p237_p2)   ;;  %v807_v23 = vld [vmem:[%s1014_s3 + $0x50] sm:$0xff] (!%p237_p2)   ;;  %v296_v36 = vshrl.u32 (!%p237_p2), %v295_v35, 7 }
   0xc   : > { %389 = vmatprep.subr.bf16.mxu0 (!%p237_p2), %v785_v5  ;;  %749 = vmatpush3.bf16.msra.mxu1 (!%p237_p2), %v804_v20  ;;  %v806_v22 = vld [vmem:[%s1014_s3 + $0x8] sm:$0xff] (!%p237_p2)   ;;  %v808_v24 = vld [vmem:[%s1014_s3 + $0x10] sm:$0xff] (!%p237_p2)   ;;  %v809_v25 = vld [vmem:[%s1014_s3 + $0x58] sm:$0xff] (!%p237_p2)  }
   0xd   : > { %s1020_s25 = smov (!%p266_p3, %s704_s25), 1  ;;  %750 = vmatprep.subr.bf16.mxu1 %v805_v21  ;;  %v810_v26 = vld [vmem:[%s1014_s3 + $0x18] sm:$0xff]   ;;  %v811_v27 = vld [vmem:[%s1014_s3 + $0x60] sm:$0xff]   ;;  %v813_v29 = vld [vmem:[%s1014_s3 + $0x68] sm:$0xff]   ;;  %v297_v37 = vsub.s32 0, %v296_v36  ;;  %v301_v39 = vsub.s32 1, %v296_v36 }
   0xe   : > { %s709_s19 = sshll.u32 %s1020_s25, 3  ;;  %v812_v28 = vld [vmem:[%s1014_s3 + $0x20] sm:$0xff]   ;;  %v814_v30 = vld [vmem:[%s1014_s3 + $0x28] sm:$0xff]   ;;  %v815_v31 = vld [vmem:[%s1014_s3 + $0x70] sm:$0xff]  }
   0xf   : > { %390 = vmatpush1.bf16.msra.mxu0 %v787_v6  ;;  %s269_s15 = scalar_lea.vmem %s1011_s0, %s709_s19  ;;  %v816_v32 = vld [vmem:[%s1014_s3 + $0x30] sm:$0xff]   ;;  %v817_v33 = vld [vmem:[%s1014_s3 + $0x78] sm:$0xff]   ;;  %v293_v38 = vld [vmem:[%s1013_s2] sm:$0x3]  ;;  %s273_s21 = scalar_lea.vmem %s1018_s7, %s709_s19 }
  0x10   : > { %391 = vmatprep.subr.bf16.mxu0 %v788_v7  ;;  %v938_v17 = vld [vmem:[%s269_s15] sm:$0xff]  ;;  %751 = vmatpush3.bf16.msra.mxu1 %v806_v22  ;;  %v818_v34 = vld [vmem:[%s1014_s3 + $0x38] sm:$0xff]   ;;  %v298_v40 = vrot.slane %v293_v38, %v297_v37  ;;  %v302_v41 = vrot.slane %v293_v38, %v301_v39 }
  0x11   : > { %v276_v18 = vpack.c.bf16 %v938_v17, %v938_v17  ;;  %752 = vmatprep.subr.bf16.mxu1 %v807_v23  ;;  %v727_v5 = vld [vmem:[%s1015_s4] ss:$0 sm:$0xff] }
  0x12   : > { %v744_v21 = vld [vmem:[%s1016_s5] ss:$0 sm:$0xff] }
  0x13   : > { %392 = vmatpush1.bf16.msra.mxu0 %v790_v8 }
  0x14   : > { %393 = vmatprep.subr.bf16.mxu0 %v791_v9  ;;  %753 = vmatpush3.bf16.msra.mxu1 %v808_v24 }
  0x15   : > { %754 = vmatprep.subr.bf16.mxu1 %v809_v25 }
  0x17   : > { %394 = vmatpush1.bf16.msra.mxu0 %v793_v10 }
  0x18   : > { %395 = vmatprep.subr.bf16.mxu0 %v794_v11  ;;  %755 = vmatpush3.bf16.msra.mxu1 %v810_v26 }
  0x19   : > { %756 = vmatprep.subr.bf16.mxu1 %v811_v27 }
  0x1b   : > { %396 = vmatpush1.bf16.msra.mxu0 %v796_v12 }
  0x1c   : > { %397 = vmatprep.subr.bf16.mxu0 %v797_v13  ;;  %757 = vmatpush3.bf16.msra.mxu1 %v812_v28 }
  0x1d   : > { %758 = vmatprep.subr.bf16.mxu1 %v813_v29 }
  0x1f   : > { %398 = vmatpush1.bf16.msra.mxu0 %v799_v14 }
  0x20   : > { %399 = vmatprep.subr.bf16.mxu0 %v800_v15  ;;  %759 = vmatpush3.bf16.msra.mxu1 %v814_v30 }
  0x21   : > { %760 = vmatprep.subr.bf16.mxu1 %v815_v31 }
  0x23   : > { %400 = vmatpush1.bf16.msra.mxu0 %v802_v16 }
  0x24   : > { %761 = vmatpush3.bf16.msra.mxu1 %v816_v32 }
  0x25   : > { %762 = vmatprep.subr.bf16.mxu1 %v817_v33 }
  0x26   : > { %418 = vmatmul.mubr.bf16.vlgmr.msra.gmra.mrb[0].mxu0 %v276_v18 }
  0x28   : > { %763 = vmatpush3.bf16.msra.mxu1 %v818_v34 }
  0xf9   : > { %v419_v42 = vpop.f32.mrb[0].mxu0 }
  0xfa   : > { %v420_v43 = vadd.f32 %v419_v42, %v298_v40  ;;  %v421_v44 = vpop.f32.mrb[1].mxu0 }
  0xfb   : > { %v422_v45 = vadd.f32 %v421_v44, %v302_v41  ;;  %v423_v46 = vpop.f32.mrb[2].mxu0 }
  0xfc   : > { %v426_v47 = vmul.f32 %v420_v43, %v420_v43  ;;  %v424_v48 = vpop.f32.mrb[3].mxu0 }
  0xfd   : > { %v427_v49 = vmul.f32 %v422_v45, %v422_v45 }
  0xfe   : > { %v428_v50 = vmul.f32 %v426_v47, %v420_v43 }
  0xff   : > { %v429_v51 = vmul.f32 %v427_v49, %v422_v45 }
 0x100   : > { %v430_v52 = vmul.f32 0.044715, %v428_v50 }
 0x101   : > { %v431_v53 = vmul.f32 0.044715, %v429_v51 }
 0x102   : > { %v432_v54 = vadd.f32 %v430_v52, %v420_v43 }
 0x103   : > { %v433_v55 = vadd.f32 %v431_v53, %v422_v45 }
 0x104   : > { %v434_v56 = vmul.f32 0.7978846, %v432_v54 }
 0x105   : > { %v435_v57 = vmul.f32 0.7978846, %v433_v55 }
 0x106   : > { %819 = vtanh.f32 %v434_v56 }
 0x107   : > { %821 = vtanh.f32 %v435_v57 }
 0x110   : > { %v820_v58 = vpop.eup %819 }
 0x111   : > { %v822_v59 = vpop.eup %821  ;;  %v438_v60 = vadd.f32 1.0, %v820_v58 }
 0x112   : > { %v439_v61 = vadd.f32 1.0, %v822_v59 }
 0x113   : > { %v440_v62 = vmul.f32 0.5, %v438_v60 }
 0x114   : > { %v441_v63 = vmul.f32 0.5, %v439_v61 }
 0x115   : > { %v442_v0 = vmul.f32 %v440_v62, %v420_v43 }
 0x116   : > { %v443_v1 = vmul.f32 %v441_v63, %v422_v45 }
 0x117   : > { %v444_v3 = vpack.c.bf16 %v442_v0, %v442_v0 }
 0x118   : > { %v445_v2 = vpack.c.bf16 %v443_v1, %v443_v1 }
 0x11a   : > { %613 = vmatprep.mubr.bf16.mxu1 %v445_v2 }
 0x11b   : > { %614 = vmatmul.mubr.bf16.vlgmr.msra.gmra.mrb[0].mxu1 %v444_v3 }
 0x1ee   : > { %v764_v4 = vpop.f32.mrb[0].mxu1 }
 0x1ef   : > { %v765_v6 = vpop.f32.mrb[1].mxu1 }
 0x1f0   : > { %v766_v7 = vadd.f32 %v765_v6, %v764_v4  ;;  %v767_v8 = vpop.f32.mrb[2].mxu1 }
 0x1f1   : > { %v768_v9 = vpop.f32.mrb[3].mxu1 }
 0x1f2   : > { %v616_v10 = vadd.f32 %v766_v7, %v727_v5 }
 0x1f4   : > { %v621_v11 = vadd.f32 %v616_v10, %v938_v17  ;;  %v745_v17 = vld [vmem:[%s1017_s6] ss:$0 sm:$0xff] }
 0x1f6   : > { %624 = vadd.xlane.f32.xlu0 %v621_v11 }
 0x283   : > { %v625_v12 = vpop.xlane.xlu0 %624 }
 0x284   : > { %v627_v13 = vmul.f32 0.0078125, %v625_v12 }
 0x286   : > { %v628_v14 = vsub.f32 %v621_v11, %v627_v13 }
 0x288   : > { %v629_v15 = vmul.f32 %v628_v14, %v628_v14 }
 0x28a   : > { %630 = vadd.xlane.f32.xlu0 %v629_v15 }
 0x317   : > { %v631_v16 = vpop.xlane.xlu0 %630 }
 0x318   : > { %v632_v18 = vmul.f32 0.0078125, %v631_v16 }
 0x31a   : > { %v633_v19 = vadd.f32 1e-05, %v632_v18 }
 0x31c   : > { %823 = vrsqrt.f32 %v633_v19 }
 0x326   : > { %v824_v20 = vpop.eup %823 }
 0x327   : > { %v635_v22 = vmul.f32 %v824_v20, %v628_v14 }
 0x329   : > { %v642_v23 = vmul.f32 %v744_v21, %v635_v22 }
 0x32b   : > { %v649_v24 = vadd.f32 %v745_v17, %v642_v23 }
 0x32d   : > { %650 = vst [vmem:[%s273_s21] sm:$0xff] %v649_v24 }
 0x32e PF: > { %s17_s24 = sadd.s32 1, %s831_s24  }
 0x32f   : > { %p14_p4 = scmp.ge.s32.totalorder %s17_s24, 4  }
 0x331   :  { %16 = sbr.rel (!%p14_p4) target bundleno = 1 (0x1), region = 78 }

// kernel: led_forward.11
= control target key start
LH: loop header
LB: loop body
LE: loop exit
PB: predicated region body
PF: predicated region fallthrough
CT: control target
= control target key end

     0   :  { %s4622_s30 = smov 0   ;;  %s5263_s0 = inlined_call_operand.vmem [shape: f32[16,128], index: 0, kind: input, shape index: {}]   ;;  %s5264_s1 = inlined_call_operand.vmem [shape: f32[1,128], index: 1, kind: input, shape index: {}]   ;;  %s5265_s2 = inlined_call_operand.vmem [shape: f32[1,128], index: 2, kind: input, shape index: {}]   ;;  %s5266_s3 = inlined_call_operand.vmem [shape: bf16[128,384], index: 3, kind: input, shape index: {}]   ;;  %s5267_s4 = inlined_call_operand.vmem [shape: f32[1,384], index: 4, kind: input, shape index: {}]   ;;  %s5268_s5 = inlined_call_operand.vmem [shape: bf16[128,128], index: 5, kind: input, shape index: {}]   ;;  %s5269_s6 = inlined_call_operand.vmem [shape: f32[1,128], index: 6, kind: input, shape index: {}]   ;;  %s5270_s7 = inlined_call_operand.vmem [shape: f32[1,128], index: 7, kind: input, shape index: {}]   ;;  %s5271_s8 = inlined_call_operand.vmem [shape: f32[1,128], index: 8, kind: input, shape index: {}]   ;;  %s5272_s9 = inlined_call_operand.vmem [shape: f32[16,128], index: 9, kind: output, shape index: {}]  }
   0x1 LB: > { %s4274_s10 = sadd.s32 4294967295, %s4562_s30   ;;  %p4278_p0 = scmp.ge.s32.totalorder %s4562_s30, 1  ;;  %s4562_s30 = sphi %s4622_s30, %s19_s30  }
   0x2   : > { %p286_p1 = scmp.lt.s32.totalorder %s4562_s30, 3 }
   0x4   : > { %p287_p2 = pnand %p4278_p0, %p286_p1 }
   0x5   : > { %p320_p3 = scmp.lt.s32.totalorder (!%p287_p2), %s4274_s10, 1  ;;  %v4496_v1 = vld [vmem:[%s5266_s3 + $0x4] ss:$12 sps:$4 sm:$0xff] (!%p287_p2)   ;;  %v4498_v2 = vld [vmem:[%s5266_s3] ss:$12 sps:$4 sm:$0xff] (!%p287_p2)   ;;  %v4564_v3 = vmov (!%p287_p2), 0.0   ;;  %v393_v41 = vlaneseq (!%p287_p2) }
   0x6   : > { %290 = sbr.rel (%p287_p2) target bundleno = 2634 (0xa4a), region = 56  ;;  %4380 = vmatprep.subr.bf16.mxu1 (!%p287_p2), %v4564_v3  ;;  %v4499_v4 = vld [vmem:[%s5266_s3 + $0x8] ss:$12 sps:$4 sm:$0xff] (!%p287_p2)   ;;  %536 = vmatprep.subr.bf16.mxu0 (!%p287_p2), %v4496_v1  ;;  %v4502_v6 = vld [vmem:[%s5266_s3 + $0x18] ss:$12 sps:$4 sm:$0xff] (!%p287_p2)   ;;  %v4565_v25 = vmov (!%p287_p2), 0  }
   0x7   : > { %v4500_v5 = vld [vmem:[%s5266_s3 + $0x1c] ss:$12 sps:$4 sm:$0xff] (!%p287_p2)   ;;  %537 = vmatpush1.bf16.msra.mxu0 (!%p287_p2), %v4498_v2  ;;  %4381 = vmatpush3.bf16.msra.mxu1 (!%p287_p2), %v4499_v4  ;;  %v4503_v7 = vld [vmem:[%s5266_s3 + $0x20] ss:$12 sps:$4 sm:$0xff] (!%p287_p2)   ;;  %v4507_v14 = vld [vmem:[%s5266_s3 + $0x38] ss:$12 sps:$4 sm:$0xff] (!%p287_p2)  }
   0x8   : > { %538 = vmatprep.subr.bf16.mxu0 (!%p287_p2), %v4500_v5  ;;  %4382 = vmatprep.subr.bf16.mxu1 (!%p287_p2), %v4564_v3  ;;  %v4504_v8 = vld [vmem:[%s5266_s3 + $0x34] ss:$12 sps:$4 sm:$0xff] (!%p287_p2)   ;;  %v4506_v13 = vld [vmem:[%s5266_s3 + $0x30] ss:$12 sps:$4 sm:$0xff] (!%p287_p2)   ;;  %v4508_v15 = vld [vmem:[%s5266_s3 + $0x4c] ss:$12 sps:$4 sm:$0xff] (!%p287_p2)  }
   0x9   : > { %v4510_v16 = vld [vmem:[%s5266_s3 + $0x48] ss:$12 sps:$4 sm:$0xff] (!%p287_p2)   ;;  %v4511_v17 = vld [vmem:[%s5266_s3 + $0x50] ss:$12 sps:$4 sm:$0xff] (!%p287_p2)   ;;  %v4514_v19 = vld [vmem:[%s5266_s3 + $0x60] ss:$12 sps:$4 sm:$0xff] (!%p287_p2)   ;;  %568 = vmatprep.mubr.bf16.mxu0 (!%p287_p2), %v4565_v25 }
   0xa   : > { %v4512_v18 = vld [vmem:[%s5266_s3 + $0x64] ss:$12 sps:$4 sm:$0xff] (!%p287_p2)   ;;  %v4515_v20 = vld [vmem:[%s5266_s3 + $0x68] ss:$12 sps:$4 sm:$0xff] (!%p287_p2)   ;;  %v4519_v23 = vld [vmem:[%s5266_s3 + $0x80] ss:$12 sps:$4 sm:$0xff] (!%p287_p2)  }
   0xb   : > { %539 = vmatpush1.bf16.msra.mxu0 (!%p287_p2), %v4502_v6  ;;  %4383 = vmatpush3.bf16.msra.mxu1 (!%p287_p2), %v4503_v7  ;;  %v4516_v21 = vld [vmem:[%s5266_s3 + $0x7c] ss:$12 sps:$4 sm:$0xff] (!%p287_p2)   ;;  %v4518_v22 = vld [vmem:[%s5266_s3 + $0x78] ss:$12 sps:$4 sm:$0xff] (!%p287_p2)   ;;  %v4520_v24 = vld [vmem:[%s5266_s3 + $0x94] ss:$12 sps:$4 sm:$0xff] (!%p287_p2)  }
   0xc   : > { %540 = vmatprep.subr.bf16.mxu0 (!%p287_p2), %v4504_v8  ;;  %4384 = vmatprep.subr.bf16.mxu1 (!%p287_p2), %v4564_v3  ;;  %vm4566_vm0 = vmmov (!%p287_p2), 0   ;;  %v4522_v26 = vld [vmem:[%s5266_s3 + $0x90] ss:$12 sps:$4 sm:$0xff] (!%p287_p2)   ;;  %v4523_v27 = vld [vmem:[%s5266_s3 + $0x98] ss:$12 sps:$4 sm:$0xff] (!%p287_p2)   ;;  %v4734_v42 = vshrl.u32 (!%p287_p2), %v393_v41, 7 }
   0xd   : > { %s5274_s10 = smov (!%p320_p3, %s4274_s10), 1  ;;  %4396 = vmatprep.mubr.msk.bf16.mxu1 %vm4566_vm0, %v4564_v3  ;;  %v4524_v28 = vld [vmem:[%s5266_s3 + $0xac] ss:$12 sps:$4 sm:$0xff]   ;;  %v4526_v29 = vld [vmem:[%s5266_s3 + $0xa8] ss:$12 sps:$4 sm:$0xff]   ;;  %s4567_s15 = smov 32  }
   0xe   : > { %s4279_s11 = sshll.u32 %s5274_s10, 3  ;;  %v4527_v30 = vld [vmem:[%s5266_s3 + $0xb0] ss:$12 sps:$4 sm:$0xff]   ;;  %v4281_v35 = vld [vmem:[%s5264_s1] ss:$0 sm:$0xff]  ;;  %v399_v43 = vsub.s32 1, %v4734_v42 }
   0xf   : > { %s323_s14 = scalar_lea.vmem %s5263_s0, %s4279_s11  ;;  %541 = vmatpush1.bf16.msra.mxu0 %v4506_v13  ;;  %4385 = vmatpush3.bf16.msra.mxu1 %v4507_v14  ;;  %v4282_v37 = vld [vmem:[%s5265_s2] ss:$0 sm:$0xff]  ;;  %v395_v45 = vsub.s32 0, %v4734_v42  ;;  %s4568_s16 = smov 96   ;;  %v4570_v58 = vmov 1983009808  }
  0x10   : > { %v329_v0 = vld [vmem:[%s323_s14] sm:$0xff]  ;;  %4386 = vmatprep.subr.bf16.mxu1 %v4564_v3  ;;  %542 = vmatprep.subr.bf16.mxu0 %v4508_v15  ;;  %s4569_s17 = smov 64   ;;  %v630_v59 = vunpack.c.l.s4 %v4570_v58  ;;  %v4571_v60 = vmov 1934713408   ;;  %vm2145_vm1 = vcmask 261120   ;;  %vm2318_vm2 = vcmask 64512   ;;  %s327_s24 = scalar_lea.vmem %s5272_s9, %s4279_s11 }
  0x11   : > { %332 = vadd.xlane.f32.xlu0 %v329_v0  ;;  %v4740_v44 = vld [vmem:[%s5267_s4] sm:$0x7]  ;;  %v662_v61 = vunpack.c.l.s4 %v4571_v60  ;;  %vm4076_vm3 = vcmask 523264   ;;  %vm4078_vm4 = vcmask 785408  }
  0x12   : > { %v400_v46 = vrot.slane %v4740_v44, %v399_v43  ;;  %v396_v51 = vrot.slane %v4740_v44, %v395_v45  ;;  %v631_v62 = vunpack.c.0.s8 %v630_v59 }
  0x13   : > { %543 = vmatpush1.bf16.msra.mxu0 %v4510_v16  ;;  %4387 = vmatpush3.bf16.msra.mxu1 %v4511_v17  ;;  %v663_v1 = vunpack.c.0.s8 %v662_v61 }
  0x14   : > { %4388 = vmatprep.subr.bf16.mxu1 %v4564_v3  ;;  %544 = vmatprep.subr.bf16.mxu0 %v4512_v18  ;;  %v4759_v2 = vsub.s32 %v631_v62, %v4734_v42 }
  0x17   : > { %545 = vmatpush1.bf16.msra.mxu0 %v4514_v19  ;;  %4389 = vmatpush3.bf16.msra.mxu1 %v4515_v20 }
  0x18   : > { %546 = vmatprep.subr.bf16.mxu0 %v4516_v21  ;;  %4390 = vmatprep.subr.bf16.mxu1 %v4564_v3 }
  0x1b   : > { %547 = vmatpush1.bf16.msra.mxu0 %v4518_v22  ;;  %4391 = vmatpush3.bf16.msra.mxu1 %v4519_v23 }
  0x1c   : > { %548 = vmatprep.subr.bf16.mxu0 %v4520_v24  ;;  %4392 = vmatprep.subr.bf16.mxu1 %v4564_v3 }
  0x1f   : > { %549 = vmatpush1.bf16.msra.mxu0 %v4522_v26  ;;  %4393 = vmatpush3.bf16.msra.mxu1 %v4523_v27 }
  0x20   : > { %550 = vmatprep.subr.bf16.mxu0 %v4524_v28  ;;  %4394 = vmatprep.subr.bf16.mxu1 %v4564_v3 }
  0x23   : > { %551 = vmatpush1.bf16.msra.mxu0 %v4526_v29  ;;  %4395 = vmatpush3.bf16.msra.mxu1 %v4527_v30 }
  0x24   : > { %4400 = vmatprep.subr.bf16.mxu1 %v4564_v3 }
  0x9e   : > { %v333_v9 = vpop.xlane.xlu0 %332 }
  0x9f   : > { %v335_v10 = vmul.f32 0.0078125, %v333_v9  ;;  %v4762_v9 = vsub.s32 %v663_v1, %v4734_v42 }
  0xa1   : > { %v336_v11 = vsub.f32 %v329_v0, %v335_v10 }
  0xa3   : > { %v337_v12 = vmul.f32 %v336_v11, %v336_v11 }
  0xa5   : > { %338 = vadd.xlane.f32.xlu0 %v337_v12 }
 0x132   : > { %v339_v31 = vpop.xlane.xlu0 %338 }
 0x133   : > { %v340_v32 = vmul.f32 0.0078125, %v339_v31 }
 0x135   : > { %v341_v33 = vadd.f32 1e-05, %v340_v32 }
 0x137   : > { %4536 = vrsqrt.f32 %v341_v33 }
 0x141   : > { %v4537_v34 = vpop.eup %4536 }
 0x142   : > { %v343_v36 = vmul.f32 %v4537_v34, %v336_v11 }
 0x144   : > { %v350_v38 = vmul.f32 %v4281_v35, %v343_v36 }
 0x146   : > { %v4728_v39 = vadd.f32 %v4282_v37, %v350_v38 }
 0x148   : > { %v358_v40 = vpack.c.bf16 %v4728_v39, %v4728_v39 }
 0x14a   : > { %569 = vmatmul.mubr.bf16.vlgmr.msra.gmra.mrb[0].mxu0 %v358_v40  ;;  %4397 = vmatmul.mubr.bf16.vlgmr.msra.gmra.mrb[0].mxu1 %v358_v40 }
 0x14b   : > { %4404 = vmatprep.mubr.msk.bf16.mxu1 %vm4566_vm0, %v4564_v3 }
 0x21d   : > { %v570_v47 = vpop.f32.mrb[0].mxu0  ;;  %v4744_v48 = vpop.f32.mrb[0].mxu1 }
 0x21e   : > { %v572_v49 = vpop.f32.mrb[1].mxu0  ;;  %v4398_v50 = vpop.f32.mrb[1].mxu1  ;;  %v4749_v57 = vadd.f32 %v570_v47, %v396_v51 }
 0x21f   : > { %v573_v52 = vadd.f32 %v572_v49, %v400_v46  ;;  %v574_v53 = vpop.f32.mrb[2].mxu0  ;;  %v614_v54 = vpop.f32.mrb[2].mxu1 }
 0x220   : > { %v575_v55 = vpop.f32.mrb[3].mxu0  ;;  %v4399_v56 = vpop.f32.mrb[3].mxu1 }
 0x221   : > { %710 = vrot.lane.b32.xlu0 %v573_v52, %s4567_s15  ;;  %704 = vrot.lane.b32.xlu1 %v573_v52, %s4568_s16 }
 0x225   : > { %707 = vrot.lane.b32.xlu1 %v573_v52, %s4569_s17  ;;  %618 = vrot.lane.b32.xlu0 %v4749_v57, %s4568_s16 }
 0x229   : > { %621 = vrot.lane.b32.xlu1 %v4749_v57, %s4569_s17 }
 0x22d   : > { %624 = vrot.lane.b32.xlu1 %v4749_v57, %s4567_s15 }
 0x293   : > { %v711_v63 = vpop.permute.xlu0 %710  ;;  %v705_v0 = vpop.permute.xlu1 %704 }
 0x294   : > { %v729_v4 = vcombine.low %v705_v0, %v711_v63  ;;  %v730_v5 = vcombine.high %v705_v0, %v711_v63 }
 0x296   : > { %v737_v10 = vrot.slane %v729_v4, %v4759_v2  ;;  %v744_v11 = vrot.slane %v730_v5, %v4759_v2 }
 0x297   : > { %v708_v6 = vpop.permute.xlu1 %707  ;;  %v4784_v45 = vpop.permute.xlu0 %618 }
 0x298   : > { %v713_v7 = vcombine.low %v573_v52, %v708_v6  ;;  %v714_v8 = vcombine.high %v573_v52, %v708_v6 }
 0x29a   : > { %v721_v12 = vrot.slane %v713_v7, %v4759_v2  ;;  %v728_v13 = vrot.slane %v714_v8, %v4759_v2 }
 0x29b   : > { %v4776_v35 = vpop.permute.xlu1 %621 }
 0x29c   : > { %v745_v14 = vcombine.low %v721_v12, %v737_v10  ;;  %v762_v15 = vcombine.high %v728_v13, %v744_v11  ;;  %v746_v16 = vcombine.high %v721_v12, %v737_v10  ;;  %v761_v23 = vcombine.low %v728_v13, %v744_v11 }
 0x29e   : > { %v753_v17 = vrot.slane %v745_v14, %v4762_v9  ;;  %v776_v18 = vrot.slane %v762_v15, %v4762_v9  ;;  %v760_v21 = vrot.slane %v746_v16, %v4762_v9  ;;  %v769_v27 = vrot.slane %v761_v23, %v4762_v9 }
 0x29f   : > { %v4778_v36 = vpop.permute.xlu1 %624 }
 0x2a0   : > { %v781_v19 = vpack.c.bf16 %v753_v17, %v753_v17  ;;  %v787_v20 = vpack.c.bf16 %v776_v18, %v776_v18  ;;  %v777_v22 = vcombine.high %v753_v17, %v4564_v3  ;;  %v783_v24 = vpack.c.bf16 %v760_v21, %v760_v21 }
 0x2a1   : > { %v785_v28 = vpack.c.bf16 %v769_v27, %v769_v27  ;;  %v778_v29 = vcombine.high %v760_v21, %v4564_v3  ;;  %v779_v31 = vcombine.high %v769_v27, %v4564_v3  ;;  %v780_v33 = vcombine.high %v776_v18, %v4564_v3 }
 0x2a2   : > { %937 = vxpose.xlu1.c.b16.start.end [1/1] (short) (narrow) %v781_v19, 32  ;;  %1033 = vxpose.xlu0.c.b16.start.end [1/1] (short) (narrow) %v787_v20, 32  ;;  %v782_v26 = vpack.c.bf16 %v777_v22, %v777_v22 }
 0x2a3   : > { %v784_v30 = vpack.c.bf16 %v778_v29, %v778_v29  ;;  %v786_v32 = vpack.c.bf16 %v779_v31, %v779_v31  ;;  %v788_v34 = vpack.c.bf16 %v780_v33, %v780_v33 }
 0x2a7   : > { %969 = vxpose.xlu1.c.b16.start.end [1/1] (short) (narrow) %v783_v24, 32  ;;  %953 = vxpose.xlu0.c.b16.start.end [1/1] (short) (narrow) %v782_v26, 32 }
 0x2ac   : > { %1001 = vxpose.xlu1.c.b16.start.end [1/1] (short) (narrow) %v785_v28, 32 }
 0x2b1   : > { %985 = vxpose.xlu1.c.b16.start.end [1/1] (short) (narrow) %v784_v30, 32 }
 0x2b6   : > { %1017 = vxpose.xlu1.c.b16.start.end [1/1] (short) (narrow) %v786_v32, 32 }
 0x2bb   : > { %1049 = vxpose.xlu1.c.b16.start.end [1/1] (short) (narrow) %v788_v34, 32 }
 0x308   : > { %v945_v37 = vpop.trf.xlu1  ;;  %v1041_v47 = vpop.trf.xlu0 }
 0x309   : > { %v1093_v58 = vshrl.u32 %v1041_v47, 16  ;;  %v1069_v12 = vshrl.u32 %v945_v37, 16 }
 0x30c   : > { %v4780_v38 = vpop.trf.xlu1  ;;  %v4790_v51 = vpop.trf.xlu0 }
 0x310   : > { %v977_v40 = vpop.trf.xlu1  ;;  %v961_v53 = vpop.trf.xlu0 }
 0x311   : > { %v1067_v56 = vpack.i.b16 %v961_v53, %v945_v37  ;;  %v1077_v4 = vshrl.u32 %v977_v40, 16  ;;  %v1070_v5 = vshrl.u32 %v961_v53, 16 }
 0x313   : > { %v1071_v18 = vpack.i.b16 %v1070_v5, %v1069_v12 }
 0x314   : > { %v4782_v41 = vpop.trf.xlu1 }
 0x315   : > { %v1109_v12 = vshrl.u32 %v4782_v41, 16 }
 0x318   : > { %v1009_v43 = vpop.trf.xlu1 }
 0x319   : > { %v1085_v6 = vshrl.u32 %v1009_v43, 16 }
 0x31c   : > { %v4786_v46 = vpop.trf.xlu1 }
 0x320   : > { %v993_v49 = vpop.trf.xlu1 }
 0x321   : > { %v1078_v59 = vshrl.u32 %v993_v49, 16  ;;  %v1075_v62 = vpack.i.b16 %v993_v49, %v977_v40 }
 0x323   : > { %v1079_v13 = vpack.i.b16 %v1078_v59, %v1077_v4  ;;  %v962_v59 = vpop.trf.xlu0 }
 0x324   : > { %v4788_v50 = vpop.trf.xlu1 }
 0x328   : > { %v1025_v52 = vpop.trf.xlu1 }
 0x329   : > { %v1083_v55 = vpack.i.b16 %v1025_v52, %v1009_v43  ;;  %v1086_v60 = vshrl.u32 %v1025_v52, 16 }
 0x32b   : > { %v1129_v63 = vcombine.low %v1067_v56, %v1083_v55  ;;  %v1130_v7 = vcombine.high %v1067_v56, %v1083_v55  ;;  %v1087_v14 = vpack.i.b16 %v1086_v60, %v1085_v6 }
 0x32c   : > { %v4792_v54 = vpop.trf.xlu1 }
 0x32d   : > { %v1137_v15 = vrot.slane %v1129_v63, %v4759_v2  ;;  %v1144_v21 = vrot.slane %v1130_v7, %v4759_v2  ;;  %v1197_v23 = vcombine.low %v1071_v18, %v1087_v14  ;;  %v1198_v31 = vcombine.high %v1071_v18, %v1087_v14 }
 0x32e   : > { %v1115_v63 = vpack.i.b16 %v4792_v54, %v4786_v46 }
 0x32f   : > { %v1205_v30 = vrot.slane %v1197_v23, %v4759_v2  ;;  %v1212_v43 = vrot.slane %v1198_v31, %v4759_v2 }
 0x330   : > { %v1057_v61 = vpop.trf.xlu1 }
 0x331   : > { %v1091_v0 = vpack.i.b16 %v1057_v61, %v1041_v47  ;;  %v1094_v1 = vshrl.u32 %v1057_v61, 16 }
 0x333   : > { %v1095_v8 = vpack.i.b16 %v1094_v1, %v1093_v58  ;;  %v1145_v10 = vcombine.low %v1075_v62, %v1091_v0  ;;  %v1146_v11 = vcombine.high %v1075_v62, %v1091_v0  ;;  %v1107_v62 = vpack.i.b16 %v4788_v50, %v4782_v41 }
 0x334   : > { %v1058_v52 = vpop.trf.xlu1  ;;  %v1099_v0 = vpack.i.b16 %v962_v59, %v4780_v38 }
 0x335   : > { %v1153_v16 = vrot.slane %v1145_v10, %v4759_v2  ;;  %v1160_v17 = vrot.slane %v1146_v11, %v4759_v2  ;;  %v1213_v19 = vcombine.low %v1079_v13, %v1095_v8  ;;  %v1214_v29 = vcombine.high %v1079_v13, %v1095_v8 }
 0x336   : > { %v1123_v56 = vpack.i.b16 %v1058_v52, %v4790_v51  ;;  %v1126_v5 = vshrl.u32 %v1058_v52, 16  ;;  %v1265_v7 = vcombine.low %v1099_v0, %v1115_v63  ;;  %v1125_v8 = vshrl.u32 %v4790_v51, 16 }
 0x337   : > { %v1162_v20 = vcombine.high %v1137_v15, %v1153_v16  ;;  %v1161_v22 = vcombine.low %v1137_v15, %v1153_v16  ;;  %v1177_v26 = vcombine.low %v1144_v21, %v1160_v17  ;;  %v1221_v28 = vrot.slane %v1213_v19, %v4759_v2 }
 0x338   : > { %v1178_v33 = vcombine.high %v1144_v21, %v1160_v17  ;;  %v1228_v40 = vrot.slane %v1214_v29, %v4759_v2  ;;  %v1281_v1 = vcombine.low %v1107_v62, %v1123_v56  ;;  %v1110_v10 = vshrl.u32 %v4788_v50, 16 }
 0x339   : > { %v1176_v24 = vrot.slane %v1162_v20, %v4762_v9  ;;  %v1169_v27 = vrot.slane %v1161_v22, %v4762_v9  ;;  %v1185_v32 = vrot.slane %v1177_v26, %v4762_v9  ;;  %v1230_v37 = vcombine.high %v1205_v30, %v1221_v28 }
 0x33a   : > { %v1192_v47 = vrot.slane %v1178_v33, %v4762_v9  ;;  %v1229_v49 = vcombine.low %v1205_v30, %v1221_v28  ;;  %v1245_v55 = vcombine.low %v1212_v43, %v1228_v40  ;;  %v1246_v61 = vcombine.high %v1212_v43, %v1228_v40 }
 0x33b   : > { %1465 = vxpose.xlu1.c.b16.start.end [1/1] (short) (narrow) %v1176_v24, 16  ;;  %1401 = vxpose.xlu0.c.b16.start.end [1/1] (short) (narrow) %v1169_v27, 16  ;;  %v1193_v34 = vcombine.high %v1169_v27, %v4565_v25  ;;  %v1244_v53 = vrot.slane %v1230_v37, %v4762_v9  ;;  %v1194_v4 = vcombine.high %v1176_v24, %v4565_v25  ;;  %v1118_v11 = vshrl.u32 %v4792_v54, 16 }
 0x33c   : > { %v1237_v58 = vrot.slane %v1229_v49, %v4762_v9  ;;  %v1253_v60 = vrot.slane %v1245_v55, %v4762_v9  ;;  %v1260_v6 = vrot.slane %v1246_v61, %v4762_v9  ;;  %v1195_v13 = vcombine.high %v1185_v32, %v4565_v25 }
 0x33d   : > { %v1289_v14 = vrot.slane %v1281_v1, %v4759_v2  ;;  %v1102_v15 = vshrl.u32 %v962_v59, 16  ;;  %v1117_v16 = vshrl.u32 %v4786_v46, 16  ;;  %v1127_v17 = vpack.i.b16 %v1126_v5, %v1125_v8 }
 0x33e   : > { %v1261_v18 = vcombine.high %v1237_v58, %v4565_v25  ;;  %v1273_v51 = vrot.slane %v1265_v7, %v4759_v2  ;;  %v1101_v50 = vshrl.u32 %v4780_v38, 16  ;;  %v1111_v19 = vpack.i.b16 %v1110_v10, %v1109_v12 }
 0x33f   : > { %1529 = vxpose.xlu1.c.b16.start.end [1/1] (short) (narrow) %v1185_v32, 16  ;;  %1433 = vxpose.xlu0.c.b16.start.end [1/1] (short) (narrow) %v1193_v34, 16  ;;  %v1119_v54 = vpack.i.b16 %v1118_v11, %v1117_v16  ;;  %v1282_v20 = vcombine.high %v1107_v62, %v1123_v56  ;;  %v1196_v41 = vcombine.high %v1192_v47, %v4565_v25  ;;  %v403_v5 = vsub.s32 2, %v4734_v42 }
 0x340   : > { %v1297_v21 = vcombine.low %v1273_v51, %v1289_v14  ;;  %v1103_v22 = vpack.i.b16 %v1102_v15, %v1101_v50  ;;  %v1262_v23 = vcombine.high %v1244_v53, %v4565_v25  ;;  %v1349_v24 = vcombine.low %v1111_v19, %v1127_v17 }
 0x341   : > { %v1266_v46 = vcombine.high %v1099_v0, %v1115_v63  ;;  %v1298_v28 = vcombine.high %v1273_v51, %v1289_v14  ;;  %v1296_v38 = vrot.slane %v1282_v20, %v4759_v2  ;;  %v1263_v29 = vcombine.high %v1253_v60, %v4565_v25 }
 0x342   : > { %v1333_v26 = vcombine.low %v1103_v22, %v1119_v54  ;;  %v1305_v27 = vrot.slane %v1297_v21, %v4762_v9  ;;  %v1357_v30 = vrot.slane %v1349_v24, %v4759_v2  ;;  %v1264_v37 = vcombine.high %v1260_v6, %v4565_v25 }
 0x343   : > { %1593 = vxpose.xlu1.c.b16.start.end [1/1] (short) (narrow) %v1192_v47, 16  ;;  %1481 = vxpose.xlu0.c.b16.start.end [1/1] (short) (narrow) %v1244_v53, 16  ;;  %v1280_v31 = vrot.slane %v1266_v46, %v4759_v2  ;;  %v1312_v33 = vrot.slane %v1298_v28, %v4762_v9  ;;  %v1350_v43 = vcombine.high %v1111_v19, %v1127_v17 }
 0x344   : > { %v1341_v32 = vrot.slane %v1333_v26, %v4759_v2  ;;  %v1334_v47 = vcombine.high %v1103_v22, %v1119_v54  ;;  %v1329_v62 = vcombine.high %v1305_v27, %v4565_v25  ;;  %v404_v8 = vrot.slane %v4740_v44, %v403_v5 }
 0x345   : > { %v1313_v34 = vcombine.low %v1280_v31, %v1296_v38  ;;  %v1314_v52 = vcombine.high %v1280_v31, %v1296_v38  ;;  %v1364_v56 = vrot.slane %v1350_v43, %v4759_v2  ;;  %v1330_v1 = vcombine.high %v1312_v33, %v4565_v25 }
 0x346   : > { %v1365_v40 = vcombine.low %v1341_v32, %v1357_v30  ;;  %v1366_v55 = vcombine.high %v1341_v32, %v1357_v30  ;;  %v4855_v12 = vadd.f32 %v4744_v48, %v404_v8  ;;  %v644_v8 = vcombine.high %v4784_v45, %v4778_v36 }
 0x347   : > { %1417 = vxpose.xlu1.c.b16.start.end [1/1] (short) (narrow) %v1237_v58, 16  ;;  %1545 = vxpose.xlu0.c.b16.start.end [1/1] (short) (narrow) %v1253_v60, 16  ;;  %v1321_v49 = vrot.slane %v1313_v34, %v4762_v9  ;;  %v1348_v58 = vrot.slane %v1334_v47, %v4759_v2  ;;  %v1328_v59 = vrot.slane %v1314_v52, %v4762_v9 }
 0x348   : > { %v1373_v53 = vrot.slane %v1365_v40, %v4762_v9  ;;  %v1380_v60 = vrot.slane %v1366_v55, %v4762_v9 }
 0x349   : > { %v1381_v61 = vcombine.low %v1348_v58, %v1364_v56  ;;  %v1382_v0 = vcombine.high %v1348_v58, %v1364_v56  ;;  %v1332_v10 = vcombine.high %v1328_v59, %v4565_v25 }
 0x34a   : > { %v1397_v7 = vcombine.high %v1373_v53, %v4565_v25  ;;  %v1398_v11 = vcombine.high %v1380_v60, %v4565_v25 }
 0x34b   : > { %1497 = vxpose.xlu1.c.b16.start.end [1/1] (short) (narrow) %v1194_v4, 16  ;;  %1609 = vxpose.xlu0.c.b16.start.end [1/1] (short) (narrow) %v1260_v6, 16  ;;  %v1389_v63 = vrot.slane %v1381_v61, %v4762_v9  ;;  %v1396_v4 = vrot.slane %v1382_v0, %v4762_v9  ;;  %v1331_v6 = vcombine.high %v1321_v49, %v4565_v25 }
 0x34d   : > { %v1400_v42 = vcombine.high %v1396_v4, %v4565_v25 }
 0x34f   : > { %1561 = vxpose.xlu1.c.b16.start.end [1/1] (short) (narrow) %v1195_v13, 16  ;;  %1449 = vxpose.xlu0.c.b16.start.end [1/1] (short) (narrow) %v1261_v18, 16  ;;  %v1399_v13 = vcombine.high %v1389_v63, %v4565_v25 }
 0x353   : > { %1625 = vxpose.xlu1.c.b16.start.end [1/1] (short) (narrow) %v1196_v41, 16  ;;  %1513 = vxpose.xlu0.c.b16.start.end [1/1] (short) (narrow) %v1262_v23, 16 }
 0x357   : > { %1657 = vxpose.xlu1.c.b16.start.end [1/1] (short) (narrow) %v1305_v27, 16  ;;  %1577 = vxpose.xlu0.c.b16.start.end [1/1] (short) (narrow) %v1263_v29, 16 }
 0x35b   : > { %1721 = vxpose.xlu1.c.b16.start.end [1/1] (short) (narrow) %v1312_v33, 16  ;;  %1641 = vxpose.xlu0.c.b16.start.end [1/1] (short) (narrow) %v1264_v37, 16 }
 0x35f   : > { %1785 = vxpose.xlu1.c.b16.start.end [1/1] (short) (narrow) %v1321_v49, 16  ;;  %1673 = vxpose.xlu0.c.b16.start.end [1/1] (short) (narrow) %v1373_v53, 16 }
 0x363   : > { %1849 = vxpose.xlu1.c.b16.start.end [1/1] (short) (narrow) %v1328_v59, 16  ;;  %1737 = vxpose.xlu0.c.b16.start.end [1/1] (short) (narrow) %v1380_v60, 16 }
 0x367   : > { %1689 = vxpose.xlu1.c.b16.start.end [1/1] (short) (narrow) %v1329_v62, 16  ;;  %1801 = vxpose.xlu0.c.b16.start.end [1/1] (short) (narrow) %v1389_v63, 16 }
 0x36b   : > { %1753 = vxpose.xlu1.c.b16.start.end [1/1] (short) (narrow) %v1330_v1, 16  ;;  %1865 = vxpose.xlu0.c.b16.start.end [1/1] (short) (narrow) %v1396_v4, 16 }
 0x36f   : > { %1817 = vxpose.xlu1.c.b16.start.end [1/1] (short) (narrow) %v1331_v6, 16  ;;  %1705 = vxpose.xlu0.c.b16.start.end [1/1] (short) (narrow) %v1397_v7, 16  ;;  %v643_v7 = vcombine.low %v4784_v45, %v4778_v36 }
 0x373   : > { %1881 = vxpose.xlu1.c.b16.start.end [1/1] (short) (narrow) %v1332_v10, 16  ;;  %1769 = vxpose.xlu0.c.b16.start.end [1/1] (short) (narrow) %v1398_v11, 16 }
 0x377   : > { %790 = vrot.lane.b32.xlu1 %v4855_v12, %s4568_s16  ;;  %1833 = vxpose.xlu0.c.b16.start.end [1/1] (short) (narrow) %v1399_v13, 16  ;;  %v627_v13 = vcombine.low %v4749_v57, %v4776_v35 }
 0x379   : > { %v635_v36 = vrot.slane %v627_v13, %v4759_v2 }
 0x37b   : > { %796 = vrot.lane.b32.xlu1 %v4855_v12, %s4567_s15  ;;  %1897 = vxpose.xlu0.c.b16.start.end [1/1] (short) (narrow) %v1400_v42, 16  ;;  %v628_v42 = vcombine.high %v4749_v57, %v4776_v35 }
 0x37d   : > { %v642_v45 = vrot.slane %v628_v42, %v4759_v2 }
 0x384   : > { %793 = vrot.lane.b32.xlu0 %v4855_v12, %s4569_s17 }
 0x3a1   : > { %v1473_v44 = vpop.trf.xlu1  ;;  %v1409_v14 = vpop.trf.xlu0 }
 0x3a2   : > { %v1913_v28 = vcombine.low %v1409_v14, %v1473_v44  ;;  %v651_v14 = vrot.slane %v643_v7, %v4759_v2 }
 0x3a4   : > { %v1920_v40 = vrot.slane %v1913_v28, %v4759_v2 }
 0x3a5   : > { %v1537_v15 = vpop.trf.xlu1  ;;  %v1441_v48 = vpop.trf.xlu0 }
 0x3a9   : > { %v1601_v16 = vpop.trf.xlu1  ;;  %v1489_v17 = vpop.trf.xlu0 }
 0x3aa   : > { %v1929_v23 = vcombine.low %v1537_v15, %v1601_v16  ;;  %v658_v15 = vrot.slane %v644_v8, %v4759_v2 }
 0x3ac   : > { %v1936_v30 = vrot.slane %v1929_v23, %v4759_v2 }
 0x3ad   : > { %v1425_v18 = vpop.trf.xlu1  ;;  %v1553_v51 = vpop.trf.xlu0 }
 0x3ae   : > { %v1963_v38 = vcombine.low %v1425_v18, %v1489_v17  ;;  %v659_v17 = vcombine.low %v635_v36, %v651_v14  ;;  %v660_v18 = vcombine.high %v635_v36, %v651_v14 }
 0x3b0   : > { %v1970_v43 = vrot.slane %v1963_v38, %v4759_v2  ;;  %v667_v35 = vrot.slane %v659_v17, %v4762_v9 }
 0x3b1   : > { %v1505_v50 = vpop.trf.xlu1  ;;  %v1617_v19 = vpop.trf.xlu0 }
 0x3b2   : > { %v1921_v24 = vcombine.low %v1441_v48, %v1505_v50  ;;  %v1979_v32 = vcombine.low %v1553_v51, %v1617_v19  ;;  %v675_v51 = vcombine.low %v642_v45, %v658_v15  ;;  %v676_v50 = vcombine.high %v642_v45, %v658_v15 }
 0x3b4   : > { %v1928_v31 = vrot.slane %v1921_v24, %v4759_v2  ;;  %v1986_v53 = vrot.slane %v1979_v32, %v4759_v2  ;;  %v691_v24 = vcombine.high %v667_v35, %v4564_v3 }
 0x3b5   : > { %v1569_v54 = vpop.trf.xlu1  ;;  %v1457_v20 = vpop.trf.xlu0 }
 0x3b6   : > { %v1945_v52 = vcombine.low %v1920_v40, %v1928_v31 }
 0x3b8   : > { %v4881_v62 = vrot.slane %v1945_v52, %v4762_v9 }
 0x3b9   : > { %v1633_v41 = vpop.trf.xlu1  ;;  %v1521_v21 = vpop.trf.xlu0 }
 0x3ba   : > { %v1937_v22 = vcombine.low %v1569_v54, %v1633_v41  ;;  %v1971_v46 = vcombine.low %v1457_v20, %v1521_v21  ;;  %v674_v54 = vrot.slane %v660_v18, %v4762_v9  ;;  %v683_v20 = vrot.slane %v675_v51, %v4762_v9 }
 0x3bb   : > { %v690_v41 = vrot.slane %v676_v50, %v4762_v9 }
 0x3bc   : > { %v1944_v29 = vrot.slane %v1937_v22, %v4759_v2  ;;  %v1978_v33 = vrot.slane %v1971_v46, %v4759_v2  ;;  %v692_v46 = vcombine.high %v674_v54, %v4564_v3 }
 0x3bd   : > { %v4865_v26 = vpop.trf.xlu1  ;;  %v1585_v27 = vpop.trf.xlu0  ;;  %v694_v28 = vcombine.high %v690_v41, %v4564_v3 }
 0x3be   : > { %v1953_v47 = vcombine.low %v1936_v30, %v1944_v29  ;;  %v1995_v55 = vcombine.low %v1970_v43, %v1978_v33 }
 0x3bf   : > { %v4310_v43 = vpack.c.bf16 %v694_v28, %v692_v46 }
 0x3c0   : > { %v4878_v60 = vrot.slane %v1953_v47, %v4762_v9  ;;  %v4884_v63 = vrot.slane %v1995_v55, %v4762_v9  ;;  %v4307_v55 = vpack.c.bf16 %v683_v20, %v667_v35 }
 0x3c1   : > { %v4871_v34 = vpop.trf.xlu1  ;;  %v1649_v37 = vpop.trf.xlu0 }
 0x3c2   : > { %v1987_v49 = vcombine.low %v1585_v27, %v1649_v37  ;;  %v4891_v5 = vcombine.low %v4881_v62, %v4878_v60  ;;  %v693_v27 = vcombine.high %v683_v20, %v4564_v3  ;;  %v2013_v32 = vcombine.low %v4865_v26, %v4871_v34 }
 0x3c3   : > { %v882_v13 = vrot.slane %v4307_v55, %v4759_v2  ;;  %v1962_v28 = vcombine.high %v4881_v62, %v4878_v60 }
 0x3c4   : > { %v1994_v56 = vrot.slane %v1987_v49, %v4759_v2  ;;  %v4309_v40 = vpack.c.bf16 %v693_v27, %v691_v24 }
 0x3c5   : > { %v1793_v58 = vpop.trf.xlu1  ;;  %v1681_v59 = vpop.trf.xlu0 }
 0x3c6   : > { %v2003_v61 = vcombine.low %v1986_v53, %v1994_v56  ;;  %v4308_v56 = vpack.c.bf16 %v690_v41, %v674_v54  ;;  %v2117_v54 = vshrl.u32 %v4891_v5, 16 }
 0x3c8   : > { %v4887_v0 = vrot.slane %v2003_v61, %v4762_v9  ;;  %v2020_v61 = vrot.slane %v2013_v32, %v4759_v2  ;;  %v890_v42 = vrot.slane %v4308_v56, %v4759_v2  ;;  %v2125_v56 = vshrl.u32 %v1962_v28, 16 }
 0x3c9   : > { %v1857_v1 = vpop.trf.xlu1  ;;  %v1745_v4 = vpop.trf.xlu0 }
 0x3ca   : > { %v4895_v6 = vcombine.low %v4884_v63, %v4887_v0  ;;  %v2029_v38 = vcombine.low %v1793_v58, %v1857_v1  ;;  %v2063_v33 = vcombine.low %v1681_v59, %v1745_v4  ;;  %v907_v59 = vrot.slane %v4309_v40, %v4759_v2 }
 0x3cb   : > { %v915_v4 = vrot.slane %v4310_v43, %v4759_v2  ;;  %v2012_v24 = vcombine.high %v4884_v63, %v4887_v0 }
 0x3cc   : > { %v2115_v11 = vpack.i.b16 %v4895_v6, %v4891_v5  ;;  %v2036_v47 = vrot.slane %v2029_v38, %v4759_v2  ;;  %v2070_v1 = vrot.slane %v2063_v33, %v4759_v2 }
 0x3cd   : > { %v1697_v10 = vpop.trf.xlu1  ;;  %v1809_v44 = vpop.trf.xlu0  ;;  %v916_v15 = vcombine.low %v907_v59, %v915_v4  ;;  %v2123_v33 = vpack.i.b16 %v2012_v24, %v1962_v28 }
 0x3ce   : > { %4401 = vmatpush3.bf16.msra.mxu1 %v2115_v11 }
 0x3cf   : > { %4402 = vmatprep.subr.bf16.mxu1 %v4564_v3  ;;  %v923_v51 = vrot.slane %v916_v15, %v4762_v9 }
 0x3d1   : > { %v1761_v48 = vpop.trf.xlu1  ;;  %v1873_v16 = vpop.trf.xlu0  ;;  %v924_v62 = vcombine.high %v923_v51, %v4565_v25 }
 0x3d2   : > { %v2021_v29 = vcombine.low %v1697_v10, %v1761_v48  ;;  %v2079_v52 = vcombine.low %v1809_v44, %v1873_v16  ;;  %v891_v16 = vcombine.low %v882_v13, %v890_v42 }
 0x3d4   : > { %v2028_v49 = vrot.slane %v2021_v29, %v4759_v2  ;;  %v2086_v8 = vrot.slane %v2079_v52, %v4759_v2  ;;  %v898_v35 = vrot.slane %v891_v16, %v4762_v9 }
 0x3d5   : > { %v1825_v19 = vpop.trf.xlu1  ;;  %v1713_v57 = vpop.trf.xlu0 }
 0x3d6   : > { %v2045_v7 = vcombine.low %v2020_v61, %v2028_v49  ;;  %v927_v20 = vpack.i.b16 %v923_v51, %v898_v35  ;;  %v928_v27 = vshrl.u32 %v898_v35, 16  ;;  %v2126_v49 = vshrl.u32 %v2012_v24, 16 }
 0x3d8   : > { %v2052_v48 = vrot.slane %v2045_v7, %v4762_v9  ;;  %v2127_v59 = vpack.i.b16 %v2126_v49, %v2125_v56 }
 0x3d9   : > { %v1889_v21 = vpop.trf.xlu1  ;;  %v1777_v22 = vpop.trf.xlu0 }
 0x3da   : > { %v2037_v23 = vcombine.low %v1825_v19, %v1889_v21  ;;  %v2071_v30 = vcombine.low %v1713_v57, %v1777_v22  ;;  %v2118_v57 = vshrl.u32 %v4895_v6, 16  ;;  %v929_v6 = vshrl.u32 %v923_v51, 16 }
 0x3dc   : > { %v2044_v37 = vrot.slane %v2037_v23, %v4759_v2  ;;  %v2078_v53 = vrot.slane %v2071_v30, %v4759_v2  ;;  %v2119_v41 = vpack.i.b16 %v2118_v57, %v2117_v54 }
 0x3dd   : > { %v1841_v31 = vpop.trf.xlu0 }
 0x3de   : > { %v2053_v26 = vcombine.low %v2036_v47, %v2044_v37  ;;  %v2095_v10 = vcombine.low %v2070_v1, %v2078_v53  ;;  %v899_v53 = vcombine.high %v898_v35, %v4565_v25 }
 0x3e0   : > { %v2060_v44 = vrot.slane %v2053_v26, %v4762_v9  ;;  %v2102_v36 = vrot.slane %v2095_v10, %v4762_v9  ;;  %v933_v61 = vpack.i.b16 %v924_v62, %v899_v53  ;;  %v934_v15 = vshrl.u32 %v899_v53, 16 }
 0x3e1   : > { %v1905_v58 = vpop.trf.xlu0 }
 0x3e2   : > { %v2087_v34 = vcombine.low %v1841_v31, %v1905_v58  ;;  %v2061_v17 = vcombine.low %v2052_v48, %v2060_v44  ;;  %v930_v31 = vpack.i.b16 %v929_v6, %v928_v27  ;;  %v2062_v40 = vcombine.high %v2052_v48, %v2060_v44 }
 0x3e4   : > { %v2094_v11 = vrot.slane %v2087_v34, %v4759_v2  ;;  %v2133_v23 = vshrl.u32 %v2061_v17, 16 }
 0x3e6   : > { %v2103_v14 = vcombine.low %v2086_v8, %v2094_v11  ;;  %v2141_v8 = vshrl.u32 %v2062_v40, 16  ;;  %v935_v11 = vshrl.u32 %v924_v62, 16 }
 0x3e8   : > { %v2110_v45 = vrot.slane %v2103_v14, %v4762_v9 }
 0x3e9   : > { %v791_v50 = vpop.permute.xlu1 %790 }
 0x3ea   : > { %v2111_v18 = vcombine.low %v2102_v36, %v2110_v45  ;;  %v2112_v32 = vcombine.high %v2102_v36, %v2110_v45  ;;  %v936_v36 = vpack.i.b16 %v935_v11, %v934_v15 }
 0x3ec   : > { %v2131_v19 = vpack.i.b16 %v2111_v18, %v2061_v17  ;;  %v2134_v21 = vshrl.u32 %v2111_v18, 16  ;;  %v2139_v47 = vpack.i.b16 %v2112_v32, %v2062_v40  ;;  %v2142_v4 = vshrl.u32 %v2112_v32, 16 }
 0x3ed   : > { %v797_v22 = vpop.permute.xlu1 %796 }
 0x3ee   : > { %4403 = vmatpush3.bf16.msra.mxu1 %v2131_v19  ;;  %v2135_v5 = vpack.i.b16 %v2134_v21, %v2133_v23  ;;  %v815_v46 = vcombine.low %v791_v50, %v797_v22  ;;  %v816_v37 = vcombine.high %v791_v50, %v797_v22  ;;  %v2143_v42 = vpack.i.b16 %v2142_v4, %v2141_v8 }
 0x3ef   : > { %4408 = vmatprep.subr.bf16.mxu1 %v4564_v3 }
 0x3f0   : > { %v823_v63 = vrot.slane %v815_v46, %v4759_v2  ;;  %v830_v52 = vrot.slane %v816_v37, %v4759_v2 }
 0x3f1   : > { %4405 = vmatmul.mubr.msk.bf16.vlgmr.msra.gmra.mrb[4].mxu1 %vm2145_vm1, %v927_v20 }
 0x3f2   : > { %4409 = vmatpush3.bf16.msra.mxu1 %v2119_v41  ;;  %4412 = vmatprep.mubr.msk.bf16.mxu1 %vm4566_vm0, %v4564_v3 }
 0x3f3   : > { %4410 = vmatprep.subr.bf16.mxu1 %v4564_v3 }
 0x3f6   : > { %4411 = vmatpush3.bf16.msra.mxu1 %v2135_v5  ;;  %v794_v38 = vpop.permute.xlu0 %793 }
 0x3f7   : > { %v799_v29 = vcombine.low %v4855_v12, %v794_v38  ;;  %v800_v30 = vcombine.high %v4855_v12, %v794_v38  ;;  %4416 = vmatprep.subr.bf16.mxu1 %v4564_v3 }
 0x3f9   : > { %v807_v0 = vrot.slane %v799_v29, %v4759_v2  ;;  %4413 = vmatmul.mubr.msk.bf16.vlgmr.msra.gmra.mrb[8].mxu1 %vm2145_vm1, %v930_v31  ;;  %v814_v60 = vrot.slane %v800_v30, %v4759_v2 }
 0x3fa   : > { %4417 = vmatpush3.bf16.msra.mxu1 %v2123_v33  ;;  %4420 = vmatprep.mubr.msk.bf16.mxu1 %vm4566_vm0, %v4564_v3 }
 0x3fb   : > { %v831_v12 = vcombine.low %v807_v0, %v823_v63  ;;  %4418 = vmatprep.subr.bf16.mxu1 %v4564_v3  ;;  %v832_v43 = vcombine.high %v807_v0, %v823_v63  ;;  %v847_v34 = vcombine.low %v814_v60, %v830_v52  ;;  %v848_v14 = vcombine.high %v814_v60, %v830_v52 }
 0x3fd   : > { %v839_v55 = vrot.slane %v831_v12, %v4762_v9  ;;  %v846_v58 = vrot.slane %v832_v43, %v4762_v9  ;;  %v855_v13 = vrot.slane %v847_v34, %v4762_v9  ;;  %v862_v16 = vrot.slane %v848_v14, %v4762_v9 }
 0x3fe   : > { %4419 = vmatpush3.bf16.msra.mxu1 %v2139_v47 }
 0x3ff   : > { %4424 = vmatprep.subr.bf16.mxu1 %v4564_v3  ;;  %v867_v1 = vpack.c.bf16 %v839_v55, %v839_v55  ;;  %v863_v26 = vcombine.high %v839_v55, %v4564_v3  ;;  %v864_v10 = vcombine.high %v846_v58, %v4564_v3  ;;  %v869_v44 = vpack.c.bf16 %v846_v58, %v846_v58 }
 0x400   : > { %v865_v45 = vcombine.high %v855_v13, %v4564_v3  ;;  %v871_v17 = vpack.c.bf16 %v855_v13, %v855_v13  ;;  %v866_v51 = vcombine.high %v862_v16, %v4564_v3  ;;  %v873_v50 = vpack.c.bf16 %v862_v16, %v862_v16 }
 0x401   : > { %4421 = vmatmul.mubr.msk.bf16.vlgmr.msra.gmra.mrb[12].mxu1 %vm2145_vm1, %v933_v61  ;;  %2367 = vxpose.xlu0.c.b16.start.end [1/1] (short) (narrow) %v867_v1, 32  ;;  %v868_v7 = vpack.c.bf16 %v863_v26, %v863_v26  ;;  %v870_v48 = vpack.c.bf16 %v864_v10, %v864_v10 }
 0x402   : > { %4425 = vmatpush3.bf16.msra.mxu1 %v2127_v59  ;;  %4428 = vmatprep.mubr.msk.bf16.mxu1 %vm4566_vm0, %v4564_v3  ;;  %v872_v18 = vpack.c.bf16 %v865_v45, %v865_v45  ;;  %v874_v19 = vpack.c.bf16 %v866_v51, %v866_v51 }
 0x403   : > { %2383 = vxpose.xlu1.c.b16.start.end [1/1] (short) (narrow) %v868_v7, 32  ;;  %4426 = vmatprep.subr.bf16.mxu1 %v4564_v3 }
 0x406   : > { %4427 = vmatpush3.bf16.msra.mxu1 %v2143_v42  ;;  %2399 = vxpose.xlu0.c.b16.start.end [1/1] (short) (narrow) %v869_v44, 32 }
 0x408   : > { %2415 = vxpose.xlu1.c.b16.start.end [1/1] (short) (narrow) %v870_v48, 32 }
 0x409   : > { %4429 = vmatmul.mubr.msk.bf16.vlgmr.msra.gmra.mrb[16].mxu1 %vm2145_vm1, %v936_v36 }
 0x40b   : > { %2431 = vxpose.xlu0.c.b16.start.end [1/1] (short) (narrow) %v871_v17, 32 }
 0x40d   : > { %2447 = vxpose.xlu1.c.b16.start.end [1/1] (short) (narrow) %v872_v18, 32 }
 0x410   : > { %2463 = vxpose.xlu0.c.b16.start.end [1/1] (short) (narrow) %v873_v50, 32 }
 0x412   : > { %2479 = vxpose.xlu1.c.b16.start.end [1/1] (short) (narrow) %v874_v19, 32 }
 0x467   : > { %v2375_v57 = vpop.trf.xlu0 }
 0x468   : > { %v2499_v27 = vshrl.u32 %v2375_v57, 16 }
 0x469   : > { %v2391_v35 = vpop.trf.xlu1 }
 0x46a   : > { %v2500_v28 = vshrl.u32 %v2391_v35, 16  ;;  %v4982_v12 = vpack.i.b16 %v2391_v35, %v2375_v57 }
 0x46b   : > { %v2376_v54 = vpop.trf.xlu0 }
 0x46c   : > { %v2531_v5 = vshrl.u32 %v2376_v54, 16  ;;  %v4984_v62 = vpack.i.b16 %v2500_v28, %v2499_v27 }
 0x46d   : > { %v2392_v20 = vpop.trf.xlu1 }
 0x46e   : > { %v2532_v46 = vshrl.u32 %v2392_v20, 16  ;;  %v4978_v29 = vpack.i.b16 %v2392_v20, %v2376_v54 }
 0x46f   : > { %v2407_v41 = vpop.trf.xlu0 }
 0x470   : > { %v2507_v33 = vshrl.u32 %v2407_v41, 16  ;;  %v2533_v0 = vpack.i.b16 %v2532_v46, %v2531_v5 }
 0x471   : > { %v2423_v21 = vpop.trf.xlu1 }
 0x472   : > { %v2508_v37 = vshrl.u32 %v2423_v21, 16  ;;  %v4986_v43 = vpack.i.b16 %v2423_v21, %v2407_v41 }
 0x473   : > { %v2408_v22 = vpop.trf.xlu0 }
 0x474   : > { %v2509_v58 = vpack.i.b16 %v2508_v37, %v2507_v33  ;;  %v2539_v61 = vshrl.u32 %v2408_v22, 16 }
 0x475   : > { %v2424_v23 = vpop.trf.xlu1 }
 0x476   : > { %v2540_v26 = vshrl.u32 %v2424_v23, 16  ;;  %v2537_v10 = vpack.i.b16 %v2424_v23, %v2408_v22 }
 0x477   : > { %v2439_v6 = vpop.trf.xlu0 }
 0x478   : > { %v2515_v30 = vshrl.u32 %v2439_v6, 16  ;;  %v2541_v15 = vpack.i.b16 %v2540_v26, %v2539_v61 }
 0x479   : > { %v2455_v24 = vpop.trf.xlu1 }
 0x47a   : > { %v2516_v31 = vshrl.u32 %v2455_v24, 16  ;;  %v4988_v47 = vpack.i.b16 %v2455_v24, %v2439_v6 }
 0x47b   : > { %v2440_v38 = vpop.trf.xlu0 }
 0x47c   : > { %v2547_v32 = vshrl.u32 %v2440_v38, 16  ;;  %v4990_v52 = vpack.i.b16 %v2516_v31, %v2515_v30  ;;  %v2559_v7 = vcombine.low %v4982_v12, %v4988_v47 }
 0x47d   : > { %v2456_v63 = vpop.trf.xlu1 }
 0x47e   : > { %v4980_v40 = vpack.i.b16 %v2456_v63, %v2440_v38  ;;  %v2548_v60 = vshrl.u32 %v2456_v63, 16  ;;  %v2627_v11 = vcombine.low %v4984_v62, %v4990_v52  ;;  %v2567_v16 = vrot.slane %v2559_v7, %v4759_v2 }
 0x47f   : > { %v2471_v49 = vpop.trf.xlu0 }
 0x480   : > { %v2549_v53 = vpack.i.b16 %v2548_v60, %v2547_v32  ;;  %v2696_v55 = vcombine.high %v4978_v29, %v4980_v40  ;;  %v2523_v56 = vshrl.u32 %v2471_v49, 16  ;;  %v2635_v50 = vrot.slane %v2627_v11, %v4759_v2 }
 0x481   : > { %v2487_v1 = vpop.trf.xlu1  ;;  %v2695_v54 = vcombine.low %v4978_v29, %v4980_v40  ;;  %v2560_v60 = vcombine.high %v4982_v12, %v4988_v47 }
 0x482   : > { %v2764_v34 = vcombine.high %v2533_v0, %v2549_v53  ;;  %v2521_v59 = vpack.i.b16 %v2487_v1, %v2471_v49  ;;  %v2524_v4 = vshrl.u32 %v2487_v1, 16  ;;  %v2763_v57 = vcombine.low %v2533_v0, %v2549_v53 }
 0x483   : > { %v2472_v8 = vpop.trf.xlu0  ;;  %v5021_v29 = vrot.slane %v2695_v54, %v4759_v2  ;;  %v2628_v49 = vcombine.high %v4984_v62, %v4990_v52  ;;  %v5045_v1 = vrot.slane %v2696_v55, %v4759_v2  ;;  %v2574_v47 = vrot.slane %v2560_v60, %v4759_v2 }
 0x484   : > { %v2525_v13 = vpack.i.b16 %v2524_v4, %v2523_v56  ;;  %v2575_v42 = vcombine.low %v4986_v43, %v2521_v59  ;;  %v2555_v44 = vshrl.u32 %v2472_v8, 16  ;;  %v5014_v46 = vrot.slane %v2763_v57, %v4759_v2 }
 0x485   : > { %v2488_v14 = vpop.trf.xlu1  ;;  %v5017_v27 = vrot.slane %v2764_v34, %v4759_v2  ;;  %v2576_v28 = vcombine.high %v4986_v43, %v2521_v59  ;;  %v2642_v62 = vrot.slane %v2628_v49, %v4759_v2 }
 0x486   : > { %v2643_v48 = vcombine.low %v2509_v58, %v2525_v13  ;;  %v2553_v36 = vpack.i.b16 %v2488_v14, %v2472_v8  ;;  %v2556_v45 = vshrl.u32 %v2488_v14, 16  ;;  %v2583_v17 = vrot.slane %v2575_v42, %v4759_v2 }
 0x487   : > { %v2644_v38 = vcombine.high %v2509_v58, %v2525_v13  ;;  %v2590_v56 = vrot.slane %v2576_v28, %v4759_v2 }
 0x488   : > { %v2557_v18 = vpack.i.b16 %v2556_v45, %v2555_v44  ;;  %v2712_v51 = vcombine.high %v2537_v10, %v2553_v36  ;;  %v2651_v19 = vrot.slane %v2643_v48, %v4759_v2  ;;  %v2591_v35 = vcombine.low %v2567_v16, %v2583_v17 }
 0x489   : > { %v2711_v22 = vcombine.low %v2537_v10, %v2553_v36  ;;  %v2592_v31 = vcombine.high %v2567_v16, %v2583_v17  ;;  %v2658_v61 = vrot.slane %v2644_v38, %v4759_v2  ;;  %v2607_v59 = vcombine.low %v2574_v47, %v2590_v56 }
 0x48a   : > { %v2779_v20 = vcombine.low %v2541_v15, %v2557_v18  ;;  %v2780_v41 = vcombine.high %v2541_v15, %v2557_v18  ;;  %v2659_v21 = vcombine.low %v2635_v50, %v2651_v19  ;;  %v2599_v23 = vrot.slane %v2591_v35, %v4762_v9 }
 0x48b   : > { %v5025_v32 = vrot.slane %v2711_v22, %v4759_v2  ;;  %v2660_v63 = vcombine.high %v2635_v50, %v2651_v19  ;;  %v2606_v53 = vrot.slane %v2592_v31, %v4762_v9  ;;  %v5048_v12 = vrot.slane %v2712_v51, %v4759_v2 }
 0x48c   : > { %v5007_v6 = vrot.slane %v2779_v20, %v4759_v2  ;;  %v5010_v24 = vrot.slane %v2780_v41, %v4759_v2  ;;  %v2667_v5 = vrot.slane %v2659_v21, %v4762_v9  ;;  %2831 = vxpose.xlu0.c.b16.start.end [1/1] (short) (narrow) %v2599_v23, 16  ;;  %v2623_v30 = vcombine.high %v2599_v23, %v4565_v25 }
 0x48d   : > { %v2728_v43 = vcombine.high %v5021_v29, %v5025_v32  ;;  %v2674_v58 = vrot.slane %v2660_v63, %v4762_v9  ;;  %v2743_v52 = vcombine.low %v5045_v1, %v5048_v12  ;;  %v2744_v26 = vcombine.high %v5045_v1, %v5048_v12 }
 0x48e   : > { %2847 = vxpose.xlu1.c.b16.start.end [1/1] (short) (narrow) %v2667_v5, 16  ;;  %v2796_v33 = vcombine.high %v5014_v46, %v5007_v6  ;;  %v2691_v37 = vcombine.high %v2667_v5, %v4565_v25  ;;  %v2811_v0 = vcombine.low %v5017_v27, %v5010_v24  ;;  %v2812_v40 = vcombine.high %v5017_v27, %v5010_v24 }
 0x48f   : > { %v2624_v34 = vcombine.high %v2606_v53, %v4565_v25  ;;  %v2692_v55 = vcombine.high %v2674_v58, %v4565_v25  ;;  %v2675_v4 = vcombine.low %v2642_v62, %v2658_v61  ;;  %v2615_v7 = vrot.slane %v2607_v59, %v4762_v9 }
 0x490   : > { %2863 = vxpose.xlu0.c.b16.start.end [1/1] (short) (narrow) %v2623_v30, 16  ;;  %v2608_v11 = vcombine.high %v2574_v47, %v2590_v56  ;;  %v2676_v42 = vcombine.high %v2642_v62, %v2658_v61  ;;  %v2727_v48 = vcombine.low %v5021_v29, %v5025_v32  ;;  %v2795_v45 = vcombine.low %v5014_v46, %v5007_v6 }
 0x491   : > { %v2683_v8 = vrot.slane %v2675_v4, %v4762_v9  ;;  %v2625_v10 = vcombine.high %v2615_v7, %v4565_v25  ;;  %v2826_v46 = vrot.slane %v2812_v40, %v4762_v9  ;;  %v2758_v32 = vrot.slane %v2744_v26, %v4762_v9 }
 0x492   : > { %2879 = vxpose.xlu1.c.b16.start.end [1/1] (short) (narrow) %v2691_v37, 16  ;;  %v2622_v44 = vrot.slane %v2608_v11, %v4762_v9  ;;  %v2690_v14 = vrot.slane %v2676_v42, %v4762_v9  ;;  %v2735_v16 = vrot.slane %v2727_v48, %v4762_v9  ;;  %v2803_v17 = vrot.slane %v2795_v45, %v4762_v9 }
 0x493   : > { %v2693_v13 = vcombine.high %v2683_v8, %v4565_v25 }
 0x494   : > { %2895 = vxpose.xlu0.c.b16.start.end [1/1] (short) (narrow) %v2606_v53, 16  ;;  %v2626_v15 = vcombine.high %v2622_v44, %v4565_v25  ;;  %v2694_v36 = vcombine.high %v2690_v14, %v4565_v25  ;;  %v2827_v63 = vcombine.high %v2803_v17, %v4565_v25 }
 0x496   : > { %2911 = vxpose.xlu1.c.b16.start.end [1/1] (short) (narrow) %v2674_v58, 16  ;;  %v2759_v58 = vcombine.high %v2735_v16, %v4565_v25 }
 0x498   : > { %2927 = vxpose.xlu0.c.b16.start.end [1/1] (short) (narrow) %v2624_v34, 16 }
 0x49a   : > { %2943 = vxpose.xlu1.c.b16.start.end [1/1] (short) (narrow) %v2692_v55, 16 }
 0x49c   : > { %2959 = vxpose.xlu0.c.b16.start.end [1/1] (short) (narrow) %v2615_v7, 16 }
 0x49e   : > { %2975 = vxpose.xlu1.c.b16.start.end [1/1] (short) (narrow) %v2683_v8, 16 }
 0x4a0   : > { %2991 = vxpose.xlu0.c.b16.start.end [1/1] (short) (narrow) %v2625_v10, 16 }
 0x4a2   : > { %3007 = vxpose.xlu1.c.b16.start.end [1/1] (short) (narrow) %v2693_v13, 16 }
 0x4a4   : > { %3023 = vxpose.xlu0.c.b16.start.end [1/1] (short) (narrow) %v2622_v44, 16 }
 0x4a6   : > { %3039 = vxpose.xlu1.c.b16.start.end [1/1] (short) (narrow) %v2690_v14, 16 }
 0x4a8   : > { %3055 = vxpose.xlu0.c.b16.start.end [1/1] (short) (narrow) %v2626_v15, 16 }
 0x4aa   : > { %3071 = vxpose.xlu1.c.b16.start.end [1/1] (short) (narrow) %v2694_v36, 16 }
 0x4ac   : > { %3087 = vxpose.xlu0.c.b16.start.end [1/1] (short) (narrow) %v2735_v16, 16 }
 0x4ae   : > { %3103 = vxpose.xlu1.c.b16.start.end [1/1] (short) (narrow) %v2803_v17, 16 }
 0x4c4   : > { %v5072_v18 = vpop.f32.mrb[4].mxu1 }
 0x4c5   : > { %v4406_v51 = vpop.f32.mrb[5].mxu1  ;;  %v2319_v50 = vsel %vm2318_vm2, %v5072_v18, -inf }
 0x4c6   : > { %v2186_v19 = vpop.f32.mrb[6].mxu1  ;;  %2320 = vmax.xlane.f32.xlu1 %v2319_v50 }
 0x4c7   : > { %v4407_v57 = vpop.f32.mrb[7].mxu1 }
 0x4cc   : > { %v5076_v35 = vpop.f32.mrb[8].mxu1 }
 0x4cd   : > { %v4414_v54 = vpop.f32.mrb[9].mxu1  ;;  %v2322_v20 = vsel %vm2318_vm2, %v5076_v35, -inf }
 0x4ce   : > { %v2229_v41 = vpop.f32.mrb[10].mxu1  ;;  %2323 = vmax.xlane.f32.xlu0 %v2322_v20 }
 0x4cf   : > { %v4415_v21 = vpop.f32.mrb[11].mxu1 }
 0x4d4   : > { %v5080_v22 = vpop.f32.mrb[12].mxu1 }
 0x4d5   : > { %v4422_v23 = vpop.f32.mrb[13].mxu1  ;;  %v2325_v62 = vsel %vm2318_vm2, %v5080_v22, -inf }
 0x4d6   : > { %v2272_v5 = vpop.f32.mrb[14].mxu1 }
 0x4d7   : > { %v4423_v28 = vpop.f32.mrb[15].mxu1 }
 0x4dc   : > { %v5082_v38 = vpop.f32.mrb[16].mxu1 }
 0x4dd   : > { %v4430_v30 = vpop.f32.mrb[17].mxu1  ;;  %v2328_v7 = vsel %vm2318_vm2, %v5082_v38, -inf }
 0x4de   : > { %v2315_v31 = vpop.f32.mrb[18].mxu1 }
 0x4df   : > { %v4431_v37 = vpop.f32.mrb[19].mxu1 }
 0x4f2   : > { %v2839_v60 = vpop.trf.xlu0 }
 0x4f3   : > { %3135 = vxpose.xlu1.c.b16.start.end [1/1] (short) (narrow) %v2827_v63, 16 }
 0x4f4   : > { %v2855_v49 = vpop.trf.xlu1 }
 0x4f6   : > { %v2871_v53 = vpop.trf.xlu0 }
 0x4f8   : > { %v2887_v56 = vpop.trf.xlu1 }
 0x4fa   : > { %v2903_v61 = vpop.trf.xlu0 }
 0x4fb   : > { %3119 = vxpose.xlu0.c.b16.start.end [1/1] (short) (narrow) %v2759_v58, 16  ;;  %v3343_v10 = vcombine.low %v2839_v60, %v2903_v61 }
 0x4fc   : > { %v2919_v47 = vpop.trf.xlu1 }
 0x4fd   : > { %v3393_v42 = vcombine.low %v2855_v49, %v2919_v47  ;;  %v3350_v15 = vrot.slane %v3343_v10, %v4759_v2  ;;  %v2810_v10 = vrot.slane %v2796_v33, %v4762_v9  ;;  %v2751_v33 = vrot.slane %v2743_v52, %v4762_v9 }
 0x4fe   : > { %v2935_v34 = vpop.trf.xlu0 }
 0x4ff   : > { %v3351_v11 = vcombine.low %v2871_v53, %v2935_v34  ;;  %v3400_v16 = vrot.slane %v3393_v42, %v4759_v2  ;;  %v2742_v42 = vrot.slane %v2728_v43, %v4762_v9  ;;  %v2761_v29 = vcombine.high %v2751_v33, %v4565_v25 }
 0x500   : > { %2326 = vmax.xlane.f32.xlu1 %v2325_v62  ;;  %v2951_v59 = vpop.trf.xlu1 }
 0x501   : > { %v3401_v44 = vcombine.low %v2887_v56, %v2951_v59  ;;  %v3358_v48 = vrot.slane %v3351_v11, %v4759_v2  ;;  %v2828_v11 = vcombine.high %v2810_v10, %v4565_v25  ;;  %v2760_v6 = vcombine.high %v2742_v42, %v4565_v25 }
 0x502   : > { %v2967_v55 = vpop.trf.xlu0 }
 0x503   : > { %v3408_v17 = vrot.slane %v3401_v44, %v4759_v2  ;;  %v3375_v19 = vcombine.low %v3350_v15, %v3358_v48 }
 0x504   : > { %v2983_v4 = vpop.trf.xlu1 }
 0x505   : > { %v3425_v41 = vcombine.low %v3400_v16, %v3408_v17  ;;  %v3382_v30 = vrot.slane %v3375_v19, %v4762_v9 }
 0x506   : > { %v2999_v8 = vpop.trf.xlu0 }
 0x507   : > { %v3432_v37 = vrot.slane %v3425_v41, %v4762_v9 }
 0x508   : > { %2329 = vmax.xlane.f32.xlu0 %v2328_v7  ;;  %v3015_v13 = vpop.trf.xlu1 }
 0x50a   : > { %v3031_v14 = vpop.trf.xlu0 }
 0x50b   : > { %v3359_v45 = vcombine.low %v2967_v55, %v3031_v14 }
 0x50c   : > { %v3047_v36 = vpop.trf.xlu1 }
 0x50d   : > { %v3409_v51 = vcombine.low %v2983_v4, %v3047_v36  ;;  %v3366_v54 = vrot.slane %v3359_v45, %v4759_v2 }
 0x50e   : > { %v3063_v50 = vpop.trf.xlu0 }
 0x50f   : > { %v3367_v20 = vcombine.low %v2999_v8, %v3063_v50  ;;  %v3416_v21 = vrot.slane %v3409_v51, %v4759_v2 }
 0x510   : > { %v3079_v57 = vpop.trf.xlu1 }
 0x511   : > { %v3417_v23 = vcombine.low %v3015_v13, %v3079_v57  ;;  %v3374_v5 = vrot.slane %v3367_v20, %v4759_v2  ;;  %v2819_v13 = vrot.slane %v2811_v0, %v4762_v9 }
 0x512   : > { %v3095_v27 = vpop.trf.xlu0 }
 0x513   : > { %v3424_v28 = vrot.slane %v3417_v23, %v4759_v2  ;;  %v3383_v31 = vcombine.low %v3366_v54, %v3374_v5  ;;  %v2829_v44 = vcombine.high %v2819_v13, %v4565_v25 }
 0x514   : > { %v3111_v0 = vpop.trf.xlu1 }
 0x515   : > { %v3433_v63 = vcombine.low %v3416_v21, %v3424_v28  ;;  %v3390_v60 = vrot.slane %v3383_v31, %v4762_v9 }
 0x517   : > { %v3440_v49 = vrot.slane %v3433_v63, %v4762_v9  ;;  %v3391_v53 = vcombine.low %v3382_v30, %v3390_v60  ;;  %v5102_v56 = vcombine.high %v3382_v30, %v3390_v60 }
 0x519   : > { %v3441_v58 = vcombine.low %v3432_v37, %v3440_v49  ;;  %v5104_v61 = vcombine.high %v3432_v37, %v3440_v49  ;;  %v3546_v47 = vshrl.u32 %v3391_v53, 16  ;;  %v3552_v62 = vshrl.u32 %v5102_v56, 16 }
 0x51b   : > { %v3545_v34 = vpack.i.b16 %v3441_v58, %v3391_v53  ;;  %v3547_v59 = vshrl.u32 %v3441_v58, 16  ;;  %v3551_v55 = vpack.i.b16 %v5104_v61, %v5102_v56  ;;  %v3553_v4 = vshrl.u32 %v5104_v61, 16 }
 0x51c   : > { %v2762_v58 = vcombine.high %v2758_v32, %v4565_v25 }
 0x51d   : > { %4434 = vmatprep.mubr.msk.bf16.mxu0 %vm2318_vm2, %v3545_v34  ;;  %v3548_v7 = vpack.i.b16 %v3547_v59, %v3546_v47  ;;  %v5111_v8 = vpack.i.b16 %v3553_v4, %v3552_v62  ;;  %v2830_v47 = vcombine.high %v2826_v46, %v4565_v25 }
 0x51f   : > { %4440 = vmatprep.mubr.msk.bf16.mxu1 %vm2318_vm2, %v3548_v7 }
 0x52d   : > { %3167 = vxpose.xlu1.c.b16.start.end [1/1] (short) (narrow) %v2810_v10, 16 }
 0x531   : > { %3199 = vxpose.xlu1.c.b16.start.end [1/1] (short) (narrow) %v2828_v11, 16 }
 0x535   : > { %3231 = vxpose.xlu1.c.b16.start.end [1/1] (short) (narrow) %v2819_v13, 16  ;;  %3151 = vxpose.xlu0.c.b16.start.end [1/1] (short) (narrow) %v2742_v42, 16 }
 0x539   : > { %3263 = vxpose.xlu1.c.b16.start.end [1/1] (short) (narrow) %v2829_v44, 16  ;;  %3183 = vxpose.xlu0.c.b16.start.end [1/1] (short) (narrow) %v2760_v6, 16 }
 0x53d   : > { %3295 = vxpose.xlu1.c.b16.start.end [1/1] (short) (narrow) %v2826_v46, 16  ;;  %3215 = vxpose.xlu0.c.b16.start.end [1/1] (short) (narrow) %v2751_v33, 16 }
 0x541   : > { %3247 = vxpose.xlu0.c.b16.start.end [1/1] (short) (narrow) %v2761_v29, 16 }
 0x545   : > { %3279 = vxpose.xlu0.c.b16.start.end [1/1] (short) (narrow) %v2758_v32, 16 }
 0x553   : > { %v2321_v43 = vpop.xlane.xlu1 %2320 }
 0x554   : > { %v2331_v24 = vsub.f32 %v5072_v18, %v2321_v43 }
 0x556   : > { %v2335_v40 = vmul.f32 1.442695, %v2331_v24 }
 0x558   : > { %4538 = vpow2.f32 %v2335_v40 }
 0x559   : > { %v3143_v12 = vpop.trf.xlu1 }
 0x55b   : > { %v2324_v14 = vpop.xlane.xlu0 %2323 }
 0x55c   : > { %v2332_v52 = vsub.f32 %v5076_v35, %v2324_v14 }
 0x55e   : > { %v2337_v15 = vmul.f32 1.442695, %v2332_v52 }
 0x560   : > { %4540 = vpow2.f32 %v2337_v15 }
 0x561   : > { %v3127_v16 = vpop.trf.xlu0 }
 0x562   : > { %v4539_v48 = vpop.eup %4538 }
 0x563   : > { %v2343_v36 = vsel %vm2318_vm2, %v4539_v48, 0.0 }
 0x564   : > { %2344 = vadd.xlane.f32.xlu0 %v2343_v36 }
 0x56a   : > { %v4541_v45 = vpop.eup %4540 }
 0x56b   : > { %v2346_v1 = vsel %vm2318_vm2, %v4541_v45, 0.0 }
 0x56c   : > { %2347 = vadd.xlane.f32.xlu1 %v2346_v1 }
 0x58d   : > { %v2327_v26 = vpop.xlane.xlu1 %2326 }
 0x58e   : > { %v2333_v18 = vsub.f32 %v5080_v22, %v2327_v26 }
 0x590   : > { %v2339_v17 = vmul.f32 1.442695, %v2333_v18 }
 0x592   : > { %4542 = vpow2.f32 %v2339_v17 }
 0x593   : > { %v3175_v51 = vpop.trf.xlu1 }
 0x594   : > { %v3493_v35 = vcombine.low %v3111_v0, %v3175_v51 }
 0x595   : > { %v2330_v50 = vpop.xlane.xlu0 %2329 }
 0x596   : > { %v2334_v19 = vsub.f32 %v5082_v38, %v2330_v50  ;;  %v5149_v41 = vrot.slane %v3493_v35, %v4759_v2 }
 0x597   : > { %v3207_v57 = vpop.trf.xlu1 }
 0x598   : > { %v2341_v54 = vmul.f32 1.442695, %v2334_v19  ;;  %v3501_v20 = vcombine.low %v3143_v12, %v3207_v57 }
 0x59a   : > { %4544 = vpow2.f32 %v2341_v54  ;;  %v5152_v21 = vrot.slane %v3501_v20, %v4759_v2 }
 0x59b   : > { %v3159_v23 = vpop.trf.xlu0  ;;  %v3239_v59 = vpop.trf.xlu1 }
 0x59c   : > { %v4543_v22 = vpop.eup %4542  ;;  %v3525_v5 = vcombine.low %v5149_v41, %v5152_v21  ;;  %v3443_v30 = vcombine.low %v3095_v27, %v3159_v23 }
 0x59d   : > { %v2349_v28 = vsel %vm2318_vm2, %v4543_v22, 0.0 }
 0x59e   : > { %2350 = vadd.xlane.f32.xlu0 %v2349_v28  ;;  %v3450_v37 = vrot.slane %v3443_v30, %v4759_v2  ;;  %v3532_v20 = vrot.slane %v3525_v5, %v4762_v9 }
 0x59f   : > { %v3191_v38 = vpop.trf.xlu0  ;;  %v3271_v7 = vpop.trf.xlu1 }
 0x5a0   : > { %v3451_v31 = vcombine.low %v3127_v16, %v3191_v38 }
 0x5a2   : > { %v3458_v63 = vrot.slane %v3451_v31, %v4759_v2 }
 0x5a3   : > { %v3223_v62 = vpop.trf.xlu0  ;;  %v3303_v11 = vpop.trf.xlu1 }
 0x5a4   : > { %v4545_v60 = vpop.eup %4544  ;;  %v3475_v49 = vcombine.low %v3450_v37, %v3458_v63  ;;  %v3509_v1 = vcombine.low %v3239_v59, %v3303_v11 }
 0x5a5   : > { %v2352_v53 = vsel %vm2318_vm2, %v4545_v60, 0.0 }
 0x5a6   : > { %2353 = vadd.xlane.f32.xlu1 %v2352_v53  ;;  %v3516_v50 = vrot.slane %v3509_v1, %v4759_v2 }
 0x5a7   : > { %v3255_v34 = vpop.trf.xlu0 }
 0x5ab   : > { %v3287_v4 = vpop.trf.xlu0 }
 0x5ac   : > { %v3459_v43 = vcombine.low %v3223_v62, %v3287_v4 }
 0x5ae   : > { %v3466_v14 = vrot.slane %v3459_v43, %v4759_v2 }
 0x5cb   : > { %3311 = vxpose.xlu0.c.b16.start.end [1/1] (short) (narrow) %v2762_v58, 16 }
 0x5d3   : > { %3327 = vxpose.xlu1.c.b16.start.end [1/1] (short) (narrow) %v2830_v47, 16 }
 0x5f1   : > { %v2345_v10 = vpop.xlane.xlu0 %2344 }
 0x5f2   : > { %4546 = vrcp.f32 %v2345_v10 }
 0x5f9   : > { %v2348_v13 = vpop.xlane.xlu1 %2347 }
 0x5fa   : > { %4548 = vrcp.f32 %v2348_v13 }
 0x5fc   : > { %v4547_v42 = vpop.eup %4546 }
 0x5fd   : > { %v2359_v44 = vmul.f32 %v4547_v42, %v4539_v48 }
 0x5ff   : > { %v2363_v6 = vpack.c.bf16 %v2359_v44, %v2359_v44 }
 0x601   : > { %4476 = vmatprep.subr.msk.bf16.mxu0 %vm2318_vm2, %v2363_v6  ;;  %v3574_v33 = vsel %vm2318_vm2, %v2363_v6, 0  ;;  %v4528_v6 = vld [vmem:[%s5268_s5] sm:$0xff]  }
 0x602   : > { %4433 = vmatpush3.bf16.xpose.msra.mxu0 %v3574_v33  ;;  %v4529_v33 = vld [vmem:[%s5268_s5 + $0x8] sm:$0xff]  }
 0x604   : > { %v4549_v25 = vpop.eup %4548 }
 0x605   : > { %v2360_v46 = vmul.f32 %v4549_v25, %v4541_v45  ;;  %v3482_v45 = vrot.slane %v3475_v49, %v4762_v9  ;;  %v4530_v25 = vld [vmem:[%s5268_s5 + $0x10] sm:$0xff]  }
 0x607   : > { %v2364_v29 = vpack.c.bf16 %v2360_v46, %v2360_v46  ;;  %v4531_v46 = vld [vmem:[%s5268_s5 + $0x18] sm:$0xff]  }
 0x609   : > { %4477 = vmatprep.subr.msk.bf16.mxu1 %vm2318_vm2, %v2364_v29  ;;  %v3632_v32 = vsel %vm2318_vm2, %v2364_v29, 0  ;;  %v4532_v29 = vld [vmem:[%s5268_s5 + $0x20] sm:$0xff]  }
 0x60a   : > { %4439 = vmatpush3.bf16.xpose.msra.mxu1 %v3632_v32  ;;  %v4533_v32 = vld [vmem:[%s5268_s5 + $0x28] sm:$0xff]  }
 0x62b   : > { %v2351_v0 = vpop.xlane.xlu0 %2350 }
 0x62c   : > { %4550 = vrcp.f32 %v2351_v0 }
 0x631   : > { %v3319_v24 = vpop.trf.xlu0 }
 0x632   : > { %v3467_v27 = vcombine.low %v3255_v34, %v3319_v24 }
 0x633   : > { %v2354_v40 = vpop.xlane.xlu1 %2353 }
 0x634   : > { %v3474_v52 = vrot.slane %v3467_v27, %v4759_v2  ;;  %4552 = vrcp.f32 %v2354_v40 }
 0x636   : > { %v4551_v15 = vpop.eup %4550  ;;  %v3483_v48 = vcombine.low %v3466_v14, %v3474_v52 }
 0x637   : > { %v2361_v36 = vmul.f32 %v4551_v15, %v4543_v22 }
 0x638   : > { %v3490_v12 = vrot.slane %v3483_v48, %v4762_v9 }
 0x639   : > { %v3335_v26 = vpop.trf.xlu1  ;;  %v2365_v18 = vpack.c.bf16 %v2361_v36, %v2361_v36 }
 0x63a   : > { %v3491_v16 = vcombine.low %v3482_v45, %v3490_v12  ;;  %v3492_v17 = vcombine.high %v3482_v45, %v3490_v12  ;;  %v3517_v51 = vcombine.low %v3271_v7, %v3335_v26 }
 0x63b   : > { %4478 = vmatprep.subr.msk.bf16.mxu0 %vm2318_vm2, %v2365_v18 }
 0x63c   : > { %v3524_v35 = vrot.slane %v3517_v51, %v4759_v2  ;;  %v3558_v38 = vshrl.u32 %v3491_v16, 16  ;;  %v3564_v31 = vshrl.u32 %v3492_v17, 16 }
 0x63e   : > { %v4553_v19 = vpop.eup %4552  ;;  %v3533_v57 = vcombine.low %v3516_v50, %v3524_v35 }
 0x63f   : > { %v2362_v54 = vmul.f32 %v4553_v19, %v4545_v60  ;;  %v3690_v60 = vsel %vm2318_vm2, %v2365_v18, 0 }
 0x640   : > { %v3540_v23 = vrot.slane %v3533_v57, %v4762_v9 }
 0x641   : > { %v2366_v22 = vpack.c.bf16 %v2362_v54, %v2362_v54 }
 0x642   : > { %v3541_v28 = vcombine.low %v3532_v20, %v3540_v23  ;;  %v3542_v30 = vcombine.high %v3532_v20, %v3540_v23 }
 0x643   : > { %4479 = vmatprep.subr.msk.bf16.mxu1 %vm2318_vm2, %v2366_v22  ;;  %v3748_v21 = vsel %vm2318_vm2, %v2366_v22, 0 }
 0x644   : > { %v3557_v37 = vpack.i.b16 %v3541_v28, %v3491_v16  ;;  %v3559_v63 = vshrl.u32 %v3541_v28, 16  ;;  %v3563_v49 = vpack.i.b16 %v3542_v30, %v3492_v17  ;;  %v3565_v53 = vshrl.u32 %v3542_v30, 16  ;;  %v4534_v17 = vld [vmem:[%s5268_s5 + $0x30] sm:$0xff]  }
 0x646   : > { %4435 = vmatmul.mubr.msk.bf16.vlgmr.msra.gmra.mrb[4].mxu0 %vm2318_vm2, %v3557_v37  ;;  %v3560_v58 = vpack.i.b16 %v3559_v63, %v3558_v38  ;;  %v3566_v41 = vpack.i.b16 %v3565_v53, %v3564_v31  ;;  %v4535_v31 = vld [vmem:[%s5268_s5 + $0x38] sm:$0xff]  }
 0x647   : > { %4445 = vmatpush3.bf16.xpose.msra.mxu0 %v3690_v60  ;;  %4446 = vmatprep.mubr.msk.bf16.mxu0 %vm2318_vm2, %v3551_v55 }
 0x648   : > { %4441 = vmatmul.mubr.msk.bf16.vlgmr.msra.gmra.mrb[20].mxu1 %vm2318_vm2, %v3560_v58  ;;  %4456 = vmatprep.subr.bf16.mxu0 %v4564_v3 }
 0x649   : > { %4451 = vmatpush3.bf16.xpose.msra.mxu1 %v3748_v21  ;;  %4452 = vmatprep.mubr.msk.bf16.mxu1 %vm2318_vm2, %v5111_v8 }
 0x64e   : > { %4447 = vmatmul.mubr.msk.bf16.vlgmr.msra.gmra.mrb[8].mxu0 %vm2318_vm2, %v3563_v49 }
 0x64f   : > { %4472 = vmatprep.mubr.msk.bf16.mxu0 %vm4566_vm0, %v4564_v3  ;;  %4457 = vmatpush3.bf16.msra.mxu0 %v4528_v6 }
 0x650   : > { %4453 = vmatmul.mubr.msk.bf16.vlgmr.msra.gmra.mrb[24].mxu1 %vm2318_vm2, %v3566_v41  ;;  %4458 = vmatprep.subr.bf16.mxu0 %v4564_v3 }
 0x653   : > { %4459 = vmatpush3.bf16.msra.mxu0 %v4529_v33 }
 0x654   : > { %4460 = vmatprep.subr.bf16.mxu0 %v4564_v3 }
 0x657   : > { %4461 = vmatpush3.bf16.msra.mxu0 %v4530_v25 }
 0x658   : > { %4462 = vmatprep.subr.bf16.mxu0 %v4564_v3 }
 0x65b   : > { %4463 = vmatpush3.bf16.msra.mxu0 %v4531_v46 }
 0x65c   : > { %4464 = vmatprep.subr.bf16.mxu0 %v4564_v3 }
 0x65f   : > { %4465 = vmatpush3.bf16.msra.mxu0 %v4532_v29 }
 0x660   : > { %4466 = vmatprep.subr.bf16.mxu0 %v4564_v3 }
 0x663   : > { %4467 = vmatpush3.bf16.msra.mxu0 %v4533_v32 }
 0x664   : > { %4468 = vmatprep.subr.bf16.mxu0 %v4564_v3 }
 0x667   : > { %4469 = vmatpush3.bf16.msra.mxu0 %v4534_v17 }
 0x668   : > { %4470 = vmatprep.subr.bf16.mxu0 %v4564_v3 }
 0x66b   : > { %4471 = vmatpush3.bf16.msra.mxu0 %v4535_v31 }
 0x719   : > { %v4436_v56 = vpop.f32.mrb[4].mxu0 }
 0x71a   : > { %v3610_v61 = vpop.f32.mrb[5].mxu0 }
 0x71b   : > { %v4442_v55 = vpop.f32.mrb[20].mxu1  ;;  %3799 = vxpose.xlu0.b32.start [1/4] (short) (narrow) %v3610_v61, 8  ;;  %v4437_v5 = vpop.f32.mrb[6].mxu0 }
 0x71c   : > { %v3613_v47 = vpop.f32.mrb[7].mxu0  ;;  %v3668_v62 = vpop.f32.mrb[21].mxu1 }
 0x71d   : > { %3831 = vxpose.xlu1.b32.start [1/4] (short) (narrow) %v3668_v62, 8  ;;  %v4443_v34 = vpop.f32.mrb[22].mxu1 }
 0x71e   : > { %v3671_v59 = vpop.f32.mrb[23].mxu1 }
 0x71f   : > { %3800 = vxpose.xlu0.b32.cont [2/4] (short) (narrow) %v3613_v47, 8 }
 0x721   : > { %3832 = vxpose.xlu1.b32.cont [2/4] (short) (narrow) %v3671_v59, 8  ;;  %v4448_v8 = vpop.f32.mrb[8].mxu0 }
 0x722   : > { %v3726_v4 = vpop.f32.mrb[9].mxu0 }
 0x723   : > { %v4454_v7 = vpop.f32.mrb[24].mxu1  ;;  %3801 = vxpose.xlu0.b32.cont [3/4] (short) (narrow) %v4436_v56, 8  ;;  %v4449_v10 = vpop.f32.mrb[10].mxu0 }
 0x724   : > { %v3729_v11 = vpop.f32.mrb[11].mxu0  ;;  %v3784_v13 = vpop.f32.mrb[25].mxu1 }
 0x725   : > { %3833 = vxpose.xlu1.b32.cont [3/4] (short) (narrow) %v4442_v55, 8  ;;  %v4455_v42 = vpop.f32.mrb[26].mxu1 }
 0x726   : > { %v3787_v44 = vpop.f32.mrb[27].mxu1 }
 0x727   : > { %3802 = vxpose.xlu0.b32.end [4/4] (short) (narrow) %v4437_v5, 8 }
 0x729   : > { %3834 = vxpose.xlu1.b32.end [4/4] (short) (narrow) %v4443_v34, 8 }
 0x72b   : > { %3863 = vxpose.xlu0.b32.start [1/4] (short) (narrow) %v3726_v4, 8 }
 0x72d   : > { %3895 = vxpose.xlu1.b32.start [1/4] (short) (narrow) %v3784_v13, 8 }
 0x72f   : > { %3864 = vxpose.xlu0.b32.cont [2/4] (short) (narrow) %v3729_v11, 8 }
 0x731   : > { %3896 = vxpose.xlu1.b32.cont [2/4] (short) (narrow) %v3787_v44, 8 }
 0x733   : > { %3865 = vxpose.xlu0.b32.cont [3/4] (short) (narrow) %v4448_v8, 8  ;;  %v4325_v8 = vld [vmem:[%s5269_s6] ss:$0 sm:$0xff] }
 0x735   : > { %3897 = vxpose.xlu1.b32.cont [3/4] (short) (narrow) %v4454_v7, 8 }
 0x737   : > { %3866 = vxpose.xlu0.b32.end [4/4] (short) (narrow) %v4449_v10, 8 }
 0x739   : > { %3898 = vxpose.xlu1.b32.end [4/4] (short) (narrow) %v4455_v42, 8 }
 0x79b   : > { %v3815_v0 = vpop.trf.xlu0 }
 0x79d   : > { %v3847_v43 = vpop.trf.xlu1 }
 0x7ab   : > { %v3879_v24 = vpop.trf.xlu0 }
 0x7ac   : > { %v3927_v27 = vcombine.low %v3815_v0, %v3879_v24  ;;  %v3928_v40 = vcombine.high %v3815_v0, %v3879_v24 }
 0x7ad   : > { %v3911_v14 = vpop.trf.xlu1 }
 0x7ae   : > { %v3943_v52 = vcombine.low %v3847_v43, %v3911_v14  ;;  %v3944_v15 = vcombine.high %v3847_v43, %v3911_v14  ;;  %v3935_v48 = vrot.slane %v3927_v27, %v4759_v2  ;;  %v3942_v36 = vrot.slane %v3928_v40, %v4759_v2  ;;  %v4334_v43 = vld [vmem:[%s5270_s7] ss:$0 sm:$0xff] }
 0x7b0   : > { %v3951_v45 = vrot.slane %v3943_v52, %v4759_v2  ;;  %v3958_v1 = vrot.slane %v3944_v15, %v4759_v2 }
 0x7b2   : > { %v3959_v12 = vcombine.low %v3935_v48, %v3951_v45  ;;  %v3960_v26 = vcombine.high %v3935_v48, %v3951_v45  ;;  %v3975_v18 = vcombine.low %v3942_v36, %v3958_v1  ;;  %v3976_v16 = vcombine.high %v3942_v36, %v3958_v1 }
 0x7b4   : > { %v3967_v51 = vrot.slane %v3959_v12, %v4762_v9  ;;  %v3974_v50 = vrot.slane %v3960_v26, %v4762_v9  ;;  %v3983_v35 = vrot.slane %v3975_v18, %v4762_v9  ;;  %v3990_v19 = vrot.slane %v3976_v16, %v4762_v9 }
 0x7b6   : > { %v3995_v57 = vcombine.low %v3967_v51, %v3974_v50  ;;  %v4323_v54 = vcombine.high %v3967_v51, %v3974_v50  ;;  %v4011_v20 = vcombine.low %v3983_v35, %v3990_v19  ;;  %v4324_v23 = vcombine.high %v3983_v35, %v3990_v19 }
 0x7b8   : > { %v4002_v22 = vrot.slane %v3995_v57, %v4759_v2  ;;  %v4010_v28 = vrot.slane %v4323_v54, %v4759_v2  ;;  %v4018_v30 = vrot.slane %v4011_v20, %v4759_v2  ;;  %v4026_v38 = vrot.slane %v4324_v23, %v4759_v2 }
 0x7ba   : > { %v4028_v37 = vcombine.high %v4002_v22, %v4010_v28  ;;  %v4044_v63 = vcombine.high %v4018_v30, %v4026_v38  ;;  %v4027_v49 = vcombine.low %v4002_v22, %v4010_v28  ;;  %v4043_v53 = vcombine.low %v4018_v30, %v4026_v38 }
 0x7bc   : > { %v4042_v60 = vrot.slane %v4028_v37, %v4762_v9  ;;  %v4058_v3 = vrot.slane %v4044_v63, %v4762_v9  ;;  %v4035_v58 = vrot.slane %v4027_v49, %v4762_v9  ;;  %v4051_v41 = vrot.slane %v4043_v53, %v4762_v9 }
 0x7be   : > { %v4061_v21 = vcombine.low %v4042_v60, %v4058_v3  ;;  %v4060_v56 = vcombine.high %v4035_v58, %v4051_v41  ;;  %v4059_v2 = vcombine.low %v4035_v58, %v4051_v41  ;;  %v4062_v61 = vcombine.high %v4042_v60, %v4058_v3 }
 0x7c0   : > { %4068 = vrot.lane.b32.xlu1 %v4061_v21, %s4569_s17  ;;  %4064 = vrot.lane.b32.xlu0 %v4060_v56, %s4567_s15 }
 0x7c4   : > { %4072 = vrot.lane.b32.xlu1 %v4062_v61, %s4568_s16 }
 0x832   : > { %v4069_v55 = vpop.permute.xlu1 %4068  ;;  %v4065_v5 = vpop.permute.xlu0 %4064 }
 0x833   : > { %v4075_v47 = vsel %vm2145_vm1, %v4059_v2, %v4065_v5 }
 0x834   : > { %v4077_v34 = vsel %vm4076_vm3, %v4075_v47, %v4069_v55 }
 0x836   : > { %v4073_v62 = vpop.permute.xlu1 %4072 }
 0x837   : > { %v4079_v59 = vsel %vm4078_vm4, %v4077_v34, %v4073_v62 }
 0x838   : > { %v4080_v9 = vpack.c.bf16 %v4079_v59, %v4079_v59 }
 0x83a   : > { %4473 = vmatmul.mubr.bf16.vlgmr.msra.gmra.mrb[12].mxu0 %v4080_v9 }
 0x90d   : > { %v4186_v4 = vpop.f32.mrb[12].mxu0 }
 0x90e   : > { %v4187_v7 = vadd.f32 %v4325_v8, %v4186_v4  ;;  %v4474_v10 = vpop.f32.mrb[13].mxu0 }
 0x90f   : > { %v4189_v11 = vpop.f32.mrb[14].mxu0 }
 0x910   : > { %v4192_v13 = vadd.f32 %v4187_v7, %v4728_v39  ;;  %v4475_v42 = vpop.f32.mrb[15].mxu0  ;;  %v4335_v39 = vld [vmem:[%s5271_s8] ss:$0 sm:$0xff] }
 0x912   : > { %4195 = vadd.xlane.f32.xlu0 %v4192_v13 }
 0x99f   : > { %v4196_v44 = vpop.xlane.xlu0 %4195 }
 0x9a0   : > { %v4197_v6 = vmul.f32 0.0078125, %v4196_v44 }
 0x9a2   : > { %v4198_v33 = vsub.f32 %v4192_v13, %v4197_v6 }
 0x9a4   : > { %v4199_v25 = vmul.f32 %v4198_v33, %v4198_v33 }
 0x9a6   : > { %4200 = vadd.xlane.f32.xlu1 %v4199_v25 }
 0xa33   : > { %v4201_v46 = vpop.xlane.xlu1 %4200 }
 0xa34   : > { %v4202_v29 = vmul.f32 0.0078125, %v4201_v46 }
 0xa36   : > { %v4203_v32 = vadd.f32 1e-05, %v4202_v29 }
 0xa38   : > { %4554 = vrsqrt.f32 %v4203_v32 }
 0xa42   : > { %v4555_v0 = vpop.eup %4554 }
 0xa43   : > { %v4205_v24 = vmul.f32 %v4555_v0, %v4198_v33 }
 0xa45   : > { %v4212_v27 = vmul.f32 %v4334_v43, %v4205_v24 }
 0xa47   : > { %v4219_v40 = vadd.f32 %v4335_v39, %v4212_v27 }
 0xa49   : > { %4220 = vst [vmem:[%s327_s24] sm:$0xff] %v4219_v40 }
 0xa4a PF: > { %s19_s30 = sadd.s32 1, %s4562_s30  }
 0xa4b   : > { %p16_p4 = scmp.ge.s32.totalorder %s19_s30, 4  }
 0xa4d   :  { %18 = sbr.rel (!%p16_p4) target bundleno = 1 (0x1), region = 86 }

// kernel: led_forward.15
= control target key start
LH: loop header
LB: loop body
LE: loop exit
PB: predicated region body
PF: predicated region fallthrough
CT: control target
= control target key end

     0   :  { %s4631_s30 = smov 0   ;;  %s5283_s0 = inlined_call_operand.vmem [shape: f32[16,128], index: 0, kind: input, shape index: {}]   ;;  %s5284_s1 = inlined_call_operand.vmem [shape: f32[1,128], index: 1, kind: input, shape index: {}]   ;;  %s5285_s2 = inlined_call_operand.vmem [shape: f32[1,128], index: 2, kind: input, shape index: {}]   ;;  %s5286_s3 = inlined_call_operand.vmem [shape: bf16[128,384], index: 3, kind: input, shape index: {}]   ;;  %s5287_s4 = inlined_call_operand.vmem [shape: f32[1,384], index: 4, kind: input, shape index: {}]   ;;  %s5288_s5 = inlined_call_operand.vmem [shape: bf16[128,128], index: 5, kind: input, shape index: {}]   ;;  %s5289_s6 = inlined_call_operand.vmem [shape: f32[1,128], index: 6, kind: input, shape index: {}]   ;;  %s5290_s7 = inlined_call_operand.vmem [shape: f32[1,128], index: 7, kind: input, shape index: {}]   ;;  %s5291_s8 = inlined_call_operand.vmem [shape: f32[1,128], index: 8, kind: input, shape index: {}]   ;;  %s5292_s9 = inlined_call_operand.vmem [shape: f32[16,128], index: 9, kind: output, shape index: {}]  }
   0x1 LB: > { %s4283_s10 = sadd.s32 4294967295, %s4571_s30   ;;  %p4287_p0 = scmp.ge.s32.totalorder %s4571_s30, 1  ;;  %s4571_s30 = sphi %s4631_s30, %s19_s30  }
   0x2   : > { %p286_p1 = scmp.lt.s32.totalorder %s4571_s30, 3 }
   0x4   : > { %p287_p2 = pnand %p4287_p0, %p286_p1 }
   0x5   : > { %p320_p3 = scmp.lt.s32.totalorder (!%p287_p2), %s4283_s10, 1  ;;  %v4505_v1 = vld [vmem:[%s5286_s3 + $0x4] ss:$12 sps:$4 sm:$0xff] (!%p287_p2)   ;;  %v4507_v2 = vld [vmem:[%s5286_s3] ss:$12 sps:$4 sm:$0xff] (!%p287_p2)   ;;  %v4573_v3 = vmov (!%p287_p2), 0.0   ;;  %v393_v41 = vlaneseq (!%p287_p2) }
   0x6   : > { %290 = sbr.rel (%p287_p2) target bundleno = 2635 (0xa4b), region = 56  ;;  %4389 = vmatprep.subr.bf16.mxu1 (!%p287_p2), %v4573_v3  ;;  %v4508_v4 = vld [vmem:[%s5286_s3 + $0x8] ss:$12 sps:$4 sm:$0xff] (!%p287_p2)   ;;  %536 = vmatprep.subr.bf16.mxu0 (!%p287_p2), %v4505_v1  ;;  %v4511_v6 = vld [vmem:[%s5286_s3 + $0x18] ss:$12 sps:$4 sm:$0xff] (!%p287_p2)   ;;  %v4574_v25 = vmov (!%p287_p2), 0  }
   0x7   : > { %v4509_v5 = vld [vmem:[%s5286_s3 + $0x1c] ss:$12 sps:$4 sm:$0xff] (!%p287_p2)   ;;  %537 = vmatpush1.bf16.msra.mxu0 (!%p287_p2), %v4507_v2  ;;  %4390 = vmatpush3.bf16.msra.mxu1 (!%p287_p2), %v4508_v4  ;;  %v4512_v7 = vld [vmem:[%s5286_s3 + $0x20] ss:$12 sps:$4 sm:$0xff] (!%p287_p2)   ;;  %v4516_v14 = vld [vmem:[%s5286_s3 + $0x38] ss:$12 sps:$4 sm:$0xff] (!%p287_p2)  }
   0x8   : > { %538 = vmatprep.subr.bf16.mxu0 (!%p287_p2), %v4509_v5  ;;  %4391 = vmatprep.subr.bf16.mxu1 (!%p287_p2), %v4573_v3  ;;  %v4513_v8 = vld [vmem:[%s5286_s3 + $0x34] ss:$12 sps:$4 sm:$0xff] (!%p287_p2)   ;;  %v4515_v13 = vld [vmem:[%s5286_s3 + $0x30] ss:$12 sps:$4 sm:$0xff] (!%p287_p2)   ;;  %v4517_v15 = vld [vmem:[%s5286_s3 + $0x4c] ss:$12 sps:$4 sm:$0xff] (!%p287_p2)  }
   0x9   : > { %v4519_v16 = vld [vmem:[%s5286_s3 + $0x48] ss:$12 sps:$4 sm:$0xff] (!%p287_p2)   ;;  %v4520_v17 = vld [vmem:[%s5286_s3 + $0x50] ss:$12 sps:$4 sm:$0xff] (!%p287_p2)   ;;  %v4523_v19 = vld [vmem:[%s5286_s3 + $0x60] ss:$12 sps:$4 sm:$0xff] (!%p287_p2)   ;;  %568 = vmatprep.mubr.bf16.mxu0 (!%p287_p2), %v4574_v25 }
   0xa   : > { %v4521_v18 = vld [vmem:[%s5286_s3 + $0x64] ss:$12 sps:$4 sm:$0xff] (!%p287_p2)   ;;  %v4524_v20 = vld [vmem:[%s5286_s3 + $0x68] ss:$12 sps:$4 sm:$0xff] (!%p287_p2)   ;;  %v4528_v23 = vld [vmem:[%s5286_s3 + $0x80] ss:$12 sps:$4 sm:$0xff] (!%p287_p2)  }
   0xb   : > { %539 = vmatpush1.bf16.msra.mxu0 (!%p287_p2), %v4511_v6  ;;  %4392 = vmatpush3.bf16.msra.mxu1 (!%p287_p2), %v4512_v7  ;;  %v4525_v21 = vld [vmem:[%s5286_s3 + $0x7c] ss:$12 sps:$4 sm:$0xff] (!%p287_p2)   ;;  %v4527_v22 = vld [vmem:[%s5286_s3 + $0x78] ss:$12 sps:$4 sm:$0xff] (!%p287_p2)   ;;  %v4529_v24 = vld [vmem:[%s5286_s3 + $0x94] ss:$12 sps:$4 sm:$0xff] (!%p287_p2)  }
   0xc   : > { %540 = vmatprep.subr.bf16.mxu0 (!%p287_p2), %v4513_v8  ;;  %4393 = vmatprep.subr.bf16.mxu1 (!%p287_p2), %v4573_v3  ;;  %vm4575_vm0 = vmmov (!%p287_p2), 0   ;;  %v4531_v26 = vld [vmem:[%s5286_s3 + $0x90] ss:$12 sps:$4 sm:$0xff] (!%p287_p2)   ;;  %v4532_v27 = vld [vmem:[%s5286_s3 + $0x98] ss:$12 sps:$4 sm:$0xff] (!%p287_p2)   ;;  %v4744_v42 = vshrl.u32 (!%p287_p2), %v393_v41, 7 }
   0xd   : > { %s5294_s10 = smov (!%p320_p3, %s4283_s10), 1  ;;  %4405 = vmatprep.mubr.msk.bf16.mxu1 %vm4575_vm0, %v4573_v3  ;;  %v4533_v28 = vld [vmem:[%s5286_s3 + $0xac] ss:$12 sps:$4 sm:$0xff]   ;;  %v4535_v29 = vld [vmem:[%s5286_s3 + $0xa8] ss:$12 sps:$4 sm:$0xff]   ;;  %s4576_s15 = smov 32  }
   0xe   : > { %s4288_s11 = sshll.u32 %s5294_s10, 3  ;;  %v4536_v30 = vld [vmem:[%s5286_s3 + $0xb0] ss:$12 sps:$4 sm:$0xff]   ;;  %v4290_v35 = vld [vmem:[%s5284_s1] ss:$0 sm:$0xff]  ;;  %v399_v43 = vsub.s32 1, %v4744_v42 }
   0xf   : > { %s323_s14 = scalar_lea.vmem %s5283_s0, %s4288_s11  ;;  %541 = vmatpush1.bf16.msra.mxu0 %v4515_v13  ;;  %4394 = vmatpush3.bf16.msra.mxu1 %v4516_v14  ;;  %v4291_v37 = vld [vmem:[%s5285_s2] ss:$0 sm:$0xff]  ;;  %v395_v45 = vsub.s32 0, %v4744_v42  ;;  %s4577_s16 = smov 96   ;;  %v4579_v58 = vmov 1983009808  }
  0x10   : > { %v329_v0 = vld [vmem:[%s323_s14] sm:$0xff]  ;;  %4395 = vmatprep.subr.bf16.mxu1 %v4573_v3  ;;  %542 = vmatprep.subr.bf16.mxu0 %v4517_v15  ;;  %s4578_s17 = smov 64   ;;  %v630_v59 = vunpack.c.l.s4 %v4579_v58  ;;  %v4580_v60 = vmov 1934713408   ;;  %vm2145_vm1 = vcmask 261120   ;;  %vm2327_vm3 = vcmask 64512   ;;  %s327_s24 = scalar_lea.vmem %s5292_s9, %s4288_s11 }
  0x11   : > { %332 = vadd.xlane.f32.xlu0 %v329_v0  ;;  %v4750_v44 = vld [vmem:[%s5287_s4] sm:$0x7]  ;;  %v662_v61 = vunpack.c.l.s4 %v4580_v60  ;;  %vm4085_vm4 = vcmask 523264   ;;  %vm4087_vm5 = vcmask 785408  }
  0x12   : > { %v400_v46 = vrot.slane %v4750_v44, %v399_v43  ;;  %v396_v51 = vrot.slane %v4750_v44, %v395_v45  ;;  %v631_v62 = vunpack.c.0.s8 %v630_v59 }
  0x13   : > { %543 = vmatpush1.bf16.msra.mxu0 %v4519_v16  ;;  %4396 = vmatpush3.bf16.msra.mxu1 %v4520_v17  ;;  %v663_v1 = vunpack.c.0.s8 %v662_v61 }
  0x14   : > { %4397 = vmatprep.subr.bf16.mxu1 %v4573_v3  ;;  %544 = vmatprep.subr.bf16.mxu0 %v4521_v18  ;;  %v4769_v2 = vsub.s32 %v631_v62, %v4744_v42 }
  0x17   : > { %545 = vmatpush1.bf16.msra.mxu0 %v4523_v19  ;;  %4398 = vmatpush3.bf16.msra.mxu1 %v4524_v20 }
  0x18   : > { %546 = vmatprep.subr.bf16.mxu0 %v4525_v21  ;;  %4399 = vmatprep.subr.bf16.mxu1 %v4573_v3 }
  0x1b   : > { %547 = vmatpush1.bf16.msra.mxu0 %v4527_v22  ;;  %4400 = vmatpush3.bf16.msra.mxu1 %v4528_v23 }
  0x1c   : > { %548 = vmatprep.subr.bf16.mxu0 %v4529_v24  ;;  %4401 = vmatprep.subr.bf16.mxu1 %v4573_v3 }
  0x1f   : > { %549 = vmatpush1.bf16.msra.mxu0 %v4531_v26  ;;  %4402 = vmatpush3.bf16.msra.mxu1 %v4532_v27 }
  0x20   : > { %550 = vmatprep.subr.bf16.mxu0 %v4533_v28  ;;  %4403 = vmatprep.subr.bf16.mxu1 %v4573_v3 }
  0x23   : > { %551 = vmatpush1.bf16.msra.mxu0 %v4535_v29  ;;  %4404 = vmatpush3.bf16.msra.mxu1 %v4536_v30 }
  0x24   : > { %4409 = vmatprep.subr.bf16.mxu1 %v4573_v3 }
  0x9e   : > { %v333_v9 = vpop.xlane.xlu0 %332 }
  0x9f   : > { %v335_v10 = vmul.f32 0.0078125, %v333_v9  ;;  %v4772_v9 = vsub.s32 %v663_v1, %v4744_v42 }
  0xa1   : > { %v336_v11 = vsub.f32 %v329_v0, %v335_v10 }
  0xa3   : > { %v337_v12 = vmul.f32 %v336_v11, %v336_v11 }
  0xa5   : > { %338 = vadd.xlane.f32.xlu0 %v337_v12 }
 0x132   : > { %v339_v31 = vpop.xlane.xlu0 %338 }
 0x133   : > { %v340_v32 = vmul.f32 0.0078125, %v339_v31 }
 0x135   : > { %v341_v33 = vadd.f32 1e-05, %v340_v32 }
 0x137   : > { %4545 = vrsqrt.f32 %v341_v33 }
 0x141   : > { %v4546_v34 = vpop.eup %4545 }
 0x142   : > { %v343_v36 = vmul.f32 %v4546_v34, %v336_v11 }
 0x144   : > { %v350_v38 = vmul.f32 %v4290_v35, %v343_v36 }
 0x146   : > { %v4737_v39 = vadd.f32 %v4291_v37, %v350_v38 }
 0x148   : > { %v358_v40 = vpack.c.bf16 %v4737_v39, %v4737_v39 }
 0x14a   : > { %569 = vmatmul.mubr.bf16.vlgmr.msra.gmra.mrb[0].mxu0 %v358_v40  ;;  %4406 = vmatmul.mubr.bf16.vlgmr.msra.gmra.mrb[0].mxu1 %v358_v40 }
 0x14b   : > { %4413 = vmatprep.mubr.msk.bf16.mxu1 %vm4575_vm0, %v4573_v3 }
 0x21d   : > { %v570_v47 = vpop.f32.mrb[0].mxu0  ;;  %v4754_v48 = vpop.f32.mrb[0].mxu1 }
 0x21e   : > { %v572_v49 = vpop.f32.mrb[1].mxu0  ;;  %v4407_v50 = vpop.f32.mrb[1].mxu1  ;;  %v4759_v57 = vadd.f32 %v570_v47, %v396_v51 }
 0x21f   : > { %v573_v52 = vadd.f32 %v572_v49, %v400_v46  ;;  %v574_v53 = vpop.f32.mrb[2].mxu0  ;;  %v614_v54 = vpop.f32.mrb[2].mxu1 }
 0x220   : > { %v575_v55 = vpop.f32.mrb[3].mxu0  ;;  %v4408_v56 = vpop.f32.mrb[3].mxu1 }
 0x221   : > { %710 = vrot.lane.b32.xlu0 %v573_v52, %s4576_s15  ;;  %704 = vrot.lane.b32.xlu1 %v573_v52, %s4577_s16 }
 0x225   : > { %707 = vrot.lane.b32.xlu1 %v573_v52, %s4578_s17  ;;  %618 = vrot.lane.b32.xlu0 %v4759_v57, %s4577_s16 }
 0x229   : > { %621 = vrot.lane.b32.xlu1 %v4759_v57, %s4578_s17 }
 0x22d   : > { %624 = vrot.lane.b32.xlu1 %v4759_v57, %s4576_s15 }
 0x293   : > { %v711_v63 = vpop.permute.xlu0 %710  ;;  %v705_v0 = vpop.permute.xlu1 %704 }
 0x294   : > { %v729_v4 = vcombine.low %v705_v0, %v711_v63  ;;  %v730_v5 = vcombine.high %v705_v0, %v711_v63 }
 0x296   : > { %v737_v10 = vrot.slane %v729_v4, %v4769_v2  ;;  %v744_v11 = vrot.slane %v730_v5, %v4769_v2 }
 0x297   : > { %v708_v6 = vpop.permute.xlu1 %707  ;;  %v4794_v46 = vpop.permute.xlu0 %618 }
 0x298   : > { %v713_v7 = vcombine.low %v573_v52, %v708_v6  ;;  %v714_v8 = vcombine.high %v573_v52, %v708_v6 }
 0x29a   : > { %v721_v12 = vrot.slane %v713_v7, %v4769_v2  ;;  %v728_v13 = vrot.slane %v714_v8, %v4769_v2 }
 0x29b   : > { %v4786_v35 = vpop.permute.xlu1 %621 }
 0x29c   : > { %v745_v14 = vcombine.low %v721_v12, %v737_v10  ;;  %v762_v15 = vcombine.high %v728_v13, %v744_v11  ;;  %v746_v16 = vcombine.high %v721_v12, %v737_v10  ;;  %v761_v23 = vcombine.low %v728_v13, %v744_v11 }
 0x29e   : > { %v753_v17 = vrot.slane %v745_v14, %v4772_v9  ;;  %v776_v18 = vrot.slane %v762_v15, %v4772_v9  ;;  %v760_v21 = vrot.slane %v746_v16, %v4772_v9  ;;  %v769_v27 = vrot.slane %v761_v23, %v4772_v9 }
 0x29f   : > { %v4788_v36 = vpop.permute.xlu1 %624 }
 0x2a0   : > { %v781_v19 = vpack.c.bf16 %v753_v17, %v753_v17  ;;  %v787_v20 = vpack.c.bf16 %v776_v18, %v776_v18  ;;  %v777_v22 = vcombine.high %v753_v17, %v4573_v3  ;;  %v783_v24 = vpack.c.bf16 %v760_v21, %v760_v21 }
 0x2a1   : > { %v785_v28 = vpack.c.bf16 %v769_v27, %v769_v27  ;;  %v778_v29 = vcombine.high %v760_v21, %v4573_v3  ;;  %v779_v31 = vcombine.high %v769_v27, %v4573_v3  ;;  %v780_v33 = vcombine.high %v776_v18, %v4573_v3 }
 0x2a2   : > { %937 = vxpose.xlu1.c.b16.start.end [1/1] (short) (narrow) %v781_v19, 32  ;;  %1033 = vxpose.xlu0.c.b16.start.end [1/1] (short) (narrow) %v787_v20, 32  ;;  %v782_v26 = vpack.c.bf16 %v777_v22, %v777_v22 }
 0x2a3   : > { %v784_v30 = vpack.c.bf16 %v778_v29, %v778_v29  ;;  %v786_v32 = vpack.c.bf16 %v779_v31, %v779_v31  ;;  %v788_v34 = vpack.c.bf16 %v780_v33, %v780_v33 }
 0x2a7   : > { %969 = vxpose.xlu1.c.b16.start.end [1/1] (short) (narrow) %v783_v24, 32  ;;  %953 = vxpose.xlu0.c.b16.start.end [1/1] (short) (narrow) %v782_v26, 32 }
 0x2ac   : > { %1001 = vxpose.xlu1.c.b16.start.end [1/1] (short) (narrow) %v785_v28, 32 }
 0x2b1   : > { %985 = vxpose.xlu1.c.b16.start.end [1/1] (short) (narrow) %v784_v30, 32 }
 0x2b6   : > { %1017 = vxpose.xlu1.c.b16.start.end [1/1] (short) (narrow) %v786_v32, 32 }
 0x2bb   : > { %1049 = vxpose.xlu1.c.b16.start.end [1/1] (short) (narrow) %v788_v34, 32 }
 0x308   : > { %v945_v37 = vpop.trf.xlu1  ;;  %v1041_v49 = vpop.trf.xlu0 }
 0x309   : > { %v1093_v59 = vshrl.u32 %v1041_v49, 16  ;;  %v1069_v13 = vshrl.u32 %v945_v37, 16 }
 0x30c   : > { %v4790_v38 = vpop.trf.xlu1  ;;  %v4800_v52 = vpop.trf.xlu0 }
 0x310   : > { %v977_v40 = vpop.trf.xlu1  ;;  %v961_v54 = vpop.trf.xlu0 }
 0x311   : > { %v1067_v58 = vpack.i.b16 %v961_v54, %v945_v37  ;;  %v1077_v5 = vshrl.u32 %v977_v40, 16  ;;  %v1070_v6 = vshrl.u32 %v961_v54, 16 }
 0x313   : > { %v1071_v19 = vpack.i.b16 %v1070_v6, %v1069_v13 }
 0x314   : > { %v4792_v43 = vpop.trf.xlu1 }
 0x318   : > { %v1009_v45 = vpop.trf.xlu1 }
 0x319   : > { %v1085_v7 = vshrl.u32 %v1009_v45, 16 }
 0x31c   : > { %v4796_v47 = vpop.trf.xlu1 }
 0x320   : > { %v993_v50 = vpop.trf.xlu1 }
 0x321   : > { %v1078_v60 = vshrl.u32 %v993_v50, 16  ;;  %v1075_v63 = vpack.i.b16 %v993_v50, %v977_v40 }
 0x323   : > { %v1079_v14 = vpack.i.b16 %v1078_v60, %v1077_v5 }
 0x324   : > { %v4798_v51 = vpop.trf.xlu1 }
 0x328   : > { %v1025_v53 = vpop.trf.xlu1 }
 0x329   : > { %v1083_v56 = vpack.i.b16 %v1025_v53, %v1009_v45  ;;  %v1086_v61 = vshrl.u32 %v1025_v53, 16 }
 0x32b   : > { %v1129_v0 = vcombine.low %v1067_v58, %v1083_v56  ;;  %v1130_v8 = vcombine.high %v1067_v58, %v1083_v56  ;;  %v1087_v15 = vpack.i.b16 %v1086_v61, %v1085_v7  ;;  %v962_v61 = vpop.trf.xlu0 }
 0x32c   : > { %v4802_v55 = vpop.trf.xlu1 }
 0x32d   : > { %v1137_v16 = vrot.slane %v1129_v0, %v4769_v2  ;;  %v1144_v22 = vrot.slane %v1130_v8, %v4769_v2  ;;  %v1197_v24 = vcombine.low %v1071_v19, %v1087_v15  ;;  %v1198_v32 = vcombine.high %v1071_v19, %v1087_v15 }
 0x32e   : > { %v1107_v0 = vpack.i.b16 %v4798_v51, %v4792_v43  ;;  %v1118_v13 = vshrl.u32 %v4802_v55, 16 }
 0x32f   : > { %v1205_v31 = vrot.slane %v1197_v24, %v4769_v2 }
 0x330   : > { %v1057_v62 = vpop.trf.xlu1 }
 0x331   : > { %v1091_v1 = vpack.i.b16 %v1057_v62, %v1041_v49  ;;  %v1094_v4 = vshrl.u32 %v1057_v62, 16  ;;  %v1212_v49 = vrot.slane %v1198_v32, %v4769_v2 }
 0x333   : > { %v1095_v10 = vpack.i.b16 %v1094_v4, %v1093_v59  ;;  %v1145_v11 = vcombine.low %v1075_v63, %v1091_v1  ;;  %v1146_v12 = vcombine.high %v1075_v63, %v1091_v1  ;;  %v1115_v1 = vpack.i.b16 %v4802_v55, %v4796_v47 }
 0x334   : > { %v1058_v54 = vpop.trf.xlu1  ;;  %v1099_v4 = vpack.i.b16 %v962_v61, %v4790_v38 }
 0x335   : > { %v1153_v17 = vrot.slane %v1145_v11, %v4769_v2  ;;  %v1160_v18 = vrot.slane %v1146_v12, %v4769_v2  ;;  %v1213_v20 = vcombine.low %v1079_v14, %v1095_v10  ;;  %v1214_v30 = vcombine.high %v1079_v14, %v1095_v10 }
 0x336   : > { %v1123_v59 = vpack.i.b16 %v1058_v54, %v4800_v52  ;;  %v1126_v7 = vshrl.u32 %v1058_v54, 16  ;;  %v1265_v10 = vcombine.low %v1099_v4, %v1115_v1  ;;  %v1125_v11 = vshrl.u32 %v4800_v52, 16 }
 0x337   : > { %v1162_v21 = vcombine.high %v1137_v16, %v1153_v17  ;;  %v1161_v23 = vcombine.low %v1137_v16, %v1153_v17  ;;  %v1177_v27 = vcombine.low %v1144_v22, %v1160_v18  ;;  %v1221_v29 = vrot.slane %v1213_v20, %v4769_v2 }
 0x338   : > { %v1178_v34 = vcombine.high %v1144_v22, %v1160_v18  ;;  %v1228_v45 = vrot.slane %v1214_v30, %v4769_v2  ;;  %v1281_v5 = vcombine.low %v1107_v0, %v1123_v59  ;;  %v1110_v12 = vshrl.u32 %v4798_v51, 16 }
 0x339   : > { %v1176_v26 = vrot.slane %v1162_v21, %v4772_v9  ;;  %v1169_v28 = vrot.slane %v1161_v23, %v4772_v9  ;;  %v1185_v33 = vrot.slane %v1177_v27, %v4772_v9  ;;  %v1230_v40 = vcombine.high %v1205_v31, %v1221_v29 }
 0x33a   : > { %v1192_v50 = vrot.slane %v1178_v34, %v4772_v9  ;;  %v1229_v53 = vcombine.low %v1205_v31, %v1221_v29  ;;  %v1245_v58 = vcombine.low %v1212_v49, %v1228_v45  ;;  %v1246_v63 = vcombine.high %v1212_v49, %v1228_v45 }
 0x33b   : > { %1465 = vxpose.xlu1.c.b16.start.end [1/1] (short) (narrow) %v1176_v26, 16  ;;  %1401 = vxpose.xlu0.c.b16.start.end [1/1] (short) (narrow) %v1169_v28, 16  ;;  %v1193_v37 = vcombine.high %v1169_v28, %v4574_v25  ;;  %v1244_v56 = vrot.slane %v1230_v40, %v4772_v9  ;;  %v1194_v6 = vcombine.high %v1176_v26, %v4574_v25  ;;  %v1109_v14 = vshrl.u32 %v4792_v43, 16 }
 0x33c   : > { %v1237_v60 = vrot.slane %v1229_v53, %v4772_v9  ;;  %v1253_v62 = vrot.slane %v1245_v58, %v4772_v9  ;;  %v1260_v8 = vrot.slane %v1246_v63, %v4772_v9  ;;  %v1195_v15 = vcombine.high %v1185_v33, %v4574_v25 }
 0x33d   : > { %v1289_v16 = vrot.slane %v1281_v5, %v4769_v2  ;;  %v1102_v17 = vshrl.u32 %v962_v61, 16  ;;  %v1117_v18 = vshrl.u32 %v4796_v47, 16  ;;  %v1127_v19 = vpack.i.b16 %v1126_v7, %v1125_v11 }
 0x33e   : > { %v1261_v20 = vcombine.high %v1237_v60, %v4574_v25  ;;  %v1273_v52 = vrot.slane %v1265_v10, %v4769_v2  ;;  %v1101_v51 = vshrl.u32 %v4790_v38, 16  ;;  %v1111_v21 = vpack.i.b16 %v1110_v12, %v1109_v14 }
 0x33f   : > { %1529 = vxpose.xlu1.c.b16.start.end [1/1] (short) (narrow) %v1185_v33, 16  ;;  %1433 = vxpose.xlu0.c.b16.start.end [1/1] (short) (narrow) %v1193_v37, 16  ;;  %v1119_v55 = vpack.i.b16 %v1118_v13, %v1117_v18  ;;  %v1282_v22 = vcombine.high %v1107_v0, %v1123_v59  ;;  %v1196_v43 = vcombine.high %v1192_v50, %v4574_v25 }
 0x340   : > { %v1297_v23 = vcombine.low %v1273_v52, %v1289_v16  ;;  %v1103_v24 = vpack.i.b16 %v1102_v17, %v1101_v51  ;;  %v1262_v26 = vcombine.high %v1244_v56, %v4574_v25  ;;  %v1349_v27 = vcombine.low %v1111_v21, %v1127_v19 }
 0x341   : > { %v1266_v47 = vcombine.high %v1099_v4, %v1115_v1  ;;  %v1298_v30 = vcombine.high %v1273_v52, %v1289_v16  ;;  %v1296_v38 = vrot.slane %v1282_v22, %v4769_v2  ;;  %v1263_v31 = vcombine.high %v1253_v62, %v4574_v25 }
 0x342   : > { %v1333_v28 = vcombine.low %v1103_v24, %v1119_v55  ;;  %v1305_v29 = vrot.slane %v1297_v23, %v4772_v9  ;;  %v1357_v32 = vrot.slane %v1349_v27, %v4769_v2  ;;  %v1264_v45 = vcombine.high %v1260_v8, %v4574_v25 }
 0x343   : > { %1593 = vxpose.xlu1.c.b16.start.end [1/1] (short) (narrow) %v1192_v50, 16  ;;  %1481 = vxpose.xlu0.c.b16.start.end [1/1] (short) (narrow) %v1244_v56, 16  ;;  %v1280_v33 = vrot.slane %v1266_v47, %v4769_v2  ;;  %v1312_v37 = vrot.slane %v1298_v30, %v4772_v9  ;;  %v1350_v50 = vcombine.high %v1111_v21, %v1127_v19 }
 0x344   : > { %v1341_v34 = vrot.slane %v1333_v28, %v4769_v2  ;;  %v1334_v53 = vcombine.high %v1103_v24, %v1119_v55  ;;  %v1329_v1 = vcombine.high %v1305_v29, %v4574_v25 }
 0x345   : > { %v1313_v40 = vcombine.low %v1280_v33, %v1296_v38  ;;  %v1314_v56 = vcombine.high %v1280_v33, %v1296_v38 }
 0x346   : > { %v1365_v49 = vcombine.low %v1341_v34, %v1357_v32  ;;  %v1366_v59 = vcombine.high %v1341_v34, %v1357_v32  ;;  %v1348_v61 = vrot.slane %v1334_v53, %v4769_v2 }
 0x347   : > { %1417 = vxpose.xlu1.c.b16.start.end [1/1] (short) (narrow) %v1237_v60, 16  ;;  %1545 = vxpose.xlu0.c.b16.start.end [1/1] (short) (narrow) %v1253_v62, 16  ;;  %v1321_v54 = vrot.slane %v1313_v40, %v4772_v9  ;;  %v1364_v60 = vrot.slane %v1350_v50, %v4769_v2  ;;  %v1328_v62 = vrot.slane %v1314_v56, %v4772_v9 }
 0x348   : > { %v1373_v58 = vrot.slane %v1365_v49, %v4772_v9  ;;  %v1380_v63 = vrot.slane %v1366_v59, %v4772_v9 }
 0x349   : > { %v1381_v0 = vcombine.low %v1348_v61, %v1364_v60  ;;  %v1382_v5 = vcombine.high %v1348_v61, %v1364_v60  ;;  %v1331_v10 = vcombine.high %v1321_v54, %v4574_v25  ;;  %v1332_v13 = vcombine.high %v1328_v62, %v4574_v25 }
 0x34a   : > { %v1397_v11 = vcombine.high %v1373_v58, %v4574_v25  ;;  %v1398_v14 = vcombine.high %v1380_v63, %v4574_v25 }
 0x34b   : > { %1497 = vxpose.xlu1.c.b16.start.end [1/1] (short) (narrow) %v1194_v6, 16  ;;  %1609 = vxpose.xlu0.c.b16.start.end [1/1] (short) (narrow) %v1260_v8, 16  ;;  %v1389_v4 = vrot.slane %v1381_v0, %v4772_v9  ;;  %v1330_v6 = vcombine.high %v1312_v37, %v4574_v25  ;;  %v1396_v7 = vrot.slane %v1382_v5, %v4772_v9  ;;  %v403_v8 = vsub.s32 2, %v4744_v42 }
 0x34d   : > { %v404_v12 = vrot.slane %v4750_v44, %v403_v8  ;;  %v1399_v16 = vcombine.high %v1389_v4, %v4574_v25  ;;  %v1400_v17 = vcombine.high %v1396_v7, %v4574_v25 }
 0x34f   : > { %1561 = vxpose.xlu1.c.b16.start.end [1/1] (short) (narrow) %v1195_v15, 16  ;;  %1449 = vxpose.xlu0.c.b16.start.end [1/1] (short) (narrow) %v1261_v20, 16  ;;  %v4865_v15 = vadd.f32 %v4754_v48, %v404_v12 }
 0x353   : > { %1625 = vxpose.xlu1.c.b16.start.end [1/1] (short) (narrow) %v1196_v43, 16  ;;  %1513 = vxpose.xlu0.c.b16.start.end [1/1] (short) (narrow) %v1262_v26, 16 }
 0x357   : > { %1657 = vxpose.xlu1.c.b16.start.end [1/1] (short) (narrow) %v1305_v29, 16  ;;  %1577 = vxpose.xlu0.c.b16.start.end [1/1] (short) (narrow) %v1263_v31, 16 }
 0x35b   : > { %1721 = vxpose.xlu1.c.b16.start.end [1/1] (short) (narrow) %v1312_v37, 16  ;;  %1641 = vxpose.xlu0.c.b16.start.end [1/1] (short) (narrow) %v1264_v45, 16 }
 0x35f   : > { %1785 = vxpose.xlu1.c.b16.start.end [1/1] (short) (narrow) %v1321_v54, 16  ;;  %1673 = vxpose.xlu0.c.b16.start.end [1/1] (short) (narrow) %v1373_v58, 16 }
 0x363   : > { %1849 = vxpose.xlu1.c.b16.start.end [1/1] (short) (narrow) %v1328_v62, 16  ;;  %1737 = vxpose.xlu0.c.b16.start.end [1/1] (short) (narrow) %v1380_v63, 16 }
 0x367   : > { %1689 = vxpose.xlu1.c.b16.start.end [1/1] (short) (narrow) %v1329_v1, 16  ;;  %1801 = vxpose.xlu0.c.b16.start.end [1/1] (short) (narrow) %v1389_v4, 16 }
 0x36b   : > { %1753 = vxpose.xlu1.c.b16.start.end [1/1] (short) (narrow) %v1330_v6, 16  ;;  %1865 = vxpose.xlu0.c.b16.start.end [1/1] (short) (narrow) %v1396_v7, 16 }
 0x36f   : > { %1817 = vxpose.xlu1.c.b16.start.end [1/1] (short) (narrow) %v1331_v10, 16  ;;  %1705 = vxpose.xlu0.c.b16.start.end [1/1] (short) (narrow) %v1397_v11, 16 }
 0x373   : > { %1881 = vxpose.xlu1.c.b16.start.end [1/1] (short) (narrow) %v1332_v13, 16  ;;  %1769 = vxpose.xlu0.c.b16.start.end [1/1] (short) (narrow) %v1398_v14, 16  ;;  %v643_v13 = vcombine.low %v4794_v46, %v4788_v36  ;;  %v644_v14 = vcombine.high %v4794_v46, %v4788_v36 }
 0x377   : > { %790 = vrot.lane.b32.xlu1 %v4865_v15, %s4577_s16  ;;  %1833 = vxpose.xlu0.c.b16.start.end [1/1] (short) (narrow) %v1399_v16, 16 }
 0x37b   : > { %796 = vrot.lane.b32.xlu1 %v4865_v15, %s4576_s15  ;;  %1897 = vxpose.xlu0.c.b16.start.end [1/1] (short) (narrow) %v1400_v17, 16 }
 0x384   : > { %793 = vrot.lane.b32.xlu0 %v4865_v15, %s4578_s17 }
 0x3a1   : > { %v1473_v44 = vpop.trf.xlu1  ;;  %v1409_v18 = vpop.trf.xlu0 }
 0x3a2   : > { %v1913_v31 = vcombine.low %v1409_v18, %v1473_v44  ;;  %v627_v44 = vcombine.low %v4759_v57, %v4786_v35  ;;  %v628_v18 = vcombine.high %v4759_v57, %v4786_v35 }
 0x3a4   : > { %v1920_v53 = vrot.slane %v1913_v31, %v4769_v2  ;;  %v635_v36 = vrot.slane %v627_v44, %v4769_v2  ;;  %v642_v46 = vrot.slane %v628_v18, %v4769_v2 }
 0x3a5   : > { %v1537_v19 = vpop.trf.xlu1  ;;  %v1441_v48 = vpop.trf.xlu0 }
 0x3a9   : > { %v1601_v20 = vpop.trf.xlu1  ;;  %v1489_v52 = vpop.trf.xlu0 }
 0x3aa   : > { %v1929_v47 = vcombine.low %v1537_v19, %v1601_v20  ;;  %v658_v20 = vrot.slane %v644_v14, %v4769_v2 }
 0x3ac   : > { %v1936_v34 = vrot.slane %v1929_v47, %v4769_v2 }
 0x3ad   : > { %v1425_v51 = vpop.trf.xlu1  ;;  %v1553_v21 = vpop.trf.xlu0 }
 0x3ae   : > { %v1963_v32 = vcombine.low %v1425_v51, %v1489_v52 }
 0x3b0   : > { %v1970_v54 = vrot.slane %v1963_v32, %v4769_v2 }
 0x3b1   : > { %v1505_v55 = vpop.trf.xlu1  ;;  %v1617_v22 = vpop.trf.xlu0 }
 0x3b2   : > { %v1921_v28 = vcombine.low %v1441_v48, %v1505_v55  ;;  %v1979_v40 = vcombine.low %v1553_v21, %v1617_v22  ;;  %v651_v48 = vrot.slane %v643_v13, %v4769_v2  ;;  %v675_v22 = vcombine.low %v642_v46, %v658_v20 }
 0x3b4   : > { %v1928_v37 = vrot.slane %v1921_v28, %v4769_v2  ;;  %v1986_v60 = vrot.slane %v1979_v40, %v4769_v2  ;;  %v659_v21 = vcombine.low %v635_v36, %v651_v48  ;;  %v660_v55 = vcombine.high %v635_v36, %v651_v48 }
 0x3b5   : > { %v1569_v43 = vpop.trf.xlu1  ;;  %v1457_v23 = vpop.trf.xlu0 }
 0x3b6   : > { %v1945_v59 = vcombine.low %v1920_v53, %v1928_v37  ;;  %v667_v35 = vrot.slane %v659_v21, %v4772_v9 }
 0x3b8   : > { %v4891_v5 = vrot.slane %v1945_v59, %v4772_v9 }
 0x3b9   : > { %v1633_v24 = vpop.trf.xlu1  ;;  %v1521_v26 = vpop.trf.xlu0 }
 0x3ba   : > { %v1937_v27 = vcombine.low %v1569_v43, %v1633_v24  ;;  %v1971_v29 = vcombine.low %v1457_v23, %v1521_v26  ;;  %v676_v43 = vcombine.high %v642_v46, %v658_v20  ;;  %v674_v24 = vrot.slane %v660_v55, %v4772_v9 }
 0x3bb   : > { %v683_v26 = vrot.slane %v675_v22, %v4772_v9 }
 0x3bc   : > { %v1944_v33 = vrot.slane %v1937_v27, %v4769_v2  ;;  %v1978_v45 = vrot.slane %v1971_v29, %v4769_v2  ;;  %v690_v27 = vrot.slane %v676_v43, %v4772_v9  ;;  %v692_v31 = vcombine.high %v674_v24, %v4573_v3 }
 0x3bd   : > { %v4875_v30 = vpop.trf.xlu1  ;;  %v1585_v38 = vpop.trf.xlu0  ;;  %v693_v32 = vcombine.high %v683_v26, %v4573_v3 }
 0x3be   : > { %v1953_v56 = vcombine.low %v1936_v34, %v1944_v33  ;;  %v1995_v61 = vcombine.low %v1970_v54, %v1978_v45  ;;  %v694_v33 = vcombine.high %v690_v27, %v4573_v3 }
 0x3c0   : > { %v4888_v1 = vrot.slane %v1953_v56, %v4772_v9  ;;  %v4894_v6 = vrot.slane %v1995_v61, %v4772_v9 }
 0x3c1   : > { %v4881_v49 = vpop.trf.xlu1  ;;  %v1649_v50 = vpop.trf.xlu0 }
 0x3c2   : > { %v1987_v58 = vcombine.low %v1585_v38, %v1649_v50  ;;  %v4901_v11 = vcombine.low %v4891_v5, %v4888_v1  ;;  %v691_v38 = vcombine.high %v667_v35, %v4573_v3  ;;  %v2013_v50 = vcombine.low %v4875_v30, %v4881_v49 }
 0x3c4   : > { %v1994_v62 = vrot.slane %v1987_v58, %v4769_v2  ;;  %v4318_v56 = vpack.c.bf16 %v693_v32, %v691_v38  ;;  %v4319_v58 = vpack.c.bf16 %v694_v33, %v692_v31  ;;  %v2020_v13 = vrot.slane %v2013_v50, %v4769_v2 }
 0x3c5   : > { %v1793_v63 = vpop.trf.xlu1  ;;  %v1681_v0 = vpop.trf.xlu0 }
 0x3c6   : > { %v2003_v4 = vcombine.low %v1986_v60, %v1994_v62 }
 0x3c8   : > { %v4897_v7 = vrot.slane %v2003_v4, %v4772_v9  ;;  %v4316_v4 = vpack.c.bf16 %v683_v26, %v667_v35 }
 0x3c9   : > { %v1857_v8 = vpop.trf.xlu1  ;;  %v1745_v10 = vpop.trf.xlu0 }
 0x3ca   : > { %v4905_v12 = vcombine.low %v4894_v6, %v4897_v7  ;;  %v2029_v34 = vcombine.low %v1793_v63, %v1857_v8  ;;  %v2063_v53 = vcombine.low %v1681_v0, %v1745_v10  ;;  %v4317_v63 = vpack.c.bf16 %v690_v27, %v674_v24 }
 0x3cb   : > { %v907_v0 = vrot.slane %v4318_v56, %v4769_v2  ;;  %v915_v10 = vrot.slane %v4319_v58, %v4769_v2  ;;  %v2117_v27 = vshrl.u32 %v4901_v11, 16  ;;  %v2012_v32 = vcombine.high %v4894_v6, %v4897_v7 }
 0x3cc   : > { %v2115_v17 = vpack.i.b16 %v4905_v12, %v4901_v11  ;;  %v2036_v59 = vrot.slane %v2029_v34, %v4769_v2  ;;  %v2070_v14 = vrot.slane %v2063_v53, %v4769_v2  ;;  %v890_v48 = vrot.slane %v4317_v63, %v4769_v2 }
 0x3cd   : > { %v1697_v16 = vpop.trf.xlu1  ;;  %v1809_v19 = vpop.trf.xlu0  ;;  %v916_v36 = vcombine.low %v907_v0, %v915_v10  ;;  %v2118_v24 = vshrl.u32 %v4905_v12, 16 }
 0x3ce   : > { %4410 = vmatpush3.bf16.msra.mxu1 %v2115_v17 }
 0x3cf   : > { %4411 = vmatprep.subr.bf16.mxu1 %v4573_v3 }
 0x3d1   : > { %v1761_v52 = vpop.trf.xlu1  ;;  %v1873_v51 = vpop.trf.xlu0 }
 0x3d2   : > { %v2021_v37 = vcombine.low %v1697_v16, %v1761_v52  ;;  %v2079_v61 = vcombine.low %v1809_v19, %v1873_v51  ;;  %v882_v19 = vrot.slane %v4316_v4, %v4769_v2 }
 0x3d4   : > { %v2028_v60 = vrot.slane %v2021_v37, %v4769_v2  ;;  %v2086_v17 = vrot.slane %v2079_v61, %v4769_v2  ;;  %v891_v55 = vcombine.low %v882_v19, %v890_v48  ;;  %v1962_v37 = vcombine.high %v4891_v5, %v4888_v1 }
 0x3d5   : > { %v1825_v23 = vpop.trf.xlu1  ;;  %v1713_v57 = vpop.trf.xlu0 }
 0x3d6   : > { %v2045_v16 = vcombine.low %v2020_v13, %v2028_v60  ;;  %v898_v26 = vrot.slane %v891_v55, %v4772_v9  ;;  %v2123_v56 = vpack.i.b16 %v2012_v32, %v1962_v37  ;;  %v2125_v13 = vshrl.u32 %v1962_v37, 16 }
 0x3d8   : > { %v2052_v46 = vrot.slane %v2045_v16, %v4772_v9  ;;  %v928_v34 = vshrl.u32 %v898_v26, 16  ;;  %v899_v63 = vcombine.high %v898_v26, %v4574_v25 }
 0x3d9   : > { %v1889_v47 = vpop.trf.xlu1  ;;  %v1777_v28 = vpop.trf.xlu0 }
 0x3da   : > { %v2037_v29 = vcombine.low %v1825_v23, %v1889_v47  ;;  %v2071_v40 = vcombine.low %v1713_v57, %v1777_v28  ;;  %v923_v23 = vrot.slane %v916_v36, %v4772_v9  ;;  %v2119_v28 = vpack.i.b16 %v2118_v24, %v2117_v27 }
 0x3dc   : > { %v2044_v54 = vrot.slane %v2037_v29, %v4769_v2  ;;  %v2078_v62 = vrot.slane %v2071_v40, %v4769_v2  ;;  %v927_v47 = vpack.i.b16 %v923_v23, %v898_v26  ;;  %v929_v12 = vshrl.u32 %v923_v23, 16 }
 0x3dd   : > { %v1841_v45 = vpop.trf.xlu0  ;;  %v924_v5 = vcombine.high %v923_v23, %v4574_v25 }
 0x3de   : > { %v2053_v30 = vcombine.low %v2036_v59, %v2044_v54  ;;  %v2095_v44 = vcombine.low %v2070_v14, %v2078_v62  ;;  %v930_v53 = vpack.i.b16 %v929_v12, %v928_v34  ;;  %v2126_v62 = vshrl.u32 %v2012_v32, 16 }
 0x3df   : > { %v935_v48 = vshrl.u32 %v924_v5, 16 }
 0x3e0   : > { %v2060_v20 = vrot.slane %v2053_v30, %v4772_v9  ;;  %v2102_v51 = vrot.slane %v2095_v44, %v4772_v9  ;;  %v933_v30 = vpack.i.b16 %v924_v5, %v899_v63  ;;  %v2127_v16 = vpack.i.b16 %v2126_v62, %v2125_v13 }
 0x3e1   : > { %v1905_v8 = vpop.trf.xlu0 }
 0x3e2   : > { %v2087_v49 = vcombine.low %v1841_v45, %v1905_v8  ;;  %v2061_v22 = vcombine.low %v2052_v46, %v2060_v20  ;;  %v2062_v59 = vcombine.high %v2052_v46, %v2060_v20 }
 0x3e4   : > { %v2094_v18 = vrot.slane %v2087_v49, %v4769_v2  ;;  %v2133_v31 = vshrl.u32 %v2061_v22, 16 }
 0x3e6   : > { %v2103_v52 = vcombine.low %v2086_v17, %v2094_v18  ;;  %v2141_v18 = vshrl.u32 %v2062_v59, 16 }
 0x3e8   : > { %v2110_v21 = vrot.slane %v2103_v52, %v4772_v9 }
 0x3e9   : > { %v791_v57 = vpop.permute.xlu1 %790 }
 0x3ea   : > { %v2111_v43 = vcombine.low %v2102_v51, %v2110_v21  ;;  %v2112_v54 = vcombine.high %v2102_v51, %v2110_v21  ;;  %v934_v51 = vshrl.u32 %v899_v63, 16 }
 0x3ec   : > { %v2131_v35 = vpack.i.b16 %v2111_v43, %v2061_v22  ;;  %v2134_v29 = vshrl.u32 %v2111_v43, 16  ;;  %v2139_v61 = vpack.i.b16 %v2112_v54, %v2062_v59  ;;  %v2142_v17 = vshrl.u32 %v2112_v54, 16 }
 0x3ed   : > { %v797_v38 = vpop.permute.xlu1 %796  ;;  %v936_v55 = vpack.i.b16 %v935_v48, %v934_v51 }
 0x3ee   : > { %4412 = vmatpush3.bf16.msra.mxu1 %v2131_v35  ;;  %v2135_v11 = vpack.i.b16 %v2134_v29, %v2133_v31  ;;  %v815_v33 = vcombine.low %v791_v57, %v797_v38  ;;  %v816_v58 = vcombine.high %v791_v57, %v797_v38  ;;  %v2143_v52 = vpack.i.b16 %v2142_v17, %v2141_v18 }
 0x3ef   : > { %4417 = vmatprep.subr.bf16.mxu1 %v4573_v3 }
 0x3f0   : > { %v823_v6 = vrot.slane %v815_v33, %v4769_v2  ;;  %v830_v4 = vrot.slane %v816_v58, %v4769_v2 }
 0x3f1   : > { %4414 = vmatmul.mubr.msk.bf16.vlgmr.msra.gmra.mrb[4].mxu1 %vm2145_vm1, %v927_v47 }
 0x3f2   : > { %4418 = vmatpush3.bf16.msra.mxu1 %v2119_v28  ;;  %4421 = vmatprep.mubr.msk.bf16.mxu1 %vm4575_vm0, %v4573_v3 }
 0x3f3   : > { %4419 = vmatprep.subr.bf16.mxu1 %v4573_v3 }
 0x3f6   : > { %4420 = vmatpush3.bf16.msra.mxu1 %v2135_v11  ;;  %v794_v40 = vpop.permute.xlu0 %793 }
 0x3f7   : > { %v799_v45 = vcombine.low %v4865_v15, %v794_v40  ;;  %v800_v50 = vcombine.high %v4865_v15, %v794_v40  ;;  %4425 = vmatprep.subr.bf16.mxu1 %v4573_v3 }
 0x3f9   : > { %v807_v7 = vrot.slane %v799_v45, %v4769_v2  ;;  %4422 = vmatmul.mubr.msk.bf16.vlgmr.msra.gmra.mrb[8].mxu1 %vm2145_vm1, %v930_v53  ;;  %v814_v1 = vrot.slane %v800_v50, %v4769_v2 }
 0x3fa   : > { %4426 = vmatpush3.bf16.msra.mxu1 %v2123_v56  ;;  %4429 = vmatprep.mubr.msk.bf16.mxu1 %vm4575_vm0, %v4573_v3 }
 0x3fb   : > { %v831_v15 = vcombine.low %v807_v7, %v823_v6  ;;  %4427 = vmatprep.subr.bf16.mxu1 %v4573_v3  ;;  %v832_v60 = vcombine.high %v807_v7, %v823_v6  ;;  %v847_v10 = vcombine.low %v814_v1, %v830_v4  ;;  %v848_v46 = vcombine.high %v814_v1, %v830_v4 }
 0x3fd   : > { %v839_v8 = vrot.slane %v831_v15, %v4772_v9  ;;  %v846_v14 = vrot.slane %v832_v60, %v4772_v9  ;;  %v855_v20 = vrot.slane %v847_v10, %v4772_v9  ;;  %v862_v43 = vrot.slane %v848_v46, %v4772_v9 }
 0x3fe   : > { %4428 = vmatpush3.bf16.msra.mxu1 %v2139_v61 }
 0x3ff   : > { %4433 = vmatprep.subr.bf16.mxu1 %v4573_v3  ;;  %v867_v49 = vpack.c.bf16 %v839_v8, %v839_v8  ;;  %v863_v0 = vcombine.high %v839_v8, %v4573_v3  ;;  %v864_v19 = vcombine.high %v846_v14, %v4573_v3  ;;  %v869_v36 = vpack.c.bf16 %v846_v14, %v846_v14 }
 0x400   : > { %v865_v22 = vcombine.high %v855_v20, %v4573_v3  ;;  %v871_v23 = vpack.c.bf16 %v855_v20, %v855_v20  ;;  %v866_v35 = vcombine.high %v862_v43, %v4573_v3  ;;  %v873_v24 = vpack.c.bf16 %v862_v43, %v862_v43 }
 0x401   : > { %4430 = vmatmul.mubr.msk.bf16.vlgmr.msra.gmra.mrb[12].mxu1 %vm2145_vm1, %v933_v30  ;;  %2376 = vxpose.xlu0.c.b16.start.end [1/1] (short) (narrow) %v867_v49, 32  ;;  %v868_v44 = vpack.c.bf16 %v863_v0, %v863_v0  ;;  %v870_v21 = vpack.c.bf16 %v864_v19, %v864_v19 }
 0x402   : > { %4434 = vmatpush3.bf16.msra.mxu1 %v2127_v16  ;;  %4437 = vmatprep.mubr.msk.bf16.mxu1 %vm4575_vm0, %v4573_v3  ;;  %v872_v57 = vpack.c.bf16 %v865_v22, %v865_v22  ;;  %v874_v26 = vpack.c.bf16 %v866_v35, %v866_v35 }
 0x403   : > { %2392 = vxpose.xlu1.c.b16.start.end [1/1] (short) (narrow) %v868_v44, 32  ;;  %4435 = vmatprep.subr.bf16.mxu1 %v4573_v3 }
 0x406   : > { %4436 = vmatpush3.bf16.msra.mxu1 %v2143_v52  ;;  %2408 = vxpose.xlu0.c.b16.start.end [1/1] (short) (narrow) %v869_v36, 32 }
 0x408   : > { %2424 = vxpose.xlu1.c.b16.start.end [1/1] (short) (narrow) %v870_v21, 32 }
 0x409   : > { %4438 = vmatmul.mubr.msk.bf16.vlgmr.msra.gmra.mrb[16].mxu1 %vm2145_vm1, %v936_v55 }
 0x40b   : > { %2440 = vxpose.xlu0.c.b16.start.end [1/1] (short) (narrow) %v871_v23, 32 }
 0x40d   : > { %2456 = vxpose.xlu1.c.b16.start.end [1/1] (short) (narrow) %v872_v57, 32 }
 0x410   : > { %2472 = vxpose.xlu0.c.b16.start.end [1/1] (short) (narrow) %v873_v24, 32 }
 0x412   : > { %2488 = vxpose.xlu1.c.b16.start.end [1/1] (short) (narrow) %v874_v26, 32 }
 0x467   : > { %v2384_v27 = vpop.trf.xlu0 }
 0x468   : > { %v2508_v40 = vshrl.u32 %v2384_v27, 16 }
 0x469   : > { %v2400_v47 = vpop.trf.xlu1 }
 0x46a   : > { %v2509_v45 = vshrl.u32 %v2400_v47, 16  ;;  %v4992_v60 = vpack.i.b16 %v2400_v47, %v2384_v27 }
 0x46b   : > { %v2385_v28 = vpop.trf.xlu0 }
 0x46c   : > { %v2540_v34 = vshrl.u32 %v2385_v28, 16  ;;  %v4994_v61 = vpack.i.b16 %v2509_v45, %v2508_v40 }
 0x46d   : > { %v2401_v29 = vpop.trf.xlu1 }
 0x46e   : > { %v2541_v37 = vshrl.u32 %v2401_v29, 16  ;;  %v4988_v53 = vpack.i.b16 %v2401_v29, %v2385_v28 }
 0x46f   : > { %v2416_v38 = vpop.trf.xlu0 }
 0x470   : > { %v2516_v6 = vshrl.u32 %v2416_v38, 16  ;;  %v2542_v1 = vpack.i.b16 %v2541_v37, %v2540_v34 }
 0x471   : > { %v2432_v31 = vpop.trf.xlu1 }
 0x472   : > { %v2517_v7 = vshrl.u32 %v2432_v31, 16  ;;  %v4996_v62 = vpack.i.b16 %v2432_v31, %v2416_v38 }
 0x473   : > { %v2417_v12 = vpop.trf.xlu0 }
 0x474   : > { %v2518_v49 = vpack.i.b16 %v2517_v7, %v2516_v6  ;;  %v2548_v0 = vshrl.u32 %v2417_v12, 16 }
 0x475   : > { %v2433_v32 = vpop.trf.xlu1 }
 0x476   : > { %v2549_v16 = vshrl.u32 %v2433_v32, 16  ;;  %v2546_v20 = vpack.i.b16 %v2433_v32, %v2417_v12 }
 0x477   : > { %v2448_v11 = vpop.trf.xlu0 }
 0x478   : > { %v2524_v54 = vshrl.u32 %v2448_v11, 16  ;;  %v2550_v55 = vpack.i.b16 %v2549_v16, %v2548_v0 }
 0x479   : > { %v2464_v33 = vpop.trf.xlu1 }
 0x47a   : > { %v2525_v56 = vshrl.u32 %v2464_v33, 16  ;;  %v4998_v4 = vpack.i.b16 %v2464_v33, %v2448_v11 }
 0x47b   : > { %v2449_v50 = vpop.trf.xlu0 }
 0x47c   : > { %v2556_v58 = vshrl.u32 %v2449_v50, 16  ;;  %v5000_v8 = vpack.i.b16 %v2525_v56, %v2524_v54  ;;  %v2568_v19 = vcombine.low %v4992_v60, %v4998_v4 }
 0x47d   : > { %v2465_v59 = vpop.trf.xlu1 }
 0x47e   : > { %v4990_v15 = vpack.i.b16 %v2465_v59, %v2449_v50  ;;  %v2557_v5 = vshrl.u32 %v2465_v59, 16  ;;  %v2636_v52 = vcombine.low %v4994_v61, %v5000_v8  ;;  %v2576_v57 = vrot.slane %v2568_v19, %v4769_v2 }
 0x47f   : > { %v2480_v63 = vpop.trf.xlu0 }
 0x480   : > { %v2558_v13 = vpack.i.b16 %v2557_v5, %v2556_v58  ;;  %v2705_v14 = vcombine.high %v4988_v53, %v4990_v15  ;;  %v2532_v30 = vshrl.u32 %v2480_v63, 16  ;;  %v2644_v27 = vrot.slane %v2636_v52, %v4769_v2 }
 0x481   : > { %v2496_v10 = vpop.trf.xlu1  ;;  %v2704_v38 = vcombine.low %v4988_v53, %v4990_v15 }
 0x482   : > { %v2773_v17 = vcombine.high %v2542_v1, %v2558_v13  ;;  %v2530_v44 = vpack.i.b16 %v2496_v10, %v2480_v63  ;;  %v2533_v18 = vshrl.u32 %v2496_v10, 16  ;;  %v2772_v28 = vcombine.low %v2542_v1, %v2558_v13 }
 0x483   : > { %v2481_v48 = vpop.trf.xlu0  ;;  %v5031_v56 = vrot.slane %v2704_v38, %v4769_v2  ;;  %v2569_v63 = vcombine.high %v4992_v60, %v4998_v4 }
 0x484   : > { %v2534_v36 = vpack.i.b16 %v2533_v18, %v2532_v30  ;;  %v2584_v46 = vcombine.low %v4996_v62, %v2530_v44  ;;  %v2564_v51 = vshrl.u32 %v2481_v48, 16  ;;  %v5024_v45 = vrot.slane %v2772_v28, %v4769_v2 }
 0x485   : > { %v2497_v21 = vpop.trf.xlu1  ;;  %v5027_v50 = vrot.slane %v2773_v17, %v4769_v2  ;;  %v2585_v53 = vcombine.high %v4996_v62, %v2530_v44  ;;  %v2637_v30 = vcombine.high %v4994_v61, %v5000_v8  ;;  %v5055_v17 = vrot.slane %v2705_v14, %v4769_v2 }
 0x486   : > { %v2652_v22 = vcombine.low %v2518_v49, %v2534_v36  ;;  %v2562_v43 = vpack.i.b16 %v2497_v21, %v2481_v48  ;;  %v2565_v23 = vshrl.u32 %v2497_v21, 16  ;;  %v2592_v35 = vrot.slane %v2584_v46, %v4769_v2 }
 0x487   : > { %v2653_v54 = vcombine.high %v2518_v49, %v2534_v36  ;;  %v2599_v0 = vrot.slane %v2585_v53, %v4769_v2  ;;  %v2583_v4 = vrot.slane %v2569_v63, %v4769_v2  ;;  %v2651_v61 = vrot.slane %v2637_v30, %v4769_v2 }
 0x488   : > { %v2566_v24 = vpack.i.b16 %v2565_v23, %v2564_v51  ;;  %v2721_v26 = vcombine.high %v2546_v20, %v2562_v43  ;;  %v2660_v47 = vrot.slane %v2652_v22, %v4769_v2  ;;  %v2600_v29 = vcombine.low %v2576_v57, %v2592_v35 }
 0x489   : > { %v2720_v11 = vcombine.low %v2546_v20, %v2562_v43  ;;  %v2601_v6 = vcombine.high %v2576_v57, %v2592_v35  ;;  %v2667_v16 = vrot.slane %v2653_v54, %v4769_v2  ;;  %v2616_v19 = vcombine.low %v2583_v4, %v2599_v0 }
 0x48a   : > { %v2788_v31 = vcombine.low %v2550_v55, %v2566_v24  ;;  %v2789_v12 = vcombine.high %v2550_v55, %v2566_v24  ;;  %v2668_v32 = vcombine.low %v2644_v27, %v2660_v47  ;;  %v2608_v33 = vrot.slane %v2600_v29, %v4772_v9 }
 0x48b   : > { %v5035_v7 = vrot.slane %v2720_v11, %v4769_v2  ;;  %v2669_v15 = vcombine.high %v2644_v27, %v2660_v47  ;;  %v2615_v49 = vrot.slane %v2601_v6, %v4772_v9  ;;  %v5058_v60 = vrot.slane %v2721_v26, %v4769_v2 }
 0x48c   : > { %v5017_v34 = vrot.slane %v2788_v31, %v4769_v2  ;;  %v5020_v37 = vrot.slane %v2789_v12, %v4769_v2  ;;  %v2676_v40 = vrot.slane %v2668_v32, %v4772_v9  ;;  %2840 = vxpose.xlu0.c.b16.start.end [1/1] (short) (narrow) %v2608_v33, 16  ;;  %v2632_v58 = vcombine.high %v2608_v33, %v4574_v25 }
 0x48d   : > { %v2737_v13 = vcombine.high %v5031_v56, %v5035_v7  ;;  %v2683_v10 = vrot.slane %v2669_v15, %v4772_v9  ;;  %v2752_v8 = vcombine.low %v5055_v17, %v5058_v60  ;;  %v2753_v44 = vcombine.high %v5055_v17, %v5058_v60 }
 0x48e   : > { %2856 = vxpose.xlu1.c.b16.start.end [1/1] (short) (narrow) %v2676_v40, 16  ;;  %v2805_v59 = vcombine.high %v5024_v45, %v5017_v34  ;;  %v2700_v1 = vcombine.high %v2676_v40, %v4574_v25  ;;  %v2820_v5 = vcombine.low %v5027_v50, %v5020_v37  ;;  %v2821_v62 = vcombine.high %v5027_v50, %v5020_v37 }
 0x48f   : > { %v2633_v18 = vcombine.high %v2615_v49, %v4574_v25  ;;  %v2701_v14 = vcombine.high %v2683_v10, %v4574_v25  ;;  %v2684_v48 = vcombine.low %v2651_v61, %v2667_v16  ;;  %v2624_v20 = vrot.slane %v2616_v19, %v4772_v9 }
 0x490   : > { %2872 = vxpose.xlu0.c.b16.start.end [1/1] (short) (narrow) %v2632_v58, 16  ;;  %v2617_v46 = vcombine.high %v2583_v4, %v2599_v0  ;;  %v2685_v21 = vcombine.high %v2651_v61, %v2667_v16  ;;  %v2736_v23 = vcombine.low %v5031_v56, %v5035_v7  ;;  %v2804_v35 = vcombine.low %v5024_v45, %v5017_v34 }
 0x491   : > { %v2692_v52 = vrot.slane %v2684_v48, %v4772_v9  ;;  %v2634_v36 = vcombine.high %v2624_v20, %v4574_v25  ;;  %v2321_v27 = vand.u32 127, %v393_v41  ;;  %v2835_v45 = vrot.slane %v2821_v62, %v4772_v9 }
 0x492   : > { %2888 = vxpose.xlu1.c.b16.start.end [1/1] (short) (narrow) %v2700_v1, 16  ;;  %v2631_v55 = vrot.slane %v2617_v46, %v4772_v9  ;;  %v2699_v22 = vrot.slane %v2685_v21, %v4772_v9  ;;  %v2744_v24 = vrot.slane %v2736_v23, %v4772_v9  ;;  %v2812_v26 = vrot.slane %v2804_v35, %v4772_v9 }
 0x493   : > { %v2702_v51 = vcombine.high %v2692_v52, %v4574_v25  ;;  %vm2322_vm2 = vcmp.le.s32.totalorder %v2321_v27, %v4744_v42  ;;  %v2767_v7 = vrot.slane %v2753_v44, %v4772_v9 }
 0x494   : > { %2904 = vxpose.xlu0.c.b16.start.end [1/1] (short) (narrow) %v2615_v49, 16  ;;  %v2635_v43 = vcombine.high %v2631_v55, %v4574_v25  ;;  %v2703_v57 = vcombine.high %v2699_v22, %v4574_v25  ;;  %v2768_v19 = vcombine.high %v2744_v24, %v4574_v25 }
 0x496   : > { %2920 = vxpose.xlu1.c.b16.start.end [1/1] (short) (narrow) %v2683_v10, 16  ;;  %v2836_v10 = vcombine.high %v2812_v26, %v4574_v25 }
 0x498   : > { %2936 = vxpose.xlu0.c.b16.start.end [1/1] (short) (narrow) %v2633_v18, 16 }
 0x49a   : > { %2952 = vxpose.xlu1.c.b16.start.end [1/1] (short) (narrow) %v2701_v14, 16 }
 0x49c   : > { %2968 = vxpose.xlu0.c.b16.start.end [1/1] (short) (narrow) %v2624_v20, 16 }
 0x49e   : > { %2984 = vxpose.xlu1.c.b16.start.end [1/1] (short) (narrow) %v2692_v52, 16 }
 0x4a0   : > { %3000 = vxpose.xlu0.c.b16.start.end [1/1] (short) (narrow) %v2634_v36, 16 }
 0x4a2   : > { %3016 = vxpose.xlu1.c.b16.start.end [1/1] (short) (narrow) %v2702_v51, 16 }
 0x4a4   : > { %3032 = vxpose.xlu0.c.b16.start.end [1/1] (short) (narrow) %v2631_v55, 16 }
 0x4a6   : > { %3048 = vxpose.xlu1.c.b16.start.end [1/1] (short) (narrow) %v2699_v22, 16 }
 0x4a8   : > { %3064 = vxpose.xlu0.c.b16.start.end [1/1] (short) (narrow) %v2635_v43, 16 }
 0x4aa   : > { %3080 = vxpose.xlu1.c.b16.start.end [1/1] (short) (narrow) %v2703_v57, 16 }
 0x4ac   : > { %3096 = vxpose.xlu0.c.b16.start.end [1/1] (short) (narrow) %v2744_v24, 16 }
 0x4ae   : > { %3112 = vxpose.xlu1.c.b16.start.end [1/1] (short) (narrow) %v2812_v26, 16 }
 0x4c4   : > { %v2183_v47 = vpop.f32.mrb[4].mxu1 }
 0x4c5   : > { %v5086_v28 = vsel %vm2322_vm2, %v2183_v47, -1e+30  ;;  %v4415_v29 = vpop.f32.mrb[5].mxu1 }
 0x4c6   : > { %v2328_v38 = vsel %vm2327_vm3, %v5086_v28, -inf  ;;  %v2186_v31 = vpop.f32.mrb[6].mxu1 }
 0x4c7   : > { %v4416_v12 = vpop.f32.mrb[7].mxu1  ;;  %2329 = vmax.xlane.f32.xlu1 %v2328_v38 }
 0x4cc   : > { %v2226_v32 = vpop.f32.mrb[8].mxu1 }
 0x4cd   : > { %v5092_v11 = vsel %vm2322_vm2, %v2226_v32, -1e+30  ;;  %v4423_v41 = vpop.f32.mrb[9].mxu1 }
 0x4ce   : > { %v2229_v33 = vpop.f32.mrb[10].mxu1  ;;  %v2331_v40 = vsel %vm2327_vm3, %v5092_v11, -inf }
 0x4cf   : > { %v4424_v53 = vpop.f32.mrb[11].mxu1  ;;  %2332 = vmax.xlane.f32.xlu0 %v2331_v40 }
 0x4d4   : > { %v2269_v54 = vpop.f32.mrb[12].mxu1 }
 0x4d5   : > { %v4431_v58 = vpop.f32.mrb[13].mxu1  ;;  %v5104_v20 = vsel %vm2322_vm2, %v2269_v54, -1e+30 }
 0x4d6   : > { %v2272_v6 = vpop.f32.mrb[14].mxu1  ;;  %v2334_v36 = vsel %vm2327_vm3, %v5104_v20, -inf }
 0x4d7   : > { %v4432_v1 = vpop.f32.mrb[15].mxu1 }
 0x4dc   : > { %v2312_v15 = vpop.f32.mrb[16].mxu1 }
 0x4dd   : > { %v5098_v63 = vsel %vm2322_vm2, %v2312_v15, -1e+30  ;;  %v4439_v30 = vpop.f32.mrb[17].mxu1 }
 0x4de   : > { %v2315_v49 = vpop.f32.mrb[18].mxu1  ;;  %v2337_v22 = vsel %vm2327_vm3, %v5098_v63, -inf }
 0x4df   : > { %v4440_v0 = vpop.f32.mrb[19].mxu1 }
 0x4f2   : > { %v2848_v16 = vpop.trf.xlu0 }
 0x4f4   : > { %3144 = vxpose.xlu1.c.b16.start.end [1/1] (short) (narrow) %v2836_v10, 16  ;;  %v2864_v4 = vpop.trf.xlu1 }
 0x4f6   : > { %v2880_v61 = vpop.trf.xlu0 }
 0x4f8   : > { %v2896_v18 = vpop.trf.xlu1 }
 0x4fa   : > { %v2912_v14 = vpop.trf.xlu0 }
 0x4fb   : > { %v3352_v43 = vcombine.low %v2848_v16, %v2912_v14 }
 0x4fc   : > { %3128 = vxpose.xlu0.c.b16.start.end [1/1] (short) (narrow) %v2768_v19, 16  ;;  %v2928_v48 = vpop.trf.xlu1 }
 0x4fd   : > { %v3402_v35 = vcombine.low %v2864_v4, %v2928_v48  ;;  %v3359_v26 = vrot.slane %v3352_v43, %v4769_v2  ;;  %v2819_v43 = vrot.slane %v2805_v59, %v4772_v9  ;;  %v2760_v59 = vrot.slane %v2752_v8, %v4772_v9 }
 0x4fe   : > { %v2944_v52 = vpop.trf.xlu0 }
 0x4ff   : > { %v3360_v23 = vcombine.low %v2880_v61, %v2944_v52  ;;  %v3409_v38 = vrot.slane %v3402_v35, %v4769_v2  ;;  %v2751_v35 = vrot.slane %v2737_v13, %v4772_v9  ;;  %v2770_v56 = vcombine.high %v2760_v59, %v4574_v25 }
 0x500   : > { %v2960_v46 = vpop.trf.xlu1 }
 0x501   : > { %2335 = vmax.xlane.f32.xlu1 %v2334_v36  ;;  %v3410_v42 = vcombine.low %v2896_v18, %v2960_v46  ;;  %v3367_v27 = vrot.slane %v3360_v23, %v4769_v2  ;;  %v2837_v23 = vcombine.high %v2819_v43, %v4574_v25  ;;  %v2769_v34 = vcombine.high %v2751_v35, %v4574_v25 }
 0x502   : > { %v2976_v51 = vpop.trf.xlu0 }
 0x503   : > { %v3417_v31 = vrot.slane %v3410_v42, %v4769_v2  ;;  %v3384_v41 = vcombine.low %v3359_v26, %v3367_v27 }
 0x504   : > { %v2992_v21 = vpop.trf.xlu1 }
 0x505   : > { %v3434_v54 = vcombine.low %v3409_v38, %v3417_v31  ;;  %v3391_v30 = vrot.slane %v3384_v41, %v4772_v9 }
 0x506   : > { %v3008_v55 = vpop.trf.xlu0 }
 0x507   : > { %v3441_v0 = vrot.slane %v3434_v54, %v4772_v9 }
 0x508   : > { %v3024_v57 = vpop.trf.xlu1 }
 0x509   : > { %2338 = vmax.xlane.f32.xlu0 %v2337_v22 }
 0x50a   : > { %v3040_v24 = vpop.trf.xlu0 }
 0x50b   : > { %v3368_v29 = vcombine.low %v2976_v51, %v3040_v24 }
 0x50c   : > { %v3056_v47 = vpop.trf.xlu1 }
 0x50d   : > { %v3418_v12 = vcombine.low %v2992_v21, %v3056_v47  ;;  %v3375_v40 = vrot.slane %v3368_v29, %v4769_v2 }
 0x50e   : > { %v3072_v32 = vpop.trf.xlu0 }
 0x50f   : > { %v3376_v53 = vcombine.low %v3008_v55, %v3072_v32  ;;  %v3425_v58 = vrot.slane %v3418_v12, %v4769_v2 }
 0x510   : > { %v3088_v33 = vpop.trf.xlu1 }
 0x511   : > { %v3426_v6 = vcombine.low %v3024_v57, %v3088_v33  ;;  %v3383_v1 = vrot.slane %v3376_v53, %v4769_v2  ;;  %v2828_v57 = vrot.slane %v2820_v5, %v4772_v9 }
 0x512   : > { %v3104_v50 = vpop.trf.xlu0 }
 0x513   : > { %v3433_v15 = vrot.slane %v3426_v6, %v4769_v2  ;;  %v3392_v49 = vcombine.low %v3375_v40, %v3383_v1  ;;  %v2838_v42 = vcombine.high %v2828_v57, %v4574_v25 }
 0x514   : > { %v3120_v5 = vpop.trf.xlu1 }
 0x515   : > { %v3442_v10 = vcombine.low %v3425_v58, %v3433_v15  ;;  %v3399_v16 = vrot.slane %v3392_v49, %v4772_v9 }
 0x517   : > { %v3449_v4 = vrot.slane %v3442_v10, %v4772_v9  ;;  %v3400_v61 = vcombine.low %v3391_v30, %v3399_v16  ;;  %v5122_v18 = vcombine.high %v3391_v30, %v3399_v16 }
 0x519   : > { %v3450_v19 = vcombine.low %v3441_v0, %v3449_v4  ;;  %v5124_v14 = vcombine.high %v3441_v0, %v3449_v4  ;;  %v3555_v48 = vshrl.u32 %v3400_v61, 16  ;;  %v3561_v52 = vshrl.u32 %v5122_v18, 16 }
 0x51b   : > { %v3554_v36 = vpack.i.b16 %v3450_v19, %v3400_v61  ;;  %v3556_v46 = vshrl.u32 %v3450_v19, 16  ;;  %v3560_v51 = vpack.i.b16 %v5124_v14, %v5122_v18  ;;  %v3562_v21 = vshrl.u32 %v5124_v14, 16 }
 0x51c   : > { %v2771_v19 = vcombine.high %v2767_v7, %v4574_v25 }
 0x51d   : > { %4443 = vmatprep.mubr.msk.bf16.mxu0 %vm2327_vm3, %v3554_v36  ;;  %v3557_v55 = vpack.i.b16 %v3556_v46, %v3555_v48  ;;  %v5131_v22 = vpack.i.b16 %v3562_v21, %v3561_v52  ;;  %v2839_v48 = vcombine.high %v2835_v45, %v4574_v25 }
 0x51f   : > { %4449 = vmatprep.mubr.msk.bf16.mxu1 %vm2327_vm3, %v3557_v55 }
 0x52e   : > { %3176 = vxpose.xlu1.c.b16.start.end [1/1] (short) (narrow) %v2819_v43, 16 }
 0x532   : > { %3208 = vxpose.xlu1.c.b16.start.end [1/1] (short) (narrow) %v2837_v23, 16 }
 0x536   : > { %3240 = vxpose.xlu1.c.b16.start.end [1/1] (short) (narrow) %v2828_v57, 16  ;;  %3160 = vxpose.xlu0.c.b16.start.end [1/1] (short) (narrow) %v2751_v35, 16 }
 0x53a   : > { %3272 = vxpose.xlu1.c.b16.start.end [1/1] (short) (narrow) %v2838_v42, 16  ;;  %3192 = vxpose.xlu0.c.b16.start.end [1/1] (short) (narrow) %v2769_v34, 16 }
 0x53e   : > { %3304 = vxpose.xlu1.c.b16.start.end [1/1] (short) (narrow) %v2835_v45, 16  ;;  %3224 = vxpose.xlu0.c.b16.start.end [1/1] (short) (narrow) %v2760_v59, 16 }
 0x542   : > { %3256 = vxpose.xlu0.c.b16.start.end [1/1] (short) (narrow) %v2770_v56, 16 }
 0x546   : > { %3288 = vxpose.xlu0.c.b16.start.end [1/1] (short) (narrow) %v2767_v7, 16 }
 0x554   : > { %v2330_v13 = vpop.xlane.xlu1 %2329 }
 0x555   : > { %v2340_v37 = vsub.f32 %v5086_v28, %v2330_v13 }
 0x557   : > { %v2344_v62 = vmul.f32 1.442695, %v2340_v37 }
 0x559   : > { %4547 = vpow2.f32 %v2344_v62 }
 0x55a   : > { %v3152_v60 = vpop.trf.xlu1 }
 0x55c   : > { %v2333_v24 = vpop.xlane.xlu0 %2332 }
 0x55d   : > { %v2341_v8 = vsub.f32 %v5092_v11, %v2333_v24 }
 0x55f   : > { %v2346_v26 = vmul.f32 1.442695, %v2341_v8 }
 0x561   : > { %4549 = vpow2.f32 %v2346_v26 }
 0x562   : > { %v3136_v38 = vpop.trf.xlu0 }
 0x563   : > { %v4548_v27 = vpop.eup %4547 }
 0x564   : > { %v2352_v47 = vsel %vm2327_vm3, %v4548_v27, 0.0 }
 0x565   : > { %2353 = vadd.xlane.f32.xlu0 %v2352_v47 }
 0x56b   : > { %v4550_v29 = vpop.eup %4549 }
 0x56c   : > { %v2355_v17 = vsel %vm2327_vm3, %v4550_v29, 0.0 }
 0x56d   : > { %2356 = vadd.xlane.f32.xlu1 %v2355_v17 }
 0x58e   : > { %v2336_v44 = vpop.xlane.xlu1 %2335 }
 0x58f   : > { %v2342_v28 = vsub.f32 %v5104_v20, %v2336_v44 }
 0x591   : > { %v2348_v31 = vmul.f32 1.442695, %v2342_v28 }
 0x593   : > { %4551 = vpow2.f32 %v2348_v31 }
 0x594   : > { %v3184_v12 = vpop.trf.xlu1 }
 0x595   : > { %v3502_v11 = vcombine.low %v3120_v5, %v3184_v12 }
 0x596   : > { %v2339_v32 = vpop.xlane.xlu0 %2338 }
 0x597   : > { %v2343_v41 = vsub.f32 %v5098_v63, %v2339_v32  ;;  %v5169_v54 = vrot.slane %v3502_v11, %v4769_v2 }
 0x598   : > { %v3216_v33 = vpop.trf.xlu1 }
 0x599   : > { %v2350_v40 = vmul.f32 1.442695, %v2343_v41  ;;  %v3510_v53 = vcombine.low %v3152_v60, %v3216_v33 }
 0x59b   : > { %4553 = vpow2.f32 %v2350_v40  ;;  %v5172_v58 = vrot.slane %v3510_v53, %v4769_v2 }
 0x59c   : > { %v3168_v6 = vpop.trf.xlu0  ;;  %v3248_v46 = vpop.trf.xlu1 }
 0x59d   : > { %v4552_v20 = vpop.eup %4551  ;;  %v3534_v1 = vcombine.low %v5169_v54, %v5172_v58  ;;  %v3452_v30 = vcombine.low %v3104_v50, %v3168_v6 }
 0x59e   : > { %v2358_v15 = vsel %vm2327_vm3, %v4552_v20, 0.0 }
 0x59f   : > { %2359 = vadd.xlane.f32.xlu0 %v2358_v15  ;;  %v3459_v0 = vrot.slane %v3452_v30, %v4769_v2  ;;  %v3541_v53 = vrot.slane %v3534_v1, %v4772_v9 }
 0x5a0   : > { %v3200_v63 = vpop.trf.xlu0  ;;  %v3280_v55 = vpop.trf.xlu1 }
 0x5a1   : > { %v3460_v49 = vcombine.low %v3136_v38, %v3200_v63 }
 0x5a3   : > { %v3467_v10 = vrot.slane %v3460_v49, %v4769_v2 }
 0x5a4   : > { %v3232_v52 = vpop.trf.xlu0  ;;  %v3312_v23 = vpop.trf.xlu1 }
 0x5a5   : > { %v4554_v16 = vpop.eup %4553  ;;  %v3484_v4 = vcombine.low %v3459_v0, %v3467_v10  ;;  %v3518_v17 = vcombine.low %v3248_v46, %v3312_v23 }
 0x5a6   : > { %v2361_v61 = vsel %vm2327_vm3, %v4554_v16, 0.0 }
 0x5a7   : > { %2362 = vadd.xlane.f32.xlu1 %v2361_v61  ;;  %v3525_v32 = vrot.slane %v3518_v17, %v4769_v2 }
 0x5a8   : > { %v3264_v36 = vpop.trf.xlu0 }
 0x5ac   : > { %v3296_v21 = vpop.trf.xlu0 }
 0x5ad   : > { %v3468_v13 = vcombine.low %v3232_v52, %v3296_v21 }
 0x5af   : > { %v3475_v24 = vrot.slane %v3468_v13, %v4769_v2 }
 0x5cc   : > { %3320 = vxpose.xlu0.c.b16.start.end [1/1] (short) (narrow) %v2771_v19, 16 }
 0x5d4   : > { %3336 = vxpose.xlu1.c.b16.start.end [1/1] (short) (narrow) %v2839_v48, 16 }
 0x5f2   : > { %v2354_v43 = vpop.xlane.xlu0 %2353 }
 0x5f3   : > { %4555 = vrcp.f32 %v2354_v43 }
 0x5fa   : > { %v2357_v57 = vpop.xlane.xlu1 %2356 }
 0x5fb   : > { %4557 = vrcp.f32 %v2357_v57 }
 0x5fd   : > { %v4556_v35 = vpop.eup %4555 }
 0x5fe   : > { %v2368_v42 = vmul.f32 %v4556_v35, %v4548_v27 }
 0x600   : > { %v2372_v34 = vpack.c.bf16 %v2368_v42, %v2368_v42 }
 0x602   : > { %4485 = vmatprep.subr.msk.bf16.mxu0 %vm2327_vm3, %v2372_v34  ;;  %v3583_v59 = vsel %vm2327_vm3, %v2372_v34, 0  ;;  %v4537_v34 = vld [vmem:[%s5288_s5] sm:$0xff]  }
 0x603   : > { %4442 = vmatpush3.bf16.xpose.msra.mxu0 %v3583_v59  ;;  %v4538_v59 = vld [vmem:[%s5288_s5 + $0x8] sm:$0xff]  }
 0x605   : > { %v4558_v25 = vpop.eup %4557 }
 0x606   : > { %v2369_v45 = vmul.f32 %v4558_v25, %v4550_v29  ;;  %v3491_v29 = vrot.slane %v3484_v4, %v4772_v9  ;;  %v4539_v25 = vld [vmem:[%s5288_s5 + $0x10] sm:$0xff]  }
 0x608   : > { %v2373_v56 = vpack.c.bf16 %v2369_v45, %v2369_v45  ;;  %v4540_v45 = vld [vmem:[%s5288_s5 + $0x18] sm:$0xff]  }
 0x60a   : > { %4486 = vmatprep.subr.msk.bf16.mxu1 %vm2327_vm3, %v2373_v56  ;;  %v3641_v7 = vsel %vm2327_vm3, %v2373_v56, 0  ;;  %v4541_v56 = vld [vmem:[%s5288_s5 + $0x20] sm:$0xff]  }
 0x60b   : > { %4448 = vmatpush3.bf16.xpose.msra.mxu1 %v3641_v7  ;;  %v4542_v7 = vld [vmem:[%s5288_s5 + $0x28] sm:$0xff]  }
 0x62c   : > { %v2360_v5 = vpop.xlane.xlu0 %2359 }
 0x62d   : > { %4559 = vrcp.f32 %v2360_v5 }
 0x632   : > { %v3328_v37 = vpop.trf.xlu0 }
 0x633   : > { %v3476_v50 = vcombine.low %v3264_v36, %v3328_v37 }
 0x634   : > { %v2363_v62 = vpop.xlane.xlu1 %2362 }
 0x635   : > { %v3483_v8 = vrot.slane %v3476_v50, %v4769_v2  ;;  %4561 = vrcp.f32 %v2363_v62 }
 0x637   : > { %v4560_v26 = vpop.eup %4559  ;;  %v3492_v27 = vcombine.low %v3475_v24, %v3483_v8 }
 0x638   : > { %v2370_v47 = vmul.f32 %v4560_v26, %v4552_v20 }
 0x639   : > { %v3499_v60 = vrot.slane %v3492_v27, %v4772_v9 }
 0x63a   : > { %v3344_v44 = vpop.trf.xlu1  ;;  %v2374_v28 = vpack.c.bf16 %v2370_v47, %v2370_v47 }
 0x63b   : > { %v3500_v38 = vcombine.low %v3491_v29, %v3499_v60  ;;  %v3501_v31 = vcombine.high %v3491_v29, %v3499_v60  ;;  %v3526_v12 = vcombine.low %v3280_v55, %v3344_v44 }
 0x63c   : > { %4487 = vmatprep.subr.msk.bf16.mxu0 %vm2327_vm3, %v2374_v28 }
 0x63d   : > { %v3533_v11 = vrot.slane %v3526_v12, %v4769_v2  ;;  %v3567_v63 = vshrl.u32 %v3500_v38, 16  ;;  %v3573_v49 = vshrl.u32 %v3501_v31, 16 }
 0x63f   : > { %v4562_v41 = vpop.eup %4561  ;;  %v3542_v33 = vcombine.low %v3525_v32, %v3533_v11 }
 0x640   : > { %v2371_v40 = vmul.f32 %v4562_v41, %v4554_v16  ;;  %v3699_v16 = vsel %vm2327_vm3, %v2374_v28, 0 }
 0x641   : > { %v3549_v6 = vrot.slane %v3542_v33, %v4772_v9 }
 0x642   : > { %v2375_v20 = vpack.c.bf16 %v2371_v40, %v2371_v40 }
 0x643   : > { %v3550_v15 = vcombine.low %v3541_v53, %v3549_v6  ;;  %v3551_v30 = vcombine.high %v3541_v53, %v3549_v6 }
 0x644   : > { %4488 = vmatprep.subr.msk.bf16.mxu1 %vm2327_vm3, %v2375_v20  ;;  %v3757_v58 = vsel %vm2327_vm3, %v2375_v20, 0 }
 0x645   : > { %v3566_v0 = vpack.i.b16 %v3550_v15, %v3500_v38  ;;  %v3568_v10 = vshrl.u32 %v3550_v15, 16  ;;  %v3572_v4 = vpack.i.b16 %v3551_v30, %v3501_v31  ;;  %v3574_v61 = vshrl.u32 %v3551_v30, 16  ;;  %v4543_v31 = vld [vmem:[%s5288_s5 + $0x30] sm:$0xff]  }
 0x647   : > { %4444 = vmatmul.mubr.msk.bf16.vlgmr.msra.gmra.mrb[4].mxu0 %vm2327_vm3, %v3566_v0  ;;  %v3569_v19 = vpack.i.b16 %v3568_v10, %v3567_v63  ;;  %v3575_v54 = vpack.i.b16 %v3574_v61, %v3573_v49  ;;  %v4544_v49 = vld [vmem:[%s5288_s5 + $0x38] sm:$0xff]  }
 0x648   : > { %4454 = vmatpush3.bf16.xpose.msra.mxu0 %v3699_v16  ;;  %4455 = vmatprep.mubr.msk.bf16.mxu0 %vm2327_vm3, %v3560_v51 }
 0x649   : > { %4450 = vmatmul.mubr.msk.bf16.vlgmr.msra.gmra.mrb[20].mxu1 %vm2327_vm3, %v3569_v19  ;;  %4465 = vmatprep.subr.bf16.mxu0 %v4573_v3 }
 0x64a   : > { %4460 = vmatpush3.bf16.xpose.msra.mxu1 %v3757_v58  ;;  %4461 = vmatprep.mubr.msk.bf16.mxu1 %vm2327_vm3, %v5131_v22 }
 0x64f   : > { %4456 = vmatmul.mubr.msk.bf16.vlgmr.msra.gmra.mrb[8].mxu0 %vm2327_vm3, %v3572_v4 }
 0x650   : > { %4481 = vmatprep.mubr.msk.bf16.mxu0 %vm4575_vm0, %v4573_v3  ;;  %4466 = vmatpush3.bf16.msra.mxu0 %v4537_v34 }
 0x651   : > { %4462 = vmatmul.mubr.msk.bf16.vlgmr.msra.gmra.mrb[24].mxu1 %vm2327_vm3, %v3575_v54  ;;  %4467 = vmatprep.subr.bf16.mxu0 %v4573_v3 }
 0x654   : > { %4468 = vmatpush3.bf16.msra.mxu0 %v4538_v59 }
 0x655   : > { %4469 = vmatprep.subr.bf16.mxu0 %v4573_v3 }
 0x658   : > { %4470 = vmatpush3.bf16.msra.mxu0 %v4539_v25 }
 0x659   : > { %4471 = vmatprep.subr.bf16.mxu0 %v4573_v3 }
 0x65c   : > { %4472 = vmatpush3.bf16.msra.mxu0 %v4540_v45 }
 0x65d   : > { %4473 = vmatprep.subr.bf16.mxu0 %v4573_v3 }
 0x660   : > { %4474 = vmatpush3.bf16.msra.mxu0 %v4541_v56 }
 0x661   : > { %4475 = vmatprep.subr.bf16.mxu0 %v4573_v3 }
 0x664   : > { %4476 = vmatpush3.bf16.msra.mxu0 %v4542_v7 }
 0x665   : > { %4477 = vmatprep.subr.bf16.mxu0 %v4573_v3 }
 0x668   : > { %4478 = vmatpush3.bf16.msra.mxu0 %v4543_v31 }
 0x669   : > { %4479 = vmatprep.subr.bf16.mxu0 %v4573_v3 }
 0x66c   : > { %4480 = vmatpush3.bf16.msra.mxu0 %v4544_v49 }
 0x71a   : > { %v4445_v18 = vpop.f32.mrb[4].mxu0 }
 0x71b   : > { %v3619_v14 = vpop.f32.mrb[5].mxu0 }
 0x71c   : > { %v4451_v51 = vpop.f32.mrb[20].mxu1  ;;  %3808 = vxpose.xlu0.b32.start [1/4] (short) (narrow) %v3619_v14, 8  ;;  %v4446_v1 = vpop.f32.mrb[6].mxu0 }
 0x71d   : > { %v3622_v48 = vpop.f32.mrb[7].mxu0  ;;  %v3677_v52 = vpop.f32.mrb[21].mxu1 }
 0x71e   : > { %3840 = vxpose.xlu1.b32.start [1/4] (short) (narrow) %v3677_v52, 8  ;;  %v4452_v36 = vpop.f32.mrb[22].mxu1 }
 0x71f   : > { %v3680_v46 = vpop.f32.mrb[23].mxu1 }
 0x720   : > { %3809 = vxpose.xlu0.b32.cont [2/4] (short) (narrow) %v3622_v48, 8 }
 0x722   : > { %3841 = vxpose.xlu1.b32.cont [2/4] (short) (narrow) %v3680_v46, 8  ;;  %v4457_v22 = vpop.f32.mrb[8].mxu0 }
 0x723   : > { %v3735_v21 = vpop.f32.mrb[9].mxu0 }
 0x724   : > { %v4463_v55 = vpop.f32.mrb[24].mxu1  ;;  %3810 = vxpose.xlu0.b32.cont [3/4] (short) (narrow) %v4445_v18, 8  ;;  %v4458_v43 = vpop.f32.mrb[10].mxu0 }
 0x725   : > { %v3738_v23 = vpop.f32.mrb[11].mxu0  ;;  %v3793_v57 = vpop.f32.mrb[25].mxu1 }
 0x726   : > { %3842 = vxpose.xlu1.b32.cont [3/4] (short) (narrow) %v4451_v51, 8  ;;  %v4464_v35 = vpop.f32.mrb[26].mxu1 }
 0x727   : > { %v3796_v42 = vpop.f32.mrb[27].mxu1 }
 0x728   : > { %3811 = vxpose.xlu0.b32.end [4/4] (short) (narrow) %v4446_v1, 8 }
 0x72a   : > { %3843 = vxpose.xlu1.b32.end [4/4] (short) (narrow) %v4452_v36, 8 }
 0x72c   : > { %3872 = vxpose.xlu0.b32.start [1/4] (short) (narrow) %v3735_v21, 8 }
 0x72e   : > { %3904 = vxpose.xlu1.b32.start [1/4] (short) (narrow) %v3793_v57, 8 }
 0x730   : > { %3873 = vxpose.xlu0.b32.cont [2/4] (short) (narrow) %v3738_v23, 8 }
 0x732   : > { %3905 = vxpose.xlu1.b32.cont [2/4] (short) (narrow) %v3796_v42, 8 }
 0x734   : > { %3874 = vxpose.xlu0.b32.cont [3/4] (short) (narrow) %v4457_v22, 8  ;;  %v4334_v22 = vld [vmem:[%s5289_s6] ss:$0 sm:$0xff] }
 0x736   : > { %3906 = vxpose.xlu1.b32.cont [3/4] (short) (narrow) %v4463_v55, 8 }
 0x738   : > { %3875 = vxpose.xlu0.b32.end [4/4] (short) (narrow) %v4458_v43, 8 }
 0x73a   : > { %3907 = vxpose.xlu1.b32.end [4/4] (short) (narrow) %v4464_v35, 8 }
 0x79c   : > { %v3824_v5 = vpop.trf.xlu0 }
 0x79e   : > { %v3856_v13 = vpop.trf.xlu1 }
 0x7ac   : > { %v3888_v37 = vpop.trf.xlu0 }
 0x7ad   : > { %v3936_v50 = vcombine.low %v3824_v5, %v3888_v37  ;;  %v3937_v62 = vcombine.high %v3824_v5, %v3888_v37 }
 0x7ae   : > { %v3920_v24 = vpop.trf.xlu1 }
 0x7af   : > { %v3952_v8 = vcombine.low %v3856_v13, %v3920_v24  ;;  %v3953_v26 = vcombine.high %v3856_v13, %v3920_v24  ;;  %v3944_v27 = vrot.slane %v3936_v50, %v4769_v2  ;;  %v3951_v47 = vrot.slane %v3937_v62, %v4769_v2  ;;  %v4343_v13 = vld [vmem:[%s5290_s7] ss:$0 sm:$0xff] }
 0x7b1   : > { %v3960_v29 = vrot.slane %v3952_v8, %v4769_v2  ;;  %v3967_v17 = vrot.slane %v3953_v26, %v4769_v2 }
 0x7b3   : > { %v3968_v60 = vcombine.low %v3944_v27, %v3960_v29  ;;  %v3969_v44 = vcombine.high %v3944_v27, %v3960_v29  ;;  %v3984_v28 = vcombine.low %v3951_v47, %v3967_v17  ;;  %v3985_v38 = vcombine.high %v3951_v47, %v3967_v17 }
 0x7b5   : > { %v3976_v12 = vrot.slane %v3968_v60, %v4772_v9  ;;  %v3983_v32 = vrot.slane %v3969_v44, %v4772_v9  ;;  %v3992_v11 = vrot.slane %v3984_v28, %v4772_v9  ;;  %v3999_v41 = vrot.slane %v3985_v38, %v4772_v9 }
 0x7b7   : > { %v4004_v33 = vcombine.low %v3976_v12, %v3983_v32  ;;  %v4332_v40 = vcombine.high %v3976_v12, %v3983_v32  ;;  %v4020_v53 = vcombine.low %v3992_v11, %v3999_v41  ;;  %v4333_v6 = vcombine.high %v3992_v11, %v3999_v41 }
 0x7b9   : > { %v4011_v20 = vrot.slane %v4004_v33, %v4769_v2  ;;  %v4019_v15 = vrot.slane %v4332_v40, %v4769_v2  ;;  %v4027_v30 = vrot.slane %v4020_v53, %v4769_v2  ;;  %v4035_v63 = vrot.slane %v4333_v6, %v4769_v2 }
 0x7bb   : > { %v4037_v0 = vcombine.high %v4011_v20, %v4019_v15  ;;  %v4053_v10 = vcombine.high %v4027_v30, %v4035_v63  ;;  %v4036_v4 = vcombine.low %v4011_v20, %v4019_v15  ;;  %v4052_v61 = vcombine.low %v4027_v30, %v4035_v63 }
 0x7bd   : > { %v4051_v16 = vrot.slane %v4037_v0, %v4772_v9  ;;  %v4067_v3 = vrot.slane %v4053_v10, %v4772_v9  ;;  %v4044_v19 = vrot.slane %v4036_v4, %v4772_v9  ;;  %v4060_v54 = vrot.slane %v4052_v61, %v4772_v9 }
 0x7bf   : > { %v4070_v58 = vcombine.low %v4051_v16, %v4067_v3  ;;  %v4069_v18 = vcombine.high %v4044_v19, %v4060_v54  ;;  %v4068_v2 = vcombine.low %v4044_v19, %v4060_v54  ;;  %v4071_v14 = vcombine.high %v4051_v16, %v4067_v3 }
 0x7c1   : > { %4077 = vrot.lane.b32.xlu1 %v4070_v58, %s4578_s17  ;;  %4073 = vrot.lane.b32.xlu0 %v4069_v18, %s4576_s15 }
 0x7c5   : > { %4081 = vrot.lane.b32.xlu1 %v4071_v14, %s4577_s16 }
 0x833   : > { %v4078_v51 = vpop.permute.xlu1 %4077  ;;  %v4074_v1 = vpop.permute.xlu0 %4073 }
 0x834   : > { %v4084_v48 = vsel %vm2145_vm1, %v4068_v2, %v4074_v1 }
 0x835   : > { %v4086_v36 = vsel %vm4085_vm4, %v4084_v48, %v4078_v51 }
 0x837   : > { %v4082_v52 = vpop.permute.xlu1 %4081 }
 0x838   : > { %v4088_v46 = vsel %vm4087_vm5, %v4086_v36, %v4082_v52 }
 0x839   : > { %v4089_v9 = vpack.c.bf16 %v4088_v46, %v4088_v46 }
 0x83b   : > { %4482 = vmatmul.mubr.bf16.vlgmr.msra.gmra.mrb[12].mxu0 %v4089_v9 }
 0x90e   : > { %v4195_v21 = vpop.f32.mrb[12].mxu0 }
 0x90f   : > { %v4196_v55 = vadd.f32 %v4334_v22, %v4195_v21  ;;  %v4483_v43 = vpop.f32.mrb[13].mxu0 }
 0x910   : > { %v4198_v23 = vpop.f32.mrb[14].mxu0 }
 0x911   : > { %v4201_v57 = vadd.f32 %v4196_v55, %v4737_v39  ;;  %v4484_v35 = vpop.f32.mrb[15].mxu0  ;;  %v4344_v39 = vld [vmem:[%s5291_s8] ss:$0 sm:$0xff] }
 0x913   : > { %4204 = vadd.xlane.f32.xlu0 %v4201_v57 }
 0x9a0   : > { %v4205_v42 = vpop.xlane.xlu0 %4204 }
 0x9a1   : > { %v4206_v34 = vmul.f32 0.0078125, %v4205_v42 }
 0x9a3   : > { %v4207_v59 = vsub.f32 %v4201_v57, %v4206_v34 }
 0x9a5   : > { %v4208_v25 = vmul.f32 %v4207_v59, %v4207_v59 }
 0x9a7   : > { %4209 = vadd.xlane.f32.xlu1 %v4208_v25 }
 0xa34   : > { %v4210_v45 = vpop.xlane.xlu1 %4209 }
 0xa35   : > { %v4211_v56 = vmul.f32 0.0078125, %v4210_v45 }
 0xa37   : > { %v4212_v7 = vadd.f32 1e-05, %v4211_v56 }
 0xa39   : > { %4563 = vrsqrt.f32 %v4212_v7 }
 0xa43   : > { %v4564_v5 = vpop.eup %4563 }
 0xa44   : > { %v4214_v37 = vmul.f32 %v4564_v5, %v4207_v59 }
 0xa46   : > { %v4221_v50 = vmul.f32 %v4343_v13, %v4214_v37 }
 0xa48   : > { %v4228_v62 = vadd.f32 %v4344_v39, %v4221_v50 }
 0xa4a   : > { %4229 = vst [vmem:[%s327_s24] sm:$0xff] %v4228_v62 }
 0xa4b PF: > { %s19_s30 = sadd.s32 1, %s4571_s30  }
 0xa4c   : > { %p16_p4 = scmp.ge.s32.totalorder %s19_s30, 4  }
 0xa4e   :  { %18 = sbr.rel (!%p16_p4) target bundleno = 1 (0x1), region = 86 }

// kernel: led_forward.13
= control target key start
LH: loop header
LB: loop body
LE: loop exit
PB: predicated region body
PF: predicated region fallthrough
CT: control target
= control target key end

     0   :  { %s4528_s24 = smov 0   ;;  %s5154_s0 = inlined_call_operand.vmem [shape: f32[16,128], index: 0, kind: input, shape index: {}]   ;;  %s5155_s1 = inlined_call_operand.vmem [shape: bf16[128,384], index: 1, kind: input, shape index: {}]   ;;  %s5156_s2 = inlined_call_operand.vmem [shape: f32[1,384], index: 2, kind: input, shape index: {}]   ;;  %s5157_s3 = inlined_call_operand.vmem [shape: bf16[128,128], index: 3, kind: input, shape index: {}]   ;;  %s5158_s4 = inlined_call_operand.vmem [shape: f32[1,128], index: 4, kind: input, shape index: {}]   ;;  %s5159_s5 = inlined_call_operand.vmem [shape: f32[1,128], index: 5, kind: input, shape index: {}]   ;;  %s5160_s6 = inlined_call_operand.vmem [shape: f32[1,128], index: 6, kind: input, shape index: {}]   ;;  %s5161_s7 = inlined_call_operand.vmem [shape: f32[16,128], index: 7, kind: output, shape index: {}]  }
   0x1 LB: > { %s4193_s25 = sadd.s32 4294967295, %s4478_s24   ;;  %p4197_p0 = scmp.ge.s32.totalorder %s4478_s24, 1  ;;  %s4478_s24 = sphi %s4528_s24, %s17_s24  }
   0x2   : > { %p236_p1 = scmp.lt.s32.totalorder %s4478_s24, 3 }
   0x4   : > { %p237_p2 = pnand %p4197_p0, %p236_p1 }
   0x5   : > { %v4413_v0 = vld [vmem:[%s5155_s1 + $0x4] ss:$12 sps:$4 sm:$0xff] (!%p237_p2)   ;;  %v4415_v1 = vld [vmem:[%s5155_s1] ss:$12 sps:$4 sm:$0xff] (!%p237_p2)   ;;  %v4480_v2 = vmov (!%p237_p2), 0   ;;  %p266_p3 = scmp.lt.s32.totalorder (!%p237_p2), %s4193_s25, 1  ;;  %v311_v27 = vlaneseq (!%p237_p2) }
   0x6   : > { %240 = sbr.rel (%p237_p2) target bundleno = 2326 (0x916), region = 48  ;;  %486 = vmatprep.mubr.bf16.mxu0 (!%p237_p2), %v4480_v2  ;;  %454 = vmatprep.subr.bf16.mxu0 (!%p237_p2), %v4413_v0  ;;  %v4416_v3 = vld [vmem:[%s5155_s1 + $0x1c] ss:$12 sps:$4 sm:$0xff] (!%p237_p2)   ;;  %v4418_v4 = vld [vmem:[%s5155_s1 + $0x18] ss:$12 sps:$4 sm:$0xff] (!%p237_p2)   ;;  %v4481_v20 = vmov (!%p237_p2), 0.0  }
   0x7   : > { %455 = vmatpush1.bf16.msra.mxu0 (!%p237_p2), %v4415_v1  ;;  %v4419_v5 = vld [vmem:[%s5155_s1 + $0x34] ss:$12 sps:$4 sm:$0xff] (!%p237_p2)   ;;  %v4421_v6 = vld [vmem:[%s5155_s1 + $0x30] ss:$12 sps:$4 sm:$0xff] (!%p237_p2)   ;;  %v4422_v7 = vld [vmem:[%s5155_s1 + $0x4c] ss:$12 sps:$4 sm:$0xff] (!%p237_p2)   ;;  %4297 = vmatprep.subr.bf16.mxu1 (!%p237_p2), %v4481_v20 }
   0x8   : > { %456 = vmatprep.subr.bf16.mxu0 (!%p237_p2), %v4416_v3  ;;  %v4424_v8 = vld [vmem:[%s5155_s1 + $0x48] ss:$12 sps:$4 sm:$0xff] (!%p237_p2)   ;;  %v4425_v9 = vld [vmem:[%s5155_s1 + $0x64] ss:$12 sps:$4 sm:$0xff] (!%p237_p2)   ;;  %v4427_v10 = vld [vmem:[%s5155_s1 + $0x60] ss:$12 sps:$4 sm:$0xff] (!%p237_p2)  }
   0x9   : > { %v4428_v11 = vld [vmem:[%s5155_s1 + $0x7c] ss:$12 sps:$4 sm:$0xff] (!%p237_p2)   ;;  %v4430_v12 = vld [vmem:[%s5155_s1 + $0x78] ss:$12 sps:$4 sm:$0xff] (!%p237_p2)   ;;  %v4431_v13 = vld [vmem:[%s5155_s1 + $0x94] ss:$12 sps:$4 sm:$0xff] (!%p237_p2)  }
   0xa   : > { %v4433_v14 = vld [vmem:[%s5155_s1 + $0x90] ss:$12 sps:$4 sm:$0xff] (!%p237_p2)   ;;  %v4434_v15 = vld [vmem:[%s5155_s1 + $0xac] ss:$12 sps:$4 sm:$0xff] (!%p237_p2)   ;;  %v4436_v16 = vld [vmem:[%s5155_s1 + $0xa8] ss:$12 sps:$4 sm:$0xff] (!%p237_p2)  }
   0xb   : > { %457 = vmatpush1.bf16.msra.mxu0 (!%p237_p2), %v4418_v4  ;;  %v4437_v19 = vld [vmem:[%s5155_s1 + $0x8] ss:$12 sps:$4 sm:$0xff] (!%p237_p2)   ;;  %v4438_v21 = vld [vmem:[%s5155_s1 + $0x20] ss:$12 sps:$4 sm:$0xff] (!%p237_p2)   ;;  %v4439_v22 = vld [vmem:[%s5155_s1 + $0x38] ss:$12 sps:$4 sm:$0xff] (!%p237_p2)  }
   0xc   : > { %458 = vmatprep.subr.bf16.mxu0 (!%p237_p2), %v4419_v5  ;;  %4298 = vmatpush3.bf16.msra.mxu1 (!%p237_p2), %v4437_v19  ;;  %v4440_v23 = vld [vmem:[%s5155_s1 + $0x50] ss:$12 sps:$4 sm:$0xff] (!%p237_p2)   ;;  %v4441_v24 = vld [vmem:[%s5155_s1 + $0x68] ss:$12 sps:$4 sm:$0xff] (!%p237_p2)   ;;  %v4442_v25 = vld [vmem:[%s5155_s1 + $0x80] ss:$12 sps:$4 sm:$0xff] (!%p237_p2)  }
   0xd   : > { %s5163_s25 = smov (!%p266_p3, %s4193_s25), 1  ;;  %4299 = vmatprep.subr.bf16.mxu1 %v4481_v20  ;;  %v4443_v26 = vld [vmem:[%s5155_s1 + $0x98] ss:$12 sps:$4 sm:$0xff]   ;;  %v4625_v28 = vshrl.u32 %v311_v27, 7  ;;  %v4444_v29 = vld [vmem:[%s5155_s1 + $0xb0] ss:$12 sps:$4 sm:$0xff]  }
   0xe   : > { %s4198_s19 = sshll.u32 %s5163_s25, 3  ;;  %v4634_v31 = vld [vmem:[%s5156_s2] sm:$0x7]  ;;  %vm4482_vm0 = vmmov 0   ;;  %s4483_s17 = smov 32   ;;  %vm2063_vm1 = vcmask 261120  }
   0xf   : > { %459 = vmatpush1.bf16.msra.mxu0 %v4421_v6  ;;  %s4590_s15 = scalar_lea.vmem %s5154_s0, %s4198_s19  ;;  %v317_v30 = vsub.s32 1, %v4625_v28  ;;  %4313 = vmatprep.mubr.msk.bf16.mxu1 %vm4482_vm0, %v4481_v20  ;;  %v313_v32 = vsub.s32 0, %v4625_v28  ;;  %s4484_s18 = smov 96   ;;  %v4486_v41 = vmov 1983009808   ;;  %vm2236_vm2 = vcmask 64512  }
  0x10   : > { %460 = vmatprep.subr.bf16.mxu0 %v4422_v7  ;;  %v275_v17 = vld [vmem:[%s4590_s15] sm:$0xff]  ;;  %4300 = vmatpush3.bf16.msra.mxu1 %v4438_v21  ;;  %s4485_s20 = smov 64   ;;  %v548_v42 = vunpack.c.l.s4 %v4486_v41  ;;  %v4487_v44 = vmov 1934713408   ;;  %vm3994_vm3 = vcmask 523264   ;;  %vm3996_vm4 = vcmask 785408   ;;  %s273_s27 = scalar_lea.vmem %s5161_s7, %s4198_s19 }
  0x11   : > { %v276_v18 = vpack.c.bf16 %v275_v17, %v275_v17  ;;  %4301 = vmatprep.subr.bf16.mxu1 %v4481_v20  ;;  %v318_v33 = vrot.slane %v4634_v31, %v317_v30  ;;  %v314_v36 = vrot.slane %v4634_v31, %v313_v32  ;;  %v580_v45 = vunpack.c.l.s4 %v4487_v44 }
  0x12   : > { %v549_v43 = vunpack.c.0.s8 %v548_v42 }
  0x13   : > { %461 = vmatpush1.bf16.msra.mxu0 %v4424_v8  ;;  %v581_v49 = vunpack.c.0.s8 %v580_v45 }
  0x14   : > { %462 = vmatprep.subr.bf16.mxu0 %v4425_v9  ;;  %4302 = vmatpush3.bf16.msra.mxu1 %v4439_v22  ;;  %v4656_v48 = vsub.s32 %v549_v43, %v4625_v28 }
  0x15   : > { %4303 = vmatprep.subr.bf16.mxu1 %v4481_v20  ;;  %v4659_v55 = vsub.s32 %v581_v49, %v4625_v28 }
  0x17   : > { %463 = vmatpush1.bf16.msra.mxu0 %v4427_v10 }
  0x18   : > { %464 = vmatprep.subr.bf16.mxu0 %v4428_v11  ;;  %4304 = vmatpush3.bf16.msra.mxu1 %v4440_v23 }
  0x19   : > { %4305 = vmatprep.subr.bf16.mxu1 %v4481_v20 }
  0x1b   : > { %465 = vmatpush1.bf16.msra.mxu0 %v4430_v12 }
  0x1c   : > { %466 = vmatprep.subr.bf16.mxu0 %v4431_v13  ;;  %4306 = vmatpush3.bf16.msra.mxu1 %v4441_v24 }
  0x1d   : > { %4307 = vmatprep.subr.bf16.mxu1 %v4481_v20 }
  0x1f   : > { %467 = vmatpush1.bf16.msra.mxu0 %v4433_v14 }
  0x20   : > { %468 = vmatprep.subr.bf16.mxu0 %v4434_v15  ;;  %4308 = vmatpush3.bf16.msra.mxu1 %v4442_v25 }
  0x21   : > { %4309 = vmatprep.subr.bf16.mxu1 %v4481_v20 }
  0x23   : > { %469 = vmatpush1.bf16.msra.mxu0 %v4436_v16 }
  0x24   : > { %4310 = vmatpush3.bf16.msra.mxu1 %v4443_v26 }
  0x25   : > { %4311 = vmatprep.subr.bf16.mxu1 %v4481_v20 }
  0x26   : > { %487 = vmatmul.mubr.bf16.vlgmr.msra.gmra.mrb[0].mxu0 %v276_v18 }
  0x28   : > { %4312 = vmatpush3.bf16.msra.mxu1 %v4444_v29 }
  0x29   : > { %4317 = vmatprep.subr.bf16.mxu1 %v4481_v20 }
  0x2b   : > { %4314 = vmatmul.mubr.bf16.vlgmr.msra.gmra.mrb[0].mxu1 %v276_v18 }
  0x2c   : > { %4321 = vmatprep.mubr.msk.bf16.mxu1 %vm4482_vm0, %v4481_v20 }
  0xf9   : > { %v488_v34 = vpop.f32.mrb[0].mxu0 }
  0xfa   : > { %v490_v35 = vpop.f32.mrb[1].mxu0  ;;  %v4646_v40 = vadd.f32 %v488_v34, %v314_v36 }
  0xfb   : > { %v491_v37 = vadd.f32 %v490_v35, %v318_v33  ;;  %v492_v38 = vpop.f32.mrb[2].mxu0 }
  0xfc   : > { %v493_v39 = vpop.f32.mrb[3].mxu0 }
  0xfd   : > { %628 = vrot.lane.b32.xlu1 %v491_v37, %s4483_s17  ;;  %622 = vrot.lane.b32.xlu0 %v491_v37, %s4484_s18 }
  0xfe   : > { %v4673_v17 = vpop.f32.mrb[0].mxu1 }
  0xff   : > { %v4315_v18 = vpop.f32.mrb[1].mxu1 }
 0x100   : > { %v532_v19 = vpop.f32.mrb[2].mxu1 }
 0x101   : > { %625 = vrot.lane.b32.xlu0 %v491_v37, %s4485_s20  ;;  %539 = vrot.lane.b32.xlu1 %v4646_v40, %s4485_s20  ;;  %v4316_v21 = vpop.f32.mrb[3].mxu1 }
 0x105   : > { %542 = vrot.lane.b32.xlu1 %v4646_v40, %s4483_s17  ;;  %536 = vrot.lane.b32.xlu0 %v4646_v40, %s4484_s18 }
 0x16f   : > { %v629_v46 = vpop.permute.xlu1 %628  ;;  %v623_v47 = vpop.permute.xlu0 %622 }
 0x170   : > { %v647_v50 = vcombine.low %v623_v47, %v629_v46  ;;  %v648_v52 = vcombine.high %v623_v47, %v629_v46 }
 0x172   : > { %v655_v56 = vrot.slane %v647_v50, %v4656_v48  ;;  %v662_v59 = vrot.slane %v648_v52, %v4656_v48 }
 0x173   : > { %v626_v51 = vpop.permute.xlu0 %625  ;;  %v4675_v22 = vpop.permute.xlu1 %539 }
 0x174   : > { %v631_v53 = vcombine.low %v491_v37, %v626_v51  ;;  %v632_v54 = vcombine.high %v491_v37, %v626_v51 }
 0x176   : > { %v639_v57 = vrot.slane %v631_v53, %v4656_v48  ;;  %v646_v58 = vrot.slane %v632_v54, %v4656_v48 }
 0x177   : > { %v4677_v23 = vpop.permute.xlu1 %542  ;;  %v4679_v24 = vpop.permute.xlu0 %536 }
 0x178   : > { %v663_v60 = vcombine.low %v639_v57, %v655_v56  ;;  %v664_v61 = vcombine.high %v639_v57, %v655_v56  ;;  %v679_v0 = vcombine.low %v646_v58, %v662_v59  ;;  %v680_v6 = vcombine.high %v646_v58, %v662_v59 }
 0x17a   : > { %v671_v62 = vrot.slane %v663_v60, %v4659_v55  ;;  %v678_v63 = vrot.slane %v664_v61, %v4659_v55  ;;  %v687_v5 = vrot.slane %v679_v0, %v4659_v55  ;;  %v694_v10 = vrot.slane %v680_v6, %v4659_v55 }
 0x17c   : > { %v699_v1 = vpack.c.bf16 %v671_v62, %v671_v62  ;;  %v701_v3 = vpack.c.bf16 %v678_v63, %v678_v63  ;;  %v696_v4 = vcombine.high %v678_v63, %v4481_v20  ;;  %v703_v8 = vpack.c.bf16 %v687_v5, %v687_v5 }
 0x17d   : > { %v697_v9 = vcombine.high %v687_v5, %v4481_v20  ;;  %v705_v12 = vpack.c.bf16 %v694_v10, %v694_v10  ;;  %v698_v13 = vcombine.high %v694_v10, %v4481_v20  ;;  %v695_v14 = vcombine.high %v671_v62, %v4481_v20 }
 0x17e   : > { %855 = vxpose.xlu1.c.b16.start.end [1/1] (short) (narrow) %v699_v1, 32  ;;  %887 = vxpose.xlu0.c.b16.start.end [1/1] (short) (narrow) %v701_v3, 32  ;;  %v702_v7 = vpack.c.bf16 %v696_v4, %v696_v4 }
 0x17f   : > { %v704_v11 = vpack.c.bf16 %v697_v9, %v697_v9  ;;  %v706_v15 = vpack.c.bf16 %v698_v13, %v698_v13  ;;  %v700_v16 = vpack.c.bf16 %v695_v14, %v695_v14 }
 0x183   : > { %903 = vxpose.xlu1.c.b16.start.end [1/1] (short) (narrow) %v702_v7, 32  ;;  %919 = vxpose.xlu0.c.b16.start.end [1/1] (short) (narrow) %v703_v8, 32 }
 0x188   : > { %935 = vxpose.xlu1.c.b16.start.end [1/1] (short) (narrow) %v704_v11, 32  ;;  %951 = vxpose.xlu0.c.b16.start.end [1/1] (short) (narrow) %v705_v12, 32 }
 0x18d   : > { %967 = vxpose.xlu1.c.b16.start.end [1/1] (short) (narrow) %v706_v15, 32  ;;  %871 = vxpose.xlu0.c.b16.start.end [1/1] (short) (narrow) %v700_v16, 32 }
 0x1e4   : > { %v863_v25 = vpop.trf.xlu1  ;;  %v895_v26 = vpop.trf.xlu0 }
 0x1e5   : > { %v987_v47 = vshrl.u32 %v863_v25, 16  ;;  %v995_v58 = vshrl.u32 %v895_v26, 16 }
 0x1e8   : > { %v4681_v27 = vpop.trf.xlu1  ;;  %v4683_v29 = vpop.trf.xlu0 }
 0x1ec   : > { %v911_v30 = vpop.trf.xlu1  ;;  %v927_v32 = vpop.trf.xlu0 }
 0x1ed   : > { %v993_v39 = vpack.i.b16 %v911_v30, %v895_v26  ;;  %v996_v49 = vshrl.u32 %v911_v30, 16  ;;  %v1003_v59 = vshrl.u32 %v927_v32, 16 }
 0x1ef   : > { %v997_v3 = vpack.i.b16 %v996_v49, %v995_v58 }
 0x1f0   : > { %v4685_v33 = vpop.trf.xlu1  ;;  %v4687_v34 = vpop.trf.xlu0 }
 0x1f4   : > { %v943_v35 = vpop.trf.xlu1  ;;  %v959_v36 = vpop.trf.xlu0 }
 0x1f5   : > { %v1001_v50 = vpack.i.b16 %v943_v35, %v927_v32  ;;  %v1004_v51 = vshrl.u32 %v943_v35, 16  ;;  %v1011_v52 = vshrl.u32 %v959_v36, 16 }
 0x1f7   : > { %v1005_v4 = vpack.i.b16 %v1004_v51, %v1003_v59 }
 0x1f8   : > { %v4689_v37 = vpop.trf.xlu1  ;;  %v4691_v38 = vpop.trf.xlu0 }
 0x1f9   : > { %v1033_v49 = vpack.i.b16 %v4689_v37, %v4687_v34  ;;  %v1036_v58 = vshrl.u32 %v4689_v37, 16  ;;  %v1043_v59 = vshrl.u32 %v4691_v38, 16 }
 0x1fc   : > { %v975_v41 = vpop.trf.xlu1  ;;  %v879_v42 = vpop.trf.xlu0 }
 0x1fd   : > { %v1009_v43 = vpack.i.b16 %v975_v41, %v959_v36  ;;  %v1012_v44 = vshrl.u32 %v975_v41, 16  ;;  %v985_v45 = vpack.i.b16 %v879_v42, %v863_v25  ;;  %v988_v46 = vshrl.u32 %v879_v42, 16 }
 0x1ff   : > { %v1063_v53 = vcombine.low %v993_v39, %v1009_v43  ;;  %v1064_v54 = vcombine.high %v993_v39, %v1009_v43  ;;  %v1047_v56 = vcombine.low %v985_v45, %v1001_v50  ;;  %v1048_v57 = vcombine.high %v985_v45, %v1001_v50 }
 0x200   : > { %v1013_v60 = vpack.i.b16 %v1012_v44, %v1011_v52  ;;  %v989_v61 = vpack.i.b16 %v988_v46, %v987_v47  ;;  %v976_v30 = vpop.trf.xlu1  ;;  %v880_v41 = vpop.trf.xlu0  ;;  %v1025_v47 = vpack.i.b16 %v4685_v33, %v4683_v29 }
 0x201   : > { %v1055_v62 = vrot.slane %v1047_v56, %v4656_v48  ;;  %v1071_v63 = vrot.slane %v1063_v53, %v4656_v48  ;;  %v1062_v0 = vrot.slane %v1048_v57, %v4656_v48  ;;  %v1078_v1 = vrot.slane %v1064_v54, %v4656_v48 }
 0x202   : > { %v1115_v8 = vcombine.low %v989_v61, %v1005_v4  ;;  %v1131_v9 = vcombine.low %v997_v3, %v1013_v60  ;;  %v1116_v12 = vcombine.high %v989_v61, %v1005_v4  ;;  %v1132_v13 = vcombine.high %v997_v3, %v1013_v60 }
 0x203   : > { %v1080_v5 = vcombine.high %v1055_v62, %v1071_v63  ;;  %v1079_v6 = vcombine.low %v1055_v62, %v1071_v63  ;;  %v1095_v7 = vcombine.low %v1062_v0, %v1078_v1  ;;  %v1096_v18 = vcombine.high %v1062_v0, %v1078_v1 }
 0x204   : > { %v1123_v14 = vrot.slane %v1115_v8, %v4656_v48  ;;  %v1139_v15 = vrot.slane %v1131_v9, %v4656_v48  ;;  %v1130_v25 = vrot.slane %v1116_v12, %v4656_v48  ;;  %v1146_v26 = vrot.slane %v1132_v13, %v4656_v48 }
 0x205   : > { %v1094_v10 = vrot.slane %v1080_v5, %v4659_v55  ;;  %v1087_v11 = vrot.slane %v1079_v6, %v4659_v55  ;;  %v1103_v16 = vrot.slane %v1095_v7, %v4659_v55  ;;  %v1110_v32 = vrot.slane %v1096_v18, %v4659_v55 }
 0x206   : > { %v1148_v21 = vcombine.high %v1123_v14, %v1139_v15  ;;  %v1147_v36 = vcombine.low %v1123_v14, %v1139_v15  ;;  %v1163_v39 = vcombine.low %v1130_v25, %v1146_v26  ;;  %v1041_v42 = vpack.i.b16 %v976_v30, %v4691_v38 }
 0x207   : > { %1383 = vxpose.xlu1.c.b16.start.end [1/1] (short) (narrow) %v1094_v10, 16  ;;  %1319 = vxpose.xlu0.c.b16.start.end [1/1] (short) (narrow) %v1087_v11, 16  ;;  %v1111_v19 = vcombine.high %v1087_v11, %v4480_v2  ;;  %v1017_v43 = vpack.i.b16 %v880_v41, %v4681_v27  ;;  %v1164_v46 = vcombine.high %v1130_v25, %v1146_v26  ;;  %v1044_v50 = vshrl.u32 %v976_v30, 16 }
 0x208   : > { %v1162_v35 = vrot.slane %v1148_v21, %v4659_v55  ;;  %v1155_v44 = vrot.slane %v1147_v36, %v4659_v55  ;;  %v1171_v45 = vrot.slane %v1163_v39, %v4659_v55  ;;  %v1020_v51 = vshrl.u32 %v880_v41, 16 }
 0x209   : > { %v1199_v52 = vcombine.low %v1025_v47, %v1041_v42  ;;  %v1183_v53 = vcombine.low %v1017_v43, %v1033_v49  ;;  %v1112_v54 = vcombine.high %v1094_v10, %v4480_v2  ;;  %v1178_v56 = vrot.slane %v1164_v46, %v4659_v55 }
 0x20a   : > { %v1019_v57 = vshrl.u32 %v4681_v27, 16  ;;  %v1028_v60 = vshrl.u32 %v4685_v33, 16  ;;  %v1027_v61 = vshrl.u32 %v4683_v29, 16  ;;  %v1035_v62 = vshrl.u32 %v4687_v34, 16 }
 0x20b   : > { %1447 = vxpose.xlu1.c.b16.start.end [1/1] (short) (narrow) %v1103_v16, 16  ;;  %1351 = vxpose.xlu0.c.b16.start.end [1/1] (short) (narrow) %v1111_v19, 16  ;;  %v1045_v63 = vpack.i.b16 %v1044_v50, %v1043_v59  ;;  %v1113_v1 = vcombine.high %v1103_v16, %v4480_v2  ;;  %v1179_v3 = vcombine.high %v1155_v44, %v4480_v2 }
 0x20c   : > { %v1021_v0 = vpack.i.b16 %v1020_v51, %v1019_v57  ;;  %v1191_v27 = vrot.slane %v1183_v53, %v4656_v48  ;;  %v1207_v37 = vrot.slane %v1199_v52, %v4656_v48  ;;  %v1037_v4 = vpack.i.b16 %v1036_v58, %v1035_v62 }
 0x20d   : > { %v1029_v38 = vpack.i.b16 %v1028_v60, %v1027_v61  ;;  %v1200_v33 = vcombine.high %v1025_v47, %v1041_v42  ;;  %v1184_v5 = vcombine.high %v1017_v43, %v1033_v49  ;;  %v1114_v29 = vcombine.high %v1110_v32, %v4480_v2 }
 0x20e   : > { %v1251_v6 = vcombine.low %v1021_v0, %v1037_v4  ;;  %v1180_v34 = vcombine.high %v1162_v35, %v4480_v2  ;;  %v1215_v7 = vcombine.low %v1191_v27, %v1207_v37  ;;  %v1181_v9 = vcombine.high %v1171_v45, %v4480_v2 }
 0x20f   : > { %1511 = vxpose.xlu1.c.b16.start.end [1/1] (short) (narrow) %v1110_v32, 16  ;;  %1399 = vxpose.xlu0.c.b16.start.end [1/1] (short) (narrow) %v1162_v35, 16  ;;  %v1267_v8 = vcombine.low %v1029_v38, %v1045_v63  ;;  %v1216_v10 = vcombine.high %v1191_v27, %v1207_v37  ;;  %v1198_v14 = vrot.slane %v1184_v5, %v4656_v48  ;;  %v321_v51 = vsub.s32 2, %v4625_v28 }
 0x210   : > { %v1259_v11 = vrot.slane %v1251_v6, %v4656_v48  ;;  %v1223_v12 = vrot.slane %v1215_v7, %v4659_v55  ;;  %v1214_v15 = vrot.slane %v1200_v33, %v4656_v48  ;;  %v1182_v16 = vcombine.high %v1178_v56, %v4480_v2 }
 0x211   : > { %v1275_v13 = vrot.slane %v1267_v8, %v4656_v48  ;;  %v1230_v18 = vrot.slane %v1216_v10, %v4659_v55  ;;  %v1252_v25 = vcombine.high %v1021_v0, %v1037_v4  ;;  %v1268_v26 = vcombine.high %v1029_v38, %v1045_v63 }
 0x212   : > { %v1231_v21 = vcombine.low %v1198_v14, %v1214_v15  ;;  %v1232_v32 = vcombine.high %v1198_v14, %v1214_v15  ;;  %v1247_v46 = vcombine.high %v1223_v12, %v4480_v2 }
 0x213   : > { %1335 = vxpose.xlu1.c.b16.start.end [1/1] (short) (narrow) %v1155_v44, 16  ;;  %1463 = vxpose.xlu0.c.b16.start.end [1/1] (short) (narrow) %v1171_v45, 16  ;;  %v1283_v19 = vcombine.low %v1259_v11, %v1275_v13  ;;  %v1284_v30 = vcombine.high %v1259_v11, %v1275_v13  ;;  %v1266_v39 = vrot.slane %v1252_v25, %v4656_v48 }
 0x214   : > { %v1239_v36 = vrot.slane %v1231_v21, %v4659_v55  ;;  %v1282_v41 = vrot.slane %v1268_v26, %v4656_v48  ;;  %v1246_v43 = vrot.slane %v1232_v32, %v4659_v55  ;;  %v1248_v50 = vcombine.high %v1230_v18, %v4480_v2 }
 0x215   : > { %v1291_v35 = vrot.slane %v1283_v19, %v4659_v55  ;;  %v1298_v42 = vrot.slane %v1284_v30, %v4659_v55 }
 0x216   : > { %v1299_v44 = vcombine.low %v1266_v39, %v1282_v41  ;;  %v1300_v47 = vcombine.high %v1266_v39, %v1282_v41  ;;  %v1249_v53 = vcombine.high %v1239_v36, %v4480_v2  ;;  %v1250_v57 = vcombine.high %v1246_v43, %v4480_v2 }
 0x217   : > { %1415 = vxpose.xlu1.c.b16.start.end [1/1] (short) (narrow) %v1112_v54, 16  ;;  %1527 = vxpose.xlu0.c.b16.start.end [1/1] (short) (narrow) %v1178_v56, 16  ;;  %v1315_v52 = vcombine.high %v1291_v35, %v4480_v2  ;;  %v322_v54 = vrot.slane %v4634_v31, %v321_v51  ;;  %v1316_v56 = vcombine.high %v1298_v42, %v4480_v2 }
 0x218   : > { %v1307_v45 = vrot.slane %v1299_v44, %v4659_v55  ;;  %v1314_v49 = vrot.slane %v1300_v47, %v4659_v55 }
 0x219   : > { %v4754_v58 = vadd.f32 %v4673_v17, %v322_v54 }
 0x21a   : > { %v1317_v59 = vcombine.high %v1307_v45, %v4480_v2  ;;  %v1318_v28 = vcombine.high %v1314_v49, %v4480_v2 }
 0x21b   : > { %1479 = vxpose.xlu1.c.b16.start.end [1/1] (short) (narrow) %v1113_v1, 16  ;;  %1367 = vxpose.xlu0.c.b16.start.end [1/1] (short) (narrow) %v1179_v3, 16 }
 0x21f   : > { %1543 = vxpose.xlu1.c.b16.start.end [1/1] (short) (narrow) %v1114_v29, 16  ;;  %1431 = vxpose.xlu0.c.b16.start.end [1/1] (short) (narrow) %v1180_v34, 16 }
 0x223   : > { %1495 = vxpose.xlu0.c.b16.start.end [1/1] (short) (narrow) %v1181_v9, 16  ;;  %1575 = vxpose.xlu1.c.b16.start.end [1/1] (short) (narrow) %v1223_v12, 16 }
 0x227   : > { %1559 = vxpose.xlu0.c.b16.start.end [1/1] (short) (narrow) %v1182_v16, 16  ;;  %1639 = vxpose.xlu1.c.b16.start.end [1/1] (short) (narrow) %v1230_v18, 16 }
 0x22b   : > { %1591 = vxpose.xlu0.c.b16.start.end [1/1] (short) (narrow) %v1291_v35, 16  ;;  %1703 = vxpose.xlu1.c.b16.start.end [1/1] (short) (narrow) %v1239_v36, 16 }
 0x22f   : > { %1655 = vxpose.xlu0.c.b16.start.end [1/1] (short) (narrow) %v1298_v42, 16  ;;  %1767 = vxpose.xlu1.c.b16.start.end [1/1] (short) (narrow) %v1246_v43, 16 }
 0x233   : > { %1719 = vxpose.xlu0.c.b16.start.end [1/1] (short) (narrow) %v1307_v45, 16  ;;  %1607 = vxpose.xlu1.c.b16.start.end [1/1] (short) (narrow) %v1247_v46, 16 }
 0x237   : > { %1783 = vxpose.xlu0.c.b16.start.end [1/1] (short) (narrow) %v1314_v49, 16  ;;  %1671 = vxpose.xlu1.c.b16.start.end [1/1] (short) (narrow) %v1248_v50, 16 }
 0x23b   : > { %1623 = vxpose.xlu0.c.b16.start.end [1/1] (short) (narrow) %v1315_v52, 16  ;;  %1735 = vxpose.xlu1.c.b16.start.end [1/1] (short) (narrow) %v1249_v53, 16  ;;  %v561_v52 = vcombine.low %v4679_v24, %v4677_v23  ;;  %v562_v53 = vcombine.high %v4679_v24, %v4677_v23 }
 0x23f   : > { %1687 = vxpose.xlu0.c.b16.start.end [1/1] (short) (narrow) %v1316_v56, 16  ;;  %1799 = vxpose.xlu1.c.b16.start.end [1/1] (short) (narrow) %v1250_v57, 16  ;;  %v545_v56 = vcombine.low %v4646_v40, %v4675_v22  ;;  %v546_v57 = vcombine.high %v4646_v40, %v4675_v22 }
 0x241   : > { %v553_v23 = vrot.slane %v545_v56, %v4656_v48  ;;  %v560_v24 = vrot.slane %v546_v57, %v4656_v48 }
 0x243   : > { %1751 = vxpose.xlu0.c.b16.start.end [1/1] (short) (narrow) %v1317_v59, 16  ;;  %708 = vrot.lane.b32.xlu1 %v4754_v58, %s4484_s18 }
 0x247   : > { %1815 = vxpose.xlu0.c.b16.start.end [1/1] (short) (narrow) %v1318_v28, 16  ;;  %714 = vrot.lane.b32.xlu1 %v4754_v58, %s4483_s17 }
 0x250   : > { %711 = vrot.lane.b32.xlu0 %v4754_v58, %s4485_s20 }
 0x26d   : > { %v1391_v31 = vpop.trf.xlu1  ;;  %v1327_v60 = vpop.trf.xlu0 }
 0x26e   : > { %v1831_v9 = vcombine.low %v1327_v60, %v1391_v31  ;;  %v569_v31 = vrot.slane %v561_v52, %v4656_v48  ;;  %v576_v60 = vrot.slane %v562_v53, %v4656_v48 }
 0x270   : > { %v1838_v19 = vrot.slane %v1831_v9, %v4656_v48 }
 0x271   : > { %v1455_v61 = vpop.trf.xlu1  ;;  %v1359_v17 = vpop.trf.xlu0 }
 0x275   : > { %v1519_v62 = vpop.trf.xlu1  ;;  %v1407_v63 = vpop.trf.xlu0 }
 0x276   : > { %v1847_v6 = vcombine.low %v1455_v61, %v1519_v62  ;;  %v577_v62 = vcombine.low %v553_v23, %v569_v31 }
 0x278   : > { %v1854_v12 = vrot.slane %v1847_v6, %v4656_v48 }
 0x279   : > { %v1343_v0 = vpop.trf.xlu1  ;;  %v1471_v1 = vpop.trf.xlu0 }
 0x27a   : > { %v1881_v10 = vcombine.low %v1343_v0, %v1407_v63  ;;  %v578_v63 = vcombine.high %v553_v23, %v569_v31  ;;  %v593_v0 = vcombine.low %v560_v24, %v576_v60 }
 0x27c   : > { %v1888_v21 = vrot.slane %v1881_v10, %v4656_v48 }
 0x27d   : > { %v1423_v3 = vpop.trf.xlu1  ;;  %v1535_v27 = vpop.trf.xlu0 }
 0x27e   : > { %v1839_v29 = vcombine.low %v1359_v17, %v1423_v3  ;;  %v1897_v14 = vcombine.low %v1471_v1, %v1535_v27  ;;  %v594_v1 = vcombine.high %v560_v24, %v576_v60  ;;  %v585_v3 = vrot.slane %v577_v62, %v4659_v55 }
 0x27f   : > { %v592_v27 = vrot.slane %v578_v63, %v4659_v55 }
 0x280   : > { %v1846_v13 = vrot.slane %v1839_v29, %v4656_v48  ;;  %v1904_v32 = vrot.slane %v1897_v14, %v4656_v48  ;;  %v609_v6 = vcombine.high %v585_v3, %v4481_v20 }
 0x281   : > { %v1487_v37 = vpop.trf.xlu1  ;;  %v1375_v4 = vpop.trf.xlu0  ;;  %v610_v29 = vcombine.high %v592_v27, %v4481_v20 }
 0x282   : > { %v1863_v30 = vcombine.low %v1838_v19, %v1846_v13 }
 0x284   : > { %v4780_v44 = vrot.slane %v1863_v30, %v4659_v55 }
 0x285   : > { %v1551_v38 = vpop.trf.xlu1  ;;  %v1439_v33 = vpop.trf.xlu0 }
 0x286   : > { %v1855_v5 = vcombine.low %v1487_v37, %v1551_v38  ;;  %v1889_v34 = vcombine.low %v1375_v4, %v1439_v33  ;;  %v601_v37 = vrot.slane %v593_v0, %v4659_v55  ;;  %v608_v4 = vrot.slane %v594_v1, %v4659_v55 }
 0x288   : > { %v1862_v11 = vrot.slane %v1855_v5, %v4656_v48  ;;  %v1896_v15 = vrot.slane %v1889_v34, %v4656_v48  ;;  %v611_v34 = vcombine.high %v601_v37, %v4481_v20 }
 0x289   : > { %v4764_v7 = vpop.trf.xlu1  ;;  %v1503_v8 = vpop.trf.xlu0 }
 0x28a   : > { %v1871_v25 = vcombine.low %v1854_v12, %v1862_v11  ;;  %v1913_v35 = vcombine.low %v1888_v21, %v1896_v15 }
 0x28c   : > { %v4777_v42 = vrot.slane %v1871_v25, %v4659_v55  ;;  %v4783_v45 = vrot.slane %v1913_v35, %v4659_v55  ;;  %v4225_v35 = vpack.c.bf16 %v608_v4, %v592_v27 }
 0x28d   : > { %v4770_v16 = vpop.trf.xlu1  ;;  %v1567_v18 = vpop.trf.xlu0 }
 0x28e   : > { %v1905_v26 = vcombine.low %v1503_v8, %v1567_v18  ;;  %v4790_v50 = vcombine.low %v4780_v44, %v4777_v42  ;;  %v612_v8 = vcombine.high %v608_v4, %v4481_v20  ;;  %v1931_v13 = vcombine.low %v4764_v7, %v4770_v16 }
 0x28f   : > { %v4226_v18 = vpack.c.bf16 %v611_v34, %v609_v6  ;;  %v808_v57 = vrot.slane %v4225_v35, %v4656_v48  ;;  %v1880_v34 = vcombine.high %v4780_v44, %v4777_v42 }
 0x290   : > { %v1912_v36 = vrot.slane %v1905_v26, %v4656_v48  ;;  %v4227_v19 = vpack.c.bf16 %v612_v8, %v610_v29 }
 0x291   : > { %v1711_v39 = vpop.trf.xlu1  ;;  %v1599_v41 = vpop.trf.xlu0 }
 0x292   : > { %v1921_v43 = vcombine.low %v1904_v32, %v1912_v36  ;;  %v4224_v32 = vpack.c.bf16 %v601_v37, %v585_v3  ;;  %v2035_v3 = vshrl.u32 %v4790_v50, 16 }
 0x294   : > { %v4786_v46 = vrot.slane %v1921_v43, %v4659_v55  ;;  %v800_v56 = vrot.slane %v4224_v32, %v4656_v48  ;;  %v2043_v32 = vshrl.u32 %v1880_v34, 16 }
 0x295   : > { %v1775_v47 = vpop.trf.xlu1  ;;  %v1663_v49 = vpop.trf.xlu0 }
 0x296   : > { %v4794_v51 = vcombine.low %v4783_v45, %v4786_v46  ;;  %v1947_v9 = vcombine.low %v1711_v39, %v1775_v47  ;;  %v1981_v14 = vcombine.low %v1599_v41, %v1663_v49  ;;  %v1938_v39 = vrot.slane %v1931_v13, %v4656_v48 }
 0x297   : > { %v825_v41 = vrot.slane %v4226_v18, %v4656_v48  ;;  %v833_v47 = vrot.slane %v4227_v19, %v4656_v48 }
 0x298   : > { %v2033_v54 = vpack.i.b16 %v4794_v51, %v4790_v50  ;;  %v1954_v21 = vrot.slane %v1947_v9, %v4656_v48  ;;  %v1988_v43 = vrot.slane %v1981_v14, %v4656_v48  ;;  %v1930_v50 = vcombine.high %v4783_v45, %v4786_v46 }
 0x299   : > { %v1615_v59 = vpop.trf.xlu1  ;;  %v1727_v28 = vpop.trf.xlu0  ;;  %v834_v31 = vcombine.low %v825_v41, %v833_v47 }
 0x29a   : > { %4318 = vmatpush3.bf16.msra.mxu1 %v2033_v54 }
 0x29b   : > { %4319 = vmatprep.subr.bf16.mxu1 %v4481_v20  ;;  %v841_v0 = vrot.slane %v834_v31, %v4659_v55 }
 0x29d   : > { %v1679_v61 = vpop.trf.xlu1  ;;  %v1791_v17 = vpop.trf.xlu0  ;;  %v842_v42 = vcombine.high %v841_v0, %v4480_v2 }
 0x29e   : > { %v1939_v10 = vcombine.low %v1615_v59, %v1679_v61  ;;  %v1997_v26 = vcombine.low %v1727_v28, %v1791_v17  ;;  %v809_v61 = vcombine.low %v800_v56, %v808_v57 }
 0x2a0   : > { %v1946_v25 = vrot.slane %v1939_v10, %v4656_v48  ;;  %v2004_v52 = vrot.slane %v1997_v26, %v4656_v48 }
 0x2a1   : > { %v1743_v40 = vpop.trf.xlu1  ;;  %v1631_v22 = vpop.trf.xlu0 }
 0x2a2   : > { %v1963_v49 = vcombine.low %v1938_v39, %v1946_v25  ;;  %v2044_v25 = vshrl.u32 %v1930_v50, 16 }
 0x2a4   : > { %v1970_v60 = vrot.slane %v1963_v49, %v4659_v55 }
 0x2a5   : > { %v1807_v38 = vpop.trf.xlu1  ;;  %v1695_v33 = vpop.trf.xlu0 }
 0x2a6   : > { %v1955_v5 = vcombine.low %v1743_v40, %v1807_v38  ;;  %v1989_v11 = vcombine.low %v1631_v22, %v1695_v33  ;;  %v2036_v40 = vshrl.u32 %v4794_v51, 16  ;;  %v816_v22 = vrot.slane %v809_v61, %v4659_v55 }
 0x2a7   : > { %v847_v51 = vshrl.u32 %v841_v0, 16 }
 0x2a8   : > { %v1962_v15 = vrot.slane %v1955_v5, %v4656_v48  ;;  %v1996_v30 = vrot.slane %v1989_v11, %v4656_v48  ;;  %v845_v27 = vpack.i.b16 %v841_v0, %v816_v22  ;;  %v2037_v37 = vpack.i.b16 %v2036_v40, %v2035_v3 }
 0x2a9   : > { %v1759_v12 = vpop.trf.xlu0  ;;  %v846_v29 = vshrl.u32 %v816_v22, 16  ;;  %v817_v26 = vcombine.high %v816_v22, %v4480_v2 }
 0x2aa   : > { %v1971_v7 = vcombine.low %v1954_v21, %v1962_v15  ;;  %v2013_v53 = vcombine.low %v1988_v43, %v1996_v30  ;;  %v2041_v15 = vpack.i.b16 %v1930_v50, %v1880_v34 }
 0x2ab   : > { %v848_v9 = vpack.i.b16 %v847_v51, %v846_v29 }
 0x2ac   : > { %v1978_v59 = vrot.slane %v1971_v7, %v4659_v55  ;;  %v2020_v23 = vrot.slane %v2013_v53, %v4659_v55  ;;  %v853_v53 = vshrl.u32 %v842_v42, 16 }
 0x2ad   : > { %v1823_v36 = vpop.trf.xlu0 }
 0x2ae   : > { %v2005_v16 = vcombine.low %v1759_v12, %v1823_v36  ;;  %v1979_v17 = vcombine.low %v1970_v60, %v1978_v59  ;;  %v1980_v46 = vcombine.high %v1970_v60, %v1978_v59  ;;  %v851_v36 = vpack.i.b16 %v842_v42, %v817_v26 }
 0x2b0   : > { %v2012_v54 = vrot.slane %v2005_v16, %v4656_v48  ;;  %v2051_v33 = vshrl.u32 %v1979_v17, 16  ;;  %v2045_v16 = vpack.i.b16 %v2044_v25, %v2043_v32  ;;  %v2059_v49 = vshrl.u32 %v1980_v46, 16 }
 0x2b2   : > { %v2021_v28 = vcombine.low %v2004_v52, %v2012_v54 }
 0x2b4   : > { %v2028_v24 = vrot.slane %v2021_v28, %v4659_v55  ;;  %v852_v28 = vshrl.u32 %v817_v26, 16 }
 0x2b5   : > { %v709_v63 = vpop.permute.xlu1 %708 }
 0x2b6   : > { %v2029_v62 = vcombine.low %v2020_v23, %v2028_v24  ;;  %v2030_v14 = vcombine.high %v2020_v23, %v2028_v24  ;;  %v854_v60 = vpack.i.b16 %v853_v53, %v852_v28 }
 0x2b8   : > { %v2049_v1 = vpack.i.b16 %v2029_v62, %v1979_v17  ;;  %v2052_v38 = vshrl.u32 %v2029_v62, 16  ;;  %v2057_v21 = vpack.i.b16 %v2030_v14, %v1980_v46  ;;  %v2060_v41 = vshrl.u32 %v2030_v14, 16 }
 0x2b9   : > { %v715_v4 = vpop.permute.xlu1 %714 }
 0x2ba   : > { %4320 = vmatpush3.bf16.msra.mxu1 %v2049_v1  ;;  %v733_v5 = vcombine.low %v709_v63, %v715_v4  ;;  %v2053_v6 = vpack.i.b16 %v2052_v38, %v2051_v33  ;;  %v734_v10 = vcombine.high %v709_v63, %v715_v4  ;;  %v2061_v56 = vpack.i.b16 %v2060_v41, %v2059_v49 }
 0x2bb   : > { %4325 = vmatprep.subr.bf16.mxu1 %v4481_v20 }
 0x2bc   : > { %v741_v11 = vrot.slane %v733_v5, %v4656_v48  ;;  %v748_v44 = vrot.slane %v734_v10, %v4656_v48 }
 0x2bd   : > { %4322 = vmatmul.mubr.msk.bf16.vlgmr.msra.gmra.mrb[4].mxu1 %vm2063_vm1, %v845_v27 }
 0x2be   : > { %4326 = vmatpush3.bf16.msra.mxu1 %v2037_v37  ;;  %4329 = vmatprep.mubr.msk.bf16.mxu1 %vm4482_vm0, %v4481_v20 }
 0x2bf   : > { %4327 = vmatprep.subr.bf16.mxu1 %v4481_v20 }
 0x2c2   : > { %4328 = vmatpush3.bf16.msra.mxu1 %v2053_v6  ;;  %v712_v8 = vpop.permute.xlu0 %711 }
 0x2c3   : > { %v717_v12 = vcombine.low %v4754_v58, %v712_v8  ;;  %v718_v13 = vcombine.high %v4754_v58, %v712_v8  ;;  %4333 = vmatprep.subr.bf16.mxu1 %v4481_v20 }
 0x2c5   : > { %v725_v45 = vrot.slane %v717_v12, %v4656_v48  ;;  %4330 = vmatmul.mubr.msk.bf16.vlgmr.msra.gmra.mrb[8].mxu1 %vm2063_vm1, %v848_v9  ;;  %v732_v18 = vrot.slane %v718_v13, %v4656_v48 }
 0x2c6   : > { %4334 = vmatpush3.bf16.msra.mxu1 %v2041_v15  ;;  %4337 = vmatprep.mubr.msk.bf16.mxu1 %vm4482_vm0, %v4481_v20 }
 0x2c7   : > { %v749_v58 = vcombine.low %v725_v45, %v741_v11  ;;  %4335 = vmatprep.subr.bf16.mxu1 %v4481_v20  ;;  %v750_v19 = vcombine.high %v725_v45, %v741_v11  ;;  %v765_v7 = vcombine.low %v732_v18, %v748_v44  ;;  %v766_v59 = vcombine.high %v732_v18, %v748_v44 }
 0x2c9   : > { %v757_v30 = vrot.slane %v749_v58, %v4659_v55  ;;  %v764_v35 = vrot.slane %v750_v19, %v4659_v55  ;;  %v773_v54 = vrot.slane %v765_v7, %v4659_v55  ;;  %v780_v24 = vrot.slane %v766_v59, %v4659_v55 }
 0x2ca   : > { %4336 = vmatpush3.bf16.msra.mxu1 %v2057_v21 }
 0x2cb   : > { %4341 = vmatprep.subr.bf16.mxu1 %v4481_v20  ;;  %v785_v39 = vpack.c.bf16 %v757_v30, %v757_v30  ;;  %v781_v43 = vcombine.high %v757_v30, %v4481_v20  ;;  %v782_v52 = vcombine.high %v764_v35, %v4481_v20  ;;  %v787_v57 = vpack.c.bf16 %v764_v35, %v764_v35 }
 0x2cc   : > { %v783_v23 = vcombine.high %v773_v54, %v4481_v20  ;;  %v789_v61 = vpack.c.bf16 %v773_v54, %v773_v54  ;;  %v784_v62 = vcombine.high %v780_v24, %v4481_v20  ;;  %v791_v63 = vpack.c.bf16 %v780_v24, %v780_v24 }
 0x2cd   : > { %4338 = vmatmul.mubr.msk.bf16.vlgmr.msra.gmra.mrb[12].mxu1 %vm2063_vm1, %v851_v36  ;;  %2285 = vxpose.xlu0.c.b16.start.end [1/1] (short) (narrow) %v785_v39, 32  ;;  %v786_v47 = vpack.c.bf16 %v781_v43, %v781_v43  ;;  %v788_v31 = vpack.c.bf16 %v782_v52, %v782_v52 }
 0x2ce   : > { %4342 = vmatpush3.bf16.msra.mxu1 %v2045_v16  ;;  %4345 = vmatprep.mubr.msk.bf16.mxu1 %vm4482_vm0, %v4481_v20  ;;  %v790_v17 = vpack.c.bf16 %v783_v23, %v783_v23  ;;  %v792_v0 = vpack.c.bf16 %v784_v62, %v784_v62 }
 0x2cf   : > { %2301 = vxpose.xlu1.c.b16.start.end [1/1] (short) (narrow) %v786_v47, 32  ;;  %4343 = vmatprep.subr.bf16.mxu1 %v4481_v20 }
 0x2d2   : > { %4344 = vmatpush3.bf16.msra.mxu1 %v2061_v56  ;;  %2317 = vxpose.xlu0.c.b16.start.end [1/1] (short) (narrow) %v787_v57, 32 }
 0x2d4   : > { %2333 = vxpose.xlu1.c.b16.start.end [1/1] (short) (narrow) %v788_v31, 32 }
 0x2d5   : > { %4346 = vmatmul.mubr.msk.bf16.vlgmr.msra.gmra.mrb[16].mxu1 %vm2063_vm1, %v854_v60 }
 0x2d7   : > { %2349 = vxpose.xlu0.c.b16.start.end [1/1] (short) (narrow) %v789_v61, 32 }
 0x2d9   : > { %2365 = vxpose.xlu1.c.b16.start.end [1/1] (short) (narrow) %v790_v17, 32 }
 0x2dc   : > { %2381 = vxpose.xlu0.c.b16.start.end [1/1] (short) (narrow) %v791_v63, 32 }
 0x2de   : > { %2397 = vxpose.xlu1.c.b16.start.end [1/1] (short) (narrow) %v792_v0, 32 }
 0x333   : > { %v2293_v1 = vpop.trf.xlu0 }
 0x334   : > { %v2417_v29 = vshrl.u32 %v2293_v1, 16 }
 0x335   : > { %v2309_v40 = vpop.trf.xlu1 }
 0x336   : > { %v2418_v34 = vshrl.u32 %v2309_v40, 16  ;;  %v4879_v10 = vpack.i.b16 %v2309_v40, %v2293_v1 }
 0x337   : > { %v2294_v22 = vpop.trf.xlu0 }
 0x338   : > { %v2449_v5 = vshrl.u32 %v2294_v22, 16  ;;  %v4883_v58 = vpack.i.b16 %v2418_v34, %v2417_v29 }
 0x339   : > { %v2310_v3 = vpop.trf.xlu1 }
 0x33a   : > { %v2450_v50 = vshrl.u32 %v2310_v3, 16  ;;  %v4877_v8 = vpack.i.b16 %v2310_v3, %v2294_v22 }
 0x33b   : > { %v2325_v27 = vpop.trf.xlu0 }
 0x33c   : > { %v2451_v14 = vpack.i.b16 %v2450_v50, %v2449_v5  ;;  %v2425_v42 = vshrl.u32 %v2325_v27, 16 }
 0x33d   : > { %v2341_v37 = vpop.trf.xlu1 }
 0x33e   : > { %v2426_v44 = vshrl.u32 %v2341_v37, 16  ;;  %v2423_v19 = vpack.i.b16 %v2341_v37, %v2325_v27 }
 0x33f   : > { %v2326_v4 = vpop.trf.xlu0 }
 0x340   : > { %v2457_v26 = vshrl.u32 %v2326_v4, 16  ;;  %v2427_v16 = vpack.i.b16 %v2426_v44, %v2425_v42 }
 0x341   : > { %v2342_v38 = vpop.trf.xlu1 }
 0x342   : > { %v2458_v30 = vshrl.u32 %v2342_v38, 16  ;;  %v2455_v49 = vpack.i.b16 %v2342_v38, %v2326_v4 }
 0x343   : > { %v2357_v33 = vpop.trf.xlu0 }
 0x344   : > { %v2433_v11 = vshrl.u32 %v2357_v33, 16  ;;  %v2459_v54 = vpack.i.b16 %v2458_v30, %v2457_v26 }
 0x345   : > { %v2373_v51 = vpop.trf.xlu1 }
 0x346   : > { %v2434_v12 = vshrl.u32 %v2373_v51, 16  ;;  %v4881_v15 = vpack.i.b16 %v2373_v51, %v2357_v33 }
 0x347   : > { %v2358_v6 = vpop.trf.xlu0 }
 0x348   : > { %v2465_v9 = vshrl.u32 %v2358_v6, 16  ;;  %v4886_v32 = vpack.i.b16 %v2434_v12, %v2433_v11  ;;  %v2477_v39 = vcombine.low %v4879_v10, %v4881_v15 }
 0x349   : > { %v2374_v13 = vpop.trf.xlu1 }
 0x34a   : > { %v2463_v45 = vpack.i.b16 %v2374_v13, %v2358_v6  ;;  %v2466_v46 = vshrl.u32 %v2374_v13, 16  ;;  %v2545_v56 = vcombine.low %v4883_v58, %v4886_v32  ;;  %v2485_v60 = vrot.slane %v2477_v39, %v4656_v48 }
 0x34b   : > { %v2389_v18 = vpop.trf.xlu0  ;;  %v2478_v13 = vcombine.high %v4879_v10, %v4881_v15 }
 0x34c   : > { %v2467_v21 = vpack.i.b16 %v2466_v46, %v2465_v9  ;;  %v2614_v25 = vcombine.high %v4877_v8, %v2463_v45  ;;  %v2441_v35 = vshrl.u32 %v2389_v18, 16  ;;  %v2553_v63 = vrot.slane %v2545_v56, %v4656_v48 }
 0x34d   : > { %v2405_v36 = vpop.trf.xlu1  ;;  %v2613_v3 = vcombine.low %v4877_v8, %v2463_v45  ;;  %v2492_v26 = vrot.slane %v2478_v13, %v4656_v48 }
 0x34e   : > { %v2682_v43 = vcombine.high %v2451_v14, %v2467_v21  ;;  %v2439_v7 = vpack.i.b16 %v2405_v36, %v2389_v18  ;;  %v2442_v41 = vshrl.u32 %v2405_v36, 16  ;;  %v2681_v27 = vcombine.low %v2451_v14, %v2467_v21 }
 0x34f   : > { %v2390_v47 = vpop.trf.xlu0  ;;  %v4913_v8 = vrot.slane %v2613_v3, %v4656_v48  ;;  %v4926_v14 = vrot.slane %v2614_v25, %v4656_v48  ;;  %v2546_v25 = vcombine.high %v4883_v58, %v4886_v32 }
 0x350   : > { %v2493_v52 = vcombine.low %v2423_v19, %v2439_v7  ;;  %v2473_v53 = vshrl.u32 %v2390_v47, 16  ;;  %v2443_v57 = vpack.i.b16 %v2442_v41, %v2441_v35  ;;  %v4902_v33 = vrot.slane %v2682_v43, %v4656_v48 }
 0x351   : > { %v2406_v59 = vpop.trf.xlu1  ;;  %v2494_v51 = vcombine.high %v2423_v19, %v2439_v7  ;;  %v4916_v9 = vrot.slane %v2681_v27, %v4656_v48  ;;  %v2560_v7 = vrot.slane %v2546_v25, %v4656_v48 }
 0x352   : > { %v2471_v28 = vpack.i.b16 %v2406_v59, %v2390_v47  ;;  %v2474_v31 = vshrl.u32 %v2406_v59, 16  ;;  %v2501_v23 = vrot.slane %v2493_v52, %v4656_v48  ;;  %v2561_v24 = vcombine.low %v2427_v16, %v2443_v57 }
 0x353   : > { %v2562_v45 = vcombine.high %v2427_v16, %v2443_v57  ;;  %v2508_v21 = vrot.slane %v2494_v51, %v4656_v48 }
 0x354   : > { %v2475_v61 = vpack.i.b16 %v2474_v31, %v2473_v53  ;;  %v2630_v17 = vcombine.high %v2455_v49, %v2471_v28  ;;  %v2509_v62 = vcombine.low %v2485_v60, %v2501_v23  ;;  %v2569_v0 = vrot.slane %v2561_v24, %v4656_v48 }
 0x355   : > { %v2629_v1 = vcombine.low %v2455_v49, %v2471_v28  ;;  %v2510_v29 = vcombine.high %v2485_v60, %v2501_v23  ;;  %v2576_v36 = vrot.slane %v2562_v45, %v4656_v48  ;;  %v2525_v43 = vcombine.low %v2492_v26, %v2508_v21 }
 0x356   : > { %v2698_v40 = vcombine.high %v2459_v54, %v2475_v61  ;;  %v2517_v22 = vrot.slane %v2509_v62, %v4659_v55  ;;  %v2697_v37 = vcombine.low %v2459_v54, %v2475_v61  ;;  %v2577_v4 = vcombine.low %v2553_v63, %v2569_v0 }
 0x357   : > { %v4906_v50 = vrot.slane %v2630_v17, %v4656_v48  ;;  %v4910_v34 = vrot.slane %v2629_v1, %v4656_v48  ;;  %v2578_v42 = vcombine.high %v2553_v63, %v2569_v0  ;;  %v2524_v19 = vrot.slane %v2510_v29, %v4659_v55 }
 0x358   : > { %v4899_v38 = vrot.slane %v2698_v40, %v4656_v48  ;;  %2749 = vxpose.xlu0.c.b16.start.end [1/1] (short) (narrow) %v2517_v22, 16  ;;  %v2585_v5 = vrot.slane %v2577_v4, %v4659_v55  ;;  %v2541_v6 = vcombine.high %v2517_v22, %v4480_v2  ;;  %v4919_v11 = vrot.slane %v2697_v37, %v4656_v48 }
 0x359   : > { %v2646_v44 = vcombine.high %v4913_v8, %v4910_v34  ;;  %v2661_v15 = vcombine.low %v4926_v14, %v4906_v50  ;;  %v2662_v30 = vcombine.high %v4926_v14, %v4906_v50  ;;  %v2592_v35 = vrot.slane %v2578_v42, %v4659_v55 }
 0x35a   : > { %2765 = vxpose.xlu1.c.b16.start.end [1/1] (short) (narrow) %v2585_v5, 16  ;;  %v2729_v12 = vcombine.low %v4902_v33, %v4899_v38  ;;  %v2609_v46 = vcombine.high %v2585_v5, %v4480_v2  ;;  %v2714_v18 = vcombine.high %v4916_v9, %v4919_v11  ;;  %v2730_v10 = vcombine.high %v4902_v33, %v4899_v38 }
 0x35b   : > { %v2542_v39 = vcombine.high %v2524_v19, %v4480_v2  ;;  %v2610_v58 = vcombine.high %v2592_v35, %v4480_v2  ;;  %v2593_v32 = vcombine.low %v2560_v7, %v2576_v36  ;;  %v2533_v16 = vrot.slane %v2525_v43, %v4659_v55 }
 0x35c   : > { %2781 = vxpose.xlu0.c.b16.start.end [1/1] (short) (narrow) %v2541_v6, 16  ;;  %v2526_v49 = vcombine.high %v2492_v26, %v2508_v21  ;;  %v2594_v53 = vcombine.high %v2560_v7, %v2576_v36  ;;  %v2645_v59 = vcombine.low %v4913_v8, %v4910_v34  ;;  %v2713_v31 = vcombine.low %v4916_v9, %v4919_v11 }
 0x35d   : > { %v2601_v41 = vrot.slane %v2593_v32, %v4659_v55  ;;  %v2543_v47 = vcombine.high %v2533_v16, %v4480_v2  ;;  %v2744_v11 = vrot.slane %v2730_v10, %v4659_v55  ;;  %v2676_v8 = vrot.slane %v2662_v30, %v4659_v55 }
 0x35e   : > { %2797 = vxpose.xlu1.c.b16.start.end [1/1] (short) (narrow) %v2609_v46, 16  ;;  %v2540_v54 = vrot.slane %v2526_v49, %v4659_v55  ;;  %v2608_v56 = vrot.slane %v2594_v53, %v4659_v55  ;;  %v2653_v60 = vrot.slane %v2645_v59, %v4659_v55  ;;  %v2721_v23 = vrot.slane %v2713_v31, %v4659_v55 }
 0x35f   : > { %v2611_v52 = vcombine.high %v2601_v41, %v4480_v2 }
 0x360   : > { %2813 = vxpose.xlu0.c.b16.start.end [1/1] (short) (narrow) %v2524_v19, 16  ;;  %v2544_v57 = vcombine.high %v2540_v54, %v4480_v2  ;;  %v2612_v28 = vcombine.high %v2608_v56, %v4480_v2  ;;  %v2745_v45 = vcombine.high %v2721_v23, %v4480_v2  ;;  %v2677_v21 = vcombine.high %v2653_v60, %v4480_v2 }
 0x362   : > { %2829 = vxpose.xlu1.c.b16.start.end [1/1] (short) (narrow) %v2592_v35, 16 }
 0x364   : > { %2845 = vxpose.xlu0.c.b16.start.end [1/1] (short) (narrow) %v2542_v39, 16 }
 0x366   : > { %2861 = vxpose.xlu1.c.b16.start.end [1/1] (short) (narrow) %v2610_v58, 16 }
 0x368   : > { %2877 = vxpose.xlu0.c.b16.start.end [1/1] (short) (narrow) %v2533_v16, 16 }
 0x36a   : > { %2893 = vxpose.xlu1.c.b16.start.end [1/1] (short) (narrow) %v2601_v41, 16 }
 0x36c   : > { %2909 = vxpose.xlu0.c.b16.start.end [1/1] (short) (narrow) %v2543_v47, 16 }
 0x36e   : > { %2925 = vxpose.xlu1.c.b16.start.end [1/1] (short) (narrow) %v2611_v52, 16 }
 0x370   : > { %2941 = vxpose.xlu0.c.b16.start.end [1/1] (short) (narrow) %v2540_v54, 16 }
 0x372   : > { %2957 = vxpose.xlu1.c.b16.start.end [1/1] (short) (narrow) %v2608_v56, 16 }
 0x374   : > { %2973 = vxpose.xlu0.c.b16.start.end [1/1] (short) (narrow) %v2544_v57, 16 }
 0x376   : > { %2989 = vxpose.xlu1.c.b16.start.end [1/1] (short) (narrow) %v2612_v28, 16 }
 0x378   : > { %3005 = vxpose.xlu0.c.b16.start.end [1/1] (short) (narrow) %v2653_v60, 16 }
 0x37a   : > { %3021 = vxpose.xlu1.c.b16.start.end [1/1] (short) (narrow) %v2721_v23, 16 }
 0x390   : > { %v4963_v24 = vpop.f32.mrb[4].mxu1 }
 0x391   : > { %v4323_v61 = vpop.f32.mrb[5].mxu1  ;;  %v2237_v17 = vsel %vm2236_vm2, %v4963_v24, -inf }
 0x392   : > { %v2104_v62 = vpop.f32.mrb[6].mxu1  ;;  %2238 = vmax.xlane.f32.xlu1 %v2237_v17 }
 0x393   : > { %v4324_v63 = vpop.f32.mrb[7].mxu1 }
 0x398   : > { %v4967_v0 = vpop.f32.mrb[8].mxu1 }
 0x399   : > { %v4331_v1 = vpop.f32.mrb[9].mxu1  ;;  %v2240_v40 = vsel %vm2236_vm2, %v4967_v0, -inf }
 0x39a   : > { %v2147_v22 = vpop.f32.mrb[10].mxu1  ;;  %2241 = vmax.xlane.f32.xlu0 %v2240_v40 }
 0x39b   : > { %v4332_v3 = vpop.f32.mrb[11].mxu1 }
 0x3a0   : > { %v4971_v27 = vpop.f32.mrb[12].mxu1 }
 0x3a1   : > { %v4339_v37 = vpop.f32.mrb[13].mxu1  ;;  %v2243_v39 = vsel %vm2236_vm2, %v4971_v27, -inf }
 0x3a2   : > { %v2190_v4 = vpop.f32.mrb[14].mxu1 }
 0x3a3   : > { %v4340_v51 = vpop.f32.mrb[15].mxu1 }
 0x3a8   : > { %v4973_v5 = vpop.f32.mrb[16].mxu1 }
 0x3a9   : > { %v4347_v6 = vpop.f32.mrb[17].mxu1  ;;  %v2246_v16 = vsel %vm2236_vm2, %v4973_v5, -inf }
 0x3aa   : > { %v2233_v29 = vpop.f32.mrb[18].mxu1 }
 0x3ab   : > { %v4348_v13 = vpop.f32.mrb[19].mxu1 }
 0x3be   : > { %v2757_v46 = vpop.trf.xlu0 }
 0x3bf   : > { %3053 = vxpose.xlu1.c.b16.start.end [1/1] (short) (narrow) %v2745_v45, 16 }
 0x3c0   : > { %v2773_v42 = vpop.trf.xlu1 }
 0x3c2   : > { %v2789_v19 = vpop.trf.xlu0 }
 0x3c4   : > { %v2805_v25 = vpop.trf.xlu1 }
 0x3c6   : > { %v2821_v26 = vpop.trf.xlu0 }
 0x3c7   : > { %3037 = vxpose.xlu0.c.b16.start.end [1/1] (short) (narrow) %v2677_v21, 16  ;;  %v3261_v41 = vcombine.low %v2757_v46, %v2821_v26 }
 0x3c8   : > { %v2837_v35 = vpop.trf.xlu1 }
 0x3c9   : > { %v3311_v52 = vcombine.low %v2773_v42, %v2837_v35  ;;  %v3268_v56 = vrot.slane %v3261_v41, %v4656_v48 }
 0x3ca   : > { %v2853_v36 = vpop.trf.xlu0 }
 0x3cb   : > { %v3269_v47 = vcombine.low %v2789_v19, %v2853_v36  ;;  %v3318_v31 = vrot.slane %v3311_v52, %v4656_v48 }
 0x3cc   : > { %2244 = vmax.xlane.f32.xlu1 %v2243_v39  ;;  %v2869_v43 = vpop.trf.xlu1 }
 0x3cd   : > { %v3319_v53 = vcombine.low %v2805_v25, %v2869_v43  ;;  %v3276_v57 = vrot.slane %v3269_v47, %v4656_v48  ;;  %v2737_v47 = vrot.slane %v2729_v12, %v4659_v55  ;;  %v2669_v12 = vrot.slane %v2661_v15, %v4659_v55 }
 0x3ce   : > { %v2885_v7 = vpop.trf.xlu0 }
 0x3cf   : > { %v3326_v60 = vrot.slane %v3319_v53, %v4656_v48  ;;  %v3293_v17 = vcombine.low %v3268_v56, %v3276_v57  ;;  %v2747_v52 = vcombine.high %v2737_v47, %v4480_v2  ;;  %v2679_v34 = vcombine.high %v2669_v12, %v4480_v2 }
 0x3d0   : > { %v2901_v58 = vpop.trf.xlu1 }
 0x3d1   : > { %v3343_v22 = vcombine.low %v3318_v31, %v3326_v60  ;;  %v3300_v4 = vrot.slane %v3293_v17, %v4659_v55 }
 0x3d2   : > { %v2917_v32 = vpop.trf.xlu0 }
 0x3d3   : > { %v3350_v13 = vrot.slane %v3343_v22, %v4659_v55 }
 0x3d4   : > { %2247 = vmax.xlane.f32.xlu0 %v2246_v16  ;;  %v2933_v49 = vpop.trf.xlu1  ;;  %v2728_v16 = vrot.slane %v2714_v18, %v4659_v55 }
 0x3d6   : > { %v2949_v54 = vpop.trf.xlu0  ;;  %v2746_v41 = vcombine.high %v2728_v16, %v4480_v2 }
 0x3d7   : > { %v3277_v59 = vcombine.low %v2885_v7, %v2949_v54 }
 0x3d8   : > { %v2965_v28 = vpop.trf.xlu1 }
 0x3d9   : > { %v3327_v23 = vcombine.low %v2901_v58, %v2965_v28  ;;  %v3284_v62 = vrot.slane %v3277_v59, %v4656_v48 }
 0x3da   : > { %v2981_v61 = vpop.trf.xlu0 }
 0x3db   : > { %v3285_v63 = vcombine.low %v2917_v32, %v2981_v61  ;;  %v3334_v3 = vrot.slane %v3327_v23, %v4656_v48 }
 0x3dc   : > { %v2997_v1 = vpop.trf.xlu1 }
 0x3dd   : > { %v3292_v40 = vrot.slane %v3285_v63, %v4656_v48  ;;  %v3335_v37 = vcombine.low %v2933_v49, %v2997_v1  ;;  %v2660_v49 = vrot.slane %v2646_v44, %v4659_v55 }
 0x3de   : > { %v3013_v33 = vpop.trf.xlu0 }
 0x3df   : > { %v3301_v51 = vcombine.low %v3284_v62, %v3292_v40  ;;  %v3342_v6 = vrot.slane %v3335_v37, %v4656_v48  ;;  %v2678_v9 = vcombine.high %v2660_v49, %v4480_v2 }
 0x3e0   : > { %v3029_v44 = vpop.trf.xlu1 }
 0x3e1   : > { %v3308_v29 = vrot.slane %v3301_v51, %v4659_v55  ;;  %v3351_v45 = vcombine.low %v3334_v3, %v3342_v6 }
 0x3e3   : > { %v3309_v46 = vcombine.low %v3300_v4, %v3308_v29  ;;  %v4992_v42 = vcombine.high %v3300_v4, %v3308_v29  ;;  %v3358_v19 = vrot.slane %v3351_v45, %v4659_v55 }
 0x3e5   : > { %v3359_v21 = vcombine.low %v3350_v13, %v3358_v19  ;;  %v4995_v25 = vcombine.high %v3350_v13, %v3358_v19  ;;  %v3464_v26 = vshrl.u32 %v3309_v46, 16  ;;  %v3470_v35 = vshrl.u32 %v4992_v42, 16 }
 0x3e6   : > { %v2680_v19 = vcombine.high %v2676_v8, %v4480_v2 }
 0x3e7   : > { %v3463_v36 = vpack.i.b16 %v3359_v21, %v3309_v46  ;;  %v3465_v39 = vshrl.u32 %v3359_v21, 16  ;;  %v3469_v43 = vpack.i.b16 %v4995_v25, %v4992_v42  ;;  %v3471_v7 = vshrl.u32 %v4995_v25, 16 }
 0x3e8   : > { %v2748_v21 = vcombine.high %v2744_v11, %v4480_v2 }
 0x3e9   : > { %4351 = vmatprep.mubr.msk.bf16.mxu0 %vm2236_vm2, %v3463_v36  ;;  %v3466_v58 = vpack.i.b16 %v3465_v39, %v3464_v26  ;;  %v5002_v32 = vpack.i.b16 %v3471_v7, %v3470_v35 }
 0x3eb   : > { %4357 = vmatprep.mubr.msk.bf16.mxu1 %vm2236_vm2, %v3466_v58 }
 0x3f9   : > { %3085 = vxpose.xlu1.c.b16.start.end [1/1] (short) (narrow) %v2728_v16, 16 }
 0x3fd   : > { %3117 = vxpose.xlu1.c.b16.start.end [1/1] (short) (narrow) %v2746_v41, 16 }
 0x401   : > { %3149 = vxpose.xlu1.c.b16.start.end [1/1] (short) (narrow) %v2737_v47, 16  ;;  %3069 = vxpose.xlu0.c.b16.start.end [1/1] (short) (narrow) %v2660_v49, 16 }
 0x405   : > { %3181 = vxpose.xlu1.c.b16.start.end [1/1] (short) (narrow) %v2747_v52, 16  ;;  %3101 = vxpose.xlu0.c.b16.start.end [1/1] (short) (narrow) %v2678_v9, 16 }
 0x409   : > { %3213 = vxpose.xlu1.c.b16.start.end [1/1] (short) (narrow) %v2744_v11, 16  ;;  %3133 = vxpose.xlu0.c.b16.start.end [1/1] (short) (narrow) %v2669_v12, 16 }
 0x40d   : > { %3165 = vxpose.xlu0.c.b16.start.end [1/1] (short) (narrow) %v2679_v34, 16 }
 0x411   : > { %3197 = vxpose.xlu0.c.b16.start.end [1/1] (short) (narrow) %v2676_v8, 16 }
 0x41f   : > { %v2239_v18 = vpop.xlane.xlu1 %2238 }
 0x420   : > { %v2249_v38 = vsub.f32 %v4963_v24, %v2239_v18 }
 0x422   : > { %v2253_v10 = vmul.f32 1.442695, %v2249_v38 }
 0x424   : > { %4453 = vpow2.f32 %v2253_v10 }
 0x425   : > { %v3061_v14 = vpop.trf.xlu1 }
 0x427   : > { %v2242_v53 = vpop.xlane.xlu0 %2241 }
 0x428   : > { %v2250_v15 = vsub.f32 %v4967_v0, %v2242_v53 }
 0x42a   : > { %v2255_v54 = vmul.f32 1.442695, %v2250_v15 }
 0x42c   : > { %4455 = vpow2.f32 %v2255_v54 }
 0x42d   : > { %v3045_v28 = vpop.trf.xlu0 }
 0x42e   : > { %v4454_v56 = vpop.eup %4453 }
 0x42f   : > { %v2261_v57 = vsel %vm2236_vm2, %v4454_v56, 0.0 }
 0x430   : > { %2262 = vadd.xlane.f32.xlu0 %v2261_v57 }
 0x436   : > { %v4456_v59 = vpop.eup %4455 }
 0x437   : > { %v2264_v50 = vsel %vm2236_vm2, %v4456_v59, 0.0 }
 0x438   : > { %2265 = vadd.xlane.f32.xlu1 %v2264_v50 }
 0x459   : > { %v2245_v30 = vpop.xlane.xlu1 %2244 }
 0x45a   : > { %v2251_v24 = vsub.f32 %v4971_v27, %v2245_v30 }
 0x45c   : > { %v2257_v31 = vmul.f32 1.442695, %v2251_v24 }
 0x45e   : > { %4457 = vpow2.f32 %v2257_v31 }
 0x45f   : > { %v3093_v60 = vpop.trf.xlu1 }
 0x460   : > { %v3411_v0 = vcombine.low %v3029_v44, %v3093_v60 }
 0x461   : > { %v2248_v23 = vpop.xlane.xlu0 %2247 }
 0x462   : > { %v2252_v61 = vsub.f32 %v4973_v5, %v2248_v23  ;;  %v5040_v1 = vrot.slane %v3411_v0, %v4656_v48 }
 0x463   : > { %v3125_v17 = vpop.trf.xlu1 }
 0x464   : > { %v2259_v62 = vmul.f32 1.442695, %v2252_v61  ;;  %v3419_v63 = vcombine.low %v3061_v14, %v3125_v17 }
 0x466   : > { %4459 = vpow2.f32 %v2259_v62  ;;  %v5043_v40 = vrot.slane %v3419_v63, %v4656_v48 }
 0x467   : > { %v3077_v22 = vpop.trf.xlu0  ;;  %v3157_v36 = vpop.trf.xlu1 }
 0x468   : > { %v4458_v27 = vpop.eup %4457  ;;  %v3443_v3 = vcombine.low %v5040_v1, %v5043_v40  ;;  %v3361_v4 = vcombine.low %v3013_v33, %v3077_v22 }
 0x469   : > { %v2267_v37 = vsel %vm2236_vm2, %v4458_v27, 0.0 }
 0x46a   : > { %2268 = vadd.xlane.f32.xlu0 %v2267_v37  ;;  %v3368_v6 = vrot.slane %v3361_v4, %v4656_v48  ;;  %v3450_v62 = vrot.slane %v3443_v3, %v4659_v55 }
 0x46b   : > { %v3109_v5 = vpop.trf.xlu0  ;;  %v3189_v7 = vpop.trf.xlu1 }
 0x46c   : > { %v3369_v51 = vcombine.low %v3045_v28, %v3109_v5 }
 0x46e   : > { %v3376_v29 = vrot.slane %v3369_v51, %v4656_v48 }
 0x46f   : > { %v3141_v26 = vpop.trf.xlu0  ;;  %v3221_v16 = vpop.trf.xlu1 }
 0x470   : > { %v4460_v13 = vpop.eup %4459  ;;  %v3393_v45 = vcombine.low %v3368_v6, %v3376_v29 }
 0x471   : > { %v2270_v46 = vsel %vm2236_vm2, %v4460_v13, 0.0 }
 0x472   : > { %2271 = vadd.xlane.f32.xlu1 %v2270_v46  ;;  %v3400_v57 = vrot.slane %v3393_v45, %v4659_v55 }
 0x473   : > { %v3173_v35 = vpop.trf.xlu0 }
 0x477   : > { %v3205_v39 = vpop.trf.xlu0 }
 0x478   : > { %v3377_v44 = vcombine.low %v3141_v26, %v3205_v39 }
 0x47a   : > { %v3384_v10 = vrot.slane %v3377_v44, %v4656_v48 }
 0x497   : > { %3229 = vxpose.xlu0.c.b16.start.end [1/1] (short) (narrow) %v2680_v19, 16 }
 0x49f   : > { %3245 = vxpose.xlu1.c.b16.start.end [1/1] (short) (narrow) %v2748_v21, 16 }
 0x4bd   : > { %v2263_v58 = vpop.xlane.xlu0 %2262 }
 0x4be   : > { %4461 = vrcp.f32 %v2263_v58 }
 0x4c5   : > { %v2266_v41 = vpop.xlane.xlu1 %2265 }
 0x4c6   : > { %4463 = vrcp.f32 %v2266_v41 }
 0x4c8   : > { %v4462_v47 = vpop.eup %4461 }
 0x4c9   : > { %v2277_v49 = vmul.f32 %v4462_v47, %v4454_v56 }
 0x4cb   : > { %v2281_v52 = vpack.c.bf16 %v2277_v49, %v2277_v49  ;;  %v4445_v49 = vld [vmem:[%s5157_s3] sm:$0xff]  }
 0x4cd   : > { %4393 = vmatprep.subr.msk.bf16.mxu0 %vm2236_vm2, %v2281_v52  ;;  %v3492_v9 = vsel %vm2236_vm2, %v2281_v52, 0  ;;  %v4446_v52 = vld [vmem:[%s5157_s3 + $0x8] sm:$0xff]  }
 0x4ce   : > { %4350 = vmatpush3.bf16.xpose.msra.mxu0 %v3492_v9  ;;  %v4447_v9 = vld [vmem:[%s5157_s3 + $0x10] sm:$0xff]  }
 0x4d0   : > { %v4464_v2 = vpop.eup %4463 }
 0x4d1   : > { %v2278_v11 = vmul.f32 %v4464_v2, %v4456_v59  ;;  %v3427_v59 = vcombine.low %v3157_v36, %v3221_v16  ;;  %v4448_v2 = vld [vmem:[%s5157_s3 + $0x18] sm:$0xff]  }
 0x4d3   : > { %v2282_v12 = vpack.c.bf16 %v2278_v11, %v2278_v11  ;;  %v3434_v60 = vrot.slane %v3427_v59, %v4656_v48  ;;  %v4449_v11 = vld [vmem:[%s5157_s3 + $0x20] sm:$0xff]  }
 0x4d5   : > { %4394 = vmatprep.subr.msk.bf16.mxu1 %vm2236_vm2, %v2282_v12  ;;  %v3550_v34 = vsel %vm2236_vm2, %v2282_v12, 0  ;;  %v4450_v12 = vld [vmem:[%s5157_s3 + $0x28] sm:$0xff]  }
 0x4d6   : > { %4356 = vmatpush3.bf16.xpose.msra.mxu1 %v3550_v34 }
 0x4f7   : > { %v2269_v8 = vpop.xlane.xlu0 %2268 }
 0x4f8   : > { %4465 = vrcp.f32 %v2269_v8 }
 0x4fd   : > { %v3237_v18 = vpop.trf.xlu0 }
 0x4fe   : > { %v3385_v38 = vcombine.low %v3173_v35, %v3237_v18 }
 0x4ff   : > { %v2272_v33 = vpop.xlane.xlu1 %2271 }
 0x500   : > { %v3392_v53 = vrot.slane %v3385_v38, %v4656_v48  ;;  %4467 = vrcp.f32 %v2272_v33 }
 0x502   : > { %v4466_v15 = vpop.eup %4465  ;;  %v3401_v54 = vcombine.low %v3384_v10, %v3392_v53 }
 0x503   : > { %v2279_v56 = vmul.f32 %v4466_v15, %v4458_v27 }
 0x504   : > { %v3408_v50 = vrot.slane %v3401_v54, %v4659_v55 }
 0x505   : > { %v3253_v14 = vpop.trf.xlu1  ;;  %v2283_v30 = vpack.c.bf16 %v2279_v56, %v2279_v56 }
 0x506   : > { %v3409_v24 = vcombine.low %v3400_v57, %v3408_v50  ;;  %v3410_v28 = vcombine.high %v3400_v57, %v3408_v50  ;;  %v3435_v31 = vcombine.low %v3189_v7, %v3253_v14 }
 0x507   : > { %4395 = vmatprep.subr.msk.bf16.mxu0 %vm2236_vm2, %v2283_v30 }
 0x508   : > { %v3442_v23 = vrot.slane %v3435_v31, %v4656_v48  ;;  %v3476_v4 = vshrl.u32 %v3409_v24, 16  ;;  %v3482_v5 = vshrl.u32 %v3410_v28, 16 }
 0x50a   : > { %v4468_v0 = vpop.eup %4467  ;;  %v3451_v61 = vcombine.low %v3434_v60, %v3442_v23 }
 0x50b   : > { %v2280_v17 = vmul.f32 %v4468_v0, %v4460_v13  ;;  %v3608_v13 = vsel %vm2236_vm2, %v2283_v30, 0 }
 0x50c   : > { %v3458_v63 = vrot.slane %v3451_v61, %v4659_v55 }
 0x50d   : > { %v2284_v22 = vpack.c.bf16 %v2280_v17, %v2280_v17 }
 0x50e   : > { %v3459_v27 = vcombine.low %v3450_v62, %v3458_v63  ;;  %v3460_v37 = vcombine.high %v3450_v62, %v3458_v63 }
 0x50f   : > { %4396 = vmatprep.subr.msk.bf16.mxu1 %vm2236_vm2, %v2284_v22  ;;  %v3666_v40 = vsel %vm2236_vm2, %v2284_v22, 0 }
 0x510   : > { %v3475_v51 = vpack.i.b16 %v3459_v27, %v3409_v24  ;;  %v3477_v6 = vshrl.u32 %v3459_v27, 16  ;;  %v3481_v29 = vpack.i.b16 %v3460_v37, %v3410_v28  ;;  %v3483_v45 = vshrl.u32 %v3460_v37, 16  ;;  %v4451_v24 = vld [vmem:[%s5157_s3 + $0x30] sm:$0xff]  }
 0x512   : > { %4352 = vmatmul.mubr.msk.bf16.vlgmr.msra.gmra.mrb[4].mxu0 %vm2236_vm2, %v3475_v51  ;;  %v3478_v46 = vpack.i.b16 %v3477_v6, %v3476_v4  ;;  %v3484_v1 = vpack.i.b16 %v3483_v45, %v3482_v5  ;;  %v4452_v4 = vld [vmem:[%s5157_s3 + $0x38] sm:$0xff]  }
 0x513   : > { %4362 = vmatpush3.bf16.xpose.msra.mxu0 %v3608_v13  ;;  %4363 = vmatprep.mubr.msk.bf16.mxu0 %vm2236_vm2, %v3469_v43 }
 0x514   : > { %4358 = vmatmul.mubr.msk.bf16.vlgmr.msra.gmra.mrb[20].mxu1 %vm2236_vm2, %v3478_v46  ;;  %4373 = vmatprep.subr.bf16.mxu0 %v4481_v20 }
 0x515   : > { %4368 = vmatpush3.bf16.xpose.msra.mxu1 %v3666_v40  ;;  %4369 = vmatprep.mubr.msk.bf16.mxu1 %vm2236_vm2, %v5002_v32 }
 0x51a   : > { %4364 = vmatmul.mubr.msk.bf16.vlgmr.msra.gmra.mrb[8].mxu0 %vm2236_vm2, %v3481_v29 }
 0x51b   : > { %4389 = vmatprep.mubr.msk.bf16.mxu0 %vm4482_vm0, %v4481_v20  ;;  %4374 = vmatpush3.bf16.msra.mxu0 %v4445_v49 }
 0x51c   : > { %4370 = vmatmul.mubr.msk.bf16.vlgmr.msra.gmra.mrb[24].mxu1 %vm2236_vm2, %v3484_v1  ;;  %4375 = vmatprep.subr.bf16.mxu0 %v4481_v20 }
 0x51f   : > { %4376 = vmatpush3.bf16.msra.mxu0 %v4446_v52 }
 0x520   : > { %4377 = vmatprep.subr.bf16.mxu0 %v4481_v20 }
 0x523   : > { %4378 = vmatpush3.bf16.msra.mxu0 %v4447_v9 }
 0x524   : > { %4379 = vmatprep.subr.bf16.mxu0 %v4481_v20 }
 0x527   : > { %4380 = vmatpush3.bf16.msra.mxu0 %v4448_v2 }
 0x528   : > { %4381 = vmatprep.subr.bf16.mxu0 %v4481_v20 }
 0x52b   : > { %4382 = vmatpush3.bf16.msra.mxu0 %v4449_v11 }
 0x52c   : > { %4383 = vmatprep.subr.bf16.mxu0 %v4481_v20 }
 0x52f   : > { %4384 = vmatpush3.bf16.msra.mxu0 %v4450_v12 }
 0x530   : > { %4385 = vmatprep.subr.bf16.mxu0 %v4481_v20 }
 0x533   : > { %4386 = vmatpush3.bf16.msra.mxu0 %v4451_v24 }
 0x534   : > { %4387 = vmatprep.subr.bf16.mxu0 %v4481_v20 }
 0x537   : > { %4388 = vmatpush3.bf16.msra.mxu0 %v4452_v4 }
 0x5e5   : > { %v4353_v42 = vpop.f32.mrb[4].mxu0 }
 0x5e6   : > { %v3528_v25 = vpop.f32.mrb[5].mxu0 }
 0x5e7   : > { %v4359_v43 = vpop.f32.mrb[20].mxu1  ;;  %3717 = vxpose.xlu0.b32.start [1/4] (short) (narrow) %v3528_v25, 8  ;;  %v4354_v3 = vpop.f32.mrb[6].mxu0 }
 0x5e8   : > { %v3531_v19 = vpop.f32.mrb[7].mxu0  ;;  %v3586_v21 = vpop.f32.mrb[21].mxu1 }
 0x5e9   : > { %3749 = vxpose.xlu1.b32.start [1/4] (short) (narrow) %v3586_v21, 8  ;;  %v4360_v26 = vpop.f32.mrb[22].mxu1 }
 0x5ea   : > { %v3589_v35 = vpop.f32.mrb[23].mxu1 }
 0x5eb   : > { %3718 = vxpose.xlu0.b32.cont [2/4] (short) (narrow) %v3531_v19, 8 }
 0x5ed   : > { %3750 = vxpose.xlu1.b32.cont [2/4] (short) (narrow) %v3589_v35, 8  ;;  %v4365_v32 = vpop.f32.mrb[8].mxu0  ;;  %v4242_v35 = vld [vmem:[%s5158_s4] ss:$0 sm:$0xff] }
 0x5ee   : > { %v3644_v36 = vpop.f32.mrb[9].mxu0 }
 0x5ef   : > { %v4371_v39 = vpop.f32.mrb[24].mxu1  ;;  %3719 = vxpose.xlu0.b32.cont [3/4] (short) (narrow) %v4353_v42, 8  ;;  %v4366_v7 = vpop.f32.mrb[10].mxu0 }
 0x5f0   : > { %v3647_v58 = vpop.f32.mrb[11].mxu0  ;;  %v3702_v16 = vpop.f32.mrb[25].mxu1 }
 0x5f1   : > { %3751 = vxpose.xlu1.b32.cont [3/4] (short) (narrow) %v4359_v43, 8  ;;  %v4372_v41 = vpop.f32.mrb[26].mxu1 }
 0x5f2   : > { %v3705_v47 = vpop.f32.mrb[27].mxu1 }
 0x5f3   : > { %3720 = vxpose.xlu0.b32.end [4/4] (short) (narrow) %v4354_v3, 8 }
 0x5f5   : > { %3752 = vxpose.xlu1.b32.end [4/4] (short) (narrow) %v4360_v26, 8 }
 0x5f7   : > { %3781 = vxpose.xlu0.b32.start [1/4] (short) (narrow) %v3644_v36, 8 }
 0x5f9   : > { %3813 = vxpose.xlu1.b32.start [1/4] (short) (narrow) %v3702_v16, 8 }
 0x5fb   : > { %3782 = vxpose.xlu0.b32.cont [2/4] (short) (narrow) %v3647_v58, 8  ;;  %v4471_v58 = vld [vmem:[%s4590_s15] sm:$0xff] }
 0x5fd   : > { %3814 = vxpose.xlu1.b32.cont [2/4] (short) (narrow) %v3705_v47, 8 }
 0x5ff   : > { %3783 = vxpose.xlu0.b32.cont [3/4] (short) (narrow) %v4365_v32, 8 }
 0x601   : > { %3815 = vxpose.xlu1.b32.cont [3/4] (short) (narrow) %v4371_v39, 8 }
 0x603   : > { %3784 = vxpose.xlu0.b32.end [4/4] (short) (narrow) %v4366_v7, 8 }
 0x605   : > { %3816 = vxpose.xlu1.b32.end [4/4] (short) (narrow) %v4372_v41, 8 }
 0x667   : > { %v3733_v34 = vpop.trf.xlu0 }
 0x669   : > { %v3765_v8 = vpop.trf.xlu1 }
 0x677   : > { %v3797_v44 = vpop.trf.xlu0 }
 0x678   : > { %v3845_v18 = vcombine.low %v3733_v34, %v3797_v44  ;;  %v3846_v38 = vcombine.high %v3733_v34, %v3797_v44 }
 0x679   : > { %v3829_v33 = vpop.trf.xlu1 }
 0x67a   : > { %v3861_v10 = vcombine.low %v3765_v8, %v3829_v33  ;;  %v3862_v53 = vcombine.high %v3765_v8, %v3829_v33  ;;  %v3853_v15 = vrot.slane %v3845_v18, %v4656_v48  ;;  %v3860_v54 = vrot.slane %v3846_v38, %v4656_v48  ;;  %v4251_v8 = vld [vmem:[%s5159_s5] ss:$0 sm:$0xff] }
 0x67b   : > { %v4252_v18 = vld [vmem:[%s5160_s6] ss:$0 sm:$0xff] }
 0x67c   : > { %v3869_v56 = vrot.slane %v3861_v10, %v4656_v48  ;;  %v3876_v57 = vrot.slane %v3862_v53, %v4656_v48 }
 0x67e   : > { %v3877_v59 = vcombine.low %v3853_v15, %v3869_v56  ;;  %v3878_v50 = vcombine.high %v3853_v15, %v3869_v56  ;;  %v3893_v14 = vcombine.low %v3860_v54, %v3876_v57  ;;  %v3894_v30 = vcombine.high %v3860_v54, %v3876_v57 }
 0x680   : > { %v3885_v28 = vrot.slane %v3877_v59, %v4659_v55  ;;  %v3892_v31 = vrot.slane %v3878_v50, %v4659_v55  ;;  %v3901_v60 = vrot.slane %v3893_v14, %v4659_v55  ;;  %v3908_v23 = vrot.slane %v3894_v30, %v4659_v55 }
 0x682   : > { %v3913_v0 = vcombine.low %v3885_v28, %v3892_v31  ;;  %v4240_v61 = vcombine.high %v3885_v28, %v3892_v31  ;;  %v3929_v17 = vcombine.low %v3901_v60, %v3908_v23  ;;  %v4241_v62 = vcombine.high %v3901_v60, %v3908_v23 }
 0x684   : > { %v3920_v63 = vrot.slane %v3913_v0, %v4656_v48  ;;  %v3928_v22 = vrot.slane %v4240_v61, %v4656_v48  ;;  %v3936_v27 = vrot.slane %v3929_v17, %v4656_v48  ;;  %v3944_v37 = vrot.slane %v4241_v62, %v4656_v48 }
 0x686   : > { %v3946_v5 = vcombine.high %v3920_v63, %v3928_v22  ;;  %v3962_v51 = vcombine.high %v3936_v27, %v3944_v37  ;;  %v3945_v6 = vcombine.low %v3920_v63, %v3928_v22  ;;  %v3961_v29 = vcombine.low %v3936_v27, %v3944_v37 }
 0x688   : > { %v3960_v45 = vrot.slane %v3946_v5, %v4659_v55  ;;  %v3976_v20 = vrot.slane %v3962_v51, %v4659_v55  ;;  %v3953_v13 = vrot.slane %v3945_v6, %v4659_v55  ;;  %v3969_v46 = vrot.slane %v3961_v29, %v4659_v55 }
 0x68a   : > { %v3979_v1 = vcombine.low %v3960_v45, %v3976_v20  ;;  %v3978_v40 = vcombine.high %v3953_v13, %v3969_v46  ;;  %v3977_v48 = vcombine.low %v3953_v13, %v3969_v46  ;;  %v3980_v42 = vcombine.high %v3960_v45, %v3976_v20 }
 0x68c   : > { %3986 = vrot.lane.b32.xlu1 %v3979_v1, %s4485_s20  ;;  %3982 = vrot.lane.b32.xlu0 %v3978_v40, %s4483_s17 }
 0x690   : > { %3990 = vrot.lane.b32.xlu1 %v3980_v42, %s4484_s18 }
 0x6fe   : > { %v3987_v25 = vpop.permute.xlu1 %3986  ;;  %v3983_v43 = vpop.permute.xlu0 %3982 }
 0x6ff   : > { %v3993_v3 = vsel %vm2063_vm1, %v3977_v48, %v3983_v43 }
 0x700   : > { %v3995_v21 = vsel %vm3994_vm3, %v3993_v3, %v3987_v25 }
 0x702   : > { %v3991_v19 = vpop.permute.xlu1 %3990 }
 0x703   : > { %v3997_v55 = vsel %vm3996_vm4, %v3995_v21, %v3991_v19 }
 0x704   : > { %v3998_v26 = vpack.c.bf16 %v3997_v55, %v3997_v55 }
 0x706   : > { %4390 = vmatmul.mubr.bf16.vlgmr.msra.gmra.mrb[12].mxu0 %v3998_v26 }
 0x7d9   : > { %v4104_v32 = vpop.f32.mrb[12].mxu0 }
 0x7da   : > { %v4105_v36 = vadd.f32 %v4242_v35, %v4104_v32  ;;  %v4391_v39 = vpop.f32.mrb[13].mxu0 }
 0x7db   : > { %v4107_v7 = vpop.f32.mrb[14].mxu0 }
 0x7dc   : > { %v4110_v16 = vadd.f32 %v4471_v58, %v4105_v36  ;;  %v4392_v41 = vpop.f32.mrb[15].mxu0 }
 0x7de   : > { %4113 = vadd.xlane.f32.xlu0 %v4110_v16 }
 0x86b   : > { %v4114_v47 = vpop.xlane.xlu0 %4113 }
 0x86c   : > { %v4116_v49 = vmul.f32 0.0078125, %v4114_v47 }
 0x86e   : > { %v4117_v52 = vsub.f32 %v4110_v16, %v4116_v49 }
 0x870   : > { %v4118_v9 = vmul.f32 %v4117_v52, %v4117_v52 }
 0x872   : > { %4119 = vadd.xlane.f32.xlu1 %v4118_v9 }
 0x8ff   : > { %v4120_v2 = vpop.xlane.xlu1 %4119 }
 0x900   : > { %v4121_v11 = vmul.f32 0.0078125, %v4120_v2 }
 0x902   : > { %v4122_v12 = vadd.f32 1e-05, %v4121_v11 }
 0x904   : > { %4469 = vrsqrt.f32 %v4122_v12 }
 0x90e   : > { %v4470_v34 = vpop.eup %4469 }
 0x90f   : > { %v4124_v44 = vmul.f32 %v4470_v34, %v4117_v52 }
 0x911   : > { %v4131_v38 = vmul.f32 %v4251_v8, %v4124_v44 }
 0x913   : > { %v4138_v33 = vadd.f32 %v4252_v18, %v4131_v38 }
 0x915   : > { %4139 = vst [vmem:[%s273_s27] sm:$0xff] %v4138_v33 }
 0x916 PF: > { %s17_s24 = sadd.s32 1, %s4478_s24  }
 0x917   : > { %p14_p4 = scmp.ge.s32.totalorder %s17_s24, 4  }
 0x919   :  { %16 = sbr.rel (!%p14_p4) target bundleno = 1 (0x1), region = 78 }

// kernel: led_forward.16
= control target key start
LH: loop header
LB: loop body
LE: loop exit
PB: predicated region body
PF: predicated region fallthrough
CT: control target
= control target key end

     0   :  { %s4658_s13 = smov 0   ;;  %s5293_s0 = inlined_call_operand.vmem [shape: f32[16,128], index: 0, kind: input, shape index: {}]   ;;  %s5294_s1 = inlined_call_operand.vmem [shape: bf16[16,128], index: 1, kind: input, shape index: {}]   ;;  %s5295_s2 = inlined_call_operand.vmem [shape: bf16[128,128], index: 2, kind: input, shape index: {}]   ;;  %s5296_s3 = inlined_call_operand.vmem [shape: f32[1,128], index: 3, kind: input, shape index: {}]   ;;  %s5297_s4 = inlined_call_operand.vmem [shape: bf16[128,256], index: 4, kind: input, shape index: {}]   ;;  %s5298_s5 = inlined_call_operand.vmem [shape: f32[1,256], index: 5, kind: input, shape index: {}]   ;;  %s5299_s6 = inlined_call_operand.vmem [shape: bf16[128,128], index: 6, kind: input, shape index: {}]   ;;  %s5300_s7 = inlined_call_operand.vmem [shape: f32[1,128], index: 7, kind: input, shape index: {}]   ;;  %s5301_s8 = inlined_call_operand.vmem [shape: f32[1,128], index: 8, kind: input, shape index: {}]   ;;  %s5302_s9 = inlined_call_operand.vmem [shape: f32[1,128], index: 9, kind: input, shape index: {}]   ;;  %s5303_s10 = inlined_call_operand.vmem [shape: f32[16,128], index: 10, kind: output, shape index: {}]  }
   0x1 LB: > { %s4306_s14 = sadd.s32 4294967295, %s4593_s13   ;;  %p4310_p0 = scmp.ge.s32.totalorder %s4593_s13, 1  ;;  %s4593_s13 = sphi %s4658_s13, %s20_s13  }
   0x2   : > { %p320_p1 = scmp.lt.s32.totalorder %s4593_s13, 3 }
   0x4   : > { %p321_p2 = pnand %p4310_p0, %p320_p1 }
   0x5   : > { %v4528_v0 = vld [vmem:[%s5297_s4 + $0x4] ss:$8 sps:$4 sm:$0xff] (!%p321_p2)   ;;  %v4530_v1 = vld [vmem:[%s5297_s4] ss:$8 sps:$4 sm:$0xff] (!%p321_p2)   ;;  %v4595_v2 = vmov (!%p321_p2), 0.0   ;;  %v4596_v3 = vmov (!%p321_p2), 0   ;;  %v505_v29 = vlaneseq (!%p321_p2) }
   0x6   : > { %324 = sbr.rel (%p321_p2) target bundleno = 2326 (0x916), region = 60  ;;  %4412 = vmatprep.subr.bf16.mxu0 (!%p321_p2), %v4595_v2  ;;  %627 = vmatprep.mubr.bf16.mxu1 (!%p321_p2), %v4596_v3  ;;  %v4531_v4 = vld [vmem:[%s5297_s4 + $0x14] ss:$8 sps:$4 sm:$0xff] (!%p321_p2)   ;;  %vm4597_vm0 = vmmov (!%p321_p2), 0   ;;  %v4533_v5 = vld [vmem:[%s5295_s2] sm:$0xff] (!%p321_p2)   ;;  %v4537_v8 = vld [vmem:[%s5295_s2 + $0x8] sm:$0xff] (!%p321_p2)  }
   0x7   : > { %595 = vmatprep.subr.bf16.mxu1 (!%p321_p2), %v4528_v0  ;;  %4428 = vmatprep.mubr.msk.bf16.mxu0 (!%p321_p2), %vm4597_vm0, %v4595_v2  ;;  %v4534_v6 = vld [vmem:[%s5297_s4 + $0x10] ss:$8 sps:$4 sm:$0xff] (!%p321_p2)   ;;  %v4535_v7 = vld [vmem:[%s5297_s4 + $0x24] ss:$8 sps:$4 sm:$0xff] (!%p321_p2)   ;;  %v4538_v9 = vld [vmem:[%s5297_s4 + $0x20] ss:$8 sps:$4 sm:$0xff] (!%p321_p2)  }
   0x8   : > { %596 = vmatpush1.bf16.msra.mxu1 (!%p321_p2), %v4530_v1  ;;  %4413 = vmatpush3.bf16.msra.mxu0 (!%p321_p2), %v4533_v5  ;;  %v4539_v10 = vld [vmem:[%s5297_s4 + $0x34] ss:$8 sps:$4 sm:$0xff] (!%p321_p2)   ;;  %v4542_v12 = vld [vmem:[%s5297_s4 + $0x30] ss:$8 sps:$4 sm:$0xff] (!%p321_p2)   ;;  %v4543_v13 = vld [vmem:[%s5297_s4 + $0x44] ss:$8 sps:$4 sm:$0xff] (!%p321_p2)  }
   0x9   : > { %597 = vmatprep.subr.bf16.mxu1 (!%p321_p2), %v4531_v4  ;;  %4414 = vmatprep.subr.bf16.mxu0 (!%p321_p2), %v4595_v2  ;;  %v4541_v11 = vld [vmem:[%s5295_s2 + $0x10] sm:$0xff] (!%p321_p2)   ;;  %v4545_v14 = vld [vmem:[%s5295_s2 + $0x18] sm:$0xff] (!%p321_p2)   ;;  %p360_p3 = scmp.lt.s32.totalorder (!%p321_p2), %s4306_s14, 1  ;;  %v4546_v15 = vld [vmem:[%s5297_s4 + $0x40] ss:$8 sps:$4 sm:$0xff] (!%p321_p2)   ;;  %v4771_v30 = vshrl.u32 (!%p321_p2), %v505_v29, 7 }
   0xa   : > { %v4547_v16 = vld [vmem:[%s5297_s4 + $0x54] ss:$8 sps:$4 sm:$0xff] (!%p321_p2)   ;;  %v4549_v17 = vld [vmem:[%s5295_s2 + $0x20] sm:$0xff] (!%p321_p2)   ;;  %v4550_v18 = vld [vmem:[%s5297_s4 + $0x50] ss:$8 sps:$4 sm:$0xff] (!%p321_p2)   ;;  %s4598_s22 = smov (!%p321_p2), 32  }
   0xb   : > { %v4551_v19 = vld [vmem:[%s5297_s4 + $0x64] ss:$8 sps:$4 sm:$0xff] (!%p321_p2)   ;;  %v4554_v21 = vld [vmem:[%s5297_s4 + $0x60] ss:$8 sps:$4 sm:$0xff] (!%p321_p2)   ;;  %v4555_v22 = vld [vmem:[%s5297_s4 + $0x74] ss:$8 sps:$4 sm:$0xff] (!%p321_p2)  }
   0xc   : > { %598 = vmatpush1.bf16.msra.mxu1 (!%p321_p2), %v4534_v6  ;;  %4415 = vmatpush3.bf16.msra.mxu0 (!%p321_p2), %v4537_v8  ;;  %v4553_v20 = vld [vmem:[%s5295_s2 + $0x28] sm:$0xff] (!%p321_p2)   ;;  %v4557_v23 = vld [vmem:[%s5295_s2 + $0x30] sm:$0xff] (!%p321_p2)   ;;  %v4559_v25 = vld [vmem:[%s5295_s2 + $0x38] sm:$0xff] (!%p321_p2)   ;;  %v507_v31 = vsub.s32 (!%p321_p2), 0, %v4771_v30  ;;  %s4599_s23 = smov (!%p321_p2), 96   ;;  %vm2164_vm1 = vcmask (!%p321_p2), 261120  }
   0xd   : > { %599 = vmatprep.subr.bf16.mxu1 %v4535_v7  ;;  %4416 = vmatprep.subr.bf16.mxu0 %v4595_v2  ;;  %s5305_s14 = smov (!%p360_p3, %s4306_s14), 1  ;;  %v4558_v24 = vld [vmem:[%s5297_s4 + $0x70] ss:$8 sps:$4 sm:$0xff]   ;;  %v4777_v32 = vld [vmem:[%s5298_s5] sm:$0x3]  ;;  %vm2337_vm2 = vcmask 64512  }
   0xe   : > { %s4311_s17 = sshll.u32 %s5305_s14, 3  ;;  %s4312_s24 = sshll.u32 %s5305_s14, 2  ;;  %v508_v33 = vrot.slane %v4777_v32, %v507_v31  ;;  %v4314_v35 = vld [vmem:[%s5296_s3] ss:$0 sm:$0xff]  ;;  %v4601_v45 = vmov 1983009808  }
   0xf   : > { %s4755_s27 = scalar_lea.vmem %s5293_s0, %s4311_s17  ;;  %s367_s12 = scalar_lea.vmem %s5294_s1, %s4312_s24  ;;  %v649_v46 = vunpack.c.l.s4 %v4601_v45  ;;  %v4602_v48 = vmov 1934713408   ;;  %vm4095_vm3 = vcmask 523264   ;;  %vm4097_vm4 = vcmask 785408  }
  0x10   : > { %600 = vmatpush1.bf16.msra.mxu1 %v4538_v9  ;;  %4417 = vmatpush3.bf16.msra.mxu0 %v4541_v11  ;;  %v373_v26 = vld [vmem:[%s4755_s27] sm:$0xff]  ;;  %s4600_s24 = smov 64   ;;  %v681_v49 = vunpack.c.l.s4 %v4602_v48  ;;  %s371_s15 = scalar_lea.vmem %s5303_s10, %s4311_s17 }
  0x11   : > { %601 = vmatprep.subr.bf16.mxu1 %v4539_v10  ;;  %4418 = vmatprep.subr.bf16.mxu0 %v4595_v2  ;;  %v486_v27 = vld [vmem:[%s367_s12] sm:$0xf]  ;;  %v374_v28 = vpack.c.bf16 %v373_v26, %v373_v26  ;;  %v650_v47 = vunpack.c.0.s8 %v649_v46 }
  0x12   : > { %v682_v53 = vunpack.c.0.s8 %v681_v49 }
  0x13   : > { %v4797_v52 = vsub.s32 %v650_v47, %v4771_v30 }
  0x14   : > { %602 = vmatpush1.bf16.msra.mxu1 %v4542_v12  ;;  %4419 = vmatpush3.bf16.msra.mxu0 %v4545_v14  ;;  %v4800_v59 = vsub.s32 %v682_v53, %v4771_v30 }
  0x15   : > { %603 = vmatprep.subr.bf16.mxu1 %v4543_v13  ;;  %4420 = vmatprep.subr.bf16.mxu0 %v4595_v2 }
  0x18   : > { %604 = vmatpush1.bf16.msra.mxu1 %v4546_v15  ;;  %4421 = vmatpush3.bf16.msra.mxu0 %v4549_v17 }
  0x19   : > { %605 = vmatprep.subr.bf16.mxu1 %v4547_v16  ;;  %4422 = vmatprep.subr.bf16.mxu0 %v4595_v2 }
  0x1c   : > { %606 = vmatpush1.bf16.msra.mxu1 %v4550_v18  ;;  %4423 = vmatpush3.bf16.msra.mxu0 %v4553_v20 }
  0x1d   : > { %607 = vmatprep.subr.bf16.mxu1 %v4551_v19  ;;  %4424 = vmatprep.subr.bf16.mxu0 %v4595_v2 }
  0x20   : > { %608 = vmatpush1.bf16.msra.mxu1 %v4554_v21  ;;  %4425 = vmatpush3.bf16.msra.mxu0 %v4557_v23 }
  0x21   : > { %609 = vmatprep.subr.bf16.mxu1 %v4555_v22  ;;  %4426 = vmatprep.subr.bf16.mxu0 %v4595_v2 }
  0x24   : > { %610 = vmatpush1.bf16.msra.mxu1 %v4558_v24  ;;  %4427 = vmatpush3.bf16.msra.mxu0 %v4559_v25 }
  0x25   : > { %4432 = vmatprep.subr.bf16.mxu1 %v4595_v2 }
  0x27   : > { %628 = vmatmul.mubr.bf16.vlgmr.msra.gmra.mrb[0].mxu1 %v486_v27  ;;  %4429 = vmatmul.mubr.bf16.vlgmr.msra.gmra.mrb[0].mxu0 %v374_v28 }
  0x28   : > { %4436 = vmatprep.mubr.msk.bf16.mxu1 %vm4597_vm0, %v4595_v2 }
  0xfa   : > { %v629_v34 = vpop.f32.mrb[0].mxu1  ;;  %v480_v39 = vpop.f32.mrb[0].mxu0 }
  0xfb   : > { %v630_v36 = vadd.f32 %v629_v34, %v508_v33  ;;  %v4783_v37 = vpop.f32.mrb[1].mxu1  ;;  %v4787_v41 = vadd.f32 %v4314_v35, %v480_v39  ;;  %v4430_v42 = vpop.f32.mrb[1].mxu0 }
  0xfc   : > { %v633_v38 = vpop.f32.mrb[2].mxu1  ;;  %v483_v43 = vpop.f32.mrb[2].mxu0 }
  0xfd   : > { %v634_v40 = vpop.f32.mrb[3].mxu1  ;;  %729 = vrot.lane.b32.xlu1 %v630_v36, %s4598_s22  ;;  %723 = vrot.lane.b32.xlu0 %v630_v36, %s4599_s23  ;;  %v4431_v44 = vpop.f32.mrb[3].mxu0 }
 0x101   : > { %726 = vrot.lane.b32.xlu0 %v630_v36, %s4600_s24  ;;  %640 = vrot.lane.b32.xlu1 %v4787_v41, %s4600_s24 }
 0x105   : > { %643 = vrot.lane.b32.xlu1 %v4787_v41, %s4598_s22  ;;  %637 = vrot.lane.b32.xlu0 %v4787_v41, %s4599_s23 }
 0x16f   : > { %v730_v50 = vpop.permute.xlu1 %729  ;;  %v724_v51 = vpop.permute.xlu0 %723 }
 0x170   : > { %v748_v54 = vcombine.low %v724_v51, %v730_v50  ;;  %v749_v56 = vcombine.high %v724_v51, %v730_v50 }
 0x172   : > { %v756_v60 = vrot.slane %v748_v54, %v4797_v52  ;;  %v763_v63 = vrot.slane %v749_v56, %v4797_v52 }
 0x173   : > { %v727_v55 = vpop.permute.xlu0 %726  ;;  %v4814_v22 = vpop.permute.xlu1 %640 }
 0x174   : > { %v732_v57 = vcombine.low %v630_v36, %v727_v55  ;;  %v733_v58 = vcombine.high %v630_v36, %v727_v55 }
 0x176   : > { %v740_v61 = vrot.slane %v732_v57, %v4797_v52  ;;  %v747_v62 = vrot.slane %v733_v58, %v4797_v52 }
 0x177   : > { %v4816_v23 = vpop.permute.xlu1 %643  ;;  %v4818_v24 = vpop.permute.xlu0 %637 }
 0x178   : > { %v764_v0 = vcombine.low %v740_v61, %v756_v60  ;;  %v765_v1 = vcombine.high %v740_v61, %v756_v60  ;;  %v780_v6 = vcombine.low %v747_v62, %v763_v63  ;;  %v781_v11 = vcombine.high %v747_v62, %v763_v63 }
 0x17a   : > { %v772_v4 = vrot.slane %v764_v0, %v4800_v59  ;;  %v779_v5 = vrot.slane %v765_v1, %v4800_v59  ;;  %v788_v10 = vrot.slane %v780_v6, %v4800_v59  ;;  %v795_v15 = vrot.slane %v781_v11, %v4800_v59 }
 0x17c   : > { %v800_v7 = vpack.c.bf16 %v772_v4, %v772_v4  ;;  %v802_v8 = vpack.c.bf16 %v779_v5, %v779_v5  ;;  %v797_v9 = vcombine.high %v779_v5, %v4595_v2  ;;  %v804_v13 = vpack.c.bf16 %v788_v10, %v788_v10 }
 0x17d   : > { %v798_v14 = vcombine.high %v788_v10, %v4595_v2  ;;  %v806_v17 = vpack.c.bf16 %v795_v15, %v795_v15  ;;  %v799_v18 = vcombine.high %v795_v15, %v4595_v2  ;;  %v796_v19 = vcombine.high %v772_v4, %v4595_v2 }
 0x17e   : > { %956 = vxpose.xlu1.c.b16.start.end [1/1] (short) (narrow) %v800_v7, 32  ;;  %988 = vxpose.xlu0.c.b16.start.end [1/1] (short) (narrow) %v802_v8, 32  ;;  %v803_v12 = vpack.c.bf16 %v797_v9, %v797_v9 }
 0x17f   : > { %v805_v16 = vpack.c.bf16 %v798_v14, %v798_v14  ;;  %v807_v20 = vpack.c.bf16 %v799_v18, %v799_v18  ;;  %v801_v21 = vpack.c.bf16 %v796_v19, %v796_v19 }
 0x183   : > { %1004 = vxpose.xlu1.c.b16.start.end [1/1] (short) (narrow) %v803_v12, 32  ;;  %1020 = vxpose.xlu0.c.b16.start.end [1/1] (short) (narrow) %v804_v13, 32 }
 0x188   : > { %1036 = vxpose.xlu1.c.b16.start.end [1/1] (short) (narrow) %v805_v16, 32  ;;  %1052 = vxpose.xlu0.c.b16.start.end [1/1] (short) (narrow) %v806_v17, 32 }
 0x18d   : > { %1068 = vxpose.xlu1.c.b16.start.end [1/1] (short) (narrow) %v807_v20, 32  ;;  %972 = vxpose.xlu0.c.b16.start.end [1/1] (short) (narrow) %v801_v21, 32 }
 0x1e4   : > { %v964_v25 = vpop.trf.xlu1  ;;  %v996_v26 = vpop.trf.xlu0 }
 0x1e5   : > { %v1088_v48 = vshrl.u32 %v964_v25, 16  ;;  %v1096_v58 = vshrl.u32 %v996_v26, 16 }
 0x1e8   : > { %v4820_v27 = vpop.trf.xlu1  ;;  %v4822_v28 = vpop.trf.xlu0 }
 0x1ec   : > { %v1012_v29 = vpop.trf.xlu1  ;;  %v1028_v31 = vpop.trf.xlu0 }
 0x1ed   : > { %v1094_v40 = vpack.i.b16 %v1012_v29, %v996_v26  ;;  %v1097_v49 = vshrl.u32 %v1012_v29, 16  ;;  %v1104_v60 = vshrl.u32 %v1028_v31, 16 }
 0x1ef   : > { %v1098_v5 = vpack.i.b16 %v1097_v49, %v1096_v58 }
 0x1f0   : > { %v4824_v33 = vpop.trf.xlu1  ;;  %v4826_v34 = vpop.trf.xlu0 }
 0x1f4   : > { %v1044_v35 = vpop.trf.xlu1  ;;  %v1060_v36 = vpop.trf.xlu0 }
 0x1f5   : > { %v1102_v50 = vpack.i.b16 %v1044_v35, %v1028_v31  ;;  %v1105_v51 = vshrl.u32 %v1044_v35, 16  ;;  %v1112_v53 = vshrl.u32 %v1060_v36, 16 }
 0x1f7   : > { %v1106_v6 = vpack.i.b16 %v1105_v51, %v1104_v60 }
 0x1f8   : > { %v4828_v38 = vpop.trf.xlu1  ;;  %v4830_v39 = vpop.trf.xlu0 }
 0x1f9   : > { %v1134_v49 = vpack.i.b16 %v4828_v38, %v4826_v34  ;;  %v1137_v58 = vshrl.u32 %v4828_v38, 16  ;;  %v1144_v60 = vshrl.u32 %v4830_v39, 16 }
 0x1fc   : > { %v1076_v42 = vpop.trf.xlu1  ;;  %v980_v43 = vpop.trf.xlu0 }
 0x1fd   : > { %v1110_v44 = vpack.i.b16 %v1076_v42, %v1060_v36  ;;  %v1113_v45 = vshrl.u32 %v1076_v42, 16  ;;  %v1086_v46 = vpack.i.b16 %v980_v43, %v964_v25  ;;  %v1089_v47 = vshrl.u32 %v980_v43, 16 }
 0x1ff   : > { %v1164_v54 = vcombine.low %v1094_v40, %v1110_v44  ;;  %v1165_v55 = vcombine.high %v1094_v40, %v1110_v44  ;;  %v1148_v56 = vcombine.low %v1086_v46, %v1102_v50  ;;  %v1149_v57 = vcombine.high %v1086_v46, %v1102_v50 }
 0x200   : > { %v1114_v61 = vpack.i.b16 %v1113_v45, %v1112_v53  ;;  %v1090_v62 = vpack.i.b16 %v1089_v47, %v1088_v48  ;;  %v1077_v29 = vpop.trf.xlu1  ;;  %v981_v42 = vpop.trf.xlu0  ;;  %v1126_v48 = vpack.i.b16 %v4824_v33, %v4822_v28 }
 0x201   : > { %v1156_v63 = vrot.slane %v1148_v56, %v4797_v52  ;;  %v1172_v0 = vrot.slane %v1164_v54, %v4797_v52  ;;  %v1163_v1 = vrot.slane %v1149_v57, %v4797_v52  ;;  %v1179_v4 = vrot.slane %v1165_v55, %v4797_v52 }
 0x202   : > { %v1216_v10 = vcombine.low %v1090_v62, %v1106_v6  ;;  %v1232_v11 = vcombine.low %v1098_v5, %v1114_v61  ;;  %v1217_v14 = vcombine.high %v1090_v62, %v1106_v6  ;;  %v1233_v15 = vcombine.high %v1098_v5, %v1114_v61 }
 0x203   : > { %v1181_v7 = vcombine.high %v1156_v63, %v1172_v0  ;;  %v1180_v8 = vcombine.low %v1156_v63, %v1172_v0  ;;  %v1196_v9 = vcombine.low %v1163_v1, %v1179_v4  ;;  %v1197_v19 = vcombine.high %v1163_v1, %v1179_v4 }
 0x204   : > { %v1224_v16 = vrot.slane %v1216_v10, %v4797_v52  ;;  %v1240_v17 = vrot.slane %v1232_v11, %v4797_v52  ;;  %v1231_v25 = vrot.slane %v1217_v14, %v4797_v52  ;;  %v1247_v26 = vrot.slane %v1233_v15, %v4797_v52 }
 0x205   : > { %v1195_v12 = vrot.slane %v1181_v7, %v4800_v59  ;;  %v1188_v13 = vrot.slane %v1180_v8, %v4800_v59  ;;  %v1204_v18 = vrot.slane %v1196_v9, %v4800_v59  ;;  %v1211_v31 = vrot.slane %v1197_v19, %v4800_v59 }
 0x206   : > { %v1249_v21 = vcombine.high %v1224_v16, %v1240_v17  ;;  %v1248_v36 = vcombine.low %v1224_v16, %v1240_v17  ;;  %v1264_v40 = vcombine.low %v1231_v25, %v1247_v26  ;;  %v1142_v43 = vpack.i.b16 %v1077_v29, %v4830_v39 }
 0x207   : > { %1484 = vxpose.xlu1.c.b16.start.end [1/1] (short) (narrow) %v1195_v12, 16  ;;  %1420 = vxpose.xlu0.c.b16.start.end [1/1] (short) (narrow) %v1188_v13, 16  ;;  %v1212_v20 = vcombine.high %v1188_v13, %v4596_v3  ;;  %v1118_v44 = vpack.i.b16 %v981_v42, %v4820_v27  ;;  %v1265_v47 = vcombine.high %v1231_v25, %v1247_v26  ;;  %v1145_v50 = vshrl.u32 %v1077_v29, 16 }
 0x208   : > { %v1263_v35 = vrot.slane %v1249_v21, %v4800_v59  ;;  %v1256_v45 = vrot.slane %v1248_v36, %v4800_v59  ;;  %v1272_v46 = vrot.slane %v1264_v40, %v4800_v59  ;;  %v1121_v51 = vshrl.u32 %v981_v42, 16 }
 0x209   : > { %v1300_v53 = vcombine.low %v1126_v48, %v1142_v43  ;;  %v1284_v54 = vcombine.low %v1118_v44, %v1134_v49  ;;  %v1213_v55 = vcombine.high %v1195_v12, %v4596_v3  ;;  %v1279_v56 = vrot.slane %v1265_v47, %v4800_v59 }
 0x20a   : > { %v1120_v57 = vshrl.u32 %v4820_v27, 16  ;;  %v1129_v61 = vshrl.u32 %v4824_v33, 16  ;;  %v1128_v62 = vshrl.u32 %v4822_v28, 16  ;;  %v1136_v63 = vshrl.u32 %v4826_v34, 16 }
 0x20b   : > { %1548 = vxpose.xlu1.c.b16.start.end [1/1] (short) (narrow) %v1204_v18, 16  ;;  %1452 = vxpose.xlu0.c.b16.start.end [1/1] (short) (narrow) %v1212_v20, 16  ;;  %v1146_v0 = vpack.i.b16 %v1145_v50, %v1144_v60  ;;  %v1214_v4 = vcombine.high %v1204_v18, %v4596_v3  ;;  %v1280_v5 = vcombine.high %v1256_v45, %v4596_v3 }
 0x20c   : > { %v1122_v1 = vpack.i.b16 %v1121_v51, %v1120_v57  ;;  %v1292_v27 = vrot.slane %v1284_v54, %v4797_v52  ;;  %v1308_v38 = vrot.slane %v1300_v53, %v4797_v52  ;;  %v1138_v6 = vpack.i.b16 %v1137_v58, %v1136_v63 }
 0x20d   : > { %v1130_v39 = vpack.i.b16 %v1129_v61, %v1128_v62  ;;  %v1301_v33 = vcombine.high %v1126_v48, %v1142_v43  ;;  %v1285_v7 = vcombine.high %v1118_v44, %v1134_v49  ;;  %v1215_v28 = vcombine.high %v1211_v31, %v4596_v3 }
 0x20e   : > { %v1352_v8 = vcombine.low %v1122_v1, %v1138_v6  ;;  %v1281_v34 = vcombine.high %v1263_v35, %v4596_v3  ;;  %v1316_v9 = vcombine.low %v1292_v27, %v1308_v38  ;;  %v1282_v11 = vcombine.high %v1272_v46, %v4596_v3 }
 0x20f   : > { %1612 = vxpose.xlu1.c.b16.start.end [1/1] (short) (narrow) %v1211_v31, 16  ;;  %1500 = vxpose.xlu0.c.b16.start.end [1/1] (short) (narrow) %v1263_v35, 16  ;;  %v1368_v10 = vcombine.low %v1130_v39, %v1146_v0  ;;  %v1317_v12 = vcombine.high %v1292_v27, %v1308_v38  ;;  %v1299_v16 = vrot.slane %v1285_v7, %v4797_v52  ;;  %v511_v51 = vsub.s32 1, %v4771_v30 }
 0x210   : > { %v1360_v13 = vrot.slane %v1352_v8, %v4797_v52  ;;  %v1324_v14 = vrot.slane %v1316_v9, %v4800_v59  ;;  %v1315_v17 = vrot.slane %v1301_v33, %v4797_v52  ;;  %v1283_v18 = vcombine.high %v1279_v56, %v4596_v3 }
 0x211   : > { %v1376_v15 = vrot.slane %v1368_v10, %v4797_v52  ;;  %v1331_v19 = vrot.slane %v1317_v12, %v4800_v59  ;;  %v1353_v25 = vcombine.high %v1122_v1, %v1138_v6  ;;  %v1369_v26 = vcombine.high %v1130_v39, %v1146_v0 }
 0x212   : > { %v1332_v21 = vcombine.low %v1299_v16, %v1315_v17  ;;  %v1333_v31 = vcombine.high %v1299_v16, %v1315_v17  ;;  %v1348_v47 = vcombine.high %v1324_v14, %v4596_v3 }
 0x213   : > { %1436 = vxpose.xlu1.c.b16.start.end [1/1] (short) (narrow) %v1256_v45, 16  ;;  %1564 = vxpose.xlu0.c.b16.start.end [1/1] (short) (narrow) %v1272_v46, 16  ;;  %v1384_v20 = vcombine.low %v1360_v13, %v1376_v15  ;;  %v1385_v29 = vcombine.high %v1360_v13, %v1376_v15  ;;  %v1367_v40 = vrot.slane %v1353_v25, %v4797_v52 }
 0x214   : > { %v1340_v36 = vrot.slane %v1332_v21, %v4800_v59  ;;  %v1383_v42 = vrot.slane %v1369_v26, %v4797_v52  ;;  %v1347_v44 = vrot.slane %v1333_v31, %v4800_v59  ;;  %v1349_v50 = vcombine.high %v1331_v19, %v4596_v3 }
 0x215   : > { %v1392_v35 = vrot.slane %v1384_v20, %v4800_v59  ;;  %v1399_v43 = vrot.slane %v1385_v29, %v4800_v59 }
 0x216   : > { %v1400_v45 = vcombine.low %v1367_v40, %v1383_v42  ;;  %v1401_v48 = vcombine.high %v1367_v40, %v1383_v42  ;;  %v1350_v54 = vcombine.high %v1340_v36, %v4596_v3  ;;  %v1351_v57 = vcombine.high %v1347_v44, %v4596_v3 }
 0x217   : > { %1516 = vxpose.xlu1.c.b16.start.end [1/1] (short) (narrow) %v1213_v55, 16  ;;  %1628 = vxpose.xlu0.c.b16.start.end [1/1] (short) (narrow) %v1279_v56, 16  ;;  %v1416_v53 = vcombine.high %v1392_v35, %v4596_v3  ;;  %v512_v55 = vrot.slane %v4777_v32, %v511_v51  ;;  %v1417_v56 = vcombine.high %v1399_v43, %v4596_v3 }
 0x218   : > { %v1408_v46 = vrot.slane %v1400_v45, %v4800_v59  ;;  %v1415_v49 = vrot.slane %v1401_v48, %v4800_v59 }
 0x219   : > { %v4893_v58 = vadd.f32 %v4783_v37, %v512_v55 }
 0x21a   : > { %v1418_v60 = vcombine.high %v1408_v46, %v4596_v3  ;;  %v1419_v30 = vcombine.high %v1415_v49, %v4596_v3 }
 0x21b   : > { %1580 = vxpose.xlu1.c.b16.start.end [1/1] (short) (narrow) %v1214_v4, 16  ;;  %1468 = vxpose.xlu0.c.b16.start.end [1/1] (short) (narrow) %v1280_v5, 16 }
 0x21f   : > { %1644 = vxpose.xlu1.c.b16.start.end [1/1] (short) (narrow) %v1215_v28, 16  ;;  %1532 = vxpose.xlu0.c.b16.start.end [1/1] (short) (narrow) %v1281_v34, 16 }
 0x223   : > { %1596 = vxpose.xlu0.c.b16.start.end [1/1] (short) (narrow) %v1282_v11, 16  ;;  %1676 = vxpose.xlu1.c.b16.start.end [1/1] (short) (narrow) %v1324_v14, 16 }
 0x227   : > { %1660 = vxpose.xlu0.c.b16.start.end [1/1] (short) (narrow) %v1283_v18, 16  ;;  %1740 = vxpose.xlu1.c.b16.start.end [1/1] (short) (narrow) %v1331_v19, 16 }
 0x22b   : > { %1692 = vxpose.xlu0.c.b16.start.end [1/1] (short) (narrow) %v1392_v35, 16  ;;  %1804 = vxpose.xlu1.c.b16.start.end [1/1] (short) (narrow) %v1340_v36, 16 }
 0x22f   : > { %1756 = vxpose.xlu0.c.b16.start.end [1/1] (short) (narrow) %v1399_v43, 16  ;;  %1868 = vxpose.xlu1.c.b16.start.end [1/1] (short) (narrow) %v1347_v44, 16 }
 0x233   : > { %1820 = vxpose.xlu0.c.b16.start.end [1/1] (short) (narrow) %v1408_v46, 16  ;;  %1708 = vxpose.xlu1.c.b16.start.end [1/1] (short) (narrow) %v1348_v47, 16 }
 0x237   : > { %1884 = vxpose.xlu0.c.b16.start.end [1/1] (short) (narrow) %v1415_v49, 16  ;;  %1772 = vxpose.xlu1.c.b16.start.end [1/1] (short) (narrow) %v1349_v50, 16 }
 0x23b   : > { %1724 = vxpose.xlu0.c.b16.start.end [1/1] (short) (narrow) %v1416_v53, 16  ;;  %1836 = vxpose.xlu1.c.b16.start.end [1/1] (short) (narrow) %v1350_v54, 16  ;;  %v662_v53 = vcombine.low %v4818_v24, %v4816_v23  ;;  %v663_v54 = vcombine.high %v4818_v24, %v4816_v23 }
 0x23f   : > { %1788 = vxpose.xlu0.c.b16.start.end [1/1] (short) (narrow) %v1417_v56, 16  ;;  %1900 = vxpose.xlu1.c.b16.start.end [1/1] (short) (narrow) %v1351_v57, 16  ;;  %v646_v56 = vcombine.low %v4787_v41, %v4814_v22  ;;  %v647_v57 = vcombine.high %v4787_v41, %v4814_v22 }
 0x241   : > { %v654_v23 = vrot.slane %v646_v56, %v4797_v52  ;;  %v661_v24 = vrot.slane %v647_v57, %v4797_v52 }
 0x243   : > { %1852 = vxpose.xlu0.c.b16.start.end [1/1] (short) (narrow) %v1418_v60, 16  ;;  %809 = vrot.lane.b32.xlu1 %v4893_v58, %s4599_s23 }
 0x247   : > { %1916 = vxpose.xlu0.c.b16.start.end [1/1] (short) (narrow) %v1419_v30, 16  ;;  %815 = vrot.lane.b32.xlu1 %v4893_v58, %s4598_s22 }
 0x250   : > { %812 = vrot.lane.b32.xlu0 %v4893_v58, %s4600_s24 }
 0x26d   : > { %v1492_v32 = vpop.trf.xlu1  ;;  %v1428_v61 = vpop.trf.xlu0 }
 0x26e   : > { %v1932_v11 = vcombine.low %v1428_v61, %v1492_v32  ;;  %v670_v32 = vrot.slane %v662_v53, %v4797_v52  ;;  %v677_v61 = vrot.slane %v663_v54, %v4797_v52 }
 0x270   : > { %v1939_v20 = vrot.slane %v1932_v11, %v4797_v52 }
 0x271   : > { %v1556_v62 = vpop.trf.xlu1  ;;  %v1460_v37 = vpop.trf.xlu0 }
 0x275   : > { %v1620_v63 = vpop.trf.xlu1  ;;  %v1508_v0 = vpop.trf.xlu0 }
 0x276   : > { %v1948_v8 = vcombine.low %v1556_v62, %v1620_v63  ;;  %v678_v63 = vcombine.low %v654_v23, %v670_v32 }
 0x278   : > { %v1955_v14 = vrot.slane %v1948_v8, %v4797_v52 }
 0x279   : > { %v1444_v1 = vpop.trf.xlu1  ;;  %v1572_v4 = vpop.trf.xlu0 }
 0x27a   : > { %v1982_v12 = vcombine.low %v1444_v1, %v1508_v0  ;;  %v679_v0 = vcombine.high %v654_v23, %v670_v32  ;;  %v694_v1 = vcombine.low %v661_v24, %v677_v61 }
 0x27c   : > { %v1989_v21 = vrot.slane %v1982_v12, %v4797_v52 }
 0x27d   : > { %v1524_v5 = vpop.trf.xlu1  ;;  %v1636_v27 = vpop.trf.xlu0 }
 0x27e   : > { %v1940_v28 = vcombine.low %v1460_v37, %v1524_v5  ;;  %v1998_v16 = vcombine.low %v1572_v4, %v1636_v27  ;;  %v695_v4 = vcombine.high %v661_v24, %v677_v61  ;;  %v686_v5 = vrot.slane %v678_v63, %v4800_v59 }
 0x27f   : > { %v693_v27 = vrot.slane %v679_v0, %v4800_v59 }
 0x280   : > { %v1947_v15 = vrot.slane %v1940_v28, %v4797_v52  ;;  %v2005_v31 = vrot.slane %v1998_v16, %v4797_v52  ;;  %v710_v8 = vcombine.high %v686_v5, %v4595_v2 }
 0x281   : > { %v1588_v38 = vpop.trf.xlu1  ;;  %v1476_v6 = vpop.trf.xlu0  ;;  %v711_v28 = vcombine.high %v693_v27, %v4595_v2 }
 0x282   : > { %v1964_v29 = vcombine.low %v1939_v20, %v1947_v15 }
 0x284   : > { %v4919_v45 = vrot.slane %v1964_v29, %v4800_v59 }
 0x285   : > { %v1652_v39 = vpop.trf.xlu1  ;;  %v1540_v33 = vpop.trf.xlu0 }
 0x286   : > { %v1956_v7 = vcombine.low %v1588_v38, %v1652_v39  ;;  %v1990_v34 = vcombine.low %v1476_v6, %v1540_v33  ;;  %v702_v38 = vrot.slane %v694_v1, %v4800_v59  ;;  %v709_v6 = vrot.slane %v695_v4, %v4800_v59 }
 0x288   : > { %v1963_v13 = vrot.slane %v1956_v7, %v4797_v52  ;;  %v1997_v17 = vrot.slane %v1990_v34, %v4797_v52  ;;  %v712_v34 = vcombine.high %v702_v38, %v4595_v2 }
 0x289   : > { %v4903_v9 = vpop.trf.xlu1  ;;  %v1604_v10 = vpop.trf.xlu0 }
 0x28a   : > { %v1972_v25 = vcombine.low %v1955_v14, %v1963_v13  ;;  %v2014_v35 = vcombine.low %v1989_v21, %v1997_v17 }
 0x28c   : > { %v4916_v43 = vrot.slane %v1972_v25, %v4800_v59  ;;  %v4922_v46 = vrot.slane %v2014_v35, %v4800_v59  ;;  %v4340_v35 = vpack.c.bf16 %v709_v6, %v693_v27 }
 0x28d   : > { %v4909_v18 = vpop.trf.xlu1  ;;  %v1668_v19 = vpop.trf.xlu0 }
 0x28e   : > { %v2006_v26 = vcombine.low %v1604_v10, %v1668_v19  ;;  %v4929_v50 = vcombine.low %v4919_v45, %v4916_v43  ;;  %v713_v10 = vcombine.high %v709_v6, %v4595_v2  ;;  %v2032_v15 = vcombine.low %v4903_v9, %v4909_v18 }
 0x28f   : > { %v4341_v19 = vpack.c.bf16 %v712_v34, %v710_v8  ;;  %v909_v57 = vrot.slane %v4340_v35, %v4797_v52  ;;  %v1981_v34 = vcombine.high %v4919_v45, %v4916_v43 }
 0x290   : > { %v2013_v36 = vrot.slane %v2006_v26, %v4797_v52  ;;  %v4342_v20 = vpack.c.bf16 %v713_v10, %v711_v28 }
 0x291   : > { %v1812_v40 = vpop.trf.xlu1  ;;  %v1700_v42 = vpop.trf.xlu0 }
 0x292   : > { %v2022_v44 = vcombine.low %v2005_v31, %v2013_v36  ;;  %v4339_v31 = vpack.c.bf16 %v702_v38, %v686_v5  ;;  %v2136_v5 = vshrl.u32 %v4929_v50, 16 }
 0x294   : > { %v4925_v47 = vrot.slane %v2022_v44, %v4800_v59  ;;  %v901_v56 = vrot.slane %v4339_v31, %v4797_v52  ;;  %v2144_v31 = vshrl.u32 %v1981_v34, 16 }
 0x295   : > { %v1876_v48 = vpop.trf.xlu1  ;;  %v1764_v49 = vpop.trf.xlu0 }
 0x296   : > { %v4933_v51 = vcombine.low %v4922_v46, %v4925_v47  ;;  %v2048_v11 = vcombine.low %v1812_v40, %v1876_v48  ;;  %v2082_v16 = vcombine.low %v1700_v42, %v1764_v49  ;;  %v2039_v40 = vrot.slane %v2032_v15, %v4797_v52 }
 0x297   : > { %v926_v42 = vrot.slane %v4341_v19, %v4797_v52  ;;  %v934_v48 = vrot.slane %v4342_v20, %v4797_v52 }
 0x298   : > { %v2134_v55 = vpack.i.b16 %v4933_v51, %v4929_v50  ;;  %v2055_v21 = vrot.slane %v2048_v11, %v4797_v52  ;;  %v2089_v44 = vrot.slane %v2082_v16, %v4797_v52 }
 0x299   : > { %v1716_v60 = vpop.trf.xlu1  ;;  %v1828_v30 = vpop.trf.xlu0  ;;  %v935_v32 = vcombine.low %v926_v42, %v934_v48 }
 0x29a   : > { %4433 = vmatpush3.bf16.msra.mxu1 %v2134_v55 }
 0x29b   : > { %4434 = vmatprep.subr.bf16.mxu1 %v4595_v2  ;;  %v942_v0 = vrot.slane %v935_v32, %v4800_v59 }
 0x29d   : > { %v1780_v62 = vpop.trf.xlu1  ;;  %v1892_v37 = vpop.trf.xlu0  ;;  %v943_v45 = vcombine.high %v942_v0, %v4596_v3 }
 0x29e   : > { %v2040_v12 = vcombine.low %v1716_v60, %v1780_v62  ;;  %v2098_v26 = vcombine.low %v1828_v30, %v1892_v37  ;;  %v910_v62 = vcombine.low %v901_v56, %v909_v57 }
 0x2a0   : > { %v2047_v25 = vrot.slane %v2040_v12, %v4797_v52  ;;  %v2105_v53 = vrot.slane %v2098_v26, %v4797_v52 }
 0x2a1   : > { %v1844_v41 = vpop.trf.xlu1  ;;  %v1732_v22 = vpop.trf.xlu0 }
 0x2a2   : > { %v2064_v49 = vcombine.low %v2039_v40, %v2047_v25 }
 0x2a4   : > { %v2071_v61 = vrot.slane %v2064_v49, %v4800_v59 }
 0x2a5   : > { %v1908_v39 = vpop.trf.xlu1  ;;  %v1796_v33 = vpop.trf.xlu0 }
 0x2a6   : > { %v2056_v7 = vcombine.low %v1844_v41, %v1908_v39  ;;  %v2090_v13 = vcombine.low %v1732_v22, %v1796_v33  ;;  %v2137_v41 = vshrl.u32 %v4933_v51, 16  ;;  %v917_v22 = vrot.slane %v910_v62, %v4800_v59 }
 0x2a7   : > { %v948_v51 = vshrl.u32 %v942_v0, 16 }
 0x2a8   : > { %v2063_v17 = vrot.slane %v2056_v7, %v4797_v52  ;;  %v2097_v29 = vrot.slane %v2090_v13, %v4797_v52  ;;  %v946_v27 = vpack.i.b16 %v942_v0, %v917_v22  ;;  %v2138_v38 = vpack.i.b16 %v2137_v41, %v2136_v5 }
 0x2a9   : > { %v1860_v14 = vpop.trf.xlu0  ;;  %v2031_v7 = vcombine.high %v4922_v46, %v4925_v47  ;;  %v947_v28 = vshrl.u32 %v917_v22, 16  ;;  %v918_v26 = vcombine.high %v917_v22, %v4596_v3 }
 0x2aa   : > { %v2072_v9 = vcombine.low %v2055_v21, %v2063_v17  ;;  %v2114_v54 = vcombine.low %v2089_v44, %v2097_v29 }
 0x2ab   : > { %v949_v13 = vpack.i.b16 %v948_v51, %v947_v28  ;;  %v2142_v15 = vpack.i.b16 %v2031_v7, %v1981_v34  ;;  %v2145_v21 = vshrl.u32 %v2031_v7, 16 }
 0x2ac   : > { %v2079_v60 = vrot.slane %v2072_v9, %v4800_v59  ;;  %v2121_v23 = vrot.slane %v2114_v54, %v4800_v59  ;;  %v954_v54 = vshrl.u32 %v943_v45, 16 }
 0x2ad   : > { %v1924_v36 = vpop.trf.xlu0 }
 0x2ae   : > { %v2106_v18 = vcombine.low %v1860_v14, %v1924_v36  ;;  %v2080_v37 = vcombine.low %v2071_v61, %v2079_v60  ;;  %v2081_v17 = vcombine.high %v2071_v61, %v2079_v60  ;;  %v952_v36 = vpack.i.b16 %v943_v45, %v918_v26 }
 0x2b0   : > { %v2113_v55 = vrot.slane %v2106_v18, %v4797_v52  ;;  %v2152_v33 = vshrl.u32 %v2080_v37, 16  ;;  %v2146_v18 = vpack.i.b16 %v2145_v21, %v2144_v31  ;;  %v2160_v49 = vshrl.u32 %v2081_v17, 16 }
 0x2b2   : > { %v2122_v30 = vcombine.low %v2105_v53, %v2113_v55 }
 0x2b4   : > { %v2129_v24 = vrot.slane %v2122_v30, %v4800_v59  ;;  %v953_v30 = vshrl.u32 %v918_v26, 16 }
 0x2b5   : > { %v810_v1 = vpop.permute.xlu1 %809 }
 0x2b6   : > { %v2130_v63 = vcombine.low %v2121_v23, %v2129_v24  ;;  %v2131_v14 = vcombine.high %v2121_v23, %v2129_v24  ;;  %v955_v61 = vpack.i.b16 %v954_v54, %v953_v30 }
 0x2b8   : > { %v2150_v4 = vpack.i.b16 %v2130_v63, %v2080_v37  ;;  %v2153_v6 = vshrl.u32 %v2130_v63, 16  ;;  %v2158_v20 = vpack.i.b16 %v2131_v14, %v2081_v17  ;;  %v2161_v42 = vshrl.u32 %v2131_v14, 16 }
 0x2b9   : > { %v816_v39 = vpop.permute.xlu1 %815 }
 0x2ba   : > { %4435 = vmatpush3.bf16.msra.mxu1 %v2150_v4  ;;  %v2154_v50 = vpack.i.b16 %v2153_v6, %v2152_v33  ;;  %v834_v8 = vcombine.low %v810_v1, %v816_v39  ;;  %v835_v16 = vcombine.high %v810_v1, %v816_v39  ;;  %v2162_v56 = vpack.i.b16 %v2161_v42, %v2160_v49 }
 0x2bb   : > { %4440 = vmatprep.subr.bf16.mxu1 %v4595_v2 }
 0x2bc   : > { %v842_v46 = vrot.slane %v834_v8, %v4797_v52  ;;  %v849_v25 = vrot.slane %v835_v16, %v4797_v52 }
 0x2bd   : > { %4437 = vmatmul.mubr.msk.bf16.vlgmr.msra.gmra.mrb[4].mxu1 %vm2164_vm1, %v946_v27 }
 0x2be   : > { %4441 = vmatpush3.bf16.msra.mxu1 %v2138_v38  ;;  %4444 = vmatprep.mubr.msk.bf16.mxu1 %vm4597_vm0, %v4595_v2 }
 0x2bf   : > { %4442 = vmatprep.subr.bf16.mxu1 %v4595_v2 }
 0x2c2   : > { %4443 = vmatpush3.bf16.msra.mxu1 %v2154_v50  ;;  %v813_v10 = vpop.permute.xlu0 %812 }
 0x2c3   : > { %v818_v11 = vcombine.low %v4893_v58, %v813_v10  ;;  %v819_v12 = vcombine.high %v4893_v58, %v813_v10  ;;  %4448 = vmatprep.subr.bf16.mxu1 %v4595_v2 }
 0x2c5   : > { %v826_v47 = vrot.slane %v818_v11, %v4797_v52  ;;  %4445 = vmatmul.mubr.msk.bf16.vlgmr.msra.gmra.mrb[8].mxu1 %vm2164_vm1, %v949_v13  ;;  %v833_v43 = vrot.slane %v819_v12, %v4797_v52 }
 0x2c6   : > { %4449 = vmatpush3.bf16.msra.mxu1 %v2142_v15  ;;  %4452 = vmatprep.mubr.msk.bf16.mxu1 %vm4597_vm0, %v4595_v2 }
 0x2c7   : > { %v850_v58 = vcombine.low %v826_v47, %v842_v46  ;;  %4450 = vmatprep.subr.bf16.mxu1 %v4595_v2  ;;  %v851_v19 = vcombine.high %v826_v47, %v842_v46  ;;  %v866_v9 = vcombine.low %v833_v43, %v849_v25  ;;  %v867_v60 = vcombine.high %v833_v43, %v849_v25 }
 0x2c9   : > { %v858_v29 = vrot.slane %v850_v58, %v4800_v59  ;;  %v865_v35 = vrot.slane %v851_v19, %v4800_v59  ;;  %v874_v55 = vrot.slane %v866_v9, %v4800_v59  ;;  %v881_v24 = vrot.slane %v867_v60, %v4800_v59 }
 0x2ca   : > { %4451 = vmatpush3.bf16.msra.mxu1 %v2158_v20 }
 0x2cb   : > { %4456 = vmatprep.subr.bf16.mxu1 %v4595_v2  ;;  %v886_v40 = vpack.c.bf16 %v858_v29, %v858_v29  ;;  %v882_v44 = vcombine.high %v858_v29, %v4595_v2  ;;  %v883_v53 = vcombine.high %v865_v35, %v4595_v2  ;;  %v888_v57 = vpack.c.bf16 %v865_v35, %v865_v35 }
 0x2cc   : > { %v884_v23 = vcombine.high %v874_v55, %v4595_v2  ;;  %v890_v62 = vpack.c.bf16 %v874_v55, %v874_v55  ;;  %v885_v63 = vcombine.high %v881_v24, %v4595_v2  ;;  %v892_v0 = vpack.c.bf16 %v881_v24, %v881_v24 }
 0x2cd   : > { %4453 = vmatmul.mubr.msk.bf16.vlgmr.msra.gmra.mrb[12].mxu1 %vm2164_vm1, %v952_v36  ;;  %2386 = vxpose.xlu0.c.b16.start.end [1/1] (short) (narrow) %v886_v40, 32  ;;  %v887_v48 = vpack.c.bf16 %v882_v44, %v882_v44  ;;  %v889_v32 = vpack.c.bf16 %v883_v53, %v883_v53 }
 0x2ce   : > { %4457 = vmatpush3.bf16.msra.mxu1 %v2146_v18  ;;  %4460 = vmatprep.mubr.msk.bf16.mxu1 %vm4597_vm0, %v4595_v2  ;;  %v891_v37 = vpack.c.bf16 %v884_v23, %v884_v23  ;;  %v893_v1 = vpack.c.bf16 %v885_v63, %v885_v63 }
 0x2cf   : > { %2402 = vxpose.xlu1.c.b16.start.end [1/1] (short) (narrow) %v887_v48, 32  ;;  %4458 = vmatprep.subr.bf16.mxu1 %v4595_v2 }
 0x2d2   : > { %4459 = vmatpush3.bf16.msra.mxu1 %v2162_v56  ;;  %2418 = vxpose.xlu0.c.b16.start.end [1/1] (short) (narrow) %v888_v57, 32 }
 0x2d4   : > { %2434 = vxpose.xlu1.c.b16.start.end [1/1] (short) (narrow) %v889_v32, 32 }
 0x2d5   : > { %4461 = vmatmul.mubr.msk.bf16.vlgmr.msra.gmra.mrb[16].mxu1 %vm2164_vm1, %v955_v61 }
 0x2d7   : > { %2450 = vxpose.xlu0.c.b16.start.end [1/1] (short) (narrow) %v890_v62, 32 }
 0x2d9   : > { %2466 = vxpose.xlu1.c.b16.start.end [1/1] (short) (narrow) %v891_v37, 32 }
 0x2dc   : > { %2482 = vxpose.xlu0.c.b16.start.end [1/1] (short) (narrow) %v892_v0, 32 }
 0x2de   : > { %2498 = vxpose.xlu1.c.b16.start.end [1/1] (short) (narrow) %v893_v1, 32 }
 0x333   : > { %v2394_v4 = vpop.trf.xlu0 }
 0x334   : > { %v2518_v28 = vshrl.u32 %v2394_v4, 16 }
 0x335   : > { %v2410_v41 = vpop.trf.xlu1 }
 0x336   : > { %v2519_v34 = vshrl.u32 %v2410_v41, 16  ;;  %v5018_v12 = vpack.i.b16 %v2410_v41, %v2394_v4 }
 0x337   : > { %v2395_v22 = vpop.trf.xlu0 }
 0x338   : > { %v2550_v7 = vshrl.u32 %v2395_v22, 16  ;;  %v5022_v19 = vpack.i.b16 %v2519_v34, %v2518_v28 }
 0x339   : > { %v2411_v5 = vpop.trf.xlu1 }
 0x33a   : > { %v2551_v50 = vshrl.u32 %v2411_v5, 16  ;;  %v5016_v10 = vpack.i.b16 %v2411_v5, %v2395_v22 }
 0x33b   : > { %v2426_v27 = vpop.trf.xlu0 }
 0x33c   : > { %v2552_v16 = vpack.i.b16 %v2551_v50, %v2550_v7  ;;  %v2526_v43 = vshrl.u32 %v2426_v27, 16 }
 0x33d   : > { %v2442_v38 = vpop.trf.xlu1 }
 0x33e   : > { %v2527_v58 = vshrl.u32 %v2442_v38, 16  ;;  %v2524_v20 = vpack.i.b16 %v2442_v38, %v2426_v27 }
 0x33f   : > { %v2427_v6 = vpop.trf.xlu0 }
 0x340   : > { %v2558_v26 = vshrl.u32 %v2427_v6, 16  ;;  %v2528_v18 = vpack.i.b16 %v2527_v58, %v2526_v43 }
 0x341   : > { %v2443_v39 = vpop.trf.xlu1 }
 0x342   : > { %v2559_v29 = vshrl.u32 %v2443_v39, 16  ;;  %v2556_v49 = vpack.i.b16 %v2443_v39, %v2427_v6 }
 0x343   : > { %v2458_v33 = vpop.trf.xlu0 }
 0x344   : > { %v2534_v13 = vshrl.u32 %v2458_v33, 16  ;;  %v2560_v55 = vpack.i.b16 %v2559_v29, %v2558_v26 }
 0x345   : > { %v2474_v51 = vpop.trf.xlu1 }
 0x346   : > { %v2535_v14 = vshrl.u32 %v2474_v51, 16  ;;  %v5020_v46 = vpack.i.b16 %v2474_v51, %v2458_v33 }
 0x347   : > { %v2459_v8 = vpop.trf.xlu0 }
 0x348   : > { %v2566_v11 = vshrl.u32 %v2459_v8, 16  ;;  %v5025_v31 = vpack.i.b16 %v2535_v14, %v2534_v13  ;;  %v2578_v40 = vcombine.low %v5018_v12, %v5020_v46 }
 0x349   : > { %v2475_v15 = vpop.trf.xlu1 }
 0x34a   : > { %v2564_v47 = vpack.i.b16 %v2475_v15, %v2459_v8  ;;  %v2567_v17 = vshrl.u32 %v2475_v15, 16  ;;  %v2646_v56 = vcombine.low %v5022_v19, %v5025_v31  ;;  %v2586_v61 = vrot.slane %v2578_v40, %v4797_v52 }
 0x34b   : > { %v2490_v45 = vpop.trf.xlu0  ;;  %v2579_v15 = vcombine.high %v5018_v12, %v5020_v46 }
 0x34c   : > { %v2568_v21 = vpack.i.b16 %v2567_v17, %v2566_v11  ;;  %v2715_v25 = vcombine.high %v5016_v10, %v2564_v47  ;;  %v2542_v35 = vshrl.u32 %v2490_v45, 16  ;;  %v2654_v0 = vrot.slane %v2646_v56, %v4797_v52 }
 0x34d   : > { %v2506_v36 = vpop.trf.xlu1  ;;  %v2714_v5 = vcombine.low %v5016_v10, %v2564_v47  ;;  %v2593_v26 = vrot.slane %v2579_v15, %v4797_v52 }
 0x34e   : > { %v2783_v44 = vcombine.high %v2552_v16, %v2568_v21  ;;  %v2540_v9 = vpack.i.b16 %v2506_v36, %v2490_v45  ;;  %v2543_v42 = vshrl.u32 %v2506_v36, 16  ;;  %v2782_v27 = vcombine.low %v2552_v16, %v2568_v21 }
 0x34f   : > { %v2491_v48 = vpop.trf.xlu0  ;;  %v5052_v10 = vrot.slane %v2714_v5, %v4797_v52  ;;  %v5065_v16 = vrot.slane %v2715_v25, %v4797_v52  ;;  %v2647_v25 = vcombine.high %v5022_v19, %v5025_v31 }
 0x350   : > { %v2594_v53 = vcombine.low %v2524_v20, %v2540_v9  ;;  %v2574_v54 = vshrl.u32 %v2491_v48, 16  ;;  %v2544_v57 = vpack.i.b16 %v2543_v42, %v2542_v35  ;;  %v5041_v33 = vrot.slane %v2783_v44, %v4797_v52 }
 0x351   : > { %v2507_v60 = vpop.trf.xlu1  ;;  %v2595_v51 = vcombine.high %v2524_v20, %v2540_v9  ;;  %v5055_v11 = vrot.slane %v2782_v27, %v4797_v52  ;;  %v2661_v9 = vrot.slane %v2647_v25, %v4797_v52 }
 0x352   : > { %v2572_v30 = vpack.i.b16 %v2507_v60, %v2491_v48  ;;  %v2575_v32 = vshrl.u32 %v2507_v60, 16  ;;  %v2602_v23 = vrot.slane %v2594_v53, %v4797_v52  ;;  %v2662_v24 = vcombine.low %v2528_v18, %v2544_v57 }
 0x353   : > { %v2663_v47 = vcombine.high %v2528_v18, %v2544_v57  ;;  %v2609_v21 = vrot.slane %v2595_v51, %v4797_v52 }
 0x354   : > { %v2576_v62 = vpack.i.b16 %v2575_v32, %v2574_v54  ;;  %v2731_v37 = vcombine.high %v2556_v49, %v2572_v30  ;;  %v2610_v63 = vcombine.low %v2586_v61, %v2602_v23  ;;  %v2670_v1 = vrot.slane %v2662_v24, %v4797_v52 }
 0x355   : > { %v2730_v4 = vcombine.low %v2556_v49, %v2572_v30  ;;  %v2611_v28 = vcombine.high %v2586_v61, %v2602_v23  ;;  %v2677_v36 = vrot.slane %v2663_v47, %v4797_v52  ;;  %v2626_v44 = vcombine.low %v2593_v26, %v2609_v21 }
 0x356   : > { %v2799_v41 = vcombine.high %v2560_v55, %v2576_v62  ;;  %v2618_v22 = vrot.slane %v2610_v63, %v4800_v59  ;;  %v2798_v38 = vcombine.low %v2560_v55, %v2576_v62  ;;  %v2678_v6 = vcombine.low %v2654_v0, %v2670_v1 }
 0x357   : > { %v5045_v50 = vrot.slane %v2731_v37, %v4797_v52  ;;  %v5049_v34 = vrot.slane %v2730_v4, %v4797_v52  ;;  %v2679_v43 = vcombine.high %v2654_v0, %v2670_v1  ;;  %v2625_v20 = vrot.slane %v2611_v28, %v4800_v59 }
 0x358   : > { %v5038_v39 = vrot.slane %v2799_v41, %v4797_v52  ;;  %2850 = vxpose.xlu0.c.b16.start.end [1/1] (short) (narrow) %v2618_v22, 16  ;;  %v2686_v7 = vrot.slane %v2678_v6, %v4800_v59  ;;  %v2642_v8 = vcombine.high %v2618_v22, %v4596_v3  ;;  %v5058_v13 = vrot.slane %v2798_v38, %v4797_v52 }
 0x359   : > { %v2747_v58 = vcombine.high %v5052_v10, %v5049_v34  ;;  %v2762_v46 = vcombine.low %v5065_v16, %v5045_v50  ;;  %v2763_v29 = vcombine.high %v5065_v16, %v5045_v50  ;;  %v2693_v35 = vrot.slane %v2679_v43, %v4800_v59 }
 0x35a   : > { %2866 = vxpose.xlu1.c.b16.start.end [1/1] (short) (narrow) %v2686_v7, 16  ;;  %v2830_v14 = vcombine.low %v5041_v33, %v5038_v39  ;;  %v2710_v17 = vcombine.high %v2686_v7, %v4596_v3  ;;  %v2815_v45 = vcombine.high %v5055_v11, %v5058_v13  ;;  %v2831_v12 = vcombine.high %v5041_v33, %v5038_v39 }
 0x35b   : > { %v2643_v40 = vcombine.high %v2625_v20, %v4596_v3  ;;  %v2711_v19 = vcombine.high %v2693_v35, %v4596_v3  ;;  %v2694_v31 = vcombine.low %v2661_v9, %v2677_v36  ;;  %v2634_v18 = vrot.slane %v2626_v44, %v4800_v59 }
 0x35c   : > { %2882 = vxpose.xlu0.c.b16.start.end [1/1] (short) (narrow) %v2642_v8, 16  ;;  %v2627_v49 = vcombine.high %v2593_v26, %v2609_v21  ;;  %v2695_v54 = vcombine.high %v2661_v9, %v2677_v36  ;;  %v2746_v60 = vcombine.low %v5052_v10, %v5049_v34  ;;  %v2814_v32 = vcombine.low %v5055_v11, %v5058_v13 }
 0x35d   : > { %v2702_v42 = vrot.slane %v2694_v31, %v4800_v59  ;;  %v2644_v48 = vcombine.high %v2634_v18, %v4596_v3  ;;  %v2845_v13 = vrot.slane %v2831_v12, %v4800_v59  ;;  %v2777_v10 = vrot.slane %v2763_v29, %v4800_v59 }
 0x35e   : > { %2898 = vxpose.xlu1.c.b16.start.end [1/1] (short) (narrow) %v2710_v17, 16  ;;  %v2641_v55 = vrot.slane %v2627_v49, %v4800_v59  ;;  %v2709_v56 = vrot.slane %v2695_v54, %v4800_v59  ;;  %v2754_v61 = vrot.slane %v2746_v60, %v4800_v59  ;;  %v2822_v23 = vrot.slane %v2814_v32, %v4800_v59 }
 0x35f   : > { %v2712_v53 = vcombine.high %v2702_v42, %v4596_v3 }
 0x360   : > { %2914 = vxpose.xlu0.c.b16.start.end [1/1] (short) (narrow) %v2625_v20, 16  ;;  %v2645_v57 = vcombine.high %v2641_v55, %v4596_v3  ;;  %v2713_v30 = vcombine.high %v2709_v56, %v4596_v3  ;;  %v2846_v47 = vcombine.high %v2822_v23, %v4596_v3  ;;  %v2778_v21 = vcombine.high %v2754_v61, %v4596_v3 }
 0x362   : > { %2930 = vxpose.xlu1.c.b16.start.end [1/1] (short) (narrow) %v2693_v35, 16 }
 0x364   : > { %2946 = vxpose.xlu0.c.b16.start.end [1/1] (short) (narrow) %v2643_v40, 16 }
 0x366   : > { %2962 = vxpose.xlu1.c.b16.start.end [1/1] (short) (narrow) %v2711_v19, 16 }
 0x368   : > { %2978 = vxpose.xlu0.c.b16.start.end [1/1] (short) (narrow) %v2634_v18, 16 }
 0x36a   : > { %2994 = vxpose.xlu1.c.b16.start.end [1/1] (short) (narrow) %v2702_v42, 16 }
 0x36c   : > { %3010 = vxpose.xlu0.c.b16.start.end [1/1] (short) (narrow) %v2644_v48, 16 }
 0x36e   : > { %3026 = vxpose.xlu1.c.b16.start.end [1/1] (short) (narrow) %v2712_v53, 16 }
 0x370   : > { %3042 = vxpose.xlu0.c.b16.start.end [1/1] (short) (narrow) %v2641_v55, 16 }
 0x372   : > { %3058 = vxpose.xlu1.c.b16.start.end [1/1] (short) (narrow) %v2709_v56, 16 }
 0x374   : > { %3074 = vxpose.xlu0.c.b16.start.end [1/1] (short) (narrow) %v2645_v57, 16 }
 0x376   : > { %3090 = vxpose.xlu1.c.b16.start.end [1/1] (short) (narrow) %v2713_v30, 16 }
 0x378   : > { %3106 = vxpose.xlu0.c.b16.start.end [1/1] (short) (narrow) %v2754_v61, 16 }
 0x37a   : > { %3122 = vxpose.xlu1.c.b16.start.end [1/1] (short) (narrow) %v2822_v23, 16 }
 0x390   : > { %v5102_v24 = vpop.f32.mrb[4].mxu1 }
 0x391   : > { %v4438_v62 = vpop.f32.mrb[5].mxu1  ;;  %v2338_v37 = vsel %vm2337_vm2, %v5102_v24, -inf }
 0x392   : > { %v2205_v63 = vpop.f32.mrb[6].mxu1  ;;  %2339 = vmax.xlane.f32.xlu1 %v2338_v37 }
 0x393   : > { %v4439_v0 = vpop.f32.mrb[7].mxu1 }
 0x398   : > { %v5106_v1 = vpop.f32.mrb[8].mxu1 }
 0x399   : > { %v4446_v4 = vpop.f32.mrb[9].mxu1  ;;  %v2341_v41 = vsel %vm2337_vm2, %v5106_v1, -inf }
 0x39a   : > { %v2248_v22 = vpop.f32.mrb[10].mxu1  ;;  %2342 = vmax.xlane.f32.xlu0 %v2341_v41 }
 0x39b   : > { %v4447_v5 = vpop.f32.mrb[11].mxu1 }
 0x3a0   : > { %v5110_v27 = vpop.f32.mrb[12].mxu1 }
 0x3a1   : > { %v4454_v38 = vpop.f32.mrb[13].mxu1  ;;  %v2344_v40 = vsel %vm2337_vm2, %v5110_v27, -inf }
 0x3a2   : > { %v2291_v6 = vpop.f32.mrb[14].mxu1 }
 0x3a3   : > { %v4455_v51 = vpop.f32.mrb[15].mxu1 }
 0x3a8   : > { %v5112_v7 = vpop.f32.mrb[16].mxu1 }
 0x3a9   : > { %v4462_v8 = vpop.f32.mrb[17].mxu1  ;;  %v2347_v18 = vsel %vm2337_vm2, %v5112_v7, -inf }
 0x3aa   : > { %v2334_v28 = vpop.f32.mrb[18].mxu1 }
 0x3ab   : > { %v4463_v15 = vpop.f32.mrb[19].mxu1 }
 0x3be   : > { %v2858_v17 = vpop.trf.xlu0 }
 0x3bf   : > { %3154 = vxpose.xlu1.c.b16.start.end [1/1] (short) (narrow) %v2846_v47, 16 }
 0x3c0   : > { %v2874_v43 = vpop.trf.xlu1 }
 0x3c2   : > { %v2890_v20 = vpop.trf.xlu0 }
 0x3c4   : > { %v2906_v25 = vpop.trf.xlu1 }
 0x3c6   : > { %v2922_v26 = vpop.trf.xlu0 }
 0x3c7   : > { %3138 = vxpose.xlu0.c.b16.start.end [1/1] (short) (narrow) %v2778_v21, 16  ;;  %v3362_v42 = vcombine.low %v2858_v17, %v2922_v26 }
 0x3c8   : > { %v2938_v35 = vpop.trf.xlu1 }
 0x3c9   : > { %v3412_v53 = vcombine.low %v2874_v43, %v2938_v35  ;;  %v3369_v56 = vrot.slane %v3362_v42, %v4797_v52 }
 0x3ca   : > { %v2954_v36 = vpop.trf.xlu0 }
 0x3cb   : > { %v3370_v48 = vcombine.low %v2890_v20, %v2954_v36  ;;  %v3419_v32 = vrot.slane %v3412_v53, %v4797_v52 }
 0x3cc   : > { %2345 = vmax.xlane.f32.xlu1 %v2344_v40  ;;  %v2970_v44 = vpop.trf.xlu1 }
 0x3cd   : > { %v3420_v54 = vcombine.low %v2906_v25, %v2970_v44  ;;  %v3377_v57 = vrot.slane %v3370_v48, %v4797_v52  ;;  %v2838_v48 = vrot.slane %v2830_v14, %v4800_v59  ;;  %v2770_v14 = vrot.slane %v2762_v46, %v4800_v59 }
 0x3ce   : > { %v2986_v9 = vpop.trf.xlu0 }
 0x3cf   : > { %v3427_v61 = vrot.slane %v3420_v54, %v4797_v52  ;;  %v3394_v37 = vcombine.low %v3369_v56, %v3377_v57  ;;  %v2848_v53 = vcombine.high %v2838_v48, %v4596_v3  ;;  %v2780_v34 = vcombine.high %v2770_v14, %v4596_v3 }
 0x3d0   : > { %v3002_v19 = vpop.trf.xlu1 }
 0x3d1   : > { %v3444_v22 = vcombine.low %v3419_v32, %v3427_v61  ;;  %v3401_v6 = vrot.slane %v3394_v37, %v4800_v59 }
 0x3d2   : > { %v3018_v31 = vpop.trf.xlu0 }
 0x3d3   : > { %v3451_v15 = vrot.slane %v3444_v22, %v4800_v59 }
 0x3d4   : > { %2348 = vmax.xlane.f32.xlu0 %v2347_v18  ;;  %v3034_v49 = vpop.trf.xlu1  ;;  %v2829_v18 = vrot.slane %v2815_v45, %v4800_v59 }
 0x3d6   : > { %v3050_v55 = vpop.trf.xlu0  ;;  %v2847_v42 = vcombine.high %v2829_v18, %v4596_v3 }
 0x3d7   : > { %v3378_v60 = vcombine.low %v2986_v9, %v3050_v55 }
 0x3d8   : > { %v3066_v30 = vpop.trf.xlu1 }
 0x3d9   : > { %v3428_v23 = vcombine.low %v3002_v19, %v3066_v30  ;;  %v3385_v63 = vrot.slane %v3378_v60, %v4797_v52 }
 0x3da   : > { %v3082_v62 = vpop.trf.xlu0 }
 0x3db   : > { %v3386_v0 = vcombine.low %v3018_v31, %v3082_v62  ;;  %v3435_v5 = vrot.slane %v3428_v23, %v4797_v52 }
 0x3dc   : > { %v3098_v4 = vpop.trf.xlu1 }
 0x3dd   : > { %v3393_v41 = vrot.slane %v3386_v0, %v4797_v52  ;;  %v3436_v38 = vcombine.low %v3034_v49, %v3098_v4  ;;  %v2761_v49 = vrot.slane %v2747_v58, %v4800_v59 }
 0x3de   : > { %v3114_v33 = vpop.trf.xlu0 }
 0x3df   : > { %v3402_v51 = vcombine.low %v3385_v63, %v3393_v41  ;;  %v3443_v8 = vrot.slane %v3436_v38, %v4797_v52  ;;  %v2779_v11 = vcombine.high %v2761_v49, %v4596_v3 }
 0x3e0   : > { %v3130_v58 = vpop.trf.xlu1 }
 0x3e1   : > { %v3409_v28 = vrot.slane %v3402_v51, %v4800_v59  ;;  %v3452_v47 = vcombine.low %v3435_v5, %v3443_v8 }
 0x3e3   : > { %v3410_v17 = vcombine.low %v3401_v6, %v3409_v28  ;;  %v5131_v43 = vcombine.high %v3401_v6, %v3409_v28  ;;  %v3459_v20 = vrot.slane %v3452_v47, %v4800_v59 }
 0x3e5   : > { %v3460_v21 = vcombine.low %v3451_v15, %v3459_v20  ;;  %v5134_v25 = vcombine.high %v3451_v15, %v3459_v20  ;;  %v3565_v26 = vshrl.u32 %v3410_v17, 16  ;;  %v3571_v35 = vshrl.u32 %v5131_v43, 16 }
 0x3e6   : > { %v2781_v20 = vcombine.high %v2777_v10, %v4596_v3 }
 0x3e7   : > { %v3564_v36 = vpack.i.b16 %v3460_v21, %v3410_v17  ;;  %v3566_v40 = vshrl.u32 %v3460_v21, 16  ;;  %v3570_v44 = vpack.i.b16 %v5134_v25, %v5131_v43  ;;  %v3572_v9 = vshrl.u32 %v5134_v25, 16 }
 0x3e8   : > { %v2849_v21 = vcombine.high %v2845_v13, %v4596_v3 }
 0x3e9   : > { %4466 = vmatprep.mubr.msk.bf16.mxu0 %vm2337_vm2, %v3564_v36  ;;  %v3567_v19 = vpack.i.b16 %v3566_v40, %v3565_v26  ;;  %v5141_v31 = vpack.i.b16 %v3572_v9, %v3571_v35 }
 0x3eb   : > { %4472 = vmatprep.mubr.msk.bf16.mxu1 %vm2337_vm2, %v3567_v19 }
 0x3f9   : > { %3186 = vxpose.xlu1.c.b16.start.end [1/1] (short) (narrow) %v2829_v18, 16 }
 0x3fd   : > { %3218 = vxpose.xlu1.c.b16.start.end [1/1] (short) (narrow) %v2847_v42, 16 }
 0x401   : > { %3250 = vxpose.xlu1.c.b16.start.end [1/1] (short) (narrow) %v2838_v48, 16  ;;  %3170 = vxpose.xlu0.c.b16.start.end [1/1] (short) (narrow) %v2761_v49, 16 }
 0x405   : > { %3282 = vxpose.xlu1.c.b16.start.end [1/1] (short) (narrow) %v2848_v53, 16  ;;  %3202 = vxpose.xlu0.c.b16.start.end [1/1] (short) (narrow) %v2779_v11, 16 }
 0x409   : > { %3314 = vxpose.xlu1.c.b16.start.end [1/1] (short) (narrow) %v2845_v13, 16  ;;  %3234 = vxpose.xlu0.c.b16.start.end [1/1] (short) (narrow) %v2770_v14, 16 }
 0x40d   : > { %3266 = vxpose.xlu0.c.b16.start.end [1/1] (short) (narrow) %v2780_v34, 16 }
 0x411   : > { %3298 = vxpose.xlu0.c.b16.start.end [1/1] (short) (narrow) %v2777_v10, 16 }
 0x41f   : > { %v2340_v45 = vpop.xlane.xlu1 %2339 }
 0x420   : > { %v2350_v39 = vsub.f32 %v5102_v24, %v2340_v45 }
 0x422   : > { %v2354_v12 = vmul.f32 1.442695, %v2350_v39 }
 0x424   : > { %4568 = vpow2.f32 %v2354_v12 }
 0x425   : > { %v3162_v16 = vpop.trf.xlu1 }
 0x427   : > { %v2343_v54 = vpop.xlane.xlu0 %2342 }
 0x428   : > { %v2351_v46 = vsub.f32 %v5106_v1, %v2343_v54 }
 0x42a   : > { %v2356_v55 = vmul.f32 1.442695, %v2351_v46 }
 0x42c   : > { %4570 = vpow2.f32 %v2356_v55 }
 0x42d   : > { %v3146_v30 = vpop.trf.xlu0 }
 0x42e   : > { %v4569_v56 = vpop.eup %4568 }
 0x42f   : > { %v2362_v57 = vsel %vm2337_vm2, %v4569_v56, 0.0 }
 0x430   : > { %2363 = vadd.xlane.f32.xlu0 %v2362_v57 }
 0x436   : > { %v4571_v60 = vpop.eup %4570 }
 0x437   : > { %v2365_v50 = vsel %vm2337_vm2, %v4571_v60, 0.0 }
 0x438   : > { %2366 = vadd.xlane.f32.xlu1 %v2365_v50 }
 0x459   : > { %v2346_v29 = vpop.xlane.xlu1 %2345 }
 0x45a   : > { %v2352_v24 = vsub.f32 %v5110_v27, %v2346_v29 }
 0x45c   : > { %v2358_v32 = vmul.f32 1.442695, %v2352_v24 }
 0x45e   : > { %4572 = vpow2.f32 %v2358_v32 }
 0x45f   : > { %v3194_v61 = vpop.trf.xlu1 }
 0x460   : > { %v3512_v1 = vcombine.low %v3130_v58, %v3194_v61 }
 0x461   : > { %v2349_v23 = vpop.xlane.xlu0 %2348 }
 0x462   : > { %v2353_v62 = vsub.f32 %v5112_v7, %v2349_v23  ;;  %v5179_v4 = vrot.slane %v3512_v1, %v4797_v52 }
 0x463   : > { %v3226_v37 = vpop.trf.xlu1 }
 0x464   : > { %v2360_v63 = vmul.f32 1.442695, %v2353_v62  ;;  %v3520_v0 = vcombine.low %v3162_v16, %v3226_v37 }
 0x466   : > { %4574 = vpow2.f32 %v2360_v63  ;;  %v5182_v41 = vrot.slane %v3520_v0, %v4797_v52 }
 0x467   : > { %v3178_v22 = vpop.trf.xlu0  ;;  %v3258_v36 = vpop.trf.xlu1 }
 0x468   : > { %v4573_v27 = vpop.eup %4572  ;;  %v3544_v5 = vcombine.low %v5179_v4, %v5182_v41  ;;  %v3462_v6 = vcombine.low %v3114_v33, %v3178_v22 }
 0x469   : > { %v2368_v38 = vsel %vm2337_vm2, %v4573_v27, 0.0 }
 0x46a   : > { %2369 = vadd.xlane.f32.xlu0 %v2368_v38  ;;  %v3469_v8 = vrot.slane %v3462_v6, %v4797_v52  ;;  %v3551_v63 = vrot.slane %v3544_v5, %v4800_v59 }
 0x46b   : > { %v3210_v7 = vpop.trf.xlu0  ;;  %v3290_v9 = vpop.trf.xlu1 }
 0x46c   : > { %v3470_v51 = vcombine.low %v3146_v30, %v3210_v7 }
 0x46e   : > { %v3477_v28 = vrot.slane %v3470_v51, %v4797_v52 }
 0x46f   : > { %v3242_v26 = vpop.trf.xlu0  ;;  %v3322_v18 = vpop.trf.xlu1 }
 0x470   : > { %v4575_v15 = vpop.eup %4574  ;;  %v3494_v47 = vcombine.low %v3469_v8, %v3477_v28 }
 0x471   : > { %v2371_v17 = vsel %vm2337_vm2, %v4575_v15, 0.0 }
 0x472   : > { %2372 = vadd.xlane.f32.xlu1 %v2371_v17  ;;  %v3501_v57 = vrot.slane %v3494_v47, %v4800_v59 }
 0x473   : > { %v3274_v35 = vpop.trf.xlu0 }
 0x477   : > { %v3306_v40 = vpop.trf.xlu0 }
 0x478   : > { %v3478_v58 = vcombine.low %v3242_v26, %v3306_v40 }
 0x47a   : > { %v3485_v12 = vrot.slane %v3478_v58, %v4797_v52 }
 0x497   : > { %3330 = vxpose.xlu0.c.b16.start.end [1/1] (short) (narrow) %v2781_v20, 16 }
 0x49f   : > { %3346 = vxpose.xlu1.c.b16.start.end [1/1] (short) (narrow) %v2849_v21, 16 }
 0x4bd   : > { %v2364_v19 = vpop.xlane.xlu0 %2363 }
 0x4be   : > { %4576 = vrcp.f32 %v2364_v19 }
 0x4c5   : > { %v2367_v42 = vpop.xlane.xlu1 %2366 }
 0x4c6   : > { %4578 = vrcp.f32 %v2367_v42 }
 0x4c8   : > { %v4577_v48 = vpop.eup %4576 }
 0x4c9   : > { %v2378_v49 = vmul.f32 %v4577_v48, %v4569_v56 }
 0x4cb   : > { %v2382_v53 = vpack.c.bf16 %v2378_v49, %v2378_v49  ;;  %v4560_v49 = vld [vmem:[%s5299_s6] sm:$0xff]  }
 0x4cd   : > { %4508 = vmatprep.subr.msk.bf16.mxu0 %vm2337_vm2, %v2382_v53  ;;  %v3593_v11 = vsel %vm2337_vm2, %v2382_v53, 0  ;;  %v4561_v53 = vld [vmem:[%s5299_s6 + $0x8] sm:$0xff]  }
 0x4ce   : > { %4465 = vmatpush3.bf16.xpose.msra.mxu0 %v3593_v11  ;;  %v4562_v11 = vld [vmem:[%s5299_s6 + $0x10] sm:$0xff]  }
 0x4d0   : > { %v4579_v3 = vpop.eup %4578 }
 0x4d1   : > { %v2379_v13 = vmul.f32 %v4579_v3, %v4571_v60  ;;  %v3528_v60 = vcombine.low %v3258_v36, %v3322_v18  ;;  %v4563_v3 = vld [vmem:[%s5299_s6 + $0x18] sm:$0xff]  }
 0x4d3   : > { %v2383_v14 = vpack.c.bf16 %v2379_v13, %v2379_v13  ;;  %v3535_v61 = vrot.slane %v3528_v60, %v4797_v52  ;;  %v4564_v13 = vld [vmem:[%s5299_s6 + $0x20] sm:$0xff]  }
 0x4d5   : > { %4509 = vmatprep.subr.msk.bf16.mxu1 %vm2337_vm2, %v2383_v14  ;;  %v3651_v34 = vsel %vm2337_vm2, %v2383_v14, 0  ;;  %v4565_v14 = vld [vmem:[%s5299_s6 + $0x28] sm:$0xff]  }
 0x4d6   : > { %4471 = vmatpush3.bf16.xpose.msra.mxu1 %v3651_v34 }
 0x4f7   : > { %v2370_v10 = vpop.xlane.xlu0 %2369 }
 0x4f8   : > { %4580 = vrcp.f32 %v2370_v10 }
 0x4fd   : > { %v3338_v45 = vpop.trf.xlu0 }
 0x4fe   : > { %v3486_v39 = vcombine.low %v3274_v35, %v3338_v45 }
 0x4ff   : > { %v2373_v33 = vpop.xlane.xlu1 %2372 }
 0x500   : > { %v3493_v54 = vrot.slane %v3486_v39, %v4797_v52  ;;  %4582 = vrcp.f32 %v2373_v33 }
 0x502   : > { %v4581_v46 = vpop.eup %4580  ;;  %v3502_v55 = vcombine.low %v3485_v12, %v3493_v54 }
 0x503   : > { %v2380_v56 = vmul.f32 %v4581_v46, %v4573_v27 }
 0x504   : > { %v3509_v50 = vrot.slane %v3502_v55, %v4800_v59 }
 0x505   : > { %v3354_v16 = vpop.trf.xlu1  ;;  %v2384_v29 = vpack.c.bf16 %v2380_v56, %v2380_v56 }
 0x506   : > { %v3510_v24 = vcombine.low %v3501_v57, %v3509_v50  ;;  %v3511_v30 = vcombine.high %v3501_v57, %v3509_v50  ;;  %v3536_v32 = vcombine.low %v3290_v9, %v3354_v16 }
 0x507   : > { %4510 = vmatprep.subr.msk.bf16.mxu0 %vm2337_vm2, %v2384_v29 }
 0x508   : > { %v3543_v23 = vrot.slane %v3536_v32, %v4797_v52  ;;  %v3577_v6 = vshrl.u32 %v3510_v24, 16  ;;  %v3583_v7 = vshrl.u32 %v3511_v30, 16 }
 0x50a   : > { %v4583_v1 = vpop.eup %4582  ;;  %v3552_v62 = vcombine.low %v3535_v61, %v3543_v23 }
 0x50b   : > { %v2381_v37 = vmul.f32 %v4583_v1, %v4575_v15  ;;  %v3709_v15 = vsel %vm2337_vm2, %v2384_v29, 0 }
 0x50c   : > { %v3559_v0 = vrot.slane %v3552_v62, %v4800_v59 }
 0x50d   : > { %v2385_v22 = vpack.c.bf16 %v2381_v37, %v2381_v37 }
 0x50e   : > { %v3560_v27 = vcombine.low %v3551_v63, %v3559_v0  ;;  %v3561_v38 = vcombine.high %v3551_v63, %v3559_v0 }
 0x50f   : > { %4511 = vmatprep.subr.msk.bf16.mxu1 %vm2337_vm2, %v2385_v22  ;;  %v3767_v41 = vsel %vm2337_vm2, %v2385_v22, 0 }
 0x510   : > { %v3576_v51 = vpack.i.b16 %v3560_v27, %v3510_v24  ;;  %v3578_v8 = vshrl.u32 %v3560_v27, 16  ;;  %v3582_v28 = vpack.i.b16 %v3561_v38, %v3511_v30  ;;  %v3584_v47 = vshrl.u32 %v3561_v38, 16  ;;  %v4566_v24 = vld [vmem:[%s5299_s6 + $0x30] sm:$0xff]  }
 0x512   : > { %4467 = vmatmul.mubr.msk.bf16.vlgmr.msra.gmra.mrb[4].mxu0 %vm2337_vm2, %v3576_v51  ;;  %v3579_v17 = vpack.i.b16 %v3578_v8, %v3577_v6  ;;  %v3585_v4 = vpack.i.b16 %v3584_v47, %v3583_v7  ;;  %v4567_v6 = vld [vmem:[%s5299_s6 + $0x38] sm:$0xff]  }
 0x513   : > { %4477 = vmatpush3.bf16.xpose.msra.mxu0 %v3709_v15  ;;  %4478 = vmatprep.mubr.msk.bf16.mxu0 %vm2337_vm2, %v3570_v44 }
 0x514   : > { %4473 = vmatmul.mubr.msk.bf16.vlgmr.msra.gmra.mrb[20].mxu1 %vm2337_vm2, %v3579_v17  ;;  %4488 = vmatprep.subr.bf16.mxu0 %v4595_v2 }
 0x515   : > { %4483 = vmatpush3.bf16.xpose.msra.mxu1 %v3767_v41  ;;  %4484 = vmatprep.mubr.msk.bf16.mxu1 %vm2337_vm2, %v5141_v31 }
 0x51a   : > { %4479 = vmatmul.mubr.msk.bf16.vlgmr.msra.gmra.mrb[8].mxu0 %vm2337_vm2, %v3582_v28 }
 0x51b   : > { %4504 = vmatprep.mubr.msk.bf16.mxu0 %vm4597_vm0, %v4595_v2  ;;  %4489 = vmatpush3.bf16.msra.mxu0 %v4560_v49 }
 0x51c   : > { %4485 = vmatmul.mubr.msk.bf16.vlgmr.msra.gmra.mrb[24].mxu1 %vm2337_vm2, %v3585_v4  ;;  %4490 = vmatprep.subr.bf16.mxu0 %v4595_v2 }
 0x51f   : > { %4491 = vmatpush3.bf16.msra.mxu0 %v4561_v53 }
 0x520   : > { %4492 = vmatprep.subr.bf16.mxu0 %v4595_v2 }
 0x523   : > { %4493 = vmatpush3.bf16.msra.mxu0 %v4562_v11 }
 0x524   : > { %4494 = vmatprep.subr.bf16.mxu0 %v4595_v2 }
 0x527   : > { %4495 = vmatpush3.bf16.msra.mxu0 %v4563_v3 }
 0x528   : > { %4496 = vmatprep.subr.bf16.mxu0 %v4595_v2 }
 0x52b   : > { %4497 = vmatpush3.bf16.msra.mxu0 %v4564_v13 }
 0x52c   : > { %4498 = vmatprep.subr.bf16.mxu0 %v4595_v2 }
 0x52f   : > { %4499 = vmatpush3.bf16.msra.mxu0 %v4565_v14 }
 0x530   : > { %4500 = vmatprep.subr.bf16.mxu0 %v4595_v2 }
 0x533   : > { %4501 = vmatpush3.bf16.msra.mxu0 %v4566_v24 }
 0x534   : > { %4502 = vmatprep.subr.bf16.mxu0 %v4595_v2 }
 0x537   : > { %4503 = vmatpush3.bf16.msra.mxu0 %v4567_v6 }
 0x5e5   : > { %v4468_v43 = vpop.f32.mrb[4].mxu0 }
 0x5e6   : > { %v3629_v25 = vpop.f32.mrb[5].mxu0 }
 0x5e7   : > { %v4474_v44 = vpop.f32.mrb[20].mxu1  ;;  %3818 = vxpose.xlu0.b32.start [1/4] (short) (narrow) %v3629_v25, 8  ;;  %v4469_v5 = vpop.f32.mrb[6].mxu0 }
 0x5e8   : > { %v3632_v20 = vpop.f32.mrb[7].mxu0  ;;  %v3687_v21 = vpop.f32.mrb[21].mxu1 }
 0x5e9   : > { %3850 = vxpose.xlu1.b32.start [1/4] (short) (narrow) %v3687_v21, 8  ;;  %v4475_v26 = vpop.f32.mrb[22].mxu1 }
 0x5ea   : > { %v3690_v35 = vpop.f32.mrb[23].mxu1 }
 0x5eb   : > { %3819 = vxpose.xlu0.b32.cont [2/4] (short) (narrow) %v3632_v20, 8 }
 0x5ed   : > { %3851 = vxpose.xlu1.b32.cont [2/4] (short) (narrow) %v3690_v35, 8  ;;  %v4480_v31 = vpop.f32.mrb[8].mxu0  ;;  %v4357_v35 = vld [vmem:[%s5300_s7] ss:$0 sm:$0xff] }
 0x5ee   : > { %v3745_v36 = vpop.f32.mrb[9].mxu0 }
 0x5ef   : > { %v4486_v40 = vpop.f32.mrb[24].mxu1  ;;  %3820 = vxpose.xlu0.b32.cont [3/4] (short) (narrow) %v4468_v43, 8  ;;  %v4481_v9 = vpop.f32.mrb[10].mxu0 }
 0x5f0   : > { %v3748_v19 = vpop.f32.mrb[11].mxu0  ;;  %v3803_v18 = vpop.f32.mrb[25].mxu1 }
 0x5f1   : > { %3852 = vxpose.xlu1.b32.cont [3/4] (short) (narrow) %v4474_v44, 8  ;;  %v4487_v42 = vpop.f32.mrb[26].mxu1 }
 0x5f2   : > { %v3806_v48 = vpop.f32.mrb[27].mxu1 }
 0x5f3   : > { %3821 = vxpose.xlu0.b32.end [4/4] (short) (narrow) %v4469_v5, 8 }
 0x5f5   : > { %3853 = vxpose.xlu1.b32.end [4/4] (short) (narrow) %v4475_v26, 8 }
 0x5f7   : > { %3882 = vxpose.xlu0.b32.start [1/4] (short) (narrow) %v3745_v36, 8 }
 0x5f9   : > { %3914 = vxpose.xlu1.b32.start [1/4] (short) (narrow) %v3803_v18, 8 }
 0x5fb   : > { %3883 = vxpose.xlu0.b32.cont [2/4] (short) (narrow) %v3748_v19, 8  ;;  %v4586_v19 = vld [vmem:[%s4755_s27] sm:$0xff] }
 0x5fd   : > { %3915 = vxpose.xlu1.b32.cont [2/4] (short) (narrow) %v3806_v48, 8 }
 0x5ff   : > { %3884 = vxpose.xlu0.b32.cont [3/4] (short) (narrow) %v4480_v31, 8 }
 0x601   : > { %3916 = vxpose.xlu1.b32.cont [3/4] (short) (narrow) %v4486_v40, 8 }
 0x603   : > { %3885 = vxpose.xlu0.b32.end [4/4] (short) (narrow) %v4481_v9, 8 }
 0x605   : > { %3917 = vxpose.xlu1.b32.end [4/4] (short) (narrow) %v4487_v42, 8 }
 0x667   : > { %v3834_v34 = vpop.trf.xlu0 }
 0x669   : > { %v3866_v10 = vpop.trf.xlu1 }
 0x677   : > { %v3898_v58 = vpop.trf.xlu0 }
 0x678   : > { %v3946_v45 = vcombine.low %v3834_v34, %v3898_v58  ;;  %v3947_v39 = vcombine.high %v3834_v34, %v3898_v58 }
 0x679   : > { %v3930_v33 = vpop.trf.xlu1 }
 0x67a   : > { %v3962_v12 = vcombine.low %v3866_v10, %v3930_v33  ;;  %v3963_v54 = vcombine.high %v3866_v10, %v3930_v33  ;;  %v3954_v46 = vrot.slane %v3946_v45, %v4797_v52  ;;  %v3961_v55 = vrot.slane %v3947_v39, %v4797_v52  ;;  %v4366_v10 = vld [vmem:[%s5301_s8] ss:$0 sm:$0xff] }
 0x67b   : > { %v4367_v45 = vld [vmem:[%s5302_s9] ss:$0 sm:$0xff] }
 0x67c   : > { %v3970_v56 = vrot.slane %v3962_v12, %v4797_v52  ;;  %v3977_v57 = vrot.slane %v3963_v54, %v4797_v52 }
 0x67e   : > { %v3978_v60 = vcombine.low %v3954_v46, %v3970_v56  ;;  %v3979_v50 = vcombine.high %v3954_v46, %v3970_v56  ;;  %v3994_v16 = vcombine.low %v3961_v55, %v3977_v57  ;;  %v3995_v29 = vcombine.high %v3961_v55, %v3977_v57 }
 0x680   : > { %v3986_v30 = vrot.slane %v3978_v60, %v4800_v59  ;;  %v3993_v32 = vrot.slane %v3979_v50, %v4800_v59  ;;  %v4002_v61 = vrot.slane %v3994_v16, %v4800_v59  ;;  %v4009_v23 = vrot.slane %v3995_v29, %v4800_v59 }
 0x682   : > { %v4014_v1 = vcombine.low %v3986_v30, %v3993_v32  ;;  %v4355_v62 = vcombine.high %v3986_v30, %v3993_v32  ;;  %v4030_v37 = vcombine.low %v4002_v61, %v4009_v23  ;;  %v4356_v63 = vcombine.high %v4002_v61, %v4009_v23 }
 0x684   : > { %v4021_v0 = vrot.slane %v4014_v1, %v4797_v52  ;;  %v4029_v22 = vrot.slane %v4355_v62, %v4797_v52  ;;  %v4037_v27 = vrot.slane %v4030_v37, %v4797_v52  ;;  %v4045_v38 = vrot.slane %v4356_v63, %v4797_v52 }
 0x686   : > { %v4047_v7 = vcombine.high %v4021_v0, %v4029_v22  ;;  %v4063_v51 = vcombine.high %v4037_v27, %v4045_v38  ;;  %v4046_v8 = vcombine.low %v4021_v0, %v4029_v22  ;;  %v4062_v28 = vcombine.low %v4037_v27, %v4045_v38 }
 0x688   : > { %v4061_v47 = vrot.slane %v4047_v7, %v4800_v59  ;;  %v4077_v2 = vrot.slane %v4063_v51, %v4800_v59  ;;  %v4054_v15 = vrot.slane %v4046_v8, %v4800_v59  ;;  %v4070_v17 = vrot.slane %v4062_v28, %v4800_v59 }
 0x68a   : > { %v4080_v4 = vcombine.low %v4061_v47, %v4077_v2  ;;  %v4079_v41 = vcombine.high %v4054_v15, %v4070_v17  ;;  %v4078_v52 = vcombine.low %v4054_v15, %v4070_v17  ;;  %v4081_v43 = vcombine.high %v4061_v47, %v4077_v2 }
 0x68c   : > { %4087 = vrot.lane.b32.xlu1 %v4080_v4, %s4600_s24  ;;  %4083 = vrot.lane.b32.xlu0 %v4079_v41, %s4598_s22 }
 0x690   : > { %4091 = vrot.lane.b32.xlu1 %v4081_v43, %s4599_s23 }
 0x6fe   : > { %v4088_v25 = vpop.permute.xlu1 %4087  ;;  %v4084_v44 = vpop.permute.xlu0 %4083 }
 0x6ff   : > { %v4094_v5 = vsel %vm2164_vm1, %v4078_v52, %v4084_v44 }
 0x700   : > { %v4096_v21 = vsel %vm4095_vm3, %v4094_v5, %v4088_v25 }
 0x702   : > { %v4092_v20 = vpop.permute.xlu1 %4091 }
 0x703   : > { %v4098_v59 = vsel %vm4097_vm4, %v4096_v21, %v4092_v20 }
 0x704   : > { %v4099_v26 = vpack.c.bf16 %v4098_v59, %v4098_v59 }
 0x706   : > { %4505 = vmatmul.mubr.bf16.vlgmr.msra.gmra.mrb[12].mxu0 %v4099_v26 }
 0x7d9   : > { %v4205_v31 = vpop.f32.mrb[12].mxu0 }
 0x7da   : > { %v4206_v36 = vadd.f32 %v4357_v35, %v4205_v31  ;;  %v4506_v40 = vpop.f32.mrb[13].mxu0 }
 0x7db   : > { %v4208_v9 = vpop.f32.mrb[14].mxu0 }
 0x7dc   : > { %v4211_v18 = vadd.f32 %v4586_v19, %v4206_v36  ;;  %v4507_v42 = vpop.f32.mrb[15].mxu0 }
 0x7de   : > { %4214 = vadd.xlane.f32.xlu0 %v4211_v18 }
 0x86b   : > { %v4215_v48 = vpop.xlane.xlu0 %4214 }
 0x86c   : > { %v4217_v49 = vmul.f32 0.0078125, %v4215_v48 }
 0x86e   : > { %v4218_v53 = vsub.f32 %v4211_v18, %v4217_v49 }
 0x870   : > { %v4219_v11 = vmul.f32 %v4218_v53, %v4218_v53 }
 0x872   : > { %4220 = vadd.xlane.f32.xlu1 %v4219_v11 }
 0x8ff   : > { %v4221_v3 = vpop.xlane.xlu1 %4220 }
 0x900   : > { %v4222_v13 = vmul.f32 0.0078125, %v4221_v3 }
 0x902   : > { %v4223_v14 = vadd.f32 1e-05, %v4222_v13 }
 0x904   : > { %4584 = vrsqrt.f32 %v4223_v14 }
 0x90e   : > { %v4585_v34 = vpop.eup %4584 }
 0x90f   : > { %v4225_v58 = vmul.f32 %v4585_v34, %v4218_v53 }
 0x911   : > { %v4232_v39 = vmul.f32 %v4366_v10, %v4225_v58 }
 0x913   : > { %v4239_v33 = vadd.f32 %v4367_v45, %v4232_v39 }
 0x915   : > { %4240 = vst [vmem:[%s371_s15] sm:$0xff] %v4239_v33 }
 0x916 PF: > { %s20_s13 = sadd.s32 1, %s4593_s13  }
 0x917   : > { %p17_p4 = scmp.ge.s32.totalorder %s20_s13, 4  }
 0x919   :  { %19 = sbr.rel (!%p17_p4) target bundleno = 1 (0x1), region = 93 }

// kernel: led_forward.21
= control target key start
LH: loop header
LB: loop body
LE: loop exit
PB: predicated region body
PF: predicated region fallthrough
CT: control target
= control target key end

     0   :  { %8 = vsyncpa [#allocation3], 0  ;;  %s723_s0 = inlined_call_operand.vmem [shape: f32[16,128], index: 0, kind: input, shape index: {}]   ;;  %s724_s1 = inlined_call_operand.vmem [shape: bf16[128,256], index: 1, kind: input, shape index: {}]   ;;  %s725_s2 = inlined_call_operand.vmem [shape: f32[1,256], index: 2, kind: input, shape index: {}]   ;;  %s726_s3 = inlined_call_operand.hbm [shape: f32[16,256], index: 3, kind: output, shape index: {}]  }
   0x1   :  { %10 = vsyncpa [#allocation3 + $0x1], 0  ;;  %s572_s12 = smov 0   ;;  %s574_s13 = smov 0  }
   0x2   :  { %s576_s14 = smov 0   ;;  %s578_s15 = smov 0  }
   0x3 LB: > { %s593_s16 = sadd.s32 4294967295, %s548_s15   ;;  %s394_s17 = sadd.s32 4294967294, %s548_s15   ;;  %s548_s15 = sphi %s578_s15, %s732_s15   ;;  %s544_s14 = sphi %s576_s14, %s731_s14   ;;  %s540_s13 = sphi %s574_s13, %s730_s13   ;;  %s536_s12 = sphi %s572_s12, %s729_s12  }
   0x4   : > { %s597_s18 = sadd.s32 1, %s548_s15   ;;  %s91_s19 = sadd.s32 1, %s544_s14 }
   0x5   : > { %s88_s20 = ssub.s32 %s548_s15, %s597_s18  ;;  %p101_p0 = scmp.ne.s32.totalorder %s544_s14, %s540_s13 }
   0x6   : > { %p89_p1 = scmp.eq.s32.totalorder %s88_s20, 0  ;;  %p102_p2 = scmp.eq.s32.totalorder %s593_s16, 1 }
   0x7   : > { %p107_p3 = scmp.ne.s32.totalorder %s540_s13, %s536_s12  ;;  %p108_p4 = scmp.eq.s32.totalorder %s394_s17, 1 }
   0x8   : > { %s608_s21 = scalar_select %p89_p1, %s544_s14, %s91_s19  }
   0x9   : > { %p610_p5 = por %p102_p2, %p101_p0  ;;  %p614_p6 = por %p108_p4, %p107_p3 }
   0xa   : > { %p397_p7 = scmp.ge.s32.totalorder %s548_s15, 1  ;;  %p139_p8 = scmp.lt.s32.totalorder %s548_s15, 3 }
   0xc   : > { %p140_p9 = pnand %p397_p7, %p139_p8 }
   0xd   : > { %v462_v0 = vld [vmem:[%s724_s1 + $0x4] ss:$8 sps:$4 sm:$0xff] (!%p140_p9)   ;;  %v464_v1 = vld [vmem:[%s724_s1] ss:$8 sps:$4 sm:$0xff] (!%p140_p9)   ;;  %v550_v2 = vmov (!%p140_p9), 0   ;;  %p162_p10 = scmp.lt.s32.totalorder (!%p140_p9), %s593_s16, 1  ;;  %v187_v19 = vlaneseq (!%p140_p9) }
   0xe   : > { %143 = sbr.rel (%p140_p9) target bundleno = 275 (0x113), region = 32  ;;  %309 = vmatprep.mubr.bf16.mxu0 (!%p140_p9), %v550_v2  ;;  %277 = vmatprep.subr.bf16.mxu0 (!%p140_p9), %v462_v0  ;;  %v465_v3 = vld [vmem:[%s724_s1 + $0x14] ss:$8 sps:$4 sm:$0xff] (!%p140_p9)   ;;  %v467_v4 = vld [vmem:[%s724_s1 + $0x10] ss:$8 sps:$4 sm:$0xff] (!%p140_p9)   ;;  %s159_s25 = sand.u32 (!%p140_p9), 1, %s540_s13  }
   0xf   : > { %278 = vmatpush1.bf16.msra.mxu0 (!%p140_p9), %v464_v1  ;;  %v468_v5 = vld [vmem:[%s724_s1 + $0x24] ss:$8 sps:$4 sm:$0xff] (!%p140_p9)   ;;  %v470_v6 = vld [vmem:[%s724_s1 + $0x20] ss:$8 sps:$4 sm:$0xff] (!%p140_p9)   ;;  %v471_v7 = vld [vmem:[%s724_s1 + $0x34] ss:$8 sps:$4 sm:$0xff] (!%p140_p9)  }
  0x10   : > { %279 = vmatprep.subr.bf16.mxu0 (!%p140_p9), %v465_v3  ;;  %v473_v8 = vld [vmem:[%s724_s1 + $0x30] ss:$8 sps:$4 sm:$0xff] (!%p140_p9)   ;;  %v474_v9 = vld [vmem:[%s724_s1 + $0x44] ss:$8 sps:$4 sm:$0xff] (!%p140_p9)   ;;  %v476_v10 = vld [vmem:[%s724_s1 + $0x40] ss:$8 sps:$4 sm:$0xff] (!%p140_p9)  }
  0x11   : > { %v477_v11 = vld [vmem:[%s724_s1 + $0x54] ss:$8 sps:$4 sm:$0xff] (!%p140_p9)   ;;  %v479_v12 = vld [vmem:[%s724_s1 + $0x50] ss:$8 sps:$4 sm:$0xff] (!%p140_p9)   ;;  %v480_v13 = vld [vmem:[%s724_s1 + $0x64] ss:$8 sps:$4 sm:$0xff] (!%p140_p9)  }
  0x12   : > { %v482_v14 = vld [vmem:[%s724_s1 + $0x60] ss:$8 sps:$4 sm:$0xff] (!%p140_p9)   ;;  %v483_v15 = vld [vmem:[%s724_s1 + $0x74] ss:$8 sps:$4 sm:$0xff] (!%p140_p9)   ;;  %v485_v16 = vld [vmem:[%s724_s1 + $0x70] ss:$8 sps:$4 sm:$0xff] (!%p140_p9)  }
  0x13   : > { %280 = vmatpush1.bf16.msra.mxu0 (!%p140_p9), %v467_v4  ;;  %v188_v20 = vshrl.u32 (!%p140_p9), %v187_v19, 7  ;;  %s398_s26 = sshll.u32 (!%p140_p9), %s159_s25, 4  ;;  %v185_v22 = vld [vmem:[%s725_s2] sm:$0x3] (!%p140_p9)  ;;  %s421_s29 = sshll.u32 (!%p140_p9), %s593_s16, 8 }
  0x14   : > { %281 = vmatprep.subr.bf16.mxu0 (!%p140_p9), %v468_v5  ;;  %s161_s30 = scalar_lea.vmem (!%p140_p9), [#allocation2], %s398_s26  ;;  %s681_s7 = scalar_lea.hbm (!%p140_p9), %s726_s3, %s421_s29 }
  0x15   : > { %s163_s28 = scalar_select %p162_p10, %s593_s16, 1  ;;  %v189_v21 = vsub.s32 0, %v188_v20  ;;  %v193_v23 = vsub.s32 1, %v188_v20 }
  0x16   : > { %s335_s4 = sshll.u32 %s161_s30, 4  ;;  %s321_s16 = scalar_lea.sflag [#allocation3], %s159_s25  ;;  %s683_s4 = int_to_ptr.vmem [resolvable:$true] %s335_s4 }
  0x17   : > { %282 = vmatpush1.bf16.msra.mxu0 %v470_v6  ;;  %s399_s6 = sshll.u32 %s163_s28, 3  ;;  %v190_v24 = vrot.slane %v185_v22, %v189_v21  ;;  %v194_v25 = vrot.slane %v185_v22, %v193_v23  ;;  %s486_s8 = scalar_lea.vmem %s683_s4, 256 }
  0x18   : > { %283 = vmatprep.subr.bf16.mxu0 %v471_v7  ;;  %s165_s19 = scalar_lea.vmem %s723_s0, %s399_s6  ;;  %p487_p11 = scmp.ne.s32.totalorder %s683_s4, %s486_s8 }
  0x19   : > { %v167_v17 = vld [vmem:[%s165_s19] sm:$0xff]  ;;  %s551_s9 = smov [#allocation2]  }
  0x1a   : > { %v168_v18 = vpack.c.bf16 %v167_v17, %v167_v17  ;;  %p488_p12 = pnand %p487_p11, %p610_p5  ;;  %s490_s10 = sshll.u32 %s551_s9, 4  ;;  %s491_s10 = int_to_ptr.vmem [resolvable:$false] %s490_s10 }
  0x1b   : > { %284 = vmatpush1.bf16.msra.mxu0 %v473_v8  ;;  %s492_s11 = scalar_lea.vmem %s491_s10, 512  ;;  %p493_p0 = scmp.lt.s32.totalorder %s683_s4, %s491_s10 }
  0x1c   : > { %285 = vmatprep.subr.bf16.mxu0 %v474_v9  ;;  %p489_p13 = pneg %p488_p12  ;;  %p494_p1 = scmp.lt.s32.totalorder %s492_s11, %s486_s8 }
  0x1e   : > { %p495_p2 = por %p494_p1, %p493_p0 }
  0x1f   : > { %286 = vmatpush1.bf16.msra.mxu0 %v476_v10 }
  0x20   : > { %287 = vmatprep.subr.bf16.mxu0 %v477_v11  ;;  %p496_p3 = pnand %p495_p2, %p489_p13 }
  0x23   : > { %288 = vmatpush1.bf16.msra.mxu0 %v479_v12 }
  0x24   : > { %289 = vmatprep.subr.bf16.mxu0 %v480_v13 }
  0x27   : > { %290 = vmatpush1.bf16.msra.mxu0 %v482_v14 }
  0x28   : > { %291 = vmatprep.subr.bf16.mxu0 %v483_v15 }
  0x2b   : > { %292 = vmatpush1.bf16.msra.mxu0 %v485_v16 }
  0x2e   : > { %310 = vmatmul.mubr.bf16.vlgmr.msra.gmra.mrb[0].mxu0 %v168_v18 }
 0x101   : > { %v311_v26 = vpop.f32.mrb[0].mxu0 }
 0x102   : > { %v312_v27 = vadd.f32 %v311_v26, %v190_v24  ;;  %v313_v28 = vpop.f32.mrb[1].mxu0 }
 0x103   : > { %v314_v29 = vadd.f32 %v313_v28, %v194_v25  ;;  %v315_v30 = vpop.f32.mrb[2].mxu0 }
 0x104   : > { %318 = vst [vmem:[%s161_s30] sm:$0xff] %v312_v27  ;;  %v316_v31 = vpop.f32.mrb[3].mxu0 }
 0x105   : > { %319 = vst [vmem:[%s161_s30 + $0x8] sm:$0xff] %v314_v29 }
 0x106   : > { %499 = shalt.err (!%p496_p3)
}
 0x107   : > { %s500_s17 = scalar_lea.hbm %s681_s7, 256  ;;  %s504_s24 = scalar_lea.hbm %s726_s3, 512 }
 0x108   : > { %p501_p4 = scmp.ne.s32.totalorder %s681_s7, %s500_s17  ;;  %p505_p9 = scmp.lt.u32.totalorder %s681_s7, %s726_s3 }
 0x109   : > { %p506_p10 = scmp.lt.u32.totalorder %s504_s24, %s500_s17  ;;  %p508_p12 = scmp.lt.u32.totalorder %s500_s17, %s681_s7 }
 0x10a   : > { %p502_p7 = pnand %p501_p4, %p610_p5 }
 0x10b   : > { %p507_p11 = por %p506_p10, %p505_p9 }
 0x10c   : > { %p503_p8 = pneg %p502_p7 }
 0x10d   : > { %p509_p13 = por %p508_p12, %p507_p11 }
 0x10f   : > { %p510_p0 = pnand %p509_p13, %p503_p8 }
 0x111   : > { %513 = shalt.err (!%p510_p0)
}
 0x112   : > { %422 = dma.vmem_to_hbm [thread:$0]  (%p610_p5), %s683_s4, 256, %s681_s7, %s321_s16  }
 0x113 PF: > { %p428_p1 = scmp.ge.s32.totalorder %s548_s15, 2  ;;  %s347_s27 = sand.u32 1, %s536_s12  }
 0x114   : > { %s348_s28 = scalar_lea.sflag [#allocation3], %s347_s27 }
 0x115   : > { %p425_p2 = pnand %p428_p1, %p614_p6 }
 0x117   : > { %531 = dma.done.wait (!%p425_p2), %s348_s28, 256  }
 0x118   : > { %533 = vsyncadd (!%p425_p2), %s348_s28, 4294967040  ;;  %p13_p3 = scmp.ge.s32.totalorder %s597_s18, 4   ;;  %s729_s12 = smov %s540_s13 }
 0x119   : > { %s730_s13 = smov %s544_s14  ;;  %s731_s14 = smov %s608_s21 }
 0x11a   : > { %s732_s15 = smov %s597_s18  ;;  %15 = sbr.rel (!%p13_p3) target bundleno = 3 (0x3), region = 67 }
 0x121   :  { %353 = vsyncpa [#allocation3], 1 }
 0x122   :  { %355 = vsyncpa [#allocation3 + $0x1], 1 }

// kernel: led_forward.18
= control target key start
LH: loop header
LB: loop body
LE: loop exit
PB: predicated region body
PF: predicated region fallthrough
CT: control target
= control target key end

     0   :  { %s4537_s24 = smov 0   ;;  %s5174_s0 = inlined_call_operand.vmem [shape: f32[16,128], index: 0, kind: input, shape index: {}]   ;;  %s5175_s1 = inlined_call_operand.vmem [shape: bf16[128,384], index: 1, kind: input, shape index: {}]   ;;  %s5176_s2 = inlined_call_operand.vmem [shape: f32[1,384], index: 2, kind: input, shape index: {}]   ;;  %s5177_s3 = inlined_call_operand.vmem [shape: bf16[128,128], index: 3, kind: input, shape index: {}]   ;;  %s5178_s4 = inlined_call_operand.vmem [shape: f32[1,128], index: 4, kind: input, shape index: {}]   ;;  %s5179_s5 = inlined_call_operand.vmem [shape: f32[1,128], index: 5, kind: input, shape index: {}]   ;;  %s5180_s6 = inlined_call_operand.vmem [shape: f32[1,128], index: 6, kind: input, shape index: {}]   ;;  %s5181_s7 = inlined_call_operand.vmem [shape: f32[16,128], index: 7, kind: output, shape index: {}]  }
   0x1 LB: > { %s4202_s25 = sadd.s32 4294967295, %s4487_s24   ;;  %p4206_p0 = scmp.ge.s32.totalorder %s4487_s24, 1  ;;  %s4487_s24 = sphi %s4537_s24, %s17_s24  }
   0x2   : > { %p236_p1 = scmp.lt.s32.totalorder %s4487_s24, 3 }
   0x4   : > { %p237_p2 = pnand %p4206_p0, %p236_p1 }
   0x5   : > { %v4422_v0 = vld [vmem:[%s5175_s1 + $0x4] ss:$12 sps:$4 sm:$0xff] (!%p237_p2)   ;;  %v4424_v1 = vld [vmem:[%s5175_s1] ss:$12 sps:$4 sm:$0xff] (!%p237_p2)   ;;  %v4489_v2 = vmov (!%p237_p2), 0   ;;  %p266_p3 = scmp.lt.s32.totalorder (!%p237_p2), %s4202_s25, 1  ;;  %v311_v27 = vlaneseq (!%p237_p2) }
   0x6   : > { %240 = sbr.rel (%p237_p2) target bundleno = 2327 (0x917), region = 48  ;;  %486 = vmatprep.mubr.bf16.mxu0 (!%p237_p2), %v4489_v2  ;;  %454 = vmatprep.subr.bf16.mxu0 (!%p237_p2), %v4422_v0  ;;  %v4425_v3 = vld [vmem:[%s5175_s1 + $0x1c] ss:$12 sps:$4 sm:$0xff] (!%p237_p2)   ;;  %v4427_v4 = vld [vmem:[%s5175_s1 + $0x18] ss:$12 sps:$4 sm:$0xff] (!%p237_p2)   ;;  %v4490_v20 = vmov (!%p237_p2), 0.0  }
   0x7   : > { %455 = vmatpush1.bf16.msra.mxu0 (!%p237_p2), %v4424_v1  ;;  %v4428_v5 = vld [vmem:[%s5175_s1 + $0x34] ss:$12 sps:$4 sm:$0xff] (!%p237_p2)   ;;  %v4430_v6 = vld [vmem:[%s5175_s1 + $0x30] ss:$12 sps:$4 sm:$0xff] (!%p237_p2)   ;;  %v4431_v7 = vld [vmem:[%s5175_s1 + $0x4c] ss:$12 sps:$4 sm:$0xff] (!%p237_p2)   ;;  %4306 = vmatprep.subr.bf16.mxu1 (!%p237_p2), %v4490_v20 }
   0x8   : > { %456 = vmatprep.subr.bf16.mxu0 (!%p237_p2), %v4425_v3  ;;  %v4433_v8 = vld [vmem:[%s5175_s1 + $0x48] ss:$12 sps:$4 sm:$0xff] (!%p237_p2)   ;;  %v4434_v9 = vld [vmem:[%s5175_s1 + $0x64] ss:$12 sps:$4 sm:$0xff] (!%p237_p2)   ;;  %v4436_v10 = vld [vmem:[%s5175_s1 + $0x60] ss:$12 sps:$4 sm:$0xff] (!%p237_p2)  }
   0x9   : > { %v4437_v11 = vld [vmem:[%s5175_s1 + $0x7c] ss:$12 sps:$4 sm:$0xff] (!%p237_p2)   ;;  %v4439_v12 = vld [vmem:[%s5175_s1 + $0x78] ss:$12 sps:$4 sm:$0xff] (!%p237_p2)   ;;  %v4440_v13 = vld [vmem:[%s5175_s1 + $0x94] ss:$12 sps:$4 sm:$0xff] (!%p237_p2)  }
   0xa   : > { %v4442_v14 = vld [vmem:[%s5175_s1 + $0x90] ss:$12 sps:$4 sm:$0xff] (!%p237_p2)   ;;  %v4443_v15 = vld [vmem:[%s5175_s1 + $0xac] ss:$12 sps:$4 sm:$0xff] (!%p237_p2)   ;;  %v4445_v16 = vld [vmem:[%s5175_s1 + $0xa8] ss:$12 sps:$4 sm:$0xff] (!%p237_p2)  }
   0xb   : > { %457 = vmatpush1.bf16.msra.mxu0 (!%p237_p2), %v4427_v4  ;;  %v4446_v19 = vld [vmem:[%s5175_s1 + $0x8] ss:$12 sps:$4 sm:$0xff] (!%p237_p2)   ;;  %v4447_v21 = vld [vmem:[%s5175_s1 + $0x20] ss:$12 sps:$4 sm:$0xff] (!%p237_p2)   ;;  %v4448_v22 = vld [vmem:[%s5175_s1 + $0x38] ss:$12 sps:$4 sm:$0xff] (!%p237_p2)  }
   0xc   : > { %458 = vmatprep.subr.bf16.mxu0 (!%p237_p2), %v4428_v5  ;;  %4307 = vmatpush3.bf16.msra.mxu1 (!%p237_p2), %v4446_v19  ;;  %v4449_v23 = vld [vmem:[%s5175_s1 + $0x50] ss:$12 sps:$4 sm:$0xff] (!%p237_p2)   ;;  %v4450_v24 = vld [vmem:[%s5175_s1 + $0x68] ss:$12 sps:$4 sm:$0xff] (!%p237_p2)   ;;  %v4451_v25 = vld [vmem:[%s5175_s1 + $0x80] ss:$12 sps:$4 sm:$0xff] (!%p237_p2)  }
   0xd   : > { %s5183_s25 = smov (!%p266_p3, %s4202_s25), 1  ;;  %4308 = vmatprep.subr.bf16.mxu1 %v4490_v20  ;;  %v4452_v26 = vld [vmem:[%s5175_s1 + $0x98] ss:$12 sps:$4 sm:$0xff]   ;;  %v4635_v28 = vshrl.u32 %v311_v27, 7  ;;  %v4453_v29 = vld [vmem:[%s5175_s1 + $0xb0] ss:$12 sps:$4 sm:$0xff]  }
   0xe   : > { %s4207_s19 = sshll.u32 %s5183_s25, 3  ;;  %v4644_v31 = vld [vmem:[%s5176_s2] sm:$0x7]  ;;  %vm4491_vm0 = vmmov 0   ;;  %s4492_s17 = smov 32   ;;  %vm2063_vm1 = vcmask 261120  }
   0xf   : > { %459 = vmatpush1.bf16.msra.mxu0 %v4430_v6  ;;  %s4599_s15 = scalar_lea.vmem %s5174_s0, %s4207_s19  ;;  %v317_v30 = vsub.s32 1, %v4635_v28  ;;  %4322 = vmatprep.mubr.msk.bf16.mxu1 %vm4491_vm0, %v4490_v20  ;;  %v313_v32 = vsub.s32 0, %v4635_v28  ;;  %s4493_s18 = smov 96   ;;  %v4495_v41 = vmov 1983009808   ;;  %vm2245_vm3 = vcmask 64512  }
  0x10   : > { %460 = vmatprep.subr.bf16.mxu0 %v4431_v7  ;;  %v275_v17 = vld [vmem:[%s4599_s15] sm:$0xff]  ;;  %4309 = vmatpush3.bf16.msra.mxu1 %v4447_v21  ;;  %s4494_s20 = smov 64   ;;  %v548_v42 = vunpack.c.l.s4 %v4495_v41  ;;  %v4496_v44 = vmov 1934713408   ;;  %vm4003_vm4 = vcmask 523264   ;;  %vm4005_vm5 = vcmask 785408   ;;  %s273_s27 = scalar_lea.vmem %s5181_s7, %s4207_s19 }
  0x11   : > { %v276_v18 = vpack.c.bf16 %v275_v17, %v275_v17  ;;  %4310 = vmatprep.subr.bf16.mxu1 %v4490_v20  ;;  %v318_v33 = vrot.slane %v4644_v31, %v317_v30  ;;  %v314_v36 = vrot.slane %v4644_v31, %v313_v32  ;;  %v580_v45 = vunpack.c.l.s4 %v4496_v44 }
  0x12   : > { %v549_v43 = vunpack.c.0.s8 %v548_v42 }
  0x13   : > { %461 = vmatpush1.bf16.msra.mxu0 %v4433_v8  ;;  %v581_v49 = vunpack.c.0.s8 %v580_v45 }
  0x14   : > { %462 = vmatprep.subr.bf16.mxu0 %v4434_v9  ;;  %4311 = vmatpush3.bf16.msra.mxu1 %v4448_v22  ;;  %v4666_v48 = vsub.s32 %v549_v43, %v4635_v28 }
  0x15   : > { %4312 = vmatprep.subr.bf16.mxu1 %v4490_v20  ;;  %v4669_v55 = vsub.s32 %v581_v49, %v4635_v28 }
  0x17   : > { %463 = vmatpush1.bf16.msra.mxu0 %v4436_v10 }
  0x18   : > { %464 = vmatprep.subr.bf16.mxu0 %v4437_v11  ;;  %4313 = vmatpush3.bf16.msra.mxu1 %v4449_v23 }
  0x19   : > { %4314 = vmatprep.subr.bf16.mxu1 %v4490_v20 }
  0x1b   : > { %465 = vmatpush1.bf16.msra.mxu0 %v4439_v12 }
  0x1c   : > { %466 = vmatprep.subr.bf16.mxu0 %v4440_v13  ;;  %4315 = vmatpush3.bf16.msra.mxu1 %v4450_v24 }
  0x1d   : > { %4316 = vmatprep.subr.bf16.mxu1 %v4490_v20 }
  0x1f   : > { %467 = vmatpush1.bf16.msra.mxu0 %v4442_v14 }
  0x20   : > { %468 = vmatprep.subr.bf16.mxu0 %v4443_v15  ;;  %4317 = vmatpush3.bf16.msra.mxu1 %v4451_v25 }
  0x21   : > { %4318 = vmatprep.subr.bf16.mxu1 %v4490_v20 }
  0x23   : > { %469 = vmatpush1.bf16.msra.mxu0 %v4445_v16 }
  0x24   : > { %4319 = vmatpush3.bf16.msra.mxu1 %v4452_v26 }
  0x25   : > { %4320 = vmatprep.subr.bf16.mxu1 %v4490_v20 }
  0x26   : > { %487 = vmatmul.mubr.bf16.vlgmr.msra.gmra.mrb[0].mxu0 %v276_v18 }
  0x28   : > { %4321 = vmatpush3.bf16.msra.mxu1 %v4453_v29 }
  0x29   : > { %4326 = vmatprep.subr.bf16.mxu1 %v4490_v20 }
  0x2b   : > { %4323 = vmatmul.mubr.bf16.vlgmr.msra.gmra.mrb[0].mxu1 %v276_v18 }
  0x2c   : > { %4330 = vmatprep.mubr.msk.bf16.mxu1 %vm4491_vm0, %v4490_v20 }
  0xf9   : > { %v488_v34 = vpop.f32.mrb[0].mxu0 }
  0xfa   : > { %v490_v35 = vpop.f32.mrb[1].mxu0  ;;  %v4656_v40 = vadd.f32 %v488_v34, %v314_v36 }
  0xfb   : > { %v491_v37 = vadd.f32 %v490_v35, %v318_v33  ;;  %v492_v38 = vpop.f32.mrb[2].mxu0 }
  0xfc   : > { %v493_v39 = vpop.f32.mrb[3].mxu0 }
  0xfd   : > { %628 = vrot.lane.b32.xlu1 %v491_v37, %s4492_s17  ;;  %622 = vrot.lane.b32.xlu0 %v491_v37, %s4493_s18 }
  0xfe   : > { %v4683_v17 = vpop.f32.mrb[0].mxu1 }
  0xff   : > { %v4324_v18 = vpop.f32.mrb[1].mxu1 }
 0x100   : > { %v532_v19 = vpop.f32.mrb[2].mxu1 }
 0x101   : > { %625 = vrot.lane.b32.xlu0 %v491_v37, %s4494_s20  ;;  %539 = vrot.lane.b32.xlu1 %v4656_v40, %s4494_s20  ;;  %v4325_v21 = vpop.f32.mrb[3].mxu1 }
 0x105   : > { %542 = vrot.lane.b32.xlu1 %v4656_v40, %s4492_s17  ;;  %536 = vrot.lane.b32.xlu0 %v4656_v40, %s4493_s18 }
 0x16f   : > { %v629_v46 = vpop.permute.xlu1 %628  ;;  %v623_v47 = vpop.permute.xlu0 %622 }
 0x170   : > { %v647_v50 = vcombine.low %v623_v47, %v629_v46  ;;  %v648_v52 = vcombine.high %v623_v47, %v629_v46 }
 0x172   : > { %v655_v56 = vrot.slane %v647_v50, %v4666_v48  ;;  %v662_v59 = vrot.slane %v648_v52, %v4666_v48 }
 0x173   : > { %v626_v51 = vpop.permute.xlu0 %625  ;;  %v4685_v22 = vpop.permute.xlu1 %539 }
 0x174   : > { %v631_v53 = vcombine.low %v491_v37, %v626_v51  ;;  %v632_v54 = vcombine.high %v491_v37, %v626_v51 }
 0x176   : > { %v639_v57 = vrot.slane %v631_v53, %v4666_v48  ;;  %v646_v58 = vrot.slane %v632_v54, %v4666_v48 }
 0x177   : > { %v4687_v23 = vpop.permute.xlu1 %542  ;;  %v4689_v24 = vpop.permute.xlu0 %536 }
 0x178   : > { %v663_v60 = vcombine.low %v639_v57, %v655_v56  ;;  %v664_v61 = vcombine.high %v639_v57, %v655_v56  ;;  %v679_v0 = vcombine.low %v646_v58, %v662_v59  ;;  %v680_v6 = vcombine.high %v646_v58, %v662_v59 }
 0x17a   : > { %v671_v62 = vrot.slane %v663_v60, %v4669_v55  ;;  %v678_v63 = vrot.slane %v664_v61, %v4669_v55  ;;  %v687_v5 = vrot.slane %v679_v0, %v4669_v55  ;;  %v694_v10 = vrot.slane %v680_v6, %v4669_v55 }
 0x17c   : > { %v699_v1 = vpack.c.bf16 %v671_v62, %v671_v62  ;;  %v701_v3 = vpack.c.bf16 %v678_v63, %v678_v63  ;;  %v696_v4 = vcombine.high %v678_v63, %v4490_v20  ;;  %v703_v8 = vpack.c.bf16 %v687_v5, %v687_v5 }
 0x17d   : > { %v697_v9 = vcombine.high %v687_v5, %v4490_v20  ;;  %v705_v12 = vpack.c.bf16 %v694_v10, %v694_v10  ;;  %v698_v13 = vcombine.high %v694_v10, %v4490_v20  ;;  %v695_v14 = vcombine.high %v671_v62, %v4490_v20 }
 0x17e   : > { %855 = vxpose.xlu1.c.b16.start.end [1/1] (short) (narrow) %v699_v1, 32  ;;  %887 = vxpose.xlu0.c.b16.start.end [1/1] (short) (narrow) %v701_v3, 32  ;;  %v702_v7 = vpack.c.bf16 %v696_v4, %v696_v4 }
 0x17f   : > { %v704_v11 = vpack.c.bf16 %v697_v9, %v697_v9  ;;  %v706_v15 = vpack.c.bf16 %v698_v13, %v698_v13  ;;  %v700_v16 = vpack.c.bf16 %v695_v14, %v695_v14 }
 0x183   : > { %903 = vxpose.xlu1.c.b16.start.end [1/1] (short) (narrow) %v702_v7, 32  ;;  %919 = vxpose.xlu0.c.b16.start.end [1/1] (short) (narrow) %v703_v8, 32 }
 0x188   : > { %935 = vxpose.xlu1.c.b16.start.end [1/1] (short) (narrow) %v704_v11, 32  ;;  %951 = vxpose.xlu0.c.b16.start.end [1/1] (short) (narrow) %v705_v12, 32 }
 0x18d   : > { %967 = vxpose.xlu1.c.b16.start.end [1/1] (short) (narrow) %v706_v15, 32  ;;  %871 = vxpose.xlu0.c.b16.start.end [1/1] (short) (narrow) %v700_v16, 32 }
 0x1e4   : > { %v863_v25 = vpop.trf.xlu1  ;;  %v895_v26 = vpop.trf.xlu0 }
 0x1e5   : > { %v987_v49 = vshrl.u32 %v863_v25, 16  ;;  %v995_v59 = vshrl.u32 %v895_v26, 16 }
 0x1e8   : > { %v4691_v29 = vpop.trf.xlu1  ;;  %v4693_v30 = vpop.trf.xlu0 }
 0x1ec   : > { %v911_v32 = vpop.trf.xlu1  ;;  %v927_v33 = vpop.trf.xlu0 }
 0x1ed   : > { %v993_v41 = vpack.i.b16 %v911_v32, %v895_v26  ;;  %v996_v50 = vshrl.u32 %v911_v32, 16  ;;  %v1003_v60 = vshrl.u32 %v927_v33, 16 }
 0x1ef   : > { %v997_v4 = vpack.i.b16 %v996_v50, %v995_v59  ;;  %v1019_v59 = vshrl.u32 %v4691_v29, 16 }
 0x1f0   : > { %v4695_v34 = vpop.trf.xlu1  ;;  %v4697_v35 = vpop.trf.xlu0 }
 0x1f1   : > { %v1025_v50 = vpack.i.b16 %v4695_v34, %v4693_v30 }
 0x1f4   : > { %v943_v36 = vpop.trf.xlu1  ;;  %v959_v37 = vpop.trf.xlu0 }
 0x1f5   : > { %v1001_v51 = vpack.i.b16 %v943_v36, %v927_v33  ;;  %v1004_v52 = vshrl.u32 %v943_v36, 16  ;;  %v1011_v53 = vshrl.u32 %v959_v37, 16 }
 0x1f7   : > { %v1005_v5 = vpack.i.b16 %v1004_v52, %v1003_v60 }
 0x1f8   : > { %v4699_v38 = vpop.trf.xlu1  ;;  %v4701_v39 = vpop.trf.xlu0 }
 0x1f9   : > { %v1036_v60 = vshrl.u32 %v4699_v38, 16 }
 0x1fc   : > { %v975_v42 = vpop.trf.xlu1  ;;  %v879_v43 = vpop.trf.xlu0 }
 0x1fd   : > { %v1009_v44 = vpack.i.b16 %v975_v42, %v959_v37  ;;  %v1012_v45 = vshrl.u32 %v975_v42, 16  ;;  %v985_v46 = vpack.i.b16 %v879_v43, %v863_v25  ;;  %v988_v47 = vshrl.u32 %v879_v43, 16 }
 0x1ff   : > { %v1063_v54 = vcombine.low %v993_v41, %v1009_v44  ;;  %v1064_v56 = vcombine.high %v993_v41, %v1009_v44  ;;  %v1047_v57 = vcombine.low %v985_v46, %v1001_v51  ;;  %v1048_v58 = vcombine.high %v985_v46, %v1001_v51 }
 0x200   : > { %v1013_v61 = vpack.i.b16 %v1012_v45, %v1011_v53  ;;  %v989_v62 = vpack.i.b16 %v988_v47, %v987_v49  ;;  %v976_v33 = vpop.trf.xlu1  ;;  %v880_v43 = vpop.trf.xlu0  ;;  %v1033_v51 = vpack.i.b16 %v4699_v38, %v4697_v35 }
 0x201   : > { %v1055_v63 = vrot.slane %v1047_v57, %v4666_v48  ;;  %v1071_v0 = vrot.slane %v1063_v54, %v4666_v48  ;;  %v1062_v1 = vrot.slane %v1048_v58, %v4666_v48  ;;  %v1078_v3 = vrot.slane %v1064_v56, %v4666_v48 }
 0x202   : > { %v1115_v9 = vcombine.low %v989_v62, %v1005_v5  ;;  %v1131_v10 = vcombine.low %v997_v4, %v1013_v61  ;;  %v1116_v13 = vcombine.high %v989_v62, %v1005_v5  ;;  %v1132_v14 = vcombine.high %v997_v4, %v1013_v61 }
 0x203   : > { %v1080_v6 = vcombine.high %v1055_v63, %v1071_v0  ;;  %v1079_v7 = vcombine.low %v1055_v63, %v1071_v0  ;;  %v1095_v8 = vcombine.low %v1062_v1, %v1078_v3  ;;  %v1096_v19 = vcombine.high %v1062_v1, %v1078_v3 }
 0x204   : > { %v1123_v15 = vrot.slane %v1115_v9, %v4666_v48  ;;  %v1139_v16 = vrot.slane %v1131_v10, %v4666_v48  ;;  %v1130_v26 = vrot.slane %v1116_v13, %v4666_v48  ;;  %v1146_v32 = vrot.slane %v1132_v14, %v4666_v48 }
 0x205   : > { %v1094_v11 = vrot.slane %v1080_v6, %v4669_v55  ;;  %v1087_v12 = vrot.slane %v1079_v7, %v4669_v55  ;;  %v1103_v18 = vrot.slane %v1095_v8, %v4669_v55  ;;  %v1110_v36 = vrot.slane %v1096_v19, %v4669_v55 }
 0x206   : > { %v1148_v25 = vcombine.high %v1123_v15, %v1139_v16  ;;  %v1147_v41 = vcombine.low %v1123_v15, %v1139_v16  ;;  %v1163_v42 = vcombine.low %v1130_v26, %v1146_v32  ;;  %v1041_v44 = vpack.i.b16 %v976_v33, %v4701_v39 }
 0x207   : > { %1383 = vxpose.xlu1.c.b16.start.end [1/1] (short) (narrow) %v1094_v11, 16  ;;  %1319 = vxpose.xlu0.c.b16.start.end [1/1] (short) (narrow) %v1087_v12, 16  ;;  %v1111_v21 = vcombine.high %v1087_v12, %v4489_v2  ;;  %v1017_v45 = vpack.i.b16 %v880_v43, %v4691_v29  ;;  %v1164_v49 = vcombine.high %v1130_v26, %v1146_v32  ;;  %v1044_v52 = vshrl.u32 %v976_v33, 16 }
 0x208   : > { %v1162_v37 = vrot.slane %v1148_v25, %v4669_v55  ;;  %v1155_v46 = vrot.slane %v1147_v41, %v4669_v55  ;;  %v1171_v47 = vrot.slane %v1163_v42, %v4669_v55  ;;  %v1020_v53 = vshrl.u32 %v880_v43, 16 }
 0x209   : > { %v1199_v54 = vcombine.low %v1025_v50, %v1041_v44  ;;  %v1183_v56 = vcombine.low %v1017_v45, %v1033_v51  ;;  %v1112_v57 = vcombine.high %v1094_v11, %v4489_v2  ;;  %v1178_v58 = vrot.slane %v1164_v49, %v4669_v55 }
 0x20a   : > { %v1043_v61 = vshrl.u32 %v4701_v39, 16  ;;  %v1028_v62 = vshrl.u32 %v4695_v34, 16  ;;  %v1027_v63 = vshrl.u32 %v4693_v30, 16  ;;  %v1035_v0 = vshrl.u32 %v4697_v35, 16 }
 0x20b   : > { %1447 = vxpose.xlu1.c.b16.start.end [1/1] (short) (narrow) %v1103_v18, 16  ;;  %1351 = vxpose.xlu0.c.b16.start.end [1/1] (short) (narrow) %v1111_v21, 16  ;;  %v1021_v3 = vpack.i.b16 %v1020_v53, %v1019_v59  ;;  %v1113_v4 = vcombine.high %v1103_v18, %v4489_v2  ;;  %v1179_v5 = vcombine.high %v1155_v46, %v4489_v2 }
 0x20c   : > { %v1045_v1 = vpack.i.b16 %v1044_v52, %v1043_v61  ;;  %v1191_v29 = vrot.slane %v1183_v56, %v4666_v48  ;;  %v1207_v38 = vrot.slane %v1199_v54, %v4666_v48  ;;  %v1037_v6 = vpack.i.b16 %v1036_v60, %v1035_v0 }
 0x20d   : > { %v1029_v39 = vpack.i.b16 %v1028_v62, %v1027_v63  ;;  %v1200_v34 = vcombine.high %v1025_v50, %v1041_v44  ;;  %v1184_v7 = vcombine.high %v1017_v45, %v1033_v51  ;;  %v1114_v30 = vcombine.high %v1110_v36, %v4489_v2 }
 0x20e   : > { %v1251_v8 = vcombine.low %v1021_v3, %v1037_v6  ;;  %v1180_v35 = vcombine.high %v1162_v37, %v4489_v2  ;;  %v1215_v9 = vcombine.low %v1191_v29, %v1207_v38  ;;  %v1181_v11 = vcombine.high %v1171_v47, %v4489_v2 }
 0x20f   : > { %1511 = vxpose.xlu1.c.b16.start.end [1/1] (short) (narrow) %v1110_v36, 16  ;;  %1399 = vxpose.xlu0.c.b16.start.end [1/1] (short) (narrow) %v1162_v37, 16  ;;  %v1267_v10 = vcombine.low %v1029_v39, %v1045_v1  ;;  %v1216_v12 = vcombine.high %v1191_v29, %v1207_v38  ;;  %v1198_v16 = vrot.slane %v1184_v7, %v4666_v48  ;;  %v321_v54 = vsub.s32 2, %v4635_v28 }
 0x210   : > { %v1259_v13 = vrot.slane %v1251_v8, %v4666_v48  ;;  %v1223_v14 = vrot.slane %v1215_v9, %v4669_v55  ;;  %v1214_v18 = vrot.slane %v1200_v34, %v4666_v48  ;;  %v1182_v19 = vcombine.high %v1178_v58, %v4489_v2 }
 0x211   : > { %v1275_v15 = vrot.slane %v1267_v10, %v4666_v48  ;;  %v1230_v21 = vrot.slane %v1216_v12, %v4669_v55  ;;  %v1252_v32 = vcombine.high %v1021_v3, %v1037_v6  ;;  %v1268_v33 = vcombine.high %v1029_v39, %v1045_v1 }
 0x212   : > { %v1231_v26 = vcombine.low %v1198_v16, %v1214_v18  ;;  %v1232_v37 = vcombine.high %v1198_v16, %v1214_v18  ;;  %v1247_v50 = vcombine.high %v1223_v14, %v4489_v2 }
 0x213   : > { %1335 = vxpose.xlu1.c.b16.start.end [1/1] (short) (narrow) %v1155_v46, 16  ;;  %1463 = vxpose.xlu0.c.b16.start.end [1/1] (short) (narrow) %v1171_v47, 16  ;;  %v1283_v25 = vcombine.low %v1259_v13, %v1275_v15  ;;  %v1284_v36 = vcombine.high %v1259_v13, %v1275_v15  ;;  %v1266_v43 = vrot.slane %v1252_v32, %v4666_v48 }
 0x214   : > { %v1239_v42 = vrot.slane %v1231_v26, %v4669_v55  ;;  %v1282_v44 = vrot.slane %v1268_v33, %v4666_v48  ;;  %v1246_v46 = vrot.slane %v1232_v37, %v4669_v55  ;;  %v1248_v53 = vcombine.high %v1230_v21, %v4489_v2 }
 0x215   : > { %v1291_v41 = vrot.slane %v1283_v25, %v4669_v55  ;;  %v1298_v45 = vrot.slane %v1284_v36, %v4669_v55 }
 0x216   : > { %v1299_v47 = vcombine.low %v1266_v43, %v1282_v44  ;;  %v1300_v51 = vcombine.high %v1266_v43, %v1282_v44  ;;  %v1250_v60 = vcombine.high %v1246_v46, %v4489_v2 }
 0x217   : > { %1415 = vxpose.xlu1.c.b16.start.end [1/1] (short) (narrow) %v1112_v57, 16  ;;  %1527 = vxpose.xlu0.c.b16.start.end [1/1] (short) (narrow) %v1178_v58, 16  ;;  %v1315_v56 = vcombine.high %v1291_v41, %v4489_v2  ;;  %v1249_v57 = vcombine.high %v1239_v42, %v4489_v2  ;;  %v322_v58 = vrot.slane %v4644_v31, %v321_v54 }
 0x218   : > { %v1307_v49 = vrot.slane %v1299_v47, %v4669_v55  ;;  %v1314_v52 = vrot.slane %v1300_v51, %v4669_v55  ;;  %v1316_v59 = vcombine.high %v1298_v45, %v4489_v2 }
 0x219   : > { %v4764_v61 = vadd.f32 %v4683_v17, %v322_v58  ;;  %v561_v58 = vcombine.low %v4689_v24, %v4687_v23 }
 0x21a   : > { %v1317_v62 = vcombine.high %v1307_v49, %v4489_v2  ;;  %v1318_v63 = vcombine.high %v1314_v52, %v4489_v2 }
 0x21b   : > { %1479 = vxpose.xlu1.c.b16.start.end [1/1] (short) (narrow) %v1113_v4, 16  ;;  %1367 = vxpose.xlu0.c.b16.start.end [1/1] (short) (narrow) %v1179_v5, 16 }
 0x21f   : > { %1543 = vxpose.xlu1.c.b16.start.end [1/1] (short) (narrow) %v1114_v30, 16  ;;  %1431 = vxpose.xlu0.c.b16.start.end [1/1] (short) (narrow) %v1180_v35, 16 }
 0x223   : > { %1495 = vxpose.xlu0.c.b16.start.end [1/1] (short) (narrow) %v1181_v11, 16  ;;  %1575 = vxpose.xlu1.c.b16.start.end [1/1] (short) (narrow) %v1223_v14, 16 }
 0x227   : > { %1559 = vxpose.xlu0.c.b16.start.end [1/1] (short) (narrow) %v1182_v19, 16  ;;  %1639 = vxpose.xlu1.c.b16.start.end [1/1] (short) (narrow) %v1230_v21, 16 }
 0x22b   : > { %1591 = vxpose.xlu0.c.b16.start.end [1/1] (short) (narrow) %v1291_v41, 16  ;;  %1703 = vxpose.xlu1.c.b16.start.end [1/1] (short) (narrow) %v1239_v42, 16 }
 0x22f   : > { %1655 = vxpose.xlu0.c.b16.start.end [1/1] (short) (narrow) %v1298_v45, 16  ;;  %1767 = vxpose.xlu1.c.b16.start.end [1/1] (short) (narrow) %v1246_v46, 16 }
 0x233   : > { %1719 = vxpose.xlu0.c.b16.start.end [1/1] (short) (narrow) %v1307_v49, 16  ;;  %1607 = vxpose.xlu1.c.b16.start.end [1/1] (short) (narrow) %v1247_v50, 16 }
 0x237   : > { %1783 = vxpose.xlu0.c.b16.start.end [1/1] (short) (narrow) %v1314_v52, 16  ;;  %1671 = vxpose.xlu1.c.b16.start.end [1/1] (short) (narrow) %v1248_v53, 16 }
 0x23b   : > { %1623 = vxpose.xlu0.c.b16.start.end [1/1] (short) (narrow) %v1315_v56, 16  ;;  %1735 = vxpose.xlu1.c.b16.start.end [1/1] (short) (narrow) %v1249_v57, 16 }
 0x23f   : > { %1687 = vxpose.xlu0.c.b16.start.end [1/1] (short) (narrow) %v1316_v59, 16  ;;  %1799 = vxpose.xlu1.c.b16.start.end [1/1] (short) (narrow) %v1250_v60, 16  ;;  %v562_v59 = vcombine.high %v4689_v24, %v4687_v23 }
 0x243   : > { %1751 = vxpose.xlu0.c.b16.start.end [1/1] (short) (narrow) %v1317_v62, 16  ;;  %708 = vrot.lane.b32.xlu1 %v4764_v61, %s4493_s18  ;;  %v545_v62 = vcombine.low %v4656_v40, %v4685_v22 }
 0x245   : > { %v553_v23 = vrot.slane %v545_v62, %v4666_v48 }
 0x247   : > { %1815 = vxpose.xlu0.c.b16.start.end [1/1] (short) (narrow) %v1318_v63, 16  ;;  %714 = vrot.lane.b32.xlu1 %v4764_v61, %s4492_s17  ;;  %v546_v63 = vcombine.high %v4656_v40, %v4685_v22 }
 0x249   : > { %v560_v24 = vrot.slane %v546_v63, %v4666_v48 }
 0x250   : > { %711 = vrot.lane.b32.xlu0 %v4764_v61, %s4494_s20 }
 0x26d   : > { %v1391_v31 = vpop.trf.xlu1  ;;  %v1327_v0 = vpop.trf.xlu0 }
 0x26e   : > { %v1831_v13 = vcombine.low %v1327_v0, %v1391_v31 }
 0x270   : > { %v1838_v32 = vrot.slane %v1831_v13, %v4666_v48 }
 0x271   : > { %v1455_v1 = vpop.trf.xlu1  ;;  %v1359_v17 = vpop.trf.xlu0 }
 0x275   : > { %v1519_v3 = vpop.trf.xlu1  ;;  %v1407_v4 = vpop.trf.xlu0 }
 0x276   : > { %v1847_v35 = vcombine.low %v1455_v1, %v1519_v3  ;;  %v569_v1 = vrot.slane %v561_v58, %v4666_v48 }
 0x278   : > { %v1854_v16 = vrot.slane %v1847_v35, %v4666_v48 }
 0x279   : > { %v1343_v5 = vpop.trf.xlu1  ;;  %v1471_v29 = vpop.trf.xlu0 }
 0x27a   : > { %v1881_v14 = vcombine.low %v1343_v5, %v1407_v4  ;;  %v577_v5 = vcombine.low %v553_v23, %v569_v1 }
 0x27c   : > { %v1888_v33 = vrot.slane %v1881_v14, %v4666_v48 }
 0x27d   : > { %v1423_v38 = vpop.trf.xlu1  ;;  %v1535_v6 = vpop.trf.xlu0 }
 0x27e   : > { %v1839_v9 = vcombine.low %v1359_v17, %v1423_v38  ;;  %v1897_v19 = vcombine.low %v1471_v29, %v1535_v6  ;;  %v576_v17 = vrot.slane %v562_v59, %v4666_v48  ;;  %v578_v29 = vcombine.high %v553_v23, %v569_v1 }
 0x280   : > { %v1846_v18 = vrot.slane %v1839_v9, %v4666_v48  ;;  %v1904_v42 = vrot.slane %v1897_v19, %v4666_v48  ;;  %v593_v38 = vcombine.low %v560_v24, %v576_v17  ;;  %v594_v6 = vcombine.high %v560_v24, %v576_v17 }
 0x281   : > { %v1487_v39 = vpop.trf.xlu1  ;;  %v1375_v34 = vpop.trf.xlu0 }
 0x282   : > { %v1863_v41 = vcombine.low %v1838_v32, %v1846_v18 }
 0x284   : > { %v4790_v50 = vrot.slane %v1863_v41, %v4669_v55 }
 0x285   : > { %v1551_v7 = vpop.trf.xlu1  ;;  %v1439_v8 = vpop.trf.xlu0 }
 0x286   : > { %v1855_v30 = vcombine.low %v1487_v39, %v1551_v7  ;;  %v1889_v10 = vcombine.low %v1375_v34, %v1439_v8  ;;  %v585_v39 = vrot.slane %v577_v5, %v4669_v55  ;;  %v592_v34 = vrot.slane %v578_v29, %v4669_v55 }
 0x287   : > { %v601_v7 = vrot.slane %v593_v38, %v4669_v55  ;;  %v608_v8 = vrot.slane %v594_v6, %v4669_v55 }
 0x288   : > { %v1862_v15 = vrot.slane %v1855_v30, %v4666_v48  ;;  %v1896_v21 = vrot.slane %v1889_v10, %v4666_v48  ;;  %v609_v10 = vcombine.high %v585_v39, %v4490_v20 }
 0x289   : > { %v4774_v11 = vpop.trf.xlu1  ;;  %v1503_v12 = vpop.trf.xlu0  ;;  %v611_v13 = vcombine.high %v601_v7, %v4490_v20  ;;  %v612_v14 = vcombine.high %v608_v8, %v4490_v20 }
 0x28a   : > { %v1871_v36 = vcombine.low %v1854_v16, %v1862_v15  ;;  %v1913_v43 = vcombine.low %v1888_v33, %v1896_v21 }
 0x28b   : > { %v4235_v33 = vpack.c.bf16 %v611_v13, %v609_v10 }
 0x28c   : > { %v4787_v47 = vrot.slane %v1871_v36, %v4669_v55  ;;  %v4793_v51 = vrot.slane %v1913_v43, %v4669_v55 }
 0x28d   : > { %v4780_v25 = vpop.trf.xlu1  ;;  %v1567_v26 = vpop.trf.xlu0 }
 0x28e   : > { %v1905_v37 = vcombine.low %v1503_v12, %v1567_v26  ;;  %v4800_v56 = vcombine.low %v4790_v50, %v4787_v47  ;;  %v610_v12 = vcombine.high %v592_v34, %v4490_v20  ;;  %v1931_v21 = vcombine.low %v4774_v11, %v4780_v25 }
 0x290   : > { %v1912_v44 = vrot.slane %v1905_v37, %v4666_v48  ;;  %v4236_v36 = vpack.c.bf16 %v612_v14, %v610_v12 }
 0x291   : > { %v1711_v45 = vpop.trf.xlu1  ;;  %v1599_v46 = vpop.trf.xlu0 }
 0x292   : > { %v1921_v49 = vcombine.low %v1904_v42, %v1912_v44  ;;  %v4233_v44 = vpack.c.bf16 %v601_v7, %v585_v39  ;;  %v2035_v7 = vshrl.u32 %v4800_v56, 16 }
 0x294   : > { %v4796_v52 = vrot.slane %v1921_v49, %v4669_v55 }
 0x295   : > { %v1775_v53 = vpop.trf.xlu1  ;;  %v1663_v54 = vpop.trf.xlu0 }
 0x296   : > { %v4804_v57 = vcombine.low %v4793_v51, %v4796_v52  ;;  %v1947_v15 = vcombine.low %v1711_v45, %v1775_v53  ;;  %v1981_v26 = vcombine.low %v1599_v46, %v1663_v54  ;;  %v4234_v45 = vpack.c.bf16 %v608_v8, %v592_v34 }
 0x297   : > { %v1938_v53 = vrot.slane %v1931_v21, %v4666_v48  ;;  %v825_v46 = vrot.slane %v4235_v33, %v4666_v48  ;;  %v833_v54 = vrot.slane %v4236_v36, %v4666_v48 }
 0x298   : > { %v2033_v60 = vpack.i.b16 %v4804_v57, %v4800_v56  ;;  %v1954_v37 = vrot.slane %v1947_v15, %v4666_v48  ;;  %v1988_v58 = vrot.slane %v1981_v26, %v4666_v48  ;;  %v2036_v39 = vshrl.u32 %v4804_v57, 16 }
 0x299   : > { %v1615_v31 = vpop.trf.xlu1  ;;  %v1727_v0 = vpop.trf.xlu0  ;;  %v834_v23 = vcombine.low %v825_v46, %v833_v54  ;;  %v1930_v56 = vcombine.high %v4793_v51, %v4796_v52  ;;  %v1880_v15 = vcombine.high %v4790_v50, %v4787_v47 }
 0x29a   : > { %4327 = vmatpush3.bf16.msra.mxu1 %v2033_v60 }
 0x29b   : > { %4328 = vmatprep.subr.bf16.mxu1 %v4490_v20  ;;  %v2041_v36 = vpack.i.b16 %v1930_v56, %v1880_v15 }
 0x29d   : > { %v1679_v3 = vpop.trf.xlu1  ;;  %v1791_v4 = vpop.trf.xlu0 }
 0x29e   : > { %v1939_v16 = vcombine.low %v1615_v31, %v1679_v3  ;;  %v1997_v42 = vcombine.low %v1727_v0, %v1791_v4  ;;  %v800_v31 = vrot.slane %v4233_v44, %v4666_v48  ;;  %v808_v0 = vrot.slane %v4234_v45, %v4666_v48 }
 0x2a0   : > { %v1946_v41 = vrot.slane %v1939_v16, %v4666_v48  ;;  %v2004_v60 = vrot.slane %v1997_v42, %v4666_v48  ;;  %v809_v5 = vcombine.low %v800_v31, %v808_v0 }
 0x2a1   : > { %v1743_v40 = vpop.trf.xlu1  ;;  %v1631_v22 = vpop.trf.xlu0 }
 0x2a2   : > { %v1963_v59 = vcombine.low %v1938_v53, %v1946_v41  ;;  %v816_v34 = vrot.slane %v809_v5, %v4669_v55 }
 0x2a4   : > { %v1970_v24 = vrot.slane %v1963_v59, %v4669_v55  ;;  %v846_v14 = vshrl.u32 %v816_v34, 16  ;;  %v817_v44 = vcombine.high %v816_v34, %v4489_v2 }
 0x2a5   : > { %v1807_v30 = vpop.trf.xlu1  ;;  %v1695_v35 = vpop.trf.xlu0 }
 0x2a6   : > { %v1955_v9 = vcombine.low %v1743_v40, %v1807_v30  ;;  %v1989_v18 = vcombine.low %v1631_v22, %v1695_v35  ;;  %v841_v40 = vrot.slane %v834_v23, %v4669_v55  ;;  %v2037_v30 = vpack.i.b16 %v2036_v39, %v2035_v7 }
 0x2a8   : > { %v1962_v32 = vrot.slane %v1955_v9, %v4666_v48  ;;  %v1996_v43 = vrot.slane %v1989_v18, %v4666_v48  ;;  %v845_v8 = vpack.i.b16 %v841_v40, %v816_v34  ;;  %v847_v57 = vshrl.u32 %v841_v40, 16 }
 0x2a9   : > { %v1759_v19 = vpop.trf.xlu0  ;;  %v842_v47 = vcombine.high %v841_v40, %v4489_v2 }
 0x2aa   : > { %v1971_v11 = vcombine.low %v1954_v37, %v1962_v32  ;;  %v2013_v62 = vcombine.low %v1988_v58, %v1996_v43  ;;  %v848_v18 = vpack.i.b16 %v847_v57, %v846_v14  ;;  %v2044_v43 = vshrl.u32 %v1930_v56, 16 }
 0x2ab   : > { %v851_v58 = vpack.i.b16 %v842_v47, %v817_v44  ;;  %v853_v31 = vshrl.u32 %v842_v47, 16 }
 0x2ac   : > { %v1978_v1 = vrot.slane %v1971_v11, %v4669_v55  ;;  %v2020_v3 = vrot.slane %v2013_v62, %v4669_v55 }
 0x2ad   : > { %v1823_v49 = vpop.trf.xlu0 }
 0x2ae   : > { %v2005_v25 = vcombine.low %v1759_v19, %v1823_v49  ;;  %v1979_v29 = vcombine.low %v1970_v24, %v1978_v1  ;;  %v1980_v52 = vcombine.high %v1970_v24, %v1978_v1  ;;  %v2043_v49 = vshrl.u32 %v1880_v15, 16 }
 0x2af   : > { %v852_v24 = vshrl.u32 %v817_v44, 16 }
 0x2b0   : > { %v2012_v63 = vrot.slane %v2005_v25, %v4666_v48  ;;  %v2051_v10 = vshrl.u32 %v1979_v29, 16  ;;  %v2045_v54 = vpack.i.b16 %v2044_v43, %v2043_v49  ;;  %v2059_v62 = vshrl.u32 %v1980_v52, 16 }
 0x2b2   : > { %v2021_v17 = vcombine.low %v2004_v60, %v2012_v63 }
 0x2b4   : > { %v2028_v4 = vrot.slane %v2021_v17, %v4669_v55 }
 0x2b5   : > { %v709_v6 = vpop.permute.xlu1 %708 }
 0x2b6   : > { %v2029_v38 = vcombine.low %v2020_v3, %v2028_v4  ;;  %v2030_v33 = vcombine.high %v2020_v3, %v2028_v4  ;;  %v854_v4 = vpack.i.b16 %v853_v31, %v852_v24 }
 0x2b8   : > { %v2049_v22 = vpack.i.b16 %v2029_v38, %v1979_v29  ;;  %v2052_v9 = vshrl.u32 %v2029_v38, 16  ;;  %v2057_v42 = vpack.i.b16 %v2030_v33, %v1980_v52  ;;  %v2060_v59 = vshrl.u32 %v2030_v33, 16 }
 0x2b9   : > { %v715_v35 = vpop.permute.xlu1 %714 }
 0x2ba   : > { %4329 = vmatpush3.bf16.msra.mxu1 %v2049_v22  ;;  %v733_v12 = vcombine.low %v709_v6, %v715_v35  ;;  %v2053_v13 = vpack.i.b16 %v2052_v9, %v2051_v10  ;;  %v734_v19 = vcombine.high %v709_v6, %v715_v35  ;;  %v2061_v1 = vpack.i.b16 %v2060_v59, %v2059_v62 }
 0x2bb   : > { %4334 = vmatprep.subr.bf16.mxu1 %v4490_v20 }
 0x2bc   : > { %v741_v21 = vrot.slane %v733_v12, %v4666_v48  ;;  %v748_v50 = vrot.slane %v734_v19, %v4666_v48 }
 0x2bd   : > { %4331 = vmatmul.mubr.msk.bf16.vlgmr.msra.gmra.mrb[4].mxu1 %vm2063_vm1, %v845_v8 }
 0x2be   : > { %4335 = vmatpush3.bf16.msra.mxu1 %v2037_v30  ;;  %4338 = vmatprep.mubr.msk.bf16.mxu1 %vm4491_vm0, %v4490_v20 }
 0x2bf   : > { %4336 = vmatprep.subr.bf16.mxu1 %v4490_v20 }
 0x2c2   : > { %4337 = vmatpush3.bf16.msra.mxu1 %v2053_v13  ;;  %v712_v16 = vpop.permute.xlu0 %711 }
 0x2c3   : > { %v717_v26 = vcombine.low %v4764_v61, %v712_v16  ;;  %v718_v32 = vcombine.high %v4764_v61, %v712_v16  ;;  %4342 = vmatprep.subr.bf16.mxu1 %v4490_v20 }
 0x2c5   : > { %v725_v51 = vrot.slane %v717_v26, %v4666_v48  ;;  %4339 = vmatmul.mubr.msk.bf16.vlgmr.msra.gmra.mrb[8].mxu1 %vm2063_vm1, %v848_v18  ;;  %v732_v37 = vrot.slane %v718_v32, %v4666_v48 }
 0x2c6   : > { %4343 = vmatpush3.bf16.msra.mxu1 %v2041_v36  ;;  %4346 = vmatprep.mubr.msk.bf16.mxu1 %vm4491_vm0, %v4490_v20 }
 0x2c7   : > { %v749_v61 = vcombine.low %v725_v51, %v741_v21  ;;  %4344 = vmatprep.subr.bf16.mxu1 %v4490_v20  ;;  %v750_v41 = vcombine.high %v725_v51, %v741_v21  ;;  %v765_v46 = vcombine.low %v732_v37, %v748_v50  ;;  %v766_v23 = vcombine.high %v732_v37, %v748_v50 }
 0x2c9   : > { %v757_v45 = vrot.slane %v749_v61, %v4669_v55  ;;  %v764_v53 = vrot.slane %v750_v41, %v4669_v55  ;;  %v773_v0 = vrot.slane %v765_v46, %v4669_v55  ;;  %v780_v29 = vrot.slane %v766_v23, %v4669_v55 }
 0x2ca   : > { %4345 = vmatpush3.bf16.msra.mxu1 %v2057_v42 }
 0x2cb   : > { %4350 = vmatprep.subr.bf16.mxu1 %v4490_v20  ;;  %v785_v11 = vpack.c.bf16 %v757_v45, %v757_v45  ;;  %v781_v25 = vcombine.high %v757_v45, %v4490_v20  ;;  %v782_v63 = vcombine.high %v764_v53, %v4490_v20  ;;  %v787_v17 = vpack.c.bf16 %v764_v53, %v764_v53 }
 0x2cc   : > { %v783_v5 = vcombine.high %v773_v0, %v4490_v20  ;;  %v789_v38 = vpack.c.bf16 %v773_v0, %v773_v0  ;;  %v784_v40 = vcombine.high %v780_v29, %v4490_v20  ;;  %v791_v22 = vpack.c.bf16 %v780_v29, %v780_v29 }
 0x2cd   : > { %4347 = vmatmul.mubr.msk.bf16.vlgmr.msra.gmra.mrb[12].mxu1 %vm2063_vm1, %v851_v58  ;;  %2294 = vxpose.xlu0.c.b16.start.end [1/1] (short) (narrow) %v785_v11, 32  ;;  %v786_v60 = vpack.c.bf16 %v781_v25, %v781_v25  ;;  %v788_v3 = vpack.c.bf16 %v782_v63, %v782_v63 }
 0x2ce   : > { %4351 = vmatpush3.bf16.msra.mxu1 %v2045_v54  ;;  %4354 = vmatprep.mubr.msk.bf16.mxu1 %vm4491_vm0, %v4490_v20  ;;  %v790_v6 = vpack.c.bf16 %v783_v5, %v783_v5  ;;  %v792_v39 = vpack.c.bf16 %v784_v40, %v784_v40 }
 0x2cf   : > { %2310 = vxpose.xlu1.c.b16.start.end [1/1] (short) (narrow) %v786_v60, 32  ;;  %4352 = vmatprep.subr.bf16.mxu1 %v4490_v20 }
 0x2d2   : > { %4353 = vmatpush3.bf16.msra.mxu1 %v2061_v1  ;;  %2326 = vxpose.xlu0.c.b16.start.end [1/1] (short) (narrow) %v787_v17, 32 }
 0x2d4   : > { %2342 = vxpose.xlu1.c.b16.start.end [1/1] (short) (narrow) %v788_v3, 32 }
 0x2d5   : > { %4355 = vmatmul.mubr.msk.bf16.vlgmr.msra.gmra.mrb[16].mxu1 %vm2063_vm1, %v854_v4 }
 0x2d7   : > { %2358 = vxpose.xlu0.c.b16.start.end [1/1] (short) (narrow) %v789_v38, 32 }
 0x2d9   : > { %2374 = vxpose.xlu1.c.b16.start.end [1/1] (short) (narrow) %v790_v6, 32 }
 0x2dc   : > { %2390 = vxpose.xlu0.c.b16.start.end [1/1] (short) (narrow) %v791_v22, 32 }
 0x2de   : > { %2406 = vxpose.xlu1.c.b16.start.end [1/1] (short) (narrow) %v792_v39, 32 }
 0x333   : > { %v2302_v34 = vpop.trf.xlu0 }
 0x334   : > { %v2426_v16 = vshrl.u32 %v2302_v34, 16 }
 0x335   : > { %v2318_v7 = vpop.trf.xlu1 }
 0x336   : > { %v2427_v18 = vshrl.u32 %v2318_v7, 16  ;;  %v4889_v26 = vpack.i.b16 %v2318_v7, %v2302_v34 }
 0x337   : > { %v2303_v8 = vpop.trf.xlu0 }
 0x338   : > { %v2458_v13 = vshrl.u32 %v2303_v8, 16  ;;  %v4893_v42 = vpack.i.b16 %v2427_v18, %v2426_v16 }
 0x339   : > { %v2319_v30 = vpop.trf.xlu1 }
 0x33a   : > { %v2459_v14 = vshrl.u32 %v2319_v30, 16  ;;  %v4887_v19 = vpack.i.b16 %v2319_v30, %v2303_v8 }
 0x33b   : > { %v2334_v35 = vpop.trf.xlu0 }
 0x33c   : > { %v2460_v51 = vpack.i.b16 %v2459_v14, %v2458_v13  ;;  %v2434_v37 = vshrl.u32 %v2334_v35, 16 }
 0x33d   : > { %v2350_v9 = vpop.trf.xlu1 }
 0x33e   : > { %v2435_v61 = vshrl.u32 %v2350_v9, 16  ;;  %v2432_v43 = vpack.i.b16 %v2350_v9, %v2334_v35 }
 0x33f   : > { %v2335_v10 = vpop.trf.xlu0 }
 0x340   : > { %v2466_v49 = vshrl.u32 %v2335_v10, 16  ;;  %v2436_v60 = vpack.i.b16 %v2435_v61, %v2434_v37 }
 0x341   : > { %v2351_v57 = vpop.trf.xlu1 }
 0x342   : > { %v2467_v53 = vshrl.u32 %v2351_v57, 16  ;;  %v2464_v31 = vpack.i.b16 %v2351_v57, %v2335_v10 }
 0x343   : > { %v2366_v12 = vpop.trf.xlu0 }
 0x344   : > { %v2442_v32 = vshrl.u32 %v2366_v12, 16  ;;  %v2468_v17 = vpack.i.b16 %v2467_v53, %v2466_v49 }
 0x345   : > { %v2382_v56 = vpop.trf.xlu1 }
 0x346   : > { %v2443_v33 = vshrl.u32 %v2382_v56, 16  ;;  %v4891_v52 = vpack.i.b16 %v2382_v56, %v2366_v12 }
 0x347   : > { %v2367_v15 = vpop.trf.xlu0 }
 0x348   : > { %v2474_v21 = vshrl.u32 %v2367_v15, 16  ;;  %v4896_v58 = vpack.i.b16 %v2443_v33, %v2442_v32  ;;  %v2486_v46 = vcombine.low %v4889_v26, %v4891_v52 }
 0x349   : > { %v2383_v36 = vpop.trf.xlu1 }
 0x34a   : > { %v2472_v47 = vpack.i.b16 %v2383_v36, %v2367_v15  ;;  %v2475_v50 = vshrl.u32 %v2383_v36, 16  ;;  %v2554_v23 = vcombine.low %v4893_v42, %v4896_v58  ;;  %v2494_v29 = vrot.slane %v2486_v46, %v4666_v48 }
 0x34b   : > { %v2398_v41 = vpop.trf.xlu0 }
 0x34c   : > { %v2476_v44 = vpack.i.b16 %v2475_v50, %v2474_v21  ;;  %v2623_v45 = vcombine.high %v4887_v19, %v2472_v47  ;;  %v2450_v11 = vshrl.u32 %v2398_v41, 16  ;;  %v2562_v34 = vrot.slane %v2554_v23, %v4666_v48 }
 0x34d   : > { %v2414_v25 = vpop.trf.xlu1  ;;  %v2622_v9 = vcombine.low %v4887_v19, %v2472_v47  ;;  %v2487_v47 = vcombine.high %v4889_v26, %v4891_v52 }
 0x34e   : > { %v2691_v54 = vcombine.high %v2460_v51, %v2476_v44  ;;  %v2448_v59 = vpack.i.b16 %v2414_v25, %v2398_v41  ;;  %v2451_v62 = vshrl.u32 %v2414_v25, 16  ;;  %v2690_v10 = vcombine.low %v2460_v51, %v2476_v44 }
 0x34f   : > { %v2399_v63 = vpop.trf.xlu0  ;;  %v4923_v32 = vrot.slane %v2622_v9, %v4666_v48  ;;  %v4936_v50 = vrot.slane %v2623_v45, %v4666_v48  ;;  %v2555_v45 = vcombine.high %v4893_v42, %v4896_v58 }
 0x350   : > { %v2502_v0 = vcombine.low %v2432_v43, %v2448_v59  ;;  %v2482_v1 = vshrl.u32 %v2399_v63, 16  ;;  %v2452_v24 = vpack.i.b16 %v2451_v62, %v2450_v11  ;;  %v4912_v13 = vrot.slane %v2691_v54, %v4666_v48 }
 0x351   : > { %v2415_v3 = vpop.trf.xlu1  ;;  %v2503_v14 = vcombine.high %v2432_v43, %v2448_v59  ;;  %v4926_v33 = vrot.slane %v2690_v10, %v4666_v48  ;;  %v2501_v11 = vrot.slane %v2487_v47, %v4666_v48  ;;  %v2569_v62 = vrot.slane %v2555_v45, %v4666_v48 }
 0x352   : > { %v2480_v4 = vpack.i.b16 %v2415_v3, %v2399_v63  ;;  %v2483_v5 = vshrl.u32 %v2415_v3, 16  ;;  %v2510_v38 = vrot.slane %v2502_v0, %v4666_v48  ;;  %v2570_v6 = vcombine.low %v2436_v60, %v2452_v24 }
 0x353   : > { %v2571_v37 = vcombine.high %v2436_v60, %v2452_v24  ;;  %v2517_v53 = vrot.slane %v2503_v14, %v4666_v48 }
 0x354   : > { %v2484_v40 = vpack.i.b16 %v2483_v5, %v2482_v1  ;;  %v2639_v22 = vcombine.high %v2464_v31, %v2480_v4  ;;  %v2518_v39 = vcombine.low %v2494_v29, %v2510_v38  ;;  %v2578_v7 = vrot.slane %v2570_v6, %v4666_v48 }
 0x355   : > { %v2638_v8 = vcombine.low %v2464_v31, %v2480_v4  ;;  %v2519_v21 = vcombine.high %v2494_v29, %v2510_v38  ;;  %v2585_v54 = vrot.slane %v2571_v37, %v4666_v48  ;;  %v2534_v60 = vcombine.low %v2501_v11, %v2517_v53 }
 0x356   : > { %v2707_v30 = vcombine.high %v2468_v17, %v2484_v40  ;;  %v2526_v35 = vrot.slane %v2518_v39, %v4669_v55  ;;  %v2706_v57 = vcombine.low %v2468_v17, %v2484_v40  ;;  %v2586_v12 = vcombine.low %v2562_v34, %v2578_v7 }
 0x357   : > { %v4916_v16 = vrot.slane %v2639_v22, %v4666_v48  ;;  %v4920_v19 = vrot.slane %v2638_v8, %v4666_v48  ;;  %v2587_v41 = vcombine.high %v2562_v34, %v2578_v7  ;;  %v2533_v49 = vrot.slane %v2519_v21, %v4669_v55 }
 0x358   : > { %v4909_v56 = vrot.slane %v2707_v30, %v4666_v48  ;;  %2758 = vxpose.xlu0.c.b16.start.end [1/1] (short) (narrow) %v2526_v35, 16  ;;  %v2594_v15 = vrot.slane %v2586_v12, %v4669_v55  ;;  %v2550_v18 = vcombine.high %v2526_v35, %v4489_v2  ;;  %v4929_v36 = vrot.slane %v2706_v57, %v4666_v48 }
 0x359   : > { %v2655_v43 = vcombine.high %v4923_v32, %v4920_v19  ;;  %v2670_v52 = vcombine.low %v4936_v50, %v4916_v16  ;;  %v2671_v25 = vcombine.high %v4936_v50, %v4916_v16  ;;  %v2601_v46 = vrot.slane %v2587_v41, %v4669_v55 }
 0x35a   : > { %2774 = vxpose.xlu1.c.b16.start.end [1/1] (short) (narrow) %v2594_v15, 16  ;;  %v2738_v51 = vcombine.low %v4912_v13, %v4909_v56  ;;  %v2618_v61 = vcombine.high %v2594_v15, %v4489_v2  ;;  %v2723_v44 = vcombine.high %v4926_v33, %v4929_v36  ;;  %v2739_v26 = vcombine.high %v4912_v13, %v4909_v56 }
 0x35b   : > { %v2551_v59 = vcombine.high %v2533_v49, %v4489_v2  ;;  %v2619_v42 = vcombine.high %v2601_v46, %v4489_v2  ;;  %v2602_v58 = vcombine.low %v2569_v62, %v2585_v54  ;;  %v2542_v63 = vrot.slane %v2534_v60, %v4669_v55 }
 0x35c   : > { %2790 = vxpose.xlu0.c.b16.start.end [1/1] (short) (narrow) %v2550_v18, 16  ;;  %v2535_v1 = vcombine.high %v2501_v11, %v2517_v53  ;;  %v2603_v23 = vcombine.high %v2569_v62, %v2585_v54  ;;  %v2654_v5 = vcombine.low %v4923_v32, %v4920_v19  ;;  %v2722_v38 = vcombine.low %v4926_v33, %v4929_v36 }
 0x35d   : > { %v2610_v31 = vrot.slane %v2602_v58, %v4669_v55  ;;  %v2552_v0 = vcombine.high %v2542_v63, %v4489_v2  ;;  %v2239_v22 = vand.u32 127, %v311_v27  ;;  %v2753_v36 = vrot.slane %v2739_v26, %v4669_v55 }
 0x35e   : > { %2806 = vxpose.xlu1.c.b16.start.end [1/1] (short) (narrow) %v2618_v61, 16  ;;  %v2549_v24 = vrot.slane %v2535_v1, %v4669_v55  ;;  %v2617_v3 = vrot.slane %v2603_v23, %v4669_v55  ;;  %v2662_v6 = vrot.slane %v2654_v5, %v4669_v55  ;;  %v2730_v40 = vrot.slane %v2722_v38, %v4669_v55 }
 0x35f   : > { %v2620_v17 = vcombine.high %v2610_v31, %v4489_v2  ;;  %vm2240_vm2 = vcmp.le.s32.totalorder %v2239_v22, %v4635_v28  ;;  %v2685_v32 = vrot.slane %v2671_v25, %v4669_v55 }
 0x360   : > { %2822 = vxpose.xlu0.c.b16.start.end [1/1] (short) (narrow) %v2533_v49, 16  ;;  %v2553_v4 = vcombine.high %v2549_v24, %v4489_v2  ;;  %v2621_v29 = vcombine.high %v2617_v3, %v4489_v2  ;;  %v2754_v45 = vcombine.high %v2730_v40, %v4489_v2  ;;  %v2686_v60 = vcombine.high %v2662_v6, %v4489_v2 }
 0x362   : > { %2838 = vxpose.xlu1.c.b16.start.end [1/1] (short) (narrow) %v2601_v46, 16 }
 0x364   : > { %2854 = vxpose.xlu0.c.b16.start.end [1/1] (short) (narrow) %v2551_v59, 16 }
 0x366   : > { %2870 = vxpose.xlu1.c.b16.start.end [1/1] (short) (narrow) %v2619_v42, 16 }
 0x368   : > { %2886 = vxpose.xlu0.c.b16.start.end [1/1] (short) (narrow) %v2542_v63, 16 }
 0x36a   : > { %2902 = vxpose.xlu1.c.b16.start.end [1/1] (short) (narrow) %v2610_v31, 16 }
 0x36c   : > { %2918 = vxpose.xlu0.c.b16.start.end [1/1] (short) (narrow) %v2552_v0, 16 }
 0x36e   : > { %2934 = vxpose.xlu1.c.b16.start.end [1/1] (short) (narrow) %v2620_v17, 16 }
 0x370   : > { %2950 = vxpose.xlu0.c.b16.start.end [1/1] (short) (narrow) %v2549_v24, 16 }
 0x372   : > { %2966 = vxpose.xlu1.c.b16.start.end [1/1] (short) (narrow) %v2617_v3, 16 }
 0x374   : > { %2982 = vxpose.xlu0.c.b16.start.end [1/1] (short) (narrow) %v2553_v4, 16 }
 0x376   : > { %2998 = vxpose.xlu1.c.b16.start.end [1/1] (short) (narrow) %v2621_v29, 16 }
 0x378   : > { %3014 = vxpose.xlu0.c.b16.start.end [1/1] (short) (narrow) %v2662_v6, 16 }
 0x37a   : > { %3030 = vxpose.xlu1.c.b16.start.end [1/1] (short) (narrow) %v2730_v40, 16 }
 0x390   : > { %v2101_v39 = vpop.f32.mrb[4].mxu1 }
 0x391   : > { %v4977_v34 = vsel %vm2240_vm2, %v2101_v39, -1e+30  ;;  %v4332_v7 = vpop.f32.mrb[5].mxu1 }
 0x392   : > { %v2104_v8 = vpop.f32.mrb[6].mxu1  ;;  %v2246_v30 = vsel %vm2245_vm3, %v4977_v34, -inf }
 0x393   : > { %v4333_v35 = vpop.f32.mrb[7].mxu1  ;;  %2247 = vmax.xlane.f32.xlu1 %v2246_v30 }
 0x398   : > { %v2144_v9 = vpop.f32.mrb[8].mxu1 }
 0x399   : > { %v4983_v10 = vsel %vm2240_vm2, %v2144_v9, -1e+30  ;;  %v4340_v27 = vpop.f32.mrb[9].mxu1 }
 0x39a   : > { %v2147_v57 = vpop.f32.mrb[10].mxu1  ;;  %v2249_v12 = vsel %vm2245_vm3, %v4983_v10, -inf }
 0x39b   : > { %v4341_v14 = vpop.f32.mrb[11].mxu1  ;;  %2250 = vmax.xlane.f32.xlu0 %v2249_v12 }
 0x3a0   : > { %v2187_v15 = vpop.f32.mrb[12].mxu1 }
 0x3a1   : > { %v4348_v18 = vpop.f32.mrb[13].mxu1  ;;  %v4995_v42 = vsel %vm2240_vm2, %v2187_v15, -1e+30 }
 0x3a2   : > { %v2190_v21 = vpop.f32.mrb[14].mxu1  ;;  %v2252_v31 = vsel %vm2245_vm3, %v4995_v42, -inf }
 0x3a3   : > { %v4349_v47 = vpop.f32.mrb[15].mxu1 }
 0x3a8   : > { %v2230_v37 = vpop.f32.mrb[16].mxu1 }
 0x3a9   : > { %v4989_v61 = vsel %vm2240_vm2, %v2230_v37, -1e+30  ;;  %v4356_v41 = vpop.f32.mrb[17].mxu1 }
 0x3aa   : > { %v2233_v49 = vpop.f32.mrb[18].mxu1  ;;  %v2255_v4 = vsel %vm2245_vm3, %v4989_v61, -inf }
 0x3ab   : > { %v4357_v53 = vpop.f32.mrb[19].mxu1 }
 0x3be   : > { %v2766_v11 = vpop.trf.xlu0 }
 0x3c0   : > { %3062 = vxpose.xlu1.c.b16.start.end [1/1] (short) (narrow) %v2754_v45, 16  ;;  %v2782_v46 = vpop.trf.xlu1 }
 0x3c2   : > { %v2798_v54 = vpop.trf.xlu0 }
 0x3c4   : > { %v2814_v59 = vpop.trf.xlu1 }
 0x3c6   : > { %v2830_v62 = vpop.trf.xlu0 }
 0x3c7   : > { %v3270_v24 = vcombine.low %v2766_v11, %v2830_v62 }
 0x3c8   : > { %3046 = vxpose.xlu0.c.b16.start.end [1/1] (short) (narrow) %v2686_v60, 16  ;;  %v2846_v58 = vpop.trf.xlu1 }
 0x3c9   : > { %v3320_v28 = vcombine.low %v2782_v46, %v2846_v58  ;;  %v3277_v6 = vrot.slane %v3270_v24, %v4666_v48  ;;  %v2737_v24 = vrot.slane %v2723_v44, %v4669_v55 }
 0x3ca   : > { %v2862_v63 = vpop.trf.xlu0 }
 0x3cb   : > { %v3278_v3 = vcombine.low %v2798_v54, %v2862_v63  ;;  %v3327_v7 = vrot.slane %v3320_v28, %v4666_v48 }
 0x3cc   : > { %v2878_v0 = vpop.trf.xlu1 }
 0x3cd   : > { %2253 = vmax.xlane.f32.xlu1 %v2252_v31  ;;  %v3328_v29 = vcombine.low %v2814_v59, %v2878_v0  ;;  %v3285_v40 = vrot.slane %v3278_v3, %v4666_v48  ;;  %v2755_v3 = vcombine.high %v2737_v24, %v4489_v2 }
 0x3ce   : > { %v2894_v1 = vpop.trf.xlu0 }
 0x3cf   : > { %v3335_v8 = vrot.slane %v3328_v29, %v4666_v48  ;;  %v3302_v9 = vcombine.low %v3277_v6, %v3285_v40 }
 0x3d0   : > { %v2910_v17 = vpop.trf.xlu1 }
 0x3d1   : > { %v3352_v15 = vcombine.low %v3327_v7, %v3335_v8  ;;  %v3309_v47 = vrot.slane %v3302_v9, %v4669_v55 }
 0x3d2   : > { %v2926_v23 = vpop.trf.xlu0 }
 0x3d3   : > { %v3359_v53 = vrot.slane %v3352_v15, %v4669_v55 }
 0x3d4   : > { %v2942_v5 = vpop.trf.xlu1 }
 0x3d5   : > { %2256 = vmax.xlane.f32.xlu0 %v2255_v4  ;;  %v2746_v4 = vrot.slane %v2738_v51, %v4669_v55  ;;  %v2678_v51 = vrot.slane %v2670_v52, %v4669_v55 }
 0x3d6   : > { %v2958_v38 = vpop.trf.xlu0 }
 0x3d7   : > { %v3286_v22 = vcombine.low %v2894_v1, %v2958_v38  ;;  %v2756_v28 = vcombine.high %v2746_v4, %v4489_v2  ;;  %v2688_v19 = vcombine.high %v2678_v51, %v4489_v2 }
 0x3d8   : > { %v2974_v39 = vpop.trf.xlu1 }
 0x3d9   : > { %v3336_v30 = vcombine.low %v2910_v17, %v2974_v39  ;;  %v3293_v27 = vrot.slane %v3286_v22, %v4666_v48 }
 0x3da   : > { %v2990_v35 = vpop.trf.xlu0 }
 0x3db   : > { %v3294_v57 = vcombine.low %v2926_v23, %v2990_v35  ;;  %v3343_v18 = vrot.slane %v3336_v30, %v4666_v48 }
 0x3dc   : > { %v3006_v12 = vpop.trf.xlu1 }
 0x3dd   : > { %v3301_v14 = vrot.slane %v3294_v57, %v4666_v48  ;;  %v3344_v21 = vcombine.low %v2942_v5, %v3006_v12  ;;  %v2669_v5 = vrot.slane %v2655_v43, %v4669_v55 }
 0x3de   : > { %v3022_v13 = vpop.trf.xlu0 }
 0x3df   : > { %v3310_v37 = vcombine.low %v3293_v27, %v3301_v14  ;;  %v3351_v41 = vrot.slane %v3344_v21, %v4666_v48  ;;  %v2687_v33 = vcombine.high %v2669_v5, %v4489_v2 }
 0x3e0   : > { %v3038_v43 = vpop.trf.xlu1 }
 0x3e1   : > { %v3317_v49 = vrot.slane %v3310_v37, %v4669_v55  ;;  %v3360_v45 = vcombine.low %v3343_v18, %v3351_v41 }
 0x3e3   : > { %v3318_v11 = vcombine.low %v3309_v47, %v3317_v49  ;;  %v5012_v46 = vcombine.high %v3309_v47, %v3317_v49  ;;  %v3367_v54 = vrot.slane %v3360_v45, %v4669_v55 }
 0x3e5   : > { %v3368_v59 = vcombine.low %v3359_v53, %v3367_v54  ;;  %v5015_v60 = vcombine.high %v3359_v53, %v3367_v54  ;;  %v3473_v62 = vshrl.u32 %v3318_v11, 16  ;;  %v3479_v58 = vshrl.u32 %v5012_v46, 16 }
 0x3e6   : > { %v2689_v54 = vcombine.high %v2685_v32, %v4489_v2 }
 0x3e7   : > { %v3472_v63 = vpack.i.b16 %v3368_v59, %v3318_v11  ;;  %v3474_v31 = vshrl.u32 %v3368_v59, 16  ;;  %v3478_v0 = vpack.i.b16 %v5015_v60, %v5012_v46  ;;  %v3480_v1 = vshrl.u32 %v5015_v60, 16 }
 0x3e8   : > { %v2757_v59 = vcombine.high %v2753_v36, %v4489_v2 }
 0x3e9   : > { %4360 = vmatprep.mubr.msk.bf16.mxu0 %vm2245_vm3, %v3472_v63  ;;  %v3475_v17 = vpack.i.b16 %v3474_v31, %v3473_v62  ;;  %v5022_v23 = vpack.i.b16 %v3480_v1, %v3479_v58 }
 0x3eb   : > { %4366 = vmatprep.mubr.msk.bf16.mxu1 %vm2245_vm3, %v3475_v17 }
 0x3fa   : > { %3094 = vxpose.xlu1.c.b16.start.end [1/1] (short) (narrow) %v2737_v24, 16 }
 0x3fe   : > { %3126 = vxpose.xlu1.c.b16.start.end [1/1] (short) (narrow) %v2755_v3, 16 }
 0x402   : > { %3158 = vxpose.xlu1.c.b16.start.end [1/1] (short) (narrow) %v2746_v4, 16  ;;  %3078 = vxpose.xlu0.c.b16.start.end [1/1] (short) (narrow) %v2669_v5, 16 }
 0x406   : > { %3190 = vxpose.xlu1.c.b16.start.end [1/1] (short) (narrow) %v2756_v28, 16  ;;  %3110 = vxpose.xlu0.c.b16.start.end [1/1] (short) (narrow) %v2687_v33, 16 }
 0x40a   : > { %3222 = vxpose.xlu1.c.b16.start.end [1/1] (short) (narrow) %v2753_v36, 16  ;;  %3142 = vxpose.xlu0.c.b16.start.end [1/1] (short) (narrow) %v2678_v51, 16 }
 0x40e   : > { %3174 = vxpose.xlu0.c.b16.start.end [1/1] (short) (narrow) %v2688_v19, 16 }
 0x412   : > { %3206 = vxpose.xlu0.c.b16.start.end [1/1] (short) (narrow) %v2685_v32, 16 }
 0x420   : > { %v2248_v44 = vpop.xlane.xlu1 %2247 }
 0x421   : > { %v2258_v56 = vsub.f32 %v4977_v34, %v2248_v44 }
 0x423   : > { %v2262_v26 = vmul.f32 1.442695, %v2258_v56 }
 0x425   : > { %4462 = vpow2.f32 %v2262_v26 }
 0x426   : > { %v3070_v50 = vpop.trf.xlu1 }
 0x428   : > { %v2251_v29 = vpop.xlane.xlu0 %2250 }
 0x429   : > { %v2259_v52 = vsub.f32 %v4983_v10, %v2251_v29 }
 0x42b   : > { %v2264_v38 = vmul.f32 1.442695, %v2259_v52 }
 0x42d   : > { %4464 = vpow2.f32 %v2264_v38 }
 0x42e   : > { %v3054_v39 = vpop.trf.xlu0 }
 0x42f   : > { %v4463_v6 = vpop.eup %4462 }
 0x430   : > { %v2270_v40 = vsel %vm2245_vm3, %v4463_v6, 0.0 }
 0x431   : > { %2271 = vadd.xlane.f32.xlu0 %v2270_v40 }
 0x437   : > { %v4465_v22 = vpop.eup %4464 }
 0x438   : > { %v2273_v16 = vsel %vm2245_vm3, %v4465_v22, 0.0 }
 0x439   : > { %2274 = vadd.xlane.f32.xlu1 %v2273_v16 }
 0x45a   : > { %v2254_v25 = vpop.xlane.xlu1 %2253 }
 0x45b   : > { %v2260_v34 = vsub.f32 %v4995_v42, %v2254_v25 }
 0x45d   : > { %v2266_v7 = vmul.f32 1.442695, %v2260_v34 }
 0x45f   : > { %4466 = vpow2.f32 %v2266_v7 }
 0x460   : > { %v3102_v8 = vpop.trf.xlu1 }
 0x461   : > { %v3420_v10 = vcombine.low %v3038_v43, %v3102_v8 }
 0x462   : > { %v2257_v30 = vpop.xlane.xlu0 %2256 }
 0x463   : > { %v2261_v35 = vsub.f32 %v4989_v61, %v2257_v30  ;;  %v5060_v12 = vrot.slane %v3420_v10, %v4666_v48 }
 0x464   : > { %v3134_v9 = vpop.trf.xlu1 }
 0x465   : > { %v2268_v27 = vmul.f32 1.442695, %v2261_v35  ;;  %v3428_v57 = vcombine.low %v3070_v50, %v3134_v9 }
 0x467   : > { %4468 = vpow2.f32 %v2268_v27  ;;  %v5063_v14 = vrot.slane %v3428_v57, %v4666_v48 }
 0x468   : > { %v3086_v15 = vpop.trf.xlu0  ;;  %v3166_v63 = vpop.trf.xlu1 }
 0x469   : > { %v4467_v42 = vpop.eup %4466  ;;  %v3452_v18 = vcombine.low %v5060_v12, %v5063_v14  ;;  %v3370_v47 = vcombine.low %v3022_v13, %v3086_v15 }
 0x46a   : > { %v2276_v21 = vsel %vm2245_vm3, %v4467_v42, 0.0 }
 0x46b   : > { %2277 = vadd.xlane.f32.xlu0 %v2276_v21  ;;  %v3377_v41 = vrot.slane %v3370_v47, %v4666_v48  ;;  %v3459_v27 = vrot.slane %v3452_v18, %v4669_v55 }
 0x46c   : > { %v3118_v61 = vpop.trf.xlu0  ;;  %v3198_v1 = vpop.trf.xlu1 }
 0x46d   : > { %v3378_v37 = vcombine.low %v3054_v39, %v3118_v61 }
 0x46f   : > { %v3385_v49 = vrot.slane %v3378_v37, %v4666_v48 }
 0x470   : > { %v3150_v62 = vpop.trf.xlu0  ;;  %v3230_v24 = vpop.trf.xlu1 }
 0x471   : > { %v4469_v53 = vpop.eup %4468  ;;  %v3402_v45 = vcombine.low %v3377_v41, %v3385_v49 }
 0x472   : > { %v2279_v11 = vsel %vm2245_vm3, %v4469_v53, 0.0 }
 0x473   : > { %2280 = vadd.xlane.f32.xlu1 %v2279_v11  ;;  %v3409_v40 = vrot.slane %v3402_v45, %v4669_v55 }
 0x474   : > { %v3182_v58 = vpop.trf.xlu0 }
 0x478   : > { %v3214_v31 = vpop.trf.xlu0 }
 0x479   : > { %v3386_v43 = vcombine.low %v3150_v62, %v3214_v31 }
 0x47b   : > { %v3393_v26 = vrot.slane %v3386_v43, %v4666_v48 }
 0x498   : > { %3238 = vxpose.xlu0.c.b16.start.end [1/1] (short) (narrow) %v2689_v54, 16 }
 0x4a0   : > { %3254 = vxpose.xlu1.c.b16.start.end [1/1] (short) (narrow) %v2757_v59, 16 }
 0x4be   : > { %v2272_v17 = vpop.xlane.xlu0 %2271 }
 0x4bf   : > { %4470 = vrcp.f32 %v2272_v17 }
 0x4c6   : > { %v2275_v3 = vpop.xlane.xlu1 %2274 }
 0x4c7   : > { %4472 = vrcp.f32 %v2275_v3 }
 0x4c9   : > { %v4471_v4 = vpop.eup %4470 }
 0x4ca   : > { %v2286_v5 = vmul.f32 %v4471_v4, %v4463_v6 }
 0x4cc   : > { %v2290_v28 = vpack.c.bf16 %v2286_v5, %v2286_v5  ;;  %v4454_v5 = vld [vmem:[%s5177_s3] sm:$0xff]  }
 0x4ce   : > { %4402 = vmatprep.subr.msk.bf16.mxu0 %vm2245_vm3, %v2290_v28  ;;  %v3501_v33 = vsel %vm2245_vm3, %v2290_v28, 0  ;;  %v4455_v28 = vld [vmem:[%s5177_s3 + $0x8] sm:$0xff]  }
 0x4cf   : > { %4359 = vmatpush3.bf16.xpose.msra.mxu0 %v3501_v33  ;;  %v4456_v33 = vld [vmem:[%s5177_s3 + $0x10] sm:$0xff]  }
 0x4d1   : > { %v4473_v2 = vpop.eup %4472 }
 0x4d2   : > { %v2287_v36 = vmul.f32 %v4473_v2, %v4465_v22  ;;  %v3436_v22 = vcombine.low %v3166_v63, %v3230_v24  ;;  %v4457_v2 = vld [vmem:[%s5177_s3 + $0x18] sm:$0xff]  }
 0x4d4   : > { %v2291_v51 = vpack.c.bf16 %v2287_v36, %v2287_v36  ;;  %v3443_v8 = vrot.slane %v3436_v22, %v4666_v48  ;;  %v4458_v36 = vld [vmem:[%s5177_s3 + $0x20] sm:$0xff]  }
 0x4d6   : > { %4403 = vmatprep.subr.msk.bf16.mxu1 %vm2245_vm3, %v2291_v51  ;;  %v3559_v19 = vsel %vm2245_vm3, %v2291_v51, 0  ;;  %v4459_v51 = vld [vmem:[%s5177_s3 + $0x28] sm:$0xff]  }
 0x4d7   : > { %4365 = vmatpush3.bf16.xpose.msra.mxu1 %v3559_v19 }
 0x4f8   : > { %v2278_v32 = vpop.xlane.xlu0 %2277 }
 0x4f9   : > { %4474 = vrcp.f32 %v2278_v32 }
 0x4fe   : > { %v3246_v44 = vpop.trf.xlu0 }
 0x4ff   : > { %v3394_v56 = vcombine.low %v3182_v58, %v3246_v44 }
 0x500   : > { %v2281_v13 = vpop.xlane.xlu1 %2280 }
 0x501   : > { %v3401_v29 = vrot.slane %v3394_v56, %v4666_v48  ;;  %4476 = vrcp.f32 %v2281_v13 }
 0x503   : > { %v4475_v52 = vpop.eup %4474  ;;  %v3410_v38 = vcombine.low %v3393_v26, %v3401_v29 }
 0x504   : > { %v2288_v6 = vmul.f32 %v4475_v52, %v4467_v42 }
 0x505   : > { %v3417_v16 = vrot.slane %v3410_v38, %v4669_v55 }
 0x506   : > { %v3262_v50 = vpop.trf.xlu1  ;;  %v2292_v25 = vpack.c.bf16 %v2288_v6, %v2288_v6 }
 0x507   : > { %v3418_v34 = vcombine.low %v3409_v40, %v3417_v16  ;;  %v3419_v39 = vcombine.high %v3409_v40, %v3417_v16  ;;  %v3444_v7 = vcombine.low %v3198_v1, %v3262_v50 }
 0x508   : > { %4404 = vmatprep.subr.msk.bf16.mxu0 %vm2245_vm3, %v2292_v25 }
 0x509   : > { %v3451_v30 = vrot.slane %v3444_v7, %v4666_v48  ;;  %v3485_v47 = vshrl.u32 %v3418_v34, 16  ;;  %v3491_v61 = vshrl.u32 %v3419_v39, 16 }
 0x50b   : > { %v4477_v10 = vpop.eup %4476  ;;  %v3460_v35 = vcombine.low %v3443_v8, %v3451_v30 }
 0x50c   : > { %v2289_v9 = vmul.f32 %v4477_v10, %v4469_v53  ;;  %v3617_v53 = vsel %vm2245_vm3, %v2292_v25, 0 }
 0x50d   : > { %v3467_v57 = vrot.slane %v3460_v35, %v4669_v55 }
 0x50e   : > { %v2293_v15 = vpack.c.bf16 %v2289_v9, %v2289_v9 }
 0x50f   : > { %v3468_v42 = vcombine.low %v3459_v27, %v3467_v57  ;;  %v3469_v21 = vcombine.high %v3459_v27, %v3467_v57 }
 0x510   : > { %4405 = vmatprep.subr.msk.bf16.mxu1 %vm2245_vm3, %v2293_v15  ;;  %v3675_v14 = vsel %vm2245_vm3, %v2293_v15, 0 }
 0x511   : > { %v3484_v37 = vpack.i.b16 %v3468_v42, %v3418_v34  ;;  %v3486_v41 = vshrl.u32 %v3468_v42, 16  ;;  %v3490_v49 = vpack.i.b16 %v3469_v21, %v3419_v39  ;;  %v3492_v45 = vshrl.u32 %v3469_v21, 16  ;;  %v4460_v34 = vld [vmem:[%s5177_s3 + $0x30] sm:$0xff]  }
 0x513   : > { %4361 = vmatmul.mubr.msk.bf16.vlgmr.msra.gmra.mrb[4].mxu0 %vm2245_vm3, %v3484_v37  ;;  %v3487_v11 = vpack.i.b16 %v3486_v41, %v3485_v47  ;;  %v3493_v12 = vpack.i.b16 %v3492_v45, %v3491_v61  ;;  %v4461_v47 = vld [vmem:[%s5177_s3 + $0x38] sm:$0xff]  }
 0x514   : > { %4371 = vmatpush3.bf16.xpose.msra.mxu0 %v3617_v53  ;;  %4372 = vmatprep.mubr.msk.bf16.mxu0 %vm2245_vm3, %v3478_v0 }
 0x515   : > { %4367 = vmatmul.mubr.msk.bf16.vlgmr.msra.gmra.mrb[20].mxu1 %vm2245_vm3, %v3487_v11  ;;  %4382 = vmatprep.subr.bf16.mxu0 %v4490_v20 }
 0x516   : > { %4377 = vmatpush3.bf16.xpose.msra.mxu1 %v3675_v14  ;;  %4378 = vmatprep.mubr.msk.bf16.mxu1 %vm2245_vm3, %v5022_v23 }
 0x51b   : > { %4373 = vmatmul.mubr.msk.bf16.vlgmr.msra.gmra.mrb[8].mxu0 %vm2245_vm3, %v3490_v49 }
 0x51c   : > { %4398 = vmatprep.mubr.msk.bf16.mxu0 %vm4491_vm0, %v4490_v20  ;;  %4383 = vmatpush3.bf16.msra.mxu0 %v4454_v5 }
 0x51d   : > { %4379 = vmatmul.mubr.msk.bf16.vlgmr.msra.gmra.mrb[24].mxu1 %vm2245_vm3, %v3493_v12  ;;  %4384 = vmatprep.subr.bf16.mxu0 %v4490_v20 }
 0x520   : > { %4385 = vmatpush3.bf16.msra.mxu0 %v4455_v28 }
 0x521   : > { %4386 = vmatprep.subr.bf16.mxu0 %v4490_v20 }
 0x524   : > { %4387 = vmatpush3.bf16.msra.mxu0 %v4456_v33 }
 0x525   : > { %4388 = vmatprep.subr.bf16.mxu0 %v4490_v20 }
 0x528   : > { %4389 = vmatpush3.bf16.msra.mxu0 %v4457_v2 }
 0x529   : > { %4390 = vmatprep.subr.bf16.mxu0 %v4490_v20 }
 0x52c   : > { %4391 = vmatpush3.bf16.msra.mxu0 %v4458_v36 }
 0x52d   : > { %4392 = vmatprep.subr.bf16.mxu0 %v4490_v20 }
 0x530   : > { %4393 = vmatpush3.bf16.msra.mxu0 %v4459_v51 }
 0x531   : > { %4394 = vmatprep.subr.bf16.mxu0 %v4490_v20 }
 0x534   : > { %4395 = vmatpush3.bf16.msra.mxu0 %v4460_v34 }
 0x535   : > { %4396 = vmatprep.subr.bf16.mxu0 %v4490_v20 }
 0x538   : > { %4397 = vmatpush3.bf16.msra.mxu0 %v4461_v47 }
 0x5e6   : > { %v4362_v46 = vpop.f32.mrb[4].mxu0 }
 0x5e7   : > { %v3537_v60 = vpop.f32.mrb[5].mxu0 }
 0x5e8   : > { %v4368_v0 = vpop.f32.mrb[20].mxu1  ;;  %3726 = vxpose.xlu0.b32.start [1/4] (short) (narrow) %v3537_v60, 8  ;;  %v4363_v18 = vpop.f32.mrb[6].mxu0 }
 0x5e9   : > { %v3540_v54 = vpop.f32.mrb[7].mxu0  ;;  %v3595_v59 = vpop.f32.mrb[21].mxu1 }
 0x5ea   : > { %3758 = vxpose.xlu1.b32.start [1/4] (short) (narrow) %v3595_v59, 8  ;;  %v4369_v62 = vpop.f32.mrb[22].mxu1 }
 0x5eb   : > { %v3598_v58 = vpop.f32.mrb[23].mxu1 }
 0x5ec   : > { %3727 = vxpose.xlu0.b32.cont [2/4] (short) (narrow) %v3540_v54, 8 }
 0x5ee   : > { %3759 = vxpose.xlu1.b32.cont [2/4] (short) (narrow) %v3598_v58, 8  ;;  %v4374_v23 = vpop.f32.mrb[8].mxu0  ;;  %v4251_v58 = vld [vmem:[%s5178_s4] ss:$0 sm:$0xff] }
 0x5ef   : > { %v3653_v63 = vpop.f32.mrb[9].mxu0 }
 0x5f0   : > { %v4380_v31 = vpop.f32.mrb[24].mxu1  ;;  %3728 = vxpose.xlu0.b32.cont [3/4] (short) (narrow) %v4362_v46, 8  ;;  %v4375_v1 = vpop.f32.mrb[10].mxu0 }
 0x5f1   : > { %v3656_v17 = vpop.f32.mrb[11].mxu0  ;;  %v3711_v24 = vpop.f32.mrb[25].mxu1 }
 0x5f2   : > { %3760 = vxpose.xlu1.b32.cont [3/4] (short) (narrow) %v4368_v0, 8  ;;  %v4381_v3 = vpop.f32.mrb[26].mxu1 }
 0x5f3   : > { %v3714_v4 = vpop.f32.mrb[27].mxu1 }
 0x5f4   : > { %3729 = vxpose.xlu0.b32.end [4/4] (short) (narrow) %v4363_v18, 8 }
 0x5f6   : > { %3761 = vxpose.xlu1.b32.end [4/4] (short) (narrow) %v4369_v62, 8 }
 0x5f8   : > { %3790 = vxpose.xlu0.b32.start [1/4] (short) (narrow) %v3653_v63, 8 }
 0x5fa   : > { %3822 = vxpose.xlu1.b32.start [1/4] (short) (narrow) %v3711_v24, 8 }
 0x5fc   : > { %3791 = vxpose.xlu0.b32.cont [2/4] (short) (narrow) %v3656_v17, 8  ;;  %v4480_v17 = vld [vmem:[%s4599_s15] sm:$0xff] }
 0x5fe   : > { %3823 = vxpose.xlu1.b32.cont [2/4] (short) (narrow) %v3714_v4, 8 }
 0x600   : > { %3792 = vxpose.xlu0.b32.cont [3/4] (short) (narrow) %v4374_v23, 8 }
 0x602   : > { %3824 = vxpose.xlu1.b32.cont [3/4] (short) (narrow) %v4380_v31, 8 }
 0x604   : > { %3793 = vxpose.xlu0.b32.end [4/4] (short) (narrow) %v4375_v1, 8 }
 0x606   : > { %3825 = vxpose.xlu1.b32.end [4/4] (short) (narrow) %v4381_v3, 8 }
 0x668   : > { %v3742_v19 = vpop.trf.xlu0 }
 0x66a   : > { %v3774_v32 = vpop.trf.xlu1 }
 0x678   : > { %v3806_v43 = vpop.trf.xlu0 }
 0x679   : > { %v3854_v44 = vcombine.low %v3742_v19, %v3806_v43  ;;  %v3855_v56 = vcombine.high %v3742_v19, %v3806_v43 }
 0x67a   : > { %v3838_v13 = vpop.trf.xlu1 }
 0x67b   : > { %v3870_v26 = vcombine.low %v3774_v32, %v3838_v13  ;;  %v3871_v29 = vcombine.high %v3774_v32, %v3838_v13  ;;  %v3862_v52 = vrot.slane %v3854_v44, %v4666_v48  ;;  %v3869_v38 = vrot.slane %v3855_v56, %v4666_v48  ;;  %v4260_v32 = vld [vmem:[%s5179_s5] ss:$0 sm:$0xff] }
 0x67c   : > { %v4261_v44 = vld [vmem:[%s5180_s6] ss:$0 sm:$0xff] }
 0x67d   : > { %v3878_v6 = vrot.slane %v3870_v26, %v4666_v48  ;;  %v3885_v40 = vrot.slane %v3871_v29, %v4666_v48 }
 0x67f   : > { %v3886_v22 = vcombine.low %v3862_v52, %v3878_v6  ;;  %v3887_v16 = vcombine.high %v3862_v52, %v3878_v6  ;;  %v3902_v50 = vcombine.low %v3869_v38, %v3885_v40  ;;  %v3903_v25 = vcombine.high %v3869_v38, %v3885_v40 }
 0x681   : > { %v3894_v39 = vrot.slane %v3886_v22, %v4669_v55  ;;  %v3901_v7 = vrot.slane %v3887_v16, %v4669_v55  ;;  %v3910_v8 = vrot.slane %v3902_v50, %v4669_v55  ;;  %v3917_v30 = vrot.slane %v3903_v25, %v4669_v55 }
 0x683   : > { %v3922_v10 = vcombine.low %v3894_v39, %v3901_v7  ;;  %v4249_v35 = vcombine.high %v3894_v39, %v3901_v7  ;;  %v3938_v9 = vcombine.low %v3910_v8, %v3917_v30  ;;  %v4250_v27 = vcombine.high %v3910_v8, %v3917_v30 }
 0x685   : > { %v3929_v57 = vrot.slane %v3922_v10, %v4666_v48  ;;  %v3937_v15 = vrot.slane %v4249_v35, %v4666_v48  ;;  %v3945_v42 = vrot.slane %v3938_v9, %v4666_v48  ;;  %v3953_v21 = vrot.slane %v4250_v27, %v4666_v48 }
 0x687   : > { %v3955_v61 = vcombine.high %v3929_v57, %v3937_v15  ;;  %v3971_v37 = vcombine.high %v3945_v42, %v3953_v21  ;;  %v3954_v41 = vcombine.low %v3929_v57, %v3937_v15  ;;  %v3970_v49 = vcombine.low %v3945_v42, %v3953_v21 }
 0x689   : > { %v3969_v45 = vrot.slane %v3955_v61, %v4669_v55  ;;  %v3985_v20 = vrot.slane %v3971_v37, %v4669_v55  ;;  %v3962_v53 = vrot.slane %v3954_v41, %v4669_v55  ;;  %v3978_v11 = vrot.slane %v3970_v49, %v4669_v55 }
 0x68b   : > { %v3988_v12 = vcombine.low %v3969_v45, %v3985_v20  ;;  %v3987_v14 = vcombine.high %v3962_v53, %v3978_v11  ;;  %v3986_v48 = vcombine.low %v3962_v53, %v3978_v11  ;;  %v3989_v46 = vcombine.high %v3969_v45, %v3985_v20 }
 0x68d   : > { %3995 = vrot.lane.b32.xlu1 %v3988_v12, %s4494_s20  ;;  %3991 = vrot.lane.b32.xlu0 %v3987_v14, %s4492_s17 }
 0x691   : > { %3999 = vrot.lane.b32.xlu1 %v3989_v46, %s4493_s18 }
 0x6ff   : > { %v3996_v60 = vpop.permute.xlu1 %3995  ;;  %v3992_v0 = vpop.permute.xlu0 %3991 }
 0x700   : > { %v4002_v18 = vsel %vm2063_vm1, %v3986_v48, %v3992_v0 }
 0x701   : > { %v4004_v59 = vsel %vm4003_vm4, %v4002_v18, %v3996_v60 }
 0x703   : > { %v4000_v54 = vpop.permute.xlu1 %3999 }
 0x704   : > { %v4006_v55 = vsel %vm4005_vm5, %v4004_v59, %v4000_v54 }
 0x705   : > { %v4007_v62 = vpack.c.bf16 %v4006_v55, %v4006_v55 }
 0x707   : > { %4399 = vmatmul.mubr.bf16.vlgmr.msra.gmra.mrb[12].mxu0 %v4007_v62 }
 0x7da   : > { %v4113_v23 = vpop.f32.mrb[12].mxu0 }
 0x7db   : > { %v4114_v63 = vadd.f32 %v4251_v58, %v4113_v23  ;;  %v4400_v31 = vpop.f32.mrb[13].mxu0 }
 0x7dc   : > { %v4116_v1 = vpop.f32.mrb[14].mxu0 }
 0x7dd   : > { %v4119_v24 = vadd.f32 %v4480_v17, %v4114_v63  ;;  %v4401_v3 = vpop.f32.mrb[15].mxu0 }
 0x7df   : > { %4122 = vadd.xlane.f32.xlu0 %v4119_v24 }
 0x86c   : > { %v4123_v4 = vpop.xlane.xlu0 %4122 }
 0x86d   : > { %v4125_v5 = vmul.f32 0.0078125, %v4123_v4 }
 0x86f   : > { %v4126_v28 = vsub.f32 %v4119_v24, %v4125_v5 }
 0x871   : > { %v4127_v33 = vmul.f32 %v4126_v28, %v4126_v28 }
 0x873   : > { %4128 = vadd.xlane.f32.xlu1 %v4127_v33 }
 0x900   : > { %v4129_v2 = vpop.xlane.xlu1 %4128 }
 0x901   : > { %v4130_v36 = vmul.f32 0.0078125, %v4129_v2 }
 0x903   : > { %v4131_v51 = vadd.f32 1e-05, %v4130_v36 }
 0x905   : > { %4478 = vrsqrt.f32 %v4131_v51 }
 0x90f   : > { %v4479_v19 = vpop.eup %4478 }
 0x910   : > { %v4133_v43 = vmul.f32 %v4479_v19, %v4126_v28 }
 0x912   : > { %v4140_v56 = vmul.f32 %v4260_v32, %v4133_v43 }
 0x914   : > { %v4147_v13 = vadd.f32 %v4261_v44, %v4140_v56 }
 0x916   : > { %4148 = vst [vmem:[%s273_s27] sm:$0xff] %v4147_v13 }
 0x917 PF: > { %s17_s24 = sadd.s32 1, %s4487_s24  }
 0x918   : > { %p14_p4 = scmp.ge.s32.totalorder %s17_s24, 4  }
 0x91a   :  { %16 = sbr.rel (!%p14_p4) target bundleno = 1 (0x1), region = 78 }

</bundles_post_ra>
